<compile_context>
chip_gen: v7x
topology: tpu7x:2x2x1
jax: 0.10.0
libtpu: 0.0.40
codegen_flags: <defaults>
</compile_context>

<pallas_src>
import jax
import jax.numpy as jnp
import numpy as np
from jax import lax
from jax.experimental import pallas as pl
from jax.experimental.pallas import tpu as pltpu


def _shift_lanes(x, off):
    """out[:, r] = x[:, r + off] (circular over the logical lane dim).

    Expressed as static slice + concat so it lowers to plain lane rotates
    (XLU slot); rows that wrap are never consumed downstream.
    """
    if off == 0:
        return x
    return jnp.concatenate([x[:, off:], x[:, :off]], axis=1)


# -----------------------------------------------------------------------------
# Fused kernel: one grid step = one batch tile of `bt` images.
#   p_ref   : (bt, 9, 676) bf16  conv1 im2col patches (tap = kh*3+kw on dim 1,
#                                spatial r = h*26+w on lanes)
#   w1c_ref : (32, 9)   bf16     conv1 weight, [co, kh*3+kw]
#   b1c_ref : (32, 1)   f32
#   w2c_ref : (64, 288) bf16     conv2 weight, [co, (kh*3+kw)*32 + ci]
#   b2c_ref : (64, 1)   f32
#   sel_ref : (676,144) bf16     0/1 selector: lane 52*ph+2*pw -> ph*12+pw
#   w1f_ref : (9216, H) bf16     fc1 weight (rows in PyTorch flatten order)
#   b1f_ref : (1, H)    f32
#   w2f_ref : (H, 10)   bf16
#   b2f_ref : (1, 10)   f32
#   out_ref : (bt, 10)  f32      fc2 logits
#   e1_ref  : (bt, H)   f32      relu(fc1) embedding
# -----------------------------------------------------------------------------
def fused_net1_kernel(p_ref, w1c_ref, b1c_ref, w2c_ref, b2c_ref, sel_ref,
                      w1f_ref, b1f_ref, w2f_ref, b2f_ref, out_ref, e1_ref):
    bt = p_ref.shape[0]
    w1c = w1c_ref[...]
    b1c = b1c_ref[...]
    w2c = w2c_ref[...]
    b2c = b2c_ref[...]
    sel = sel_ref[...]

    feat_rows = []
    for b in range(bt):
        patches = p_ref[b]                                     # (9, 676) bf16

        # conv1 + ReLU: channels on sublanes, spatial r = h*26+w on lanes.
        h1 = jnp.dot(w1c, patches, preferred_element_type=jnp.float32)
        h1 = jnp.maximum(h1 + b1c, 0.0)                        # (32, 676) f32
        h1b = h1.astype(jnp.bfloat16)

        # conv2: 9 lane-shifted taps stacked along sublanes (32-row groups are
        # sublane-aligned, so the concat is free) -> single K=288 GEMM.
        slab = jnp.concatenate(
            [_shift_lanes(h1b, kh * 26 + kw)
             for kh in range(3) for kw in range(3)], axis=0)   # (288, 676)
        h2 = jnp.dot(w2c, slab, preferred_element_type=jnp.float32)
        h2 = jnp.maximum(h2 + b2c, 0.0)                        # (64, 676) f32
        # Lanes with w>=24 or h>=24 hold garbage (finite) values; they are
        # never selected below.

        # 2x2 max pool on the lane axis: neighbour in w is +1, in h is +26.
        m = jnp.maximum(h2, _shift_lanes(h2, 1))
        m = jnp.maximum(m, _shift_lanes(m, 26))                # valid @ 52*ph+2*pw

        # Compact the 144 pooled lanes with a 0/1 selector GEMM (MXU slack).
        pooled = jnp.dot(m.astype(jnp.bfloat16), sel,
                         preferred_element_type=jnp.float32)   # (64, 144)
        pooled = pooled.astype(jnp.bfloat16)

        # Irreducible sublane->lane ravel: channel rows laid side by side give
        # feature index co*144 + ph*12 + pw == PyTorch flatten order.
        feat_rows.append(jnp.concatenate(
            [pooled[c:c + 1, :] for c in range(64)], axis=1))  # (1, 9216)

    feat = jnp.concatenate(feat_rows, axis=0)                  # (bt, 9216) bf16

    # fc head, whole batch tile as one GEMM pair; fc1 weight stays resident.
    e1 = jnp.dot(feat, w1f_ref[...],
                 preferred_element_type=jnp.float32) + b1f_ref[...]
    e1 = jnp.maximum(e1, 0.0)                                  # (bt, H) f32
    e1_ref[...] = e1
    out_ref[...] = jnp.dot(e1.astype(jnp.bfloat16), w2f_ref[...],
                           preferred_element_type=jnp.float32) + b2f_ref[...]


# -----------------------------------------------------------------------------
# One-time (init-time) parameter re-layout + bf16 cast.  Pure re-layout: keeps
# the per-forward path free of XLA transpose/cast kernels.
# -----------------------------------------------------------------------------
def prepare_net1_params(params):
    w1c, b1c, w2c, b2c, w1f, b1f, w2f, b2f = params
    H = w1f.shape[0]
    NC = w2f.shape[0]
    # conv1: OIHW (32,1,3,3) -> [co, kh*3+kw]
    w1k = jnp.asarray(w1c).reshape(32, 9).astype(jnp.bfloat16)
    b1k = jnp.asarray(b1c, jnp.float32).reshape(32, 1)
    # conv2: OIHW (64,32,3,3) -> [co, (kh*3+kw)*32 + ci]
    w2k = (jnp.transpose(jnp.asarray(w2c), (0, 2, 3, 1))
           .reshape(64, 288).astype(jnp.bfloat16))
    b2k = jnp.asarray(b2c, jnp.float32).reshape(64, 1)
    # 0/1 selector compacting pooled lanes 52*ph + 2*pw -> ph*12 + pw (exact in bf16)
    sel = np.zeros((676, 144), np.float32)
    for ph in range(12):
        for pw in range(12):
            sel[52 * ph + 2 * pw, ph * 12 + pw] = 1.0
    selk = jnp.asarray(sel, dtype=jnp.bfloat16)
    # fc1 rows in PyTorch flatten order (co*144 + ph*12 + pw) == our feat order.
    w1fk = jnp.asarray(w1f).T.astype(jnp.bfloat16)             # (9216, H)
    b1fk = jnp.asarray(b1f, jnp.float32).reshape(1, H)
    w2fk = jnp.asarray(w2f).T.astype(jnp.bfloat16)             # (H, NC)
    b2fk = jnp.asarray(b2f, jnp.float32).reshape(1, NC)
    return (w1k, b1k, w2k, b2k, selk, w1fk, b1fk, w2fk, b2fk)


def net1_forward(x, kparams):
    (w1k, b1k, w2k, b2k, selk, w1fk, b1fk, w2fk, b2fk) = kparams
    B = x.shape[0]
    H = w1fk.shape[1]
    NC = w2fk.shape[1]

    # conv1 im2col in the wrapper (pure gather; XLA fuses it into the HBM
    # read).  Lane-dense layout: taps on sublanes, spatial positions on lanes.
    x2 = x[:, 0, :, :]                                         # (B, 28, 28)
    patches = jnp.stack(
        [x2[:, kh:kh + 26, kw:kw + 26].reshape(B, 676)
         for kh in range(3) for kw in range(3)],
        axis=1).astype(jnp.bfloat16)                           # (B, 9, 676)

    # Batch tile: whole batch for small B, otherwise multiples of 8 so the
    # output block's second-to-last dim obeys the (8,128) rule.
    if B <= 8:
        bt = B
    elif B % 8 == 0:
        bt = 8
    else:
        bt = B
    grid = (B // bt,)

    out, e1 = pl.pallas_call(
        fused_net1_kernel,
        out_shape=(jax.ShapeDtypeStruct((B, NC), jnp.float32),
                   jax.ShapeDtypeStruct((B, H), jnp.float32)),
        grid_spec=pltpu.PrefetchScalarGridSpec(
            num_scalar_prefetch=0,
            grid=grid,
            in_specs=[
                pl.BlockSpec((bt, 9, 676), lambda i: (i, 0, 0)),
                pl.BlockSpec((32, 9), lambda i: (0, 0)),
                pl.BlockSpec((32, 1), lambda i: (0, 0)),
                pl.BlockSpec((64, 288), lambda i: (0, 0)),
                pl.BlockSpec((64, 1), lambda i: (0, 0)),
                pl.BlockSpec((676, 144), lambda i: (0, 0)),
                pl.BlockSpec((9216, H), lambda i: (0, 0)),   # resident fc1 wt
                pl.BlockSpec((1, H), lambda i: (0, 0)),
                pl.BlockSpec((H, NC), lambda i: (0, 0)),
                pl.BlockSpec((1, NC), lambda i: (0, 0)),
            ],
            out_specs=(pl.BlockSpec((bt, NC), lambda i: (i, 0)),
                       pl.BlockSpec((bt, H), lambda i: (i, 0))),
        ),
        compiler_params=pltpu.CompilerParams(
            dimension_semantics=("parallel",)),   # batch tiles across TCs
    )(patches, w1k, b1k, w2k, b2k, selk, w1fk, b1fk, w2fk, b2fk)
    return out, e1


# -----------------------------------------------------------------------------
# Pure-JAX reference (matches the PyTorch forward in eval mode).
# -----------------------------------------------------------------------------
def ref_forward(x, params):
    (w1c, b1c, w2c, b2c, w1f, b1f, w2f, b2f) = params
    dn = ("NCHW", "OIHW", "NCHW")
    y = lax.conv_general_dilated(x, w1c, (1, 1), "VALID", dimension_numbers=dn)
    y = jnp.maximum(y + b1c[None, :, None, None], 0.0)
    y = lax.conv_general_dilated(y, w2c, (1, 1), "VALID", dimension_numbers=dn)
    y = jnp.maximum(y + b2c[None, :, None, None], 0.0)
    B, C, Hh, Ww = y.shape
    y = y.reshape(B, C, Hh // 2, 2, Ww // 2, 2).max(axis=(3, 5))
    y = y.reshape(B, -1)                                       # (B, 9216)
    e1 = jnp.maximum(y @ w1f.T + b1f, 0.0)
    out = e1 @ w2f.T + b2f
    return out, e1


if __name__ == "__main__":
    key = jax.random.PRNGKey(0)
    kx, *kp = jax.random.split(key, 9)

    def uinit(k, shape, fan_in):
        bound = 1.0 / np.sqrt(fan_in)
        return jax.random.uniform(k, shape, jnp.float32, -bound, bound)

    # Net1(num_hide=128) parameter shapes, deterministic init.
    params = (
        uinit(kp[0], (32, 1, 3, 3), 9),      # conv1.weight
        uinit(kp[1], (32,), 9),              # conv1.bias
        uinit(kp[2], (64, 32, 3, 3), 288),   # conv2.weight
        uinit(kp[3], (64,), 288),            # conv2.bias
        uinit(kp[4], (128, 9216), 9216),     # fc1.weight
        uinit(kp[5], (128,), 9216),          # fc1.bias
        uinit(kp[6], (10, 128), 128),        # fc2.weight
        uinit(kp[7], (10,), 128),            # fc2.bias
    )

    # 9216 = 64 * 12 * 12 forces 28x28 single-channel input; batch = 2.
    x = jax.random.normal(kx, (2, 1, 28, 28), jnp.float32)

    # One-time parameter re-layout / bf16 cast (outside the forward path).
    kparams = jax.block_until_ready(prepare_net1_params(params))

    out, e1 = jax.jit(net1_forward)(x, kparams)
    jax.block_until_ready((out, e1))

    ref_out, ref_e1 = ref_forward(x, params)
    assert out.shape == (2, 10) and e1.shape == (2, 128)
    # bf16 MXU operands with f32 accumulation: observed error is O(1e-3).
    np.testing.assert_allclose(np.asarray(out), np.asarray(ref_out),
                               rtol=2e-2, atol=2e-2)
    np.testing.assert_allclose(np.asarray(e1), np.asarray(ref_e1),
                               rtol=2e-2, atol=2e-2)
    print("KERNEL_OK")
</pallas_src>

<mosaic_0001>
module attributes {stable_mosaic.version = 11 : i64} {
  func.func @fused_net1_kernel(%arg0: i32, %arg1: memref<2x9x676xbf16, #tpu.memory_space<vmem>>, %arg2: memref<32x9xbf16, #tpu.memory_space<vmem>>, %arg3: memref<32x1xf32, #tpu.memory_space<vmem>>, %arg4: memref<64x288xbf16, #tpu.memory_space<vmem>>, %arg5: memref<64x1xf32, #tpu.memory_space<vmem>>, %arg6: memref<676x144xbf16, #tpu.memory_space<vmem>>, %arg7: memref<9216x128xbf16, #tpu.memory_space<vmem>>, %arg8: memref<1x128xf32, #tpu.memory_space<vmem>>, %arg9: memref<128x10xbf16, #tpu.memory_space<vmem>>, %arg10: memref<1x10xf32, #tpu.memory_space<vmem>>, %arg11: memref<2x10xf32, #tpu.memory_space<vmem>>, %arg12: memref<2x128xf32, #tpu.memory_space<vmem>>) attributes {dimension_semantics = [#tpu.dimension_semantics<parallel>], iteration_bounds = array<i64: 1>, scalar_prefetch = 0 : i64, scratch_operands = 0 : i64, tpu.core_type = #tpu.core_type<tc>, window_params = [{transform_indices = @transform_0, window_bounds = array<i64: 2, 9, 676>}, {pipeline_mode = #tpu.pipeline_mode<synchronous>, transform_indices = @transform_1, window_bounds = array<i64: 32, 9>}, {pipeline_mode = #tpu.pipeline_mode<synchronous>, transform_indices = @transform_2, window_bounds = array<i64: 32, 1>}, {pipeline_mode = #tpu.pipeline_mode<synchronous>, transform_indices = @transform_3, window_bounds = array<i64: 64, 288>}, {pipeline_mode = #tpu.pipeline_mode<synchronous>, transform_indices = @transform_4, window_bounds = array<i64: 64, 1>}, {pipeline_mode = #tpu.pipeline_mode<synchronous>, transform_indices = @transform_5, window_bounds = array<i64: 676, 144>}, {pipeline_mode = #tpu.pipeline_mode<synchronous>, transform_indices = @transform_6, window_bounds = array<i64: 9216, 128>}, {pipeline_mode = #tpu.pipeline_mode<synchronous>, transform_indices = @transform_7, window_bounds = array<i64: 1, 128>}, {pipeline_mode = #tpu.pipeline_mode<synchronous>, transform_indices = @transform_8, window_bounds = array<i64: 128, 10>}, {pipeline_mode = #tpu.pipeline_mode<synchronous>, transform_indices = @transform_9, window_bounds = array<i64: 1, 10>}, {transform_indices = @transform_10, window_bounds = array<i64: 2, 10>}, {transform_indices = @transform_11, window_bounds = array<i64: 2, 128>}]} {
    %c0 = arith.constant 0 : index
    %c0_0 = arith.constant 0 : index
    %0 = vector.load %arg2[%c0, %c0_0] : memref<32x9xbf16, #tpu.memory_space<vmem>>, vector<32x9xbf16>
    %c0_1 = arith.constant 0 : index
    %c0_2 = arith.constant 0 : index
    %1 = vector.load %arg3[%c0_1, %c0_2] : memref<32x1xf32, #tpu.memory_space<vmem>>, vector<32x1xf32>
    %c0_3 = arith.constant 0 : index
    %c0_4 = arith.constant 0 : index
    %2 = vector.load %arg4[%c0_3, %c0_4] : memref<64x288xbf16, #tpu.memory_space<vmem>>, vector<64x288xbf16>
    %c0_5 = arith.constant 0 : index
    %c0_6 = arith.constant 0 : index
    %3 = vector.load %arg5[%c0_5, %c0_6] : memref<64x1xf32, #tpu.memory_space<vmem>>, vector<64x1xf32>
    %c0_7 = arith.constant 0 : index
    %c0_8 = arith.constant 0 : index
    %4 = vector.load %arg6[%c0_7, %c0_8] : memref<676x144xbf16, #tpu.memory_space<vmem>>, vector<676x144xbf16>
    %c0_9 = arith.constant 0 : index
    %c0_10 = arith.constant 0 : index
    %c0_11 = arith.constant 0 : index
    %5 = vector.load %arg1[%c0_9, %c0_10, %c0_11] : memref<2x9x676xbf16, #tpu.memory_space<vmem>>, vector<1x9x676xbf16>
    %6 = vector.shape_cast %5 : vector<1x9x676xbf16> to vector<9x676xbf16>
    %cst = arith.constant dense<0.000000e+00> : vector<32x676xf32>
    %7 = tpu.matmul %0, %6, %cst {dimension_numbers = #tpu.dot_dimension_numbers<[1], [0], [0], [1], [0, 0, 1, 1], [], []>} : vector<32x9xbf16>, vector<9x676xbf16>, vector<32x676xf32> -> vector<32x676xf32>
    %8 = vector.broadcast %1 : vector<32x1xf32> to vector<32x676xf32>
    %9 = arith.addf %7, %8 : vector<32x676xf32>
    %cst_12 = arith.constant 0.000000e+00 : f32
    %10 = vector.broadcast %cst_12 : f32 to vector<32x676xf32>
    %11 = arith.maximumf %9, %10 : vector<32x676xf32>
    %12 = arith.truncf %11 : vector<32x676xf32> to vector<32x676xbf16>
    %13 = vector.extract_strided_slice %12 {offsets = [0, 1], sizes = [32, 675], strides = [1, 1]} : vector<32x676xbf16> to vector<32x675xbf16>
    %14 = vector.extract_strided_slice %12 {offsets = [0, 0], sizes = [32, 1], strides = [1, 1]} : vector<32x676xbf16> to vector<32x1xbf16>
    %15 = tpu.concatenate %13, %14 in 1 : vector<32x675xbf16>, vector<32x1xbf16> -> vector<32x676xbf16>
    %16 = vector.extract_strided_slice %12 {offsets = [0, 2], sizes = [32, 674], strides = [1, 1]} : vector<32x676xbf16> to vector<32x674xbf16>
    %17 = vector.extract_strided_slice %12 {offsets = [0, 0], sizes = [32, 2], strides = [1, 1]} : vector<32x676xbf16> to vector<32x2xbf16>
    %18 = tpu.concatenate %16, %17 in 1 : vector<32x674xbf16>, vector<32x2xbf16> -> vector<32x676xbf16>
    %19 = vector.extract_strided_slice %12 {offsets = [0, 26], sizes = [32, 650], strides = [1, 1]} : vector<32x676xbf16> to vector<32x650xbf16>
    %20 = vector.extract_strided_slice %12 {offsets = [0, 0], sizes = [32, 26], strides = [1, 1]} : vector<32x676xbf16> to vector<32x26xbf16>
    %21 = tpu.concatenate %19, %20 in 1 : vector<32x650xbf16>, vector<32x26xbf16> -> vector<32x676xbf16>
    %22 = vector.extract_strided_slice %12 {offsets = [0, 27], sizes = [32, 649], strides = [1, 1]} : vector<32x676xbf16> to vector<32x649xbf16>
    %23 = vector.extract_strided_slice %12 {offsets = [0, 0], sizes = [32, 27], strides = [1, 1]} : vector<32x676xbf16> to vector<32x27xbf16>
    %24 = tpu.concatenate %22, %23 in 1 : vector<32x649xbf16>, vector<32x27xbf16> -> vector<32x676xbf16>
    %25 = vector.extract_strided_slice %12 {offsets = [0, 28], sizes = [32, 648], strides = [1, 1]} : vector<32x676xbf16> to vector<32x648xbf16>
    %26 = vector.extract_strided_slice %12 {offsets = [0, 0], sizes = [32, 28], strides = [1, 1]} : vector<32x676xbf16> to vector<32x28xbf16>
    %27 = tpu.concatenate %25, %26 in 1 : vector<32x648xbf16>, vector<32x28xbf16> -> vector<32x676xbf16>
    %28 = vector.extract_strided_slice %12 {offsets = [0, 52], sizes = [32, 624], strides = [1, 1]} : vector<32x676xbf16> to vector<32x624xbf16>
    %29 = vector.extract_strided_slice %12 {offsets = [0, 0], sizes = [32, 52], strides = [1, 1]} : vector<32x676xbf16> to vector<32x52xbf16>
    %30 = tpu.concatenate %28, %29 in 1 : vector<32x624xbf16>, vector<32x52xbf16> -> vector<32x676xbf16>
    %31 = vector.extract_strided_slice %12 {offsets = [0, 53], sizes = [32, 623], strides = [1, 1]} : vector<32x676xbf16> to vector<32x623xbf16>
    %32 = vector.extract_strided_slice %12 {offsets = [0, 0], sizes = [32, 53], strides = [1, 1]} : vector<32x676xbf16> to vector<32x53xbf16>
    %33 = tpu.concatenate %31, %32 in 1 : vector<32x623xbf16>, vector<32x53xbf16> -> vector<32x676xbf16>
    %34 = vector.extract_strided_slice %12 {offsets = [0, 54], sizes = [32, 622], strides = [1, 1]} : vector<32x676xbf16> to vector<32x622xbf16>
    %35 = vector.extract_strided_slice %12 {offsets = [0, 0], sizes = [32, 54], strides = [1, 1]} : vector<32x676xbf16> to vector<32x54xbf16>
    %36 = tpu.concatenate %34, %35 in 1 : vector<32x622xbf16>, vector<32x54xbf16> -> vector<32x676xbf16>
    %37 = tpu.concatenate %12, %15, %18, %21, %24, %27, %30, %33, %36 in 0 : vector<32x676xbf16>, vector<32x676xbf16>, vector<32x676xbf16>, vector<32x676xbf16>, vector<32x676xbf16>, vector<32x676xbf16>, vector<32x676xbf16>, vector<32x676xbf16>, vector<32x676xbf16> -> vector<288x676xbf16>
    %cst_13 = arith.constant dense<0.000000e+00> : vector<64x676xf32>
    %38 = tpu.matmul %2, %37, %cst_13 {dimension_numbers = #tpu.dot_dimension_numbers<[1], [0], [0], [1], [0, 0, 1, 1], [], []>} : vector<64x288xbf16>, vector<288x676xbf16>, vector<64x676xf32> -> vector<64x676xf32>
    %39 = vector.broadcast %3 : vector<64x1xf32> to vector<64x676xf32>
    %40 = arith.addf %38, %39 : vector<64x676xf32>
    %cst_14 = arith.constant 0.000000e+00 : f32
    %41 = vector.broadcast %cst_14 : f32 to vector<64x676xf32>
    %42 = arith.maximumf %40, %41 : vector<64x676xf32>
    %43 = vector.extract_strided_slice %42 {offsets = [0, 1], sizes = [64, 675], strides = [1, 1]} : vector<64x676xf32> to vector<64x675xf32>
    %44 = vector.extract_strided_slice %42 {offsets = [0, 0], sizes = [64, 1], strides = [1, 1]} : vector<64x676xf32> to vector<64x1xf32>
    %45 = tpu.concatenate %43, %44 in 1 : vector<64x675xf32>, vector<64x1xf32> -> vector<64x676xf32>
    %46 = arith.maximumf %42, %45 : vector<64x676xf32>
    %47 = vector.extract_strided_slice %46 {offsets = [0, 26], sizes = [64, 650], strides = [1, 1]} : vector<64x676xf32> to vector<64x650xf32>
    %48 = vector.extract_strided_slice %46 {offsets = [0, 0], sizes = [64, 26], strides = [1, 1]} : vector<64x676xf32> to vector<64x26xf32>
    %49 = tpu.concatenate %47, %48 in 1 : vector<64x650xf32>, vector<64x26xf32> -> vector<64x676xf32>
    %50 = arith.maximumf %46, %49 : vector<64x676xf32>
    %51 = arith.truncf %50 : vector<64x676xf32> to vector<64x676xbf16>
    %cst_15 = arith.constant dense<0.000000e+00> : vector<64x144xf32>
    %52 = tpu.matmul %51, %4, %cst_15 {dimension_numbers = #tpu.dot_dimension_numbers<[1], [0], [0], [1], [0, 0, 1, 1], [], []>} : vector<64x676xbf16>, vector<676x144xbf16>, vector<64x144xf32> -> vector<64x144xf32>
    %53 = arith.truncf %52 : vector<64x144xf32> to vector<64x144xbf16>
    %54 = vector.extract_strided_slice %53 {offsets = [0, 0], sizes = [1, 144], strides = [1, 1]} : vector<64x144xbf16> to vector<1x144xbf16>
    %55 = vector.extract_strided_slice %53 {offsets = [1, 0], sizes = [1, 144], strides = [1, 1]} : vector<64x144xbf16> to vector<1x144xbf16>
    %56 = vector.extract_strided_slice %53 {offsets = [2, 0], sizes = [1, 144], strides = [1, 1]} : vector<64x144xbf16> to vector<1x144xbf16>
    %57 = vector.extract_strided_slice %53 {offsets = [3, 0], sizes = [1, 144], strides = [1, 1]} : vector<64x144xbf16> to vector<1x144xbf16>
    %58 = vector.extract_strided_slice %53 {offsets = [4, 0], sizes = [1, 144], strides = [1, 1]} : vector<64x144xbf16> to vector<1x144xbf16>
    %59 = vector.extract_strided_slice %53 {offsets = [5, 0], sizes = [1, 144], strides = [1, 1]} : vector<64x144xbf16> to vector<1x144xbf16>
    %60 = vector.extract_strided_slice %53 {offsets = [6, 0], sizes = [1, 144], strides = [1, 1]} : vector<64x144xbf16> to vector<1x144xbf16>
    %61 = vector.extract_strided_slice %53 {offsets = [7, 0], sizes = [1, 144], strides = [1, 1]} : vector<64x144xbf16> to vector<1x144xbf16>
    %62 = vector.extract_strided_slice %53 {offsets = [8, 0], sizes = [1, 144], strides = [1, 1]} : vector<64x144xbf16> to vector<1x144xbf16>
    %63 = vector.extract_strided_slice %53 {offsets = [9, 0], sizes = [1, 144], strides = [1, 1]} : vector<64x144xbf16> to vector<1x144xbf16>
    %64 = vector.extract_strided_slice %53 {offsets = [10, 0], sizes = [1, 144], strides = [1, 1]} : vector<64x144xbf16> to vector<1x144xbf16>
    %65 = vector.extract_strided_slice %53 {offsets = [11, 0], sizes = [1, 144], strides = [1, 1]} : vector<64x144xbf16> to vector<1x144xbf16>
    %66 = vector.extract_strided_slice %53 {offsets = [12, 0], sizes = [1, 144], strides = [1, 1]} : vector<64x144xbf16> to vector<1x144xbf16>
    %67 = vector.extract_strided_slice %53 {offsets = [13, 0], sizes = [1, 144], strides = [1, 1]} : vector<64x144xbf16> to vector<1x144xbf16>
    %68 = vector.extract_strided_slice %53 {offsets = [14, 0], sizes = [1, 144], strides = [1, 1]} : vector<64x144xbf16> to vector<1x144xbf16>
    %69 = vector.extract_strided_slice %53 {offsets = [15, 0], sizes = [1, 144], strides = [1, 1]} : vector<64x144xbf16> to vector<1x144xbf16>
    %70 = vector.extract_strided_slice %53 {offsets = [16, 0], sizes = [1, 144], strides = [1, 1]} : vector<64x144xbf16> to vector<1x144xbf16>
    %71 = vector.extract_strided_slice %53 {offsets = [17, 0], sizes = [1, 144], strides = [1, 1]} : vector<64x144xbf16> to vector<1x144xbf16>
    %72 = vector.extract_strided_slice %53 {offsets = [18, 0], sizes = [1, 144], strides = [1, 1]} : vector<64x144xbf16> to vector<1x144xbf16>
    %73 = vector.extract_strided_slice %53 {offsets = [19, 0], sizes = [1, 144], strides = [1, 1]} : vector<64x144xbf16> to vector<1x144xbf16>
    %74 = vector.extract_strided_slice %53 {offsets = [20, 0], sizes = [1, 144], strides = [1, 1]} : vector<64x144xbf16> to vector<1x144xbf16>
    %75 = vector.extract_strided_slice %53 {offsets = [21, 0], sizes = [1, 144], strides = [1, 1]} : vector<64x144xbf16> to vector<1x144xbf16>
    %76 = vector.extract_strided_slice %53 {offsets = [22, 0], sizes = [1, 144], strides = [1, 1]} : vector<64x144xbf16> to vector<1x144xbf16>
    %77 = vector.extract_strided_slice %53 {offsets = [23, 0], sizes = [1, 144], strides = [1, 1]} : vector<64x144xbf16> to vector<1x144xbf16>
    %78 = vector.extract_strided_slice %53 {offsets = [24, 0], sizes = [1, 144], strides = [1, 1]} : vector<64x144xbf16> to vector<1x144xbf16>
    %79 = vector.extract_strided_slice %53 {offsets = [25, 0], sizes = [1, 144], strides = [1, 1]} : vector<64x144xbf16> to vector<1x144xbf16>
    %80 = vector.extract_strided_slice %53 {offsets = [26, 0], sizes = [1, 144], strides = [1, 1]} : vector<64x144xbf16> to vector<1x144xbf16>
    %81 = vector.extract_strided_slice %53 {offsets = [27, 0], sizes = [1, 144], strides = [1, 1]} : vector<64x144xbf16> to vector<1x144xbf16>
    %82 = vector.extract_strided_slice %53 {offsets = [28, 0], sizes = [1, 144], strides = [1, 1]} : vector<64x144xbf16> to vector<1x144xbf16>
    %83 = vector.extract_strided_slice %53 {offsets = [29, 0], sizes = [1, 144], strides = [1, 1]} : vector<64x144xbf16> to vector<1x144xbf16>
    %84 = vector.extract_strided_slice %53 {offsets = [30, 0], sizes = [1, 144], strides = [1, 1]} : vector<64x144xbf16> to vector<1x144xbf16>
    %85 = vector.extract_strided_slice %53 {offsets = [31, 0], sizes = [1, 144], strides = [1, 1]} : vector<64x144xbf16> to vector<1x144xbf16>
    %86 = vector.extract_strided_slice %53 {offsets = [32, 0], sizes = [1, 144], strides = [1, 1]} : vector<64x144xbf16> to vector<1x144xbf16>
    %87 = vector.extract_strided_slice %53 {offsets = [33, 0], sizes = [1, 144], strides = [1, 1]} : vector<64x144xbf16> to vector<1x144xbf16>
    %88 = vector.extract_strided_slice %53 {offsets = [34, 0], sizes = [1, 144], strides = [1, 1]} : vector<64x144xbf16> to vector<1x144xbf16>
    %89 = vector.extract_strided_slice %53 {offsets = [35, 0], sizes = [1, 144], strides = [1, 1]} : vector<64x144xbf16> to vector<1x144xbf16>
    %90 = vector.extract_strided_slice %53 {offsets = [36, 0], sizes = [1, 144], strides = [1, 1]} : vector<64x144xbf16> to vector<1x144xbf16>
    %91 = vector.extract_strided_slice %53 {offsets = [37, 0], sizes = [1, 144], strides = [1, 1]} : vector<64x144xbf16> to vector<1x144xbf16>
    %92 = vector.extract_strided_slice %53 {offsets = [38, 0], sizes = [1, 144], strides = [1, 1]} : vector<64x144xbf16> to vector<1x144xbf16>
    %93 = vector.extract_strided_slice %53 {offsets = [39, 0], sizes = [1, 144], strides = [1, 1]} : vector<64x144xbf16> to vector<1x144xbf16>
    %94 = vector.extract_strided_slice %53 {offsets = [40, 0], sizes = [1, 144], strides = [1, 1]} : vector<64x144xbf16> to vector<1x144xbf16>
    %95 = vector.extract_strided_slice %53 {offsets = [41, 0], sizes = [1, 144], strides = [1, 1]} : vector<64x144xbf16> to vector<1x144xbf16>
    %96 = vector.extract_strided_slice %53 {offsets = [42, 0], sizes = [1, 144], strides = [1, 1]} : vector<64x144xbf16> to vector<1x144xbf16>
    %97 = vector.extract_strided_slice %53 {offsets = [43, 0], sizes = [1, 144], strides = [1, 1]} : vector<64x144xbf16> to vector<1x144xbf16>
    %98 = vector.extract_strided_slice %53 {offsets = [44, 0], sizes = [1, 144], strides = [1, 1]} : vector<64x144xbf16> to vector<1x144xbf16>
    %99 = vector.extract_strided_slice %53 {offsets = [45, 0], sizes = [1, 144], strides = [1, 1]} : vector<64x144xbf16> to vector<1x144xbf16>
    %100 = vector.extract_strided_slice %53 {offsets = [46, 0], sizes = [1, 144], strides = [1, 1]} : vector<64x144xbf16> to vector<1x144xbf16>
    %101 = vector.extract_strided_slice %53 {offsets = [47, 0], sizes = [1, 144], strides = [1, 1]} : vector<64x144xbf16> to vector<1x144xbf16>
    %102 = vector.extract_strided_slice %53 {offsets = [48, 0], sizes = [1, 144], strides = [1, 1]} : vector<64x144xbf16> to vector<1x144xbf16>
    %103 = vector.extract_strided_slice %53 {offsets = [49, 0], sizes = [1, 144], strides = [1, 1]} : vector<64x144xbf16> to vector<1x144xbf16>
    %104 = vector.extract_strided_slice %53 {offsets = [50, 0], sizes = [1, 144], strides = [1, 1]} : vector<64x144xbf16> to vector<1x144xbf16>
    %105 = vector.extract_strided_slice %53 {offsets = [51, 0], sizes = [1, 144], strides = [1, 1]} : vector<64x144xbf16> to vector<1x144xbf16>
    %106 = vector.extract_strided_slice %53 {offsets = [52, 0], sizes = [1, 144], strides = [1, 1]} : vector<64x144xbf16> to vector<1x144xbf16>
    %107 = vector.extract_strided_slice %53 {offsets = [53, 0], sizes = [1, 144], strides = [1, 1]} : vector<64x144xbf16> to vector<1x144xbf16>
    %108 = vector.extract_strided_slice %53 {offsets = [54, 0], sizes = [1, 144], strides = [1, 1]} : vector<64x144xbf16> to vector<1x144xbf16>
    %109 = vector.extract_strided_slice %53 {offsets = [55, 0], sizes = [1, 144], strides = [1, 1]} : vector<64x144xbf16> to vector<1x144xbf16>
    %110 = vector.extract_strided_slice %53 {offsets = [56, 0], sizes = [1, 144], strides = [1, 1]} : vector<64x144xbf16> to vector<1x144xbf16>
    %111 = vector.extract_strided_slice %53 {offsets = [57, 0], sizes = [1, 144], strides = [1, 1]} : vector<64x144xbf16> to vector<1x144xbf16>
    %112 = vector.extract_strided_slice %53 {offsets = [58, 0], sizes = [1, 144], strides = [1, 1]} : vector<64x144xbf16> to vector<1x144xbf16>
    %113 = vector.extract_strided_slice %53 {offsets = [59, 0], sizes = [1, 144], strides = [1, 1]} : vector<64x144xbf16> to vector<1x144xbf16>
    %114 = vector.extract_strided_slice %53 {offsets = [60, 0], sizes = [1, 144], strides = [1, 1]} : vector<64x144xbf16> to vector<1x144xbf16>
    %115 = vector.extract_strided_slice %53 {offsets = [61, 0], sizes = [1, 144], strides = [1, 1]} : vector<64x144xbf16> to vector<1x144xbf16>
    %116 = vector.extract_strided_slice %53 {offsets = [62, 0], sizes = [1, 144], strides = [1, 1]} : vector<64x144xbf16> to vector<1x144xbf16>
    %117 = vector.extract_strided_slice %53 {offsets = [63, 0], sizes = [1, 144], strides = [1, 1]} : vector<64x144xbf16> to vector<1x144xbf16>
    %118 = tpu.concatenate %54, %55, %56, %57, %58, %59, %60, %61, %62, %63, %64, %65, %66, %67, %68, %69 in 1 : vector<1x144xbf16>, vector<1x144xbf16>, vector<1x144xbf16>, vector<1x144xbf16>, vector<1x144xbf16>, vector<1x144xbf16>, vector<1x144xbf16>, vector<1x144xbf16>, vector<1x144xbf16>, vector<1x144xbf16>, vector<1x144xbf16>, vector<1x144xbf16>, vector<1x144xbf16>, vector<1x144xbf16>, vector<1x144xbf16>, vector<1x144xbf16> -> vector<1x2304xbf16>
    %119 = tpu.concatenate %70, %71, %72, %73, %74, %75, %76, %77, %78, %79, %80, %81, %82, %83, %84, %85 in 1 : vector<1x144xbf16>, vector<1x144xbf16>, vector<1x144xbf16>, vector<1x144xbf16>, vector<1x144xbf16>, vector<1x144xbf16>, vector<1x144xbf16>, vector<1x144xbf16>, vector<1x144xbf16>, vector<1x144xbf16>, vector<1x144xbf16>, vector<1x144xbf16>, vector<1x144xbf16>, vector<1x144xbf16>, vector<1x144xbf16>, vector<1x144xbf16> -> vector<1x2304xbf16>
    %120 = tpu.concatenate %86, %87, %88, %89, %90, %91, %92, %93, %94, %95, %96, %97, %98, %99, %100, %101 in 1 : vector<1x144xbf16>, vector<1x144xbf16>, vector<1x144xbf16>, vector<1x144xbf16>, vector<1x144xbf16>, vector<1x144xbf16>, vector<1x144xbf16>, vector<1x144xbf16>, vector<1x144xbf16>, vector<1x144xbf16>, vector<1x144xbf16>, vector<1x144xbf16>, vector<1x144xbf16>, vector<1x144xbf16>, vector<1x144xbf16>, vector<1x144xbf16> -> vector<1x2304xbf16>
    %121 = tpu.concatenate %102, %103, %104, %105, %106, %107, %108, %109, %110, %111, %112, %113, %114, %115, %116, %117 in 1 : vector<1x144xbf16>, vector<1x144xbf16>, vector<1x144xbf16>, vector<1x144xbf16>, vector<1x144xbf16>, vector<1x144xbf16>, vector<1x144xbf16>, vector<1x144xbf16>, vector<1x144xbf16>, vector<1x144xbf16>, vector<1x144xbf16>, vector<1x144xbf16>, vector<1x144xbf16>, vector<1x144xbf16>, vector<1x144xbf16>, vector<1x144xbf16> -> vector<1x2304xbf16>
    %122 = tpu.concatenate %118, %119, %120, %121 in 1 : vector<1x2304xbf16>, vector<1x2304xbf16>, vector<1x2304xbf16>, vector<1x2304xbf16> -> vector<1x9216xbf16>
    %c1 = arith.constant 1 : index
    %c0_16 = arith.constant 0 : index
    %c0_17 = arith.constant 0 : index
    %123 = vector.load %arg1[%c1, %c0_16, %c0_17] : memref<2x9x676xbf16, #tpu.memory_space<vmem>>, vector<1x9x676xbf16>
    %124 = vector.shape_cast %123 : vector<1x9x676xbf16> to vector<9x676xbf16>
    %cst_18 = arith.constant dense<0.000000e+00> : vector<32x676xf32>
    %125 = tpu.matmul %0, %124, %cst_18 {dimension_numbers = #tpu.dot_dimension_numbers<[1], [0], [0], [1], [0, 0, 1, 1], [], []>} : vector<32x9xbf16>, vector<9x676xbf16>, vector<32x676xf32> -> vector<32x676xf32>
    %126 = vector.broadcast %1 : vector<32x1xf32> to vector<32x676xf32>
    %127 = arith.addf %125, %126 : vector<32x676xf32>
    %cst_19 = arith.constant 0.000000e+00 : f32
    %128 = vector.broadcast %cst_19 : f32 to vector<32x676xf32>
    %129 = arith.maximumf %127, %128 : vector<32x676xf32>
    %130 = arith.truncf %129 : vector<32x676xf32> to vector<32x676xbf16>
    %131 = vector.extract_strided_slice %130 {offsets = [0, 1], sizes = [32, 675], strides = [1, 1]} : vector<32x676xbf16> to vector<32x675xbf16>
    %132 = vector.extract_strided_slice %130 {offsets = [0, 0], sizes = [32, 1], strides = [1, 1]} : vector<32x676xbf16> to vector<32x1xbf16>
    %133 = tpu.concatenate %131, %132 in 1 : vector<32x675xbf16>, vector<32x1xbf16> -> vector<32x676xbf16>
    %134 = vector.extract_strided_slice %130 {offsets = [0, 2], sizes = [32, 674], strides = [1, 1]} : vector<32x676xbf16> to vector<32x674xbf16>
    %135 = vector.extract_strided_slice %130 {offsets = [0, 0], sizes = [32, 2], strides = [1, 1]} : vector<32x676xbf16> to vector<32x2xbf16>
    %136 = tpu.concatenate %134, %135 in 1 : vector<32x674xbf16>, vector<32x2xbf16> -> vector<32x676xbf16>
    %137 = vector.extract_strided_slice %130 {offsets = [0, 26], sizes = [32, 650], strides = [1, 1]} : vector<32x676xbf16> to vector<32x650xbf16>
    %138 = vector.extract_strided_slice %130 {offsets = [0, 0], sizes = [32, 26], strides = [1, 1]} : vector<32x676xbf16> to vector<32x26xbf16>
    %139 = tpu.concatenate %137, %138 in 1 : vector<32x650xbf16>, vector<32x26xbf16> -> vector<32x676xbf16>
    %140 = vector.extract_strided_slice %130 {offsets = [0, 27], sizes = [32, 649], strides = [1, 1]} : vector<32x676xbf16> to vector<32x649xbf16>
    %141 = vector.extract_strided_slice %130 {offsets = [0, 0], sizes = [32, 27], strides = [1, 1]} : vector<32x676xbf16> to vector<32x27xbf16>
    %142 = tpu.concatenate %140, %141 in 1 : vector<32x649xbf16>, vector<32x27xbf16> -> vector<32x676xbf16>
    %143 = vector.extract_strided_slice %130 {offsets = [0, 28], sizes = [32, 648], strides = [1, 1]} : vector<32x676xbf16> to vector<32x648xbf16>
    %144 = vector.extract_strided_slice %130 {offsets = [0, 0], sizes = [32, 28], strides = [1, 1]} : vector<32x676xbf16> to vector<32x28xbf16>
    %145 = tpu.concatenate %143, %144 in 1 : vector<32x648xbf16>, vector<32x28xbf16> -> vector<32x676xbf16>
    %146 = vector.extract_strided_slice %130 {offsets = [0, 52], sizes = [32, 624], strides = [1, 1]} : vector<32x676xbf16> to vector<32x624xbf16>
    %147 = vector.extract_strided_slice %130 {offsets = [0, 0], sizes = [32, 52], strides = [1, 1]} : vector<32x676xbf16> to vector<32x52xbf16>
    %148 = tpu.concatenate %146, %147 in 1 : vector<32x624xbf16>, vector<32x52xbf16> -> vector<32x676xbf16>
    %149 = vector.extract_strided_slice %130 {offsets = [0, 53], sizes = [32, 623], strides = [1, 1]} : vector<32x676xbf16> to vector<32x623xbf16>
    %150 = vector.extract_strided_slice %130 {offsets = [0, 0], sizes = [32, 53], strides = [1, 1]} : vector<32x676xbf16> to vector<32x53xbf16>
    %151 = tpu.concatenate %149, %150 in 1 : vector<32x623xbf16>, vector<32x53xbf16> -> vector<32x676xbf16>
    %152 = vector.extract_strided_slice %130 {offsets = [0, 54], sizes = [32, 622], strides = [1, 1]} : vector<32x676xbf16> to vector<32x622xbf16>
    %153 = vector.extract_strided_slice %130 {offsets = [0, 0], sizes = [32, 54], strides = [1, 1]} : vector<32x676xbf16> to vector<32x54xbf16>
    %154 = tpu.concatenate %152, %153 in 1 : vector<32x622xbf16>, vector<32x54xbf16> -> vector<32x676xbf16>
    %155 = tpu.concatenate %130, %133, %136, %139, %142, %145, %148, %151, %154 in 0 : vector<32x676xbf16>, vector<32x676xbf16>, vector<32x676xbf16>, vector<32x676xbf16>, vector<32x676xbf16>, vector<32x676xbf16>, vector<32x676xbf16>, vector<32x676xbf16>, vector<32x676xbf16> -> vector<288x676xbf16>
    %cst_20 = arith.constant dense<0.000000e+00> : vector<64x676xf32>
    %156 = tpu.matmul %2, %155, %cst_20 {dimension_numbers = #tpu.dot_dimension_numbers<[1], [0], [0], [1], [0, 0, 1, 1], [], []>} : vector<64x288xbf16>, vector<288x676xbf16>, vector<64x676xf32> -> vector<64x676xf32>
    %157 = vector.broadcast %3 : vector<64x1xf32> to vector<64x676xf32>
    %158 = arith.addf %156, %157 : vector<64x676xf32>
    %cst_21 = arith.constant 0.000000e+00 : f32
    %159 = vector.broadcast %cst_21 : f32 to vector<64x676xf32>
    %160 = arith.maximumf %158, %159 : vector<64x676xf32>
    %161 = vector.extract_strided_slice %160 {offsets = [0, 1], sizes = [64, 675], strides = [1, 1]} : vector<64x676xf32> to vector<64x675xf32>
    %162 = vector.extract_strided_slice %160 {offsets = [0, 0], sizes = [64, 1], strides = [1, 1]} : vector<64x676xf32> to vector<64x1xf32>
    %163 = tpu.concatenate %161, %162 in 1 : vector<64x675xf32>, vector<64x1xf32> -> vector<64x676xf32>
    %164 = arith.maximumf %160, %163 : vector<64x676xf32>
    %165 = vector.extract_strided_slice %164 {offsets = [0, 26], sizes = [64, 650], strides = [1, 1]} : vector<64x676xf32> to vector<64x650xf32>
    %166 = vector.extract_strided_slice %164 {offsets = [0, 0], sizes = [64, 26], strides = [1, 1]} : vector<64x676xf32> to vector<64x26xf32>
    %167 = tpu.concatenate %165, %166 in 1 : vector<64x650xf32>, vector<64x26xf32> -> vector<64x676xf32>
    %168 = arith.maximumf %164, %167 : vector<64x676xf32>
    %169 = arith.truncf %168 : vector<64x676xf32> to vector<64x676xbf16>
    %cst_22 = arith.constant dense<0.000000e+00> : vector<64x144xf32>
    %170 = tpu.matmul %169, %4, %cst_22 {dimension_numbers = #tpu.dot_dimension_numbers<[1], [0], [0], [1], [0, 0, 1, 1], [], []>} : vector<64x676xbf16>, vector<676x144xbf16>, vector<64x144xf32> -> vector<64x144xf32>
    %171 = arith.truncf %170 : vector<64x144xf32> to vector<64x144xbf16>
    %172 = vector.extract_strided_slice %171 {offsets = [0, 0], sizes = [1, 144], strides = [1, 1]} : vector<64x144xbf16> to vector<1x144xbf16>
    %173 = vector.extract_strided_slice %171 {offsets = [1, 0], sizes = [1, 144], strides = [1, 1]} : vector<64x144xbf16> to vector<1x144xbf16>
    %174 = vector.extract_strided_slice %171 {offsets = [2, 0], sizes = [1, 144], strides = [1, 1]} : vector<64x144xbf16> to vector<1x144xbf16>
    %175 = vector.extract_strided_slice %171 {offsets = [3, 0], sizes = [1, 144], strides = [1, 1]} : vector<64x144xbf16> to vector<1x144xbf16>
    %176 = vector.extract_strided_slice %171 {offsets = [4, 0], sizes = [1, 144], strides = [1, 1]} : vector<64x144xbf16> to vector<1x144xbf16>
    %177 = vector.extract_strided_slice %171 {offsets = [5, 0], sizes = [1, 144], strides = [1, 1]} : vector<64x144xbf16> to vector<1x144xbf16>
    %178 = vector.extract_strided_slice %171 {offsets = [6, 0], sizes = [1, 144], strides = [1, 1]} : vector<64x144xbf16> to vector<1x144xbf16>
    %179 = vector.extract_strided_slice %171 {offsets = [7, 0], sizes = [1, 144], strides = [1, 1]} : vector<64x144xbf16> to vector<1x144xbf16>
    %180 = vector.extract_strided_slice %171 {offsets = [8, 0], sizes = [1, 144], strides = [1, 1]} : vector<64x144xbf16> to vector<1x144xbf16>
    %181 = vector.extract_strided_slice %171 {offsets = [9, 0], sizes = [1, 144], strides = [1, 1]} : vector<64x144xbf16> to vector<1x144xbf16>
    %182 = vector.extract_strided_slice %171 {offsets = [10, 0], sizes = [1, 144], strides = [1, 1]} : vector<64x144xbf16> to vector<1x144xbf16>
    %183 = vector.extract_strided_slice %171 {offsets = [11, 0], sizes = [1, 144], strides = [1, 1]} : vector<64x144xbf16> to vector<1x144xbf16>
    %184 = vector.extract_strided_slice %171 {offsets = [12, 0], sizes = [1, 144], strides = [1, 1]} : vector<64x144xbf16> to vector<1x144xbf16>
    %185 = vector.extract_strided_slice %171 {offsets = [13, 0], sizes = [1, 144], strides = [1, 1]} : vector<64x144xbf16> to vector<1x144xbf16>
    %186 = vector.extract_strided_slice %171 {offsets = [14, 0], sizes = [1, 144], strides = [1, 1]} : vector<64x144xbf16> to vector<1x144xbf16>
    %187 = vector.extract_strided_slice %171 {offsets = [15, 0], sizes = [1, 144], strides = [1, 1]} : vector<64x144xbf16> to vector<1x144xbf16>
    %188 = vector.extract_strided_slice %171 {offsets = [16, 0], sizes = [1, 144], strides = [1, 1]} : vector<64x144xbf16> to vector<1x144xbf16>
    %189 = vector.extract_strided_slice %171 {offsets = [17, 0], sizes = [1, 144], strides = [1, 1]} : vector<64x144xbf16> to vector<1x144xbf16>
    %190 = vector.extract_strided_slice %171 {offsets = [18, 0], sizes = [1, 144], strides = [1, 1]} : vector<64x144xbf16> to vector<1x144xbf16>
    %191 = vector.extract_strided_slice %171 {offsets = [19, 0], sizes = [1, 144], strides = [1, 1]} : vector<64x144xbf16> to vector<1x144xbf16>
    %192 = vector.extract_strided_slice %171 {offsets = [20, 0], sizes = [1, 144], strides = [1, 1]} : vector<64x144xbf16> to vector<1x144xbf16>
    %193 = vector.extract_strided_slice %171 {offsets = [21, 0], sizes = [1, 144], strides = [1, 1]} : vector<64x144xbf16> to vector<1x144xbf16>
    %194 = vector.extract_strided_slice %171 {offsets = [22, 0], sizes = [1, 144], strides = [1, 1]} : vector<64x144xbf16> to vector<1x144xbf16>
    %195 = vector.extract_strided_slice %171 {offsets = [23, 0], sizes = [1, 144], strides = [1, 1]} : vector<64x144xbf16> to vector<1x144xbf16>
    %196 = vector.extract_strided_slice %171 {offsets = [24, 0], sizes = [1, 144], strides = [1, 1]} : vector<64x144xbf16> to vector<1x144xbf16>
    %197 = vector.extract_strided_slice %171 {offsets = [25, 0], sizes = [1, 144], strides = [1, 1]} : vector<64x144xbf16> to vector<1x144xbf16>
    %198 = vector.extract_strided_slice %171 {offsets = [26, 0], sizes = [1, 144], strides = [1, 1]} : vector<64x144xbf16> to vector<1x144xbf16>
    %199 = vector.extract_strided_slice %171 {offsets = [27, 0], sizes = [1, 144], strides = [1, 1]} : vector<64x144xbf16> to vector<1x144xbf16>
    %200 = vector.extract_strided_slice %171 {offsets = [28, 0], sizes = [1, 144], strides = [1, 1]} : vector<64x144xbf16> to vector<1x144xbf16>
    %201 = vector.extract_strided_slice %171 {offsets = [29, 0], sizes = [1, 144], strides = [1, 1]} : vector<64x144xbf16> to vector<1x144xbf16>
    %202 = vector.extract_strided_slice %171 {offsets = [30, 0], sizes = [1, 144], strides = [1, 1]} : vector<64x144xbf16> to vector<1x144xbf16>
    %203 = vector.extract_strided_slice %171 {offsets = [31, 0], sizes = [1, 144], strides = [1, 1]} : vector<64x144xbf16> to vector<1x144xbf16>
    %204 = vector.extract_strided_slice %171 {offsets = [32, 0], sizes = [1, 144], strides = [1, 1]} : vector<64x144xbf16> to vector<1x144xbf16>
    %205 = vector.extract_strided_slice %171 {offsets = [33, 0], sizes = [1, 144], strides = [1, 1]} : vector<64x144xbf16> to vector<1x144xbf16>
    %206 = vector.extract_strided_slice %171 {offsets = [34, 0], sizes = [1, 144], strides = [1, 1]} : vector<64x144xbf16> to vector<1x144xbf16>
    %207 = vector.extract_strided_slice %171 {offsets = [35, 0], sizes = [1, 144], strides = [1, 1]} : vector<64x144xbf16> to vector<1x144xbf16>
    %208 = vector.extract_strided_slice %171 {offsets = [36, 0], sizes = [1, 144], strides = [1, 1]} : vector<64x144xbf16> to vector<1x144xbf16>
    %209 = vector.extract_strided_slice %171 {offsets = [37, 0], sizes = [1, 144], strides = [1, 1]} : vector<64x144xbf16> to vector<1x144xbf16>
    %210 = vector.extract_strided_slice %171 {offsets = [38, 0], sizes = [1, 144], strides = [1, 1]} : vector<64x144xbf16> to vector<1x144xbf16>
    %211 = vector.extract_strided_slice %171 {offsets = [39, 0], sizes = [1, 144], strides = [1, 1]} : vector<64x144xbf16> to vector<1x144xbf16>
    %212 = vector.extract_strided_slice %171 {offsets = [40, 0], sizes = [1, 144], strides = [1, 1]} : vector<64x144xbf16> to vector<1x144xbf16>
    %213 = vector.extract_strided_slice %171 {offsets = [41, 0], sizes = [1, 144], strides = [1, 1]} : vector<64x144xbf16> to vector<1x144xbf16>
    %214 = vector.extract_strided_slice %171 {offsets = [42, 0], sizes = [1, 144], strides = [1, 1]} : vector<64x144xbf16> to vector<1x144xbf16>
    %215 = vector.extract_strided_slice %171 {offsets = [43, 0], sizes = [1, 144], strides = [1, 1]} : vector<64x144xbf16> to vector<1x144xbf16>
    %216 = vector.extract_strided_slice %171 {offsets = [44, 0], sizes = [1, 144], strides = [1, 1]} : vector<64x144xbf16> to vector<1x144xbf16>
    %217 = vector.extract_strided_slice %171 {offsets = [45, 0], sizes = [1, 144], strides = [1, 1]} : vector<64x144xbf16> to vector<1x144xbf16>
    %218 = vector.extract_strided_slice %171 {offsets = [46, 0], sizes = [1, 144], strides = [1, 1]} : vector<64x144xbf16> to vector<1x144xbf16>
    %219 = vector.extract_strided_slice %171 {offsets = [47, 0], sizes = [1, 144], strides = [1, 1]} : vector<64x144xbf16> to vector<1x144xbf16>
    %220 = vector.extract_strided_slice %171 {offsets = [48, 0], sizes = [1, 144], strides = [1, 1]} : vector<64x144xbf16> to vector<1x144xbf16>
    %221 = vector.extract_strided_slice %171 {offsets = [49, 0], sizes = [1, 144], strides = [1, 1]} : vector<64x144xbf16> to vector<1x144xbf16>
    %222 = vector.extract_strided_slice %171 {offsets = [50, 0], sizes = [1, 144], strides = [1, 1]} : vector<64x144xbf16> to vector<1x144xbf16>
    %223 = vector.extract_strided_slice %171 {offsets = [51, 0], sizes = [1, 144], strides = [1, 1]} : vector<64x144xbf16> to vector<1x144xbf16>
    %224 = vector.extract_strided_slice %171 {offsets = [52, 0], sizes = [1, 144], strides = [1, 1]} : vector<64x144xbf16> to vector<1x144xbf16>
    %225 = vector.extract_strided_slice %171 {offsets = [53, 0], sizes = [1, 144], strides = [1, 1]} : vector<64x144xbf16> to vector<1x144xbf16>
    %226 = vector.extract_strided_slice %171 {offsets = [54, 0], sizes = [1, 144], strides = [1, 1]} : vector<64x144xbf16> to vector<1x144xbf16>
    %227 = vector.extract_strided_slice %171 {offsets = [55, 0], sizes = [1, 144], strides = [1, 1]} : vector<64x144xbf16> to vector<1x144xbf16>
    %228 = vector.extract_strided_slice %171 {offsets = [56, 0], sizes = [1, 144], strides = [1, 1]} : vector<64x144xbf16> to vector<1x144xbf16>
    %229 = vector.extract_strided_slice %171 {offsets = [57, 0], sizes = [1, 144], strides = [1, 1]} : vector<64x144xbf16> to vector<1x144xbf16>
    %230 = vector.extract_strided_slice %171 {offsets = [58, 0], sizes = [1, 144], strides = [1, 1]} : vector<64x144xbf16> to vector<1x144xbf16>
    %231 = vector.extract_strided_slice %171 {offsets = [59, 0], sizes = [1, 144], strides = [1, 1]} : vector<64x144xbf16> to vector<1x144xbf16>
    %232 = vector.extract_strided_slice %171 {offsets = [60, 0], sizes = [1, 144], strides = [1, 1]} : vector<64x144xbf16> to vector<1x144xbf16>
    %233 = vector.extract_strided_slice %171 {offsets = [61, 0], sizes = [1, 144], strides = [1, 1]} : vector<64x144xbf16> to vector<1x144xbf16>
    %234 = vector.extract_strided_slice %171 {offsets = [62, 0], sizes = [1, 144], strides = [1, 1]} : vector<64x144xbf16> to vector<1x144xbf16>
    %235 = vector.extract_strided_slice %171 {offsets = [63, 0], sizes = [1, 144], strides = [1, 1]} : vector<64x144xbf16> to vector<1x144xbf16>
    %236 = tpu.concatenate %172, %173, %174, %175, %176, %177, %178, %179, %180, %181, %182, %183, %184, %185, %186, %187 in 1 : vector<1x144xbf16>, vector<1x144xbf16>, vector<1x144xbf16>, vector<1x144xbf16>, vector<1x144xbf16>, vector<1x144xbf16>, vector<1x144xbf16>, vector<1x144xbf16>, vector<1x144xbf16>, vector<1x144xbf16>, vector<1x144xbf16>, vector<1x144xbf16>, vector<1x144xbf16>, vector<1x144xbf16>, vector<1x144xbf16>, vector<1x144xbf16> -> vector<1x2304xbf16>
    %237 = tpu.concatenate %188, %189, %190, %191, %192, %193, %194, %195, %196, %197, %198, %199, %200, %201, %202, %203 in 1 : vector<1x144xbf16>, vector<1x144xbf16>, vector<1x144xbf16>, vector<1x144xbf16>, vector<1x144xbf16>, vector<1x144xbf16>, vector<1x144xbf16>, vector<1x144xbf16>, vector<1x144xbf16>, vector<1x144xbf16>, vector<1x144xbf16>, vector<1x144xbf16>, vector<1x144xbf16>, vector<1x144xbf16>, vector<1x144xbf16>, vector<1x144xbf16> -> vector<1x2304xbf16>
    %238 = tpu.concatenate %204, %205, %206, %207, %208, %209, %210, %211, %212, %213, %214, %215, %216, %217, %218, %219 in 1 : vector<1x144xbf16>, vector<1x144xbf16>, vector<1x144xbf16>, vector<1x144xbf16>, vector<1x144xbf16>, vector<1x144xbf16>, vector<1x144xbf16>, vector<1x144xbf16>, vector<1x144xbf16>, vector<1x144xbf16>, vector<1x144xbf16>, vector<1x144xbf16>, vector<1x144xbf16>, vector<1x144xbf16>, vector<1x144xbf16>, vector<1x144xbf16> -> vector<1x2304xbf16>
    %239 = tpu.concatenate %220, %221, %222, %223, %224, %225, %226, %227, %228, %229, %230, %231, %232, %233, %234, %235 in 1 : vector<1x144xbf16>, vector<1x144xbf16>, vector<1x144xbf16>, vector<1x144xbf16>, vector<1x144xbf16>, vector<1x144xbf16>, vector<1x144xbf16>, vector<1x144xbf16>, vector<1x144xbf16>, vector<1x144xbf16>, vector<1x144xbf16>, vector<1x144xbf16>, vector<1x144xbf16>, vector<1x144xbf16>, vector<1x144xbf16>, vector<1x144xbf16> -> vector<1x2304xbf16>
    %240 = tpu.concatenate %236, %237, %238, %239 in 1 : vector<1x2304xbf16>, vector<1x2304xbf16>, vector<1x2304xbf16>, vector<1x2304xbf16> -> vector<1x9216xbf16>
    %241 = tpu.concatenate %122, %240 in 0 : vector<1x9216xbf16>, vector<1x9216xbf16> -> vector<2x9216xbf16>
    %c0_23 = arith.constant 0 : index
    %c0_24 = arith.constant 0 : index
    %242 = vector.load %arg7[%c0_23, %c0_24] : memref<9216x128xbf16, #tpu.memory_space<vmem>>, vector<9216x128xbf16>
    %cst_25 = arith.constant dense<0.000000e+00> : vector<2x128xf32>
    %243 = tpu.matmul %241, %242, %cst_25 {dimension_numbers = #tpu.dot_dimension_numbers<[1], [0], [0], [1], [0, 0, 1, 1], [], []>} : vector<2x9216xbf16>, vector<9216x128xbf16>, vector<2x128xf32> -> vector<2x128xf32>
    %c0_26 = arith.constant 0 : index
    %c0_27 = arith.constant 0 : index
    %244 = vector.load %arg8[%c0_26, %c0_27] : memref<1x128xf32, #tpu.memory_space<vmem>>, vector<1x128xf32>
    %245 = vector.broadcast %244 : vector<1x128xf32> to vector<2x128xf32>
    %246 = arith.addf %243, %245 : vector<2x128xf32>
    %cst_28 = arith.constant 0.000000e+00 : f32
    %247 = vector.broadcast %cst_28 : f32 to vector<2x128xf32>
    %248 = arith.maximumf %246, %247 : vector<2x128xf32>
    %c0_29 = arith.constant 0 : index
    %c0_30 = arith.constant 0 : index
    %249 = vector.load %arg12[%c0_29, %c0_30] : memref<2x128xf32, #tpu.memory_space<vmem>>, vector<2x128xf32>
    tpu.vector_store %arg12[%c0_29, %c0_30], %248 {strides = array<i32>} : memref<2x128xf32, #tpu.memory_space<vmem>>, vector<2x128xf32>,
    %250 = arith.truncf %248 : vector<2x128xf32> to vector<2x128xbf16>
    %c0_31 = arith.constant 0 : index
    %c0_32 = arith.constant 0 : index
    %251 = vector.load %arg9[%c0_31, %c0_32] : memref<128x10xbf16, #tpu.memory_space<vmem>>, vector<128x10xbf16>
    %cst_33 = arith.constant dense<0.000000e+00> : vector<2x10xf32>
    %252 = tpu.matmul %250, %251, %cst_33 {dimension_numbers = #tpu.dot_dimension_numbers<[1], [0], [0], [1], [0, 0, 1, 1], [], []>} : vector<2x128xbf16>, vector<128x10xbf16>, vector<2x10xf32> -> vector<2x10xf32>
    %c0_34 = arith.constant 0 : index
    %c0_35 = arith.constant 0 : index
    %253 = vector.load %arg10[%c0_34, %c0_35] : memref<1x10xf32, #tpu.memory_space<vmem>>, vector<1x10xf32>
    %254 = vector.broadcast %253 : vector<1x10xf32> to vector<2x10xf32>
    %255 = arith.addf %252, %254 : vector<2x10xf32>
    %c0_36 = arith.constant 0 : index
    %c0_37 = arith.constant 0 : index
    %256 = vector.load %arg11[%c0_36, %c0_37] : memref<2x10xf32, #tpu.memory_space<vmem>>, vector<2x10xf32>
    tpu.vector_store %arg11[%c0_36, %c0_37], %255 {strides = array<i32>} : memref<2x10xf32, #tpu.memory_space<vmem>>, vector<2x10xf32>,
    return
  }
  func.func @transform_0(%arg0: i32) -> (i32, i32, i32) {
    %c0_i32 = arith.constant 0 : i32
    %c0_i32_0 = arith.constant 0 : i32
    %c0_i32_1 = arith.constant 0 : i32
    return %arg0, %c0_i32, %c0_i32_0 : i32, i32, i32
  }
  func.func @transform_1(%arg0: i32) -> (i32, i32) {
    %c0_i32 = arith.constant 0 : i32
    %c0_i32_0 = arith.constant 0 : i32
    %c0_i32_1 = arith.constant 0 : i32
    return %c0_i32, %c0_i32_0 : i32, i32
  }
  func.func @transform_2(%arg0: i32) -> (i32, i32) {
    %c0_i32 = arith.constant 0 : i32
    %c0_i32_0 = arith.constant 0 : i32
    %c0_i32_1 = arith.constant 0 : i32
    return %c0_i32, %c0_i32_0 : i32, i32
  }
  func.func @transform_3(%arg0: i32) -> (i32, i32) {
    %c0_i32 = arith.constant 0 : i32
    %c0_i32_0 = arith.constant 0 : i32
    %c0_i32_1 = arith.constant 0 : i32
    return %c0_i32, %c0_i32_0 : i32, i32
  }
  func.func @transform_4(%arg0: i32) -> (i32, i32) {
    %c0_i32 = arith.constant 0 : i32
    %c0_i32_0 = arith.constant 0 : i32
    %c0_i32_1 = arith.constant 0 : i32
    return %c0_i32, %c0_i32_0 : i32, i32
  }
  func.func @transform_5(%arg0: i32) -> (i32, i32) {
    %c0_i32 = arith.constant 0 : i32
    %c0_i32_0 = arith.constant 0 : i32
    %c0_i32_1 = arith.constant 0 : i32
    return %c0_i32, %c0_i32_0 : i32, i32
  }
  func.func @transform_6(%arg0: i32) -> (i32, i32) {
    %c0_i32 = arith.constant 0 : i32
    %c0_i32_0 = arith.constant 0 : i32
    %c0_i32_1 = arith.constant 0 : i32
    return %c0_i32, %c0_i32_0 : i32, i32
  }
  func.func @transform_7(%arg0: i32) -> (i32, i32) {
    %c0_i32 = arith.constant 0 : i32
    %c0_i32_0 = arith.constant 0 : i32
    %c0_i32_1 = arith.constant 0 : i32
    return %c0_i32, %c0_i32_0 : i32, i32
  }
  func.func @transform_8(%arg0: i32) -> (i32, i32) {
    %c0_i32 = arith.constant 0 : i32
    %c0_i32_0 = arith.constant 0 : i32
    %c0_i32_1 = arith.constant 0 : i32
    return %c0_i32, %c0_i32_0 : i32, i32
  }
  func.func @transform_9(%arg0: i32) -> (i32, i32) {
    %c0_i32 = arith.constant 0 : i32
    %c0_i32_0 = arith.constant 0 : i32
    %c0_i32_1 = arith.constant 0 : i32
    return %c0_i32, %c0_i32_0 : i32, i32
  }
  func.func @transform_10(%arg0: i32) -> (i32, i32) {
    %c0_i32 = arith.constant 0 : i32
    %c0_i32_0 = arith.constant 0 : i32
    return %arg0, %c0_i32 : i32, i32
  }
  func.func @transform_11(%arg0: i32) -> (i32, i32) {
    %c0_i32 = arith.constant 0 : i32
    %c0_i32_0 = arith.constant 0 : i32
    return %arg0, %c0_i32 : i32, i32
  }
}

</mosaic_0001>

<bundles_post_ra>
// kernel: net1_forward.1
= control target key start
LH: loop header
LB: loop body
LE: loop exit
PB: predicated region body
PF: predicated region fallthrough
CT: control target
= control target key end

     0   :  { %17 = vsyncpa [#allocation3], 0  ;;  %s22181_s0 = inlined_call_operand.vmem [shape: bf16[2,9,676], index: 0, kind: input, shape index: {}]   ;;  %s22182_s1 = inlined_call_operand.vmem [shape: bf16[32,9], index: 1, kind: input, shape index: {}]   ;;  %s22183_s2 = inlined_call_operand.vmem [shape: f32[32,1], index: 2, kind: input, shape index: {}]   ;;  %s22184_s3 = inlined_call_operand.hbm [shape: bf16[64,288], index: 3, kind: input, shape index: {}]   ;;  %s22185_s4 = inlined_call_operand.vmem [shape: f32[64,1], index: 4, kind: input, shape index: {}]   ;;  %s22186_s5 = inlined_call_operand.vmem [shape: bf16[676,144], index: 5, kind: input, shape index: {}]   ;;  %s22187_s6 = inlined_call_operand.hbm [shape: bf16[9216,128], index: 6, kind: input, shape index: {}]   ;;  %s22188_s7 = inlined_call_operand.hbm [shape: f32[1,128], index: 7, kind: input, shape index: {}]   ;;  %s22189_s8 = inlined_call_operand.vmem [shape: bf16[128,10], index: 8, kind: input, shape index: {}]   ;;  %s22190_s9 = inlined_call_operand.hbm [shape: f32[1,10], index: 9, kind: input, shape index: {}]   ;;  %s22191_s10 = inlined_call_operand.hbm [shape: f32[2,10], index: 10, kind: output, shape index: {0}]   ;;  %s22192_s11 = inlined_call_operand.hbm [shape: f32[2,128], index: 11, kind: output, shape index: {1}]  }
   0x1   :  { %18 = vsyncpa [#allocation6], 0 }
   0x2   :  { %19 = vsyncpa [#allocation9], 0 }
   0x3   :  { %20 = vsyncpa [#allocation4], 0 }
   0x4   :  { %21 = vsyncpa [#allocation12], 0  ;;  %s16139_s17 = smov [#allocation5]   ;;  %s15997_s21 = scalar_lea.hbm %s22187_s6, 73728 }
   0x5   :  { %s49_s18 = sshll.u32 %s16139_s17, 4  ;;  %p15998_p0 = scmp.ne.s32.totalorder %s22187_s6, %s15997_s21  ;;  %s50_s18 = int_to_ptr.vmem [resolvable:$true] %s49_s18 }
   0x6   :  { %p16001_p1 = scmp.lt.u32.totalorder %s15997_s21, %s22187_s6 }
   0x8   :  { %p16003_p2 = pnand %p16001_p1, %p15998_p0 }
   0xa   :  { %16006 = shalt.err (!%p16003_p2)
}
   0xb   :  { %s16007_s26 = scalar_lea.vmem %s50_s18, 73728  ;;  %p16012_p4 = scmp.lt.s32.totalorder %s50_s18, %s50_s18 }
   0xc   :  { %p16008_p3 = scmp.ne.s32.totalorder %s50_s18, %s16007_s26  ;;  %p16013_p5 = scmp.lt.s32.totalorder %s16007_s26, %s16007_s26 }
   0xe   :  { %p16014_p6 = por %p16013_p5, %p16012_p4 }
  0x10   :  { %p16015_p7 = pnand %p16014_p6, %p16008_p3 }
  0x12   :  { %16018 = shalt.err (!%p16015_p7)
}
  0x13   :  { %s16140_s27 = smov 64   ;;  %s16141_s28 = smov 4  }
  0x14   :  { %55 = dma.hbm_to_vmem [thread:$0]  %s22187_s6, 73728, %s50_s18, [#allocation6], %s16140_s27, %s16140_s27, %s16141_s28  }
  0x15   :  { %s16142_s12 = smov [#allocation2]   ;;  %s16019_s16 = scalar_lea.hbm %s22184_s3, 1536 }
  0x16   :  { %s33_s13 = sshll.u32 %s16142_s12, 4  ;;  %p16020_p8 = scmp.ne.s32.totalorder %s22184_s3, %s16019_s16  ;;  %s34_s13 = int_to_ptr.vmem [resolvable:$true] %s33_s13 }
  0x17   :  { %p16023_p9 = scmp.lt.u32.totalorder %s16019_s16, %s22184_s3 }
  0x19   :  { %p16025_p10 = pnand %p16023_p9, %p16020_p8 }
  0x1b   :  { %16028 = shalt.err (!%p16025_p10)
}
  0x1c   :  { %s16029_s22 = scalar_lea.vmem %s34_s13, 1536  ;;  %p16034_p12 = scmp.lt.s32.totalorder %s34_s13, %s34_s13 }
  0x1d   :  { %p16030_p11 = scmp.ne.s32.totalorder %s34_s13, %s16029_s22  ;;  %p16035_p13 = scmp.lt.s32.totalorder %s16029_s22, %s16029_s22 }
  0x1f   :  { %p16036_p0 = por %p16035_p13, %p16034_p12 }
  0x21   :  { %p16037_p1 = pnand %p16036_p0, %p16030_p11 }
  0x23   :  { %16040 = shalt.err (!%p16037_p1)
}
  0x24   :  { %s16143_s6 = smov 192   ;;  %s16144_s18 = smov 12  }
  0x25   :  { %39 = dma.hbm_to_vmem [thread:$0]  %s22184_s3, 1536, %s34_s13, [#allocation3], %s16143_s6, %s16143_s6, %s16144_s18  }
  0x26   :  { %s16145_s25 = smov [#allocation7]   ;;  %s16146_s28 = smov [#allocation8]  }
  0x27   :  { %s62_s26 = sshll.u32 %s16145_s25, 4  ;;  %s74_s29 = sshll.u32 %s16146_s28, 4  ;;  %s63_s26 = int_to_ptr.vmem [resolvable:$true] %s62_s26  ;;  %s75_s29 = int_to_ptr.vmem [resolvable:$true] %s74_s29 }
  0x28   :  { %s16041_s14 = scalar_lea.hbm %s22188_s7, 16 }
  0x29   :  { %p16042_p2 = scmp.ne.s32.totalorder %s22188_s7, %s16041_s14  ;;  %p16045_p3 = scmp.lt.u32.totalorder %s16041_s14, %s22188_s7 }
  0x2b   :  { %p16047_p4 = pnand %p16045_p3, %p16042_p2 }
  0x2d   :  { %16050 = shalt.err (!%p16047_p4)
}
  0x2e   :  { %s16051_s3 = scalar_lea.vmem %s63_s26, 16  ;;  %s16055_s13 = scalar_lea.vmem %s63_s26, 32 }
  0x2f   :  { %p16052_p5 = scmp.ne.s32.totalorder %s63_s26, %s16051_s3  ;;  %p16056_p6 = scmp.lt.s32.totalorder %s63_s26, %s63_s26 }
  0x30   :  { %p16057_p7 = scmp.lt.s32.totalorder %s16055_s13, %s16051_s3 }
  0x32   :  { %p16058_p8 = por %p16057_p7, %p16056_p6 }
  0x34   :  { %p16059_p9 = pnand %p16058_p8, %p16052_p5 }
  0x36   :  { %16062 = shalt.err (!%p16059_p9)
}
  0x37   :  { %65 = dma.hbm_to_vmem [thread:$0]  %s22188_s7, 16, %s63_s26, [#allocation6]  }
  0x38   :  { %s16063_s18 = scalar_lea.hbm %s22190_s9, 16 }
  0x39   :  { %p16064_p10 = scmp.ne.s32.totalorder %s22190_s9, %s16063_s18  ;;  %p16067_p11 = scmp.lt.u32.totalorder %s16063_s18, %s22190_s9 }
  0x3b   :  { %p16069_p12 = pnand %p16067_p11, %p16064_p10 }
  0x3d   :  { %16072 = shalt.err (!%p16069_p12)
}
  0x3e   :  { %s16073_s30 = scalar_lea.vmem %s75_s29, 16  ;;  %s16077_s12 = scalar_lea.vmem %s75_s29, 32 }
  0x3f   :  { %p16074_p13 = scmp.ne.s32.totalorder %s75_s29, %s16073_s30  ;;  %p16078_p0 = scmp.lt.s32.totalorder %s75_s29, %s75_s29 }
  0x40   :  { %p16079_p1 = scmp.lt.s32.totalorder %s16077_s12, %s16073_s30 }
  0x42   :  { %p16080_p2 = por %p16079_p1, %p16078_p0 }
  0x44   :  { %p16081_p3 = pnand %p16080_p2, %p16074_p13 }
  0x46   :  { %16084 = shalt.err (!%p16081_p3)
}
  0x47   :  { %77 = dma.hbm_to_vmem [thread:$0]  %s22190_s9, 16, %s75_s29, [#allocation9]  }
  0x48   :  { %16129 = dma.done.wait [#allocation3], 1536  }
  0x49   :  { %16130 = vsyncadd [#allocation3], 4294965760 }
  0x4a   :  { %16131 = dma.done.wait [#allocation6], 73744  }
  0x4b   :  { %16132 = vsyncadd [#allocation6], 4294893552 }
  0x4c   :  { %16133 = dma.done.wait [#allocation9], 16  }
  0x4d   :  { %16134 = vsyncadd [#allocation9], 4294967280  ;;  %vm275_vm0 = vcmask 1043456   ;;  %v22194_v0 = vmov 0   ;;  %vm276_vm1 = vcmask 1044480   ;;  %v16148_v1 = vmov 65535  }
  0x4e   :  { %329 = vmatprep.mubr.bf16.mxu0 %v22194_v0  ;;  %382 = vmatprep.mubr.bf16.mxu1 %v22194_v0  ;;  %v277_v2 = vsel %vm275_vm0, 4294967295, %v16148_v1  ;;  %v15150_v4 = vld [vmem:[%s22181_s0 + $0x4] ss:$24 sps:$4 sm:$0x1f]   ;;  %vm268_vm2 = vcmask 72704   ;;  %v96_v17 = vld [vmem:[%s22183_s2 + $0x8] sm:$0xff] }
  0x4f   :  { %14588 = vset.pattern.permute.xlu0 %v22194_v0  ;;  %14589 = vset.pattern.permute.xlu1 %v22194_v0  ;;  %v16288_v3 = vsel %vm276_vm1, %v277_v2, 0  ;;  %v15152_v5 = vld [vmem:[%s22181_s0 + $0xc] ss:$24 sps:$4 sm:$0x1f]   ;;  %v97_v18 = vld [vmem:[%s22183_s2 + $0x10] sm:$0xff]  ;;  %v98_v19 = vld [vmem:[%s22183_s2 + $0x18] sm:$0xff] }
  0x50   :  { %v283_v6 = vand.u32 %v15150_v4, %v16288_v3  ;;  %v15154_v7 = vld [vmem:[%s22181_s0] ss:$24 sps:$4 sm:$0x1f]   ;;  %v289_v9 = vand.u32 %v15152_v5, %v16288_v3  ;;  %v15158_v13 = vld [vmem:[%s22181_s0 + $0x10] ss:$24 sps:$4 sm:$0x1f]   ;;  %226 = vperm.xlu1 %14589, %v97_v18  }
  0x51   :  { %v15155_v8 = vld [vmem:[%s22181_s0 + $0x8] ss:$24 sps:$4 sm:$0x1f]   ;;  %v280_v10 = vand.u32 %v15154_v7, %v16288_v3  ;;  %v15160_v14 = vld [vmem:[%s22181_s0 + $0x14] ss:$24 sps:$4 sm:$0x1f]   ;;  %v292_v16 = vand.u32 %v15158_v13, %v16288_v3 }
  0x52   :  { %297 = vmatprep.subr.bf16.mxu0 %v283_v6  ;;  %v286_v11 = vand.u32 %v15155_v8, %v16288_v3  ;;  %v15156_v12 = vld [vmem:[%s22182_s1] sm:$0xff]   ;;  %350 = vmatprep.subr.bf16.mxu1 %v289_v9  ;;  %v295_v20 = vand.u32 %v15160_v14, %v16288_v3  ;;  %v15157_v21 = vld [vmem:[%s22182_s1 + $0x8] sm:$0xff]   ;;  %s16150_s14 = smov 126   ;;  %s16151_s15 = smov 102   ;;  %vm528_vm3 = vcmask 1039360   ;;  %vm586_vm4 = vcmask 1031168  }
  0x53   :  { %298 = vmatpush1.bf16.msra.mxu0 %v280_v10  ;;  %v95_v15 = vld [vmem:[%s22183_s2] sm:$0xff]  ;;  %s16149_s2 = smov 127   ;;  %s16152_s16 = smov 101   ;;  %vm644_vm5 = vcmask 834560   ;;  %vm702_vm6 = vcmask 826368   ;;  %vm759_vm7 = vcmask 818176  }
  0x54   :  { %351 = vmatpush1.bf16.msra.mxu1 %v286_v11  ;;  %216 = vperm.xlu0 %14588, %v95_v15   ;;  %s16153_s17 = smov 100   ;;  %s16154_s19 = smov 76   ;;  %vm817_vm8 = vcmask 621568   ;;  %vm875_vm9 = vcmask 613376   ;;  %vm933_vm10 = vcmask 605184   ;;  %vm1067_vm11 = vcmask 261120  }
  0x55   :  { %403 = vmatprep.subr.bf16.mxu0 %v295_v20  ;;  %231 = vperm.xlu1 %14589, %v98_v19   ;;  %s16155_s3 = smov 75   ;;  %s16156_s13 = smov 74   ;;  %vm553_vm12 = vcmask 285696   ;;  %vm611_vm13 = vcmask 277504   ;;  %vm669_vm14 = vcmask 80896   ;;  %vm784_vm15 = vcmask 64512  }
  0x56   :  { %12734 = vmatmul.mubr.msk.bf16.vlgmr.msra.gmra.mrb[0].mxu0 %vm268_vm2, %v15156_v12  ;;  %s16157_s20 = smov 35   ;;  %s16158_s21 = smov 34   ;;  %vm22193_vm0 = vcmask 916480   ;;  %vm22353_vm1 = vcmask 908288  }
  0x57   :  { %12736 = vmatmul.mubr.msk.bf16.vlgmr.msra.gmra.mrb[0].mxu1 %vm268_vm2, %v15156_v12  ;;  %339 = vmatprep.mubr.bf16.mxu0 %v22194_v0  ;;  %s16159_s22 = smov 10   ;;  %s16160_s6 = smov 9  }
  0x58   :  { %404 = vmatpush1.bf16.msra.mxu0 %v292_v16  ;;  %392 = vmatprep.mubr.bf16.mxu1 %v22194_v0  ;;  %s16161_s18 = smov 8   ;;  %s16162_s23 = smov 112  }
  0x59   :  { %221 = vperm.xlu0 %14588, %v96_v17   ;;  %s16163_s24 = smov 111   ;;  %s16164_s25 = smov 110  }
  0x5a   :  { %s16165_s29 = smov 16  }
  0x5e   :  { %12735 = vmatmul.mubr.msk.bf16.gmra.mrb[4].mxu0 %vm268_vm2, %v15157_v21 }
  0x5f   :  { %12737 = vmatmul.mubr.msk.bf16.gmra.mrb[4].mxu1 %vm268_vm2, %v15157_v21  ;;  %435 = vmatprep.mubr.bf16.mxu0 %v22194_v0 }
  0x66   :  { %12738 = vmatmul.mubr.msk.bf16.vlgmr.msra.gmra.mrb[8].mxu0 %vm268_vm2, %v15156_v12 }
  0x67   :  { %445 = vmatprep.mubr.bf16.mxu0 %v22194_v0 }
  0x6e   :  { %12739 = vmatmul.mubr.msk.bf16.gmra.mrb[12].mxu0 %vm268_vm2, %v15157_v21 }
  0xcf   :  { %v16346_v24 = vpop.permute.xlu1 %226 }
  0xd3   :  { %v16342_v22 = vpop.permute.xlu0 %216 }
  0xd4   :  { %v16360_v51 = vpop.permute.xlu1 %231 }
  0xd8   :  { %v16344_v23 = vpop.permute.xlu0 %221 }
 0x129   :  { %v331_v25 = vpop.f32.mrb[0].mxu0 }
 0x12a   :  { %v384_v26 = vpop.f32.mrb[0].mxu1  ;;  %v332_v27 = vadd.f32 %v331_v25, %v16342_v22  ;;  %v333_v29 = vpop.f32.mrb[1].mxu0 }
 0x12b   :  { %v385_v28 = vadd.f32 %v384_v26, %v16342_v22  ;;  %v386_v30 = vpop.f32.mrb[1].mxu1  ;;  %v334_v31 = vadd.f32 %v333_v29, %v16342_v22  ;;  %v335_v33 = vpop.f32.mrb[2].mxu0 }
 0x12c   :  { %v387_v32 = vadd.f32 %v386_v30, %v16342_v22  ;;  %v388_v34 = vpop.f32.mrb[2].mxu1  ;;  %v456_v35 = vmax.f32 %v332_v27, 0.0  ;;  %v336_v37 = vadd.f32 %v335_v33, %v16344_v23  ;;  %v337_v39 = vpop.f32.mrb[3].mxu0 }
 0x12d   :  { %v458_v36 = vmax.f32 %v385_v28, 0.0  ;;  %v389_v38 = vadd.f32 %v388_v34, %v16344_v23  ;;  %v390_v40 = vpop.f32.mrb[3].mxu1  ;;  %v457_v41 = vmax.f32 %v334_v31, 0.0  ;;  %v338_v43 = vadd.f32 %v337_v39, %v16344_v23 }
 0x12e   :  { %v459_v42 = vmax.f32 %v387_v32, 0.0  ;;  %v391_v44 = vadd.f32 %v390_v40, %v16344_v23  ;;  %v462_v45 = vmax.f32 %v336_v37, 0.0 }
 0x12f   :  { %v464_v46 = vmax.f32 %v389_v38, 0.0  ;;  %v463_v47 = vmax.f32 %v338_v43, 0.0 }
 0x130   :  { %v465_v48 = vmax.f32 %v391_v44, 0.0  ;;  %v16356_v49 = vpack.c.bf16 %v462_v45, %v456_v35 }
 0x131   :  { %v16358_v50 = vpack.c.bf16 %v464_v46, %v458_v36  ;;  %v16362_v52 = vpack.c.bf16 %v463_v47, %v457_v41  ;;  %v341_v54 = vpop.f32.mrb[4].mxu0 }
 0x132   :  { %v16364_v53 = vpack.c.bf16 %v465_v48, %v459_v42  ;;  %v394_v55 = vpop.f32.mrb[4].mxu1  ;;  %504 = vrot.lane.b32.xlu0 %v16356_v49, %s16149_s2  ;;  %v343_v56 = vpop.f32.mrb[5].mxu0  ;;  %v342_v57 = vadd.f32 %v341_v54, %v16346_v24 }
 0x133   :  { %508 = vrot.lane.b32.xlu1 %v16358_v50, %s16149_s2  ;;  %v395_v58 = vadd.f32 %v394_v55, %v16346_v24  ;;  %v396_v59 = vpop.f32.mrb[5].mxu1  ;;  %1080 = vmatprep.subr.bf16.mxu1 %v16362_v52  ;;  %v345_v60 = vpop.f32.mrb[6].mxu0  ;;  %v344_v63 = vadd.f32 %v343_v56, %v16346_v24  ;;  %v15161_v56 = vld [vmem:[#allocation2 + $0x4] ss:$12 sps:$4 sm:$0xff]  }
 0x134   :  { %1226 = vmatprep.subr.bf16.mxu0 %v16364_v53  ;;  %v397_v61 = vadd.f32 %v396_v59, %v16346_v24  ;;  %v398_v62 = vpop.f32.mrb[6].mxu1  ;;  %1081 = vmatpush1.bf16.msra.mxu1 %v16356_v49  ;;  %v347_v1 = vpop.f32.mrb[7].mxu0  ;;  %v468_v2 = vmax.f32 %v342_v57, 0.0  ;;  %v346_v5 = vadd.f32 %v345_v60, %v16360_v51 }
 0x135   :  { %1227 = vmatpush1.bf16.msra.mxu0 %v16358_v50  ;;  %v470_v4 = vmax.f32 %v395_v58, 0.0  ;;  %v400_v6 = vpop.f32.mrb[7].mxu1  ;;  %v399_v7 = vadd.f32 %v398_v62, %v16360_v51  ;;  %v348_v10 = vadd.f32 %v347_v1, %v16360_v51  ;;  %v469_v11 = vmax.f32 %v344_v63, 0.0  ;;  %1112 = vmatprep.mubr.bf16.mxu1 %v15161_v56 }
 0x136   :  { %v471_v8 = vmax.f32 %v397_v61, 0.0  ;;  %v401_v9 = vadd.f32 %v400_v6, %v16360_v51  ;;  %562 = vrot.lane.b32.xlu0 %v16356_v49, %s16150_s14  ;;  %v474_v12 = vmax.f32 %v346_v5, 0.0  ;;  %1258 = vmatprep.mubr.bf16.mxu0 %v15161_v56 }
 0x137   :  { %566 = vrot.lane.b32.xlu1 %v16358_v50, %s16150_s14  ;;  %v476_v13 = vmax.f32 %v399_v7, 0.0  ;;  %v475_v15 = vmax.f32 %v348_v10, 0.0 }
 0x138   :  { %v477_v14 = vmax.f32 %v401_v9, 0.0  ;;  %v16386_v16 = vpack.c.bf16 %v474_v12, %v468_v2 }
 0x139   :  { %v16388_v17 = vpack.c.bf16 %v476_v13, %v470_v4  ;;  %v437_v18 = vpop.f32.mrb[8].mxu0  ;;  %v16392_v20 = vpack.c.bf16 %v475_v15, %v469_v11 }
 0x13a   :  { %v16390_v19 = vpack.c.bf16 %v477_v14, %v471_v8  ;;  %v438_v21 = vadd.f32 %v437_v18, %v16342_v22  ;;  %v439_v25 = vpop.f32.mrb[9].mxu0  ;;  %620 = vrot.lane.b32.xlu0 %v16356_v49, %s16151_s15 }
 0x13b   :  { %624 = vrot.lane.b32.xlu1 %v16358_v50, %s16151_s15  ;;  %v440_v26 = vadd.f32 %v439_v25, %v16342_v22  ;;  %v441_v27 = vpop.f32.mrb[10].mxu0  ;;  %1082 = vmatprep.subr.bf16.mxu1 %v16392_v20 }
 0x13c   :  { %1228 = vmatprep.subr.bf16.mxu0 %v16390_v19  ;;  %v442_v28 = vadd.f32 %v441_v27, %v16344_v23  ;;  %v443_v29 = vpop.f32.mrb[11].mxu0  ;;  %1083 = vmatpush1.bf16.msra.mxu1 %v16386_v16  ;;  %v460_v31 = vmax.f32 %v438_v21, 0.0 }
 0x13d   :  { %1229 = vmatpush1.bf16.msra.mxu0 %v16388_v17  ;;  %v444_v30 = vadd.f32 %v443_v29, %v16344_v23  ;;  %v461_v33 = vmax.f32 %v440_v26, 0.0 }
 0x13e   :  { %v466_v32 = vmax.f32 %v442_v28, 0.0  ;;  %678 = vrot.lane.b32.xlu0 %v16356_v49, %s16152_s16 }
 0x13f   :  { %682 = vrot.lane.b32.xlu1 %v16358_v50, %s16152_s16  ;;  %v467_v34 = vmax.f32 %v444_v30, 0.0 }
 0x140   :  { %v16410_v35 = vpack.c.bf16 %v466_v32, %v460_v31 }
 0x141   :  { %v16412_v36 = vpack.c.bf16 %v467_v34, %v461_v33  ;;  %v447_v37 = vpop.f32.mrb[12].mxu0 }
 0x142   :  { %v448_v38 = vadd.f32 %v447_v37, %v16346_v24  ;;  %v449_v39 = vpop.f32.mrb[13].mxu0  ;;  %735 = vrot.lane.b32.xlu0 %v16356_v49, %s16153_s17 }
 0x143   :  { %739 = vrot.lane.b32.xlu1 %v16358_v50, %s16153_s17  ;;  %v450_v40 = vadd.f32 %v449_v39, %v16346_v24  ;;  %v451_v41 = vpop.f32.mrb[14].mxu0 }
 0x144   :  { %v472_v42 = vmax.f32 %v448_v38, 0.0  ;;  %v452_v43 = vadd.f32 %v451_v41, %v16360_v51  ;;  %v453_v44 = vpop.f32.mrb[15].mxu0 }
 0x145   :  { %v473_v45 = vmax.f32 %v450_v40, 0.0  ;;  %v454_v46 = vadd.f32 %v453_v44, %v16360_v51 }
 0x146   :  { %v478_v47 = vmax.f32 %v452_v43, 0.0  ;;  %793 = vrot.lane.b32.xlu0 %v16356_v49, %s16154_s19 }
 0x147   :  { %797 = vrot.lane.b32.xlu1 %v16358_v50, %s16154_s19  ;;  %v479_v48 = vmax.f32 %v454_v46, 0.0 }
 0x148   :  { %v16426_v54 = vpack.c.bf16 %v478_v47, %v472_v42 }
 0x149   :  { %v16428_v55 = vpack.c.bf16 %v479_v48, %v473_v45 }
 0x14a   :  { %851 = vrot.lane.b32.xlu0 %v16356_v49, %s16155_s3 }
 0x14b   :  { %855 = vrot.lane.b32.xlu1 %v16358_v50, %s16155_s3 }
 0x14e   :  { %506 = vrot.lane.b32.xlu0 %v16362_v52, %s16149_s2 }
 0x14f   :  { %516 = vrot.lane.b32.xlu1 %v16386_v16, %s16149_s2 }
 0x152   :  { %564 = vrot.lane.b32.xlu0 %v16362_v52, %s16150_s14 }
 0x153   :  { %574 = vrot.lane.b32.xlu1 %v16386_v16, %s16150_s14 }
 0x156   :  { %622 = vrot.lane.b32.xlu0 %v16362_v52, %s16151_s15 }
 0x157   :  { %632 = vrot.lane.b32.xlu1 %v16386_v16, %s16151_s15 }
 0x15a   :  { %680 = vrot.lane.b32.xlu0 %v16362_v52, %s16152_s16 }
 0x15b   :  { %690 = vrot.lane.b32.xlu1 %v16386_v16, %s16152_s16 }
 0x15e   :  { %510 = vrot.lane.b32.xlu0 %v16364_v53, %s16149_s2 }
 0x15f   :  { %747 = vrot.lane.b32.xlu1 %v16386_v16, %s16153_s17 }
 0x162   :  { %737 = vrot.lane.b32.xlu0 %v16362_v52, %s16153_s17 }
 0x163   :  { %805 = vrot.lane.b32.xlu1 %v16386_v16, %s16154_s19 }
 0x166   :  { %568 = vrot.lane.b32.xlu0 %v16364_v53, %s16150_s14 }
 0x167   :  { %863 = vrot.lane.b32.xlu1 %v16386_v16, %s16155_s3 }
 0x16a   :  { %795 = vrot.lane.b32.xlu0 %v16362_v52, %s16154_s19 }
 0x16b   :  { %518 = vrot.lane.b32.xlu1 %v16392_v20, %s16149_s2 }
 0x16e   :  { %626 = vrot.lane.b32.xlu0 %v16364_v53, %s16151_s15 }
 0x16f   :  { %576 = vrot.lane.b32.xlu1 %v16392_v20, %s16150_s14 }
 0x172   :  { %853 = vrot.lane.b32.xlu0 %v16362_v52, %s16155_s3 }
 0x173   :  { %634 = vrot.lane.b32.xlu1 %v16392_v20, %s16151_s15 }
 0x176   :  { %520 = vrot.lane.b32.xlu0 %v16388_v17, %s16149_s2 }
 0x177   :  { %692 = vrot.lane.b32.xlu1 %v16392_v20, %s16152_s16 }
 0x17a   :  { %684 = vrot.lane.b32.xlu0 %v16364_v53, %s16152_s16 }
 0x17b   :  { %522 = vrot.lane.b32.xlu1 %v16390_v19, %s16149_s2 }
 0x17e   :  { %578 = vrot.lane.b32.xlu0 %v16388_v17, %s16150_s14 }
 0x17f   :  { %749 = vrot.lane.b32.xlu1 %v16392_v20, %s16153_s17 }
 0x182   :  { %636 = vrot.lane.b32.xlu0 %v16388_v17, %s16151_s15 }
 0x183   :  { %580 = vrot.lane.b32.xlu1 %v16390_v19, %s16150_s14 }
 0x186   :  { %694 = vrot.lane.b32.xlu0 %v16388_v17, %s16152_s16 }
 0x187   :  { %807 = vrot.lane.b32.xlu1 %v16392_v20, %s16154_s19 }
 0x18a   :  { %751 = vrot.lane.b32.xlu0 %v16388_v17, %s16153_s17 }
 0x18b   :  { %638 = vrot.lane.b32.xlu1 %v16390_v19, %s16151_s15 }
 0x18e   :  { %809 = vrot.lane.b32.xlu0 %v16388_v17, %s16154_s19 }
 0x18f   :  { %865 = vrot.lane.b32.xlu1 %v16392_v20, %s16155_s3 }
 0x192   :  { %867 = vrot.lane.b32.xlu0 %v16388_v17, %s16155_s3 }
 0x193   :  { %512 = vrot.lane.b32.xlu1 %v16410_v35, %s16149_s2 }
 0x196   :  { %524 = vrot.lane.b32.xlu0 %v16426_v54, %s16149_s2 }
 0x197   :  { %570 = vrot.lane.b32.xlu1 %v16410_v35, %s16150_s14 }
 0x19a   :  { %696 = vrot.lane.b32.xlu0 %v16390_v19, %s16152_s16 }
 0x19b   :  { %628 = vrot.lane.b32.xlu1 %v16410_v35, %s16151_s15 }
 0x19e   :  { %582 = vrot.lane.b32.xlu0 %v16426_v54, %s16150_s14 }
 0x19f   :  { %686 = vrot.lane.b32.xlu1 %v16410_v35, %s16152_s16 }
 0x1a2   :  { %741 = vrot.lane.b32.xlu0 %v16364_v53, %s16153_s17 }
 0x1a3   :  { %743 = vrot.lane.b32.xlu1 %v16410_v35, %s16153_s17 }
 0x1a4   :  { %v505_v58 = vpop.permute.xlu0 %504 }
 0x1a5   :  { %v16522_v57 = vpop.permute.xlu1 %508 }
 0x1a6   :  { %640 = vrot.lane.b32.xlu0 %v16426_v54, %s16151_s15 }
 0x1a7   :  { %801 = vrot.lane.b32.xlu1 %v16410_v35, %s16154_s19 }
 0x1a8   :  { %v16530_v60 = vpop.permute.xlu0 %562 }
 0x1a9   :  { %v16528_v59 = vpop.permute.xlu1 %566 }
 0x1aa   :  { %753 = vrot.lane.b32.xlu0 %v16390_v19, %s16153_s17 }
 0x1ab   :  { %859 = vrot.lane.b32.xlu1 %v16410_v35, %s16155_s3 }
 0x1ac   :  { %v16538_v62 = vpop.permute.xlu0 %620 }
 0x1ad   :  { %v16536_v61 = vpop.permute.xlu1 %624 }
 0x1ae   :  { %799 = vrot.lane.b32.xlu0 %v16364_v53, %s16154_s19 }
 0x1af   :  { %698 = vrot.lane.b32.xlu1 %v16426_v54, %s16152_s16 }
 0x1b0   :  { %v16546_v1 = vpop.permute.xlu0 %678 }
 0x1b1   :  { %v16544_v63 = vpop.permute.xlu1 %682 }
 0x1b2   :  { %811 = vrot.lane.b32.xlu0 %v16390_v19, %s16154_s19 }
 0x1b3   :  { %913 = vrot.lane.b32.xlu1 %v16358_v50, %s16156_s13 }
 0x1b4   :  { %v16554_v4 = vpop.permute.xlu0 %735 }
 0x1b5   :  { %v16552_v2 = vpop.permute.xlu1 %739 }
 0x1b6   :  { %857 = vrot.lane.b32.xlu0 %v16364_v53, %s16155_s3 }
 0x1b7   :  { %755 = vrot.lane.b32.xlu1 %v16426_v54, %s16153_s17 }
 0x1b8   :  { %v16562_v6 = vpop.permute.xlu0 %793 }
 0x1b9   :  { %v16560_v5 = vpop.permute.xlu1 %797 }
 0x1ba   :  { %911 = vrot.lane.b32.xlu0 %v16362_v52, %s16156_s13 }
 0x1bb   :  { %869 = vrot.lane.b32.xlu1 %v16390_v19, %s16155_s3 }
 0x1bc   :  { %v16570_v7 = vpop.permute.xlu0 %851 }
 0x1bd   :  { %v16568_v50 = vpop.permute.xlu1 %855 }
 0x1be   :  { %909 = vrot.lane.b32.xlu0 %v16356_v49, %s16156_s13 }
 0x1bf   :  { %813 = vrot.lane.b32.xlu1 %v16426_v54, %s16154_s19 }
 0x1c0   :  { %v507_v9 = vpop.permute.xlu0 %506 }
 0x1c1   :  { %v517_v8 = vpop.permute.xlu1 %516  ;;  %v530_v10 = vsel %vm528_vm3, %v507_v9, %v16522_v57  ;;  %v529_v11 = vsel %vm528_vm3, %v505_v58, %v507_v9 }
 0x1c2   :  { %925 = vrot.lane.b32.xlu0 %v16388_v17, %s16156_s13  ;;  %1084 = vmatprep.subr.bf16.mxu1 %v530_v10 }
 0x1c3   :  { %923 = vrot.lane.b32.xlu1 %v16392_v20, %s16156_s13  ;;  %1085 = vmatpush1.bf16.msra.mxu1 %v529_v11 }
 0x1c4   :  { %v565_v12 = vpop.permute.xlu0 %564 }
 0x1c5   :  { %v16583_v52 = vpop.permute.xlu1 %574  ;;  %v588_v40 = vsel %vm586_vm4, %v565_v12, %v16528_v59  ;;  %v587_v41 = vsel %vm586_vm4, %v16530_v60, %v565_v12 }
 0x1c6   :  { %871 = vrot.lane.b32.xlu0 %v16426_v54, %s16155_s3 }
 0x1c7   :  { %921 = vrot.lane.b32.xlu1 %v16386_v16, %s16156_s13 }
 0x1c8   :  { %v16591_v14 = vpop.permute.xlu0 %622 }
 0x1c9   :  { %v16589_v13 = vpop.permute.xlu1 %632  ;;  %v646_v48 = vsel %vm644_vm5, %v16591_v14, %v16536_v61  ;;  %v645_v56 = vsel %vm644_vm5, %v16538_v62, %v16591_v14 }
 0x1ca   :  { %514 = vrot.lane.b32.xlu0 %v16412_v36, %s16149_s2 }
 0x1cb   :  { %549 = vrot.lane.b32.xlu1 %v16356_v49, %s16157_s20 }
 0x1cc   :  { %v16599_v17 = vpop.permute.xlu0 %680 }
 0x1cd   :  { %v16597_v15 = vpop.permute.xlu1 %690  ;;  %v704_v11 = vsel %vm702_vm6, %v16599_v17, %v16544_v63 }
 0x1ce   :  { %572 = vrot.lane.b32.xlu0 %v16412_v36, %s16150_s14 }
 0x1cf   :  { %551 = vrot.lane.b32.xlu1 %v16386_v16, %s16157_s20 }
 0x1d0   :  { %v16607_v20 = vpop.permute.xlu0 %510 }
 0x1d1   :  { %v16605_v18 = vpop.permute.xlu1 %747 }
 0x1d2   :  { %630 = vrot.lane.b32.xlu0 %v16412_v36, %s16151_s15 }
 0x1d3   :  { %607 = vrot.lane.b32.xlu1 %v16356_v49, %s16158_s21 }
 0x1d4   :  { %v16615_v25 = vpop.permute.xlu0 %737 }
 0x1d5   :  { %v16613_v21 = vpop.permute.xlu1 %805 }
 0x1d6   :  { %526 = vrot.lane.b32.xlu0 %v16428_v55, %s16149_s2 }
 0x1d7   :  { %609 = vrot.lane.b32.xlu1 %v16386_v16, %s16158_s21 }
 0x1d8   :  { %v16623_v27 = vpop.permute.xlu0 %568 }
 0x1d9   :  { %v16621_v26 = vpop.permute.xlu1 %863 }
 0x1da   :  { %915 = vrot.lane.b32.xlu0 %v16364_v53, %s16156_s13 }
 0x1db   :  { %665 = vrot.lane.b32.xlu1 %v16356_v49, %s16159_s22 }
 0x1dc   :  { %v16629_v29 = vpop.permute.xlu0 %795 }
 0x1dd   :  { %v519_v28 = vpop.permute.xlu1 %518 }
 0x1de   :  { %584 = vrot.lane.b32.xlu0 %v16428_v55, %s16150_s14 }
 0x1df   :  { %917 = vrot.lane.b32.xlu1 %v16410_v35, %s16156_s13 }
 0x1e0   :  { %v16635_v31 = vpop.permute.xlu0 %626 }
 0x1e1   :  { %v577_v30 = vpop.permute.xlu1 %576 }
 0x1e2   :  { %927 = vrot.lane.b32.xlu0 %v16390_v19, %s16156_s13  ;;  %v534_v19 = vsel %vm528_vm3, %v517_v8, %v519_v28  ;;  %v592_v45 = vsel %vm586_vm4, %v16583_v52, %v577_v30  ;;  %v703_v52 = vsel %vm702_vm6, %v16546_v1, %v16599_v17 }
 0x1e3   :  { %667 = vrot.lane.b32.xlu1 %v16386_v16, %s16159_s22 }
 0x1e4   :  { %v16641_v53 = vpop.permute.xlu0 %853 }
 0x1e5   :  { %v635_v32 = vpop.permute.xlu1 %634 }
 0x1e6   :  { %642 = vrot.lane.b32.xlu0 %v16428_v55, %s16151_s15  ;;  %v650_v62 = vsel %vm644_vm5, %v16589_v13, %v635_v32 }
 0x1e7   :  { %929 = vrot.lane.b32.xlu1 %v16426_v54, %s16156_s13 }
 0x1e8   :  { %v16649_v34 = vpop.permute.xlu0 %520 }
 0x1e9   :  { %v16647_v33 = vpop.permute.xlu1 %692  ;;  %v535_v37 = vsel %vm528_vm3, %v519_v28, %v16649_v34 }
 0x1ea   :  { %688 = vrot.lane.b32.xlu0 %v16412_v36, %s16152_s16  ;;  %1086 = vmatprep.subr.bf16.mxu1 %v535_v37  ;;  %v708_v1 = vsel %vm702_vm6, %v16597_v15, %v16647_v33  ;;  %v760_v15 = vsel %vm759_vm7, %v16554_v4, %v16615_v25 }
 0x1eb   :  { %723 = vrot.lane.b32.xlu1 %v16356_v49, %s16160_s6  ;;  %1087 = vmatpush1.bf16.msra.mxu1 %v534_v19 }
 0x1ec   :  { %v16660_v39 = vpop.permute.xlu0 %684  ;;  %1088 = vmatprep.subr.bf16.mxu1 %v588_v40 }
 0x1ed   :  { %v16658_v38 = vpop.permute.xlu1 %522 }
 0x1ee   :  { %700 = vrot.lane.b32.xlu0 %v16428_v55, %s16152_s16  ;;  %v536_v4 = vsel %vm528_vm3, %v16649_v34, %v16658_v38  ;;  %v115_v34 = vld [vmem:[%s22185_s4] sm:$0xff] }
 0x1ef   :  { %725 = vrot.lane.b32.xlu1 %v16386_v16, %s16160_s6  ;;  %1089 = vmatpush1.bf16.msra.mxu1 %v587_v41 }
 0x1f0   :  { %v16672_v43 = vpop.permute.xlu0 %578 }
 0x1f1   :  { %v16670_v42 = vpop.permute.xlu1 %749  ;;  %v593_v44 = vsel %vm586_vm4, %v577_v30, %v16672_v43  ;;  %v761_v30 = vsel %vm759_vm7, %v16615_v25, %v16552_v2 }
 0x1f2   :  { %745 = vrot.lane.b32.xlu0 %v16412_v36, %s16153_s17  ;;  %1090 = vmatprep.subr.bf16.mxu1 %v593_v44  ;;  %v819_v44 = vsel %vm817_vm8, %v16629_v29, %v16560_v5 }
 0x1f3   :  { %780 = vrot.lane.b32.xlu1 %v16356_v49, %s16161_s18  ;;  %1091 = vmatpush1.bf16.msra.mxu1 %v592_v45 }
 0x1f4   :  { %v16684_v47 = vpop.permute.xlu0 %636  ;;  %1092 = vmatprep.subr.bf16.mxu1 %v646_v48 }
 0x1f5   :  { %v16682_v46 = vpop.permute.xlu1 %580  ;;  %v651_v8 = vsel %vm644_vm5, %v635_v32, %v16684_v47 }
 0x1f6   :  { %757 = vrot.lane.b32.xlu0 %v16428_v55, %s16153_s17 }
 0x1f7   :  { %782 = vrot.lane.b32.xlu1 %v16386_v16, %s16161_s18  ;;  %1093 = vmatpush1.bf16.msra.mxu1 %v645_v56 }
 0x1f8   :  { %v16698_v60 = vpop.permute.xlu0 %694  ;;  %1094 = vmatprep.subr.bf16.mxu1 %v651_v8 }
 0x1f9   :  { %v16696_v58 = vpop.permute.xlu1 %807  ;;  %v709_v14 = vsel %vm702_vm6, %v16647_v33, %v16698_v60  ;;  %v531_v33 = vsel %vm528_vm3, %v16522_v57, %v16607_v20  ;;  %v765_v57 = vsel %vm759_vm7, %v16605_v18, %v16670_v42  ;;  %v116_v18 = vld [vmem:[%s22185_s4 + $0x8] sm:$0xff] }
 0x1fa   :  { %803 = vrot.lane.b32.xlu0 %v16412_v36, %s16154_s19 }
 0x1fb   :  { %836 = vrot.lane.b32.xlu1 %v16356_v49, %s16162_s23  ;;  %1095 = vmatpush1.bf16.msra.mxu1 %v650_v62 }
 0x1fc   :  { %v16710_v10 = vpop.permute.xlu0 %751  ;;  %1096 = vmatprep.subr.bf16.mxu1 %v704_v11 }
 0x1fd   :  { %v16708_v9 = vpop.permute.xlu1 %638  ;;  %v766_v40 = vsel %vm759_vm7, %v16670_v42, %v16710_v10  ;;  %v589_v42 = vsel %vm586_vm4, %v16528_v59, %v16623_v27  ;;  %v117_v59 = vld [vmem:[%s22185_s4 + $0x10] sm:$0xff] }
 0x1fe   :  { %815 = vrot.lane.b32.xlu0 %v16428_v55, %s16154_s19 }
 0x1ff   :  { %838 = vrot.lane.b32.xlu1 %v16386_v16, %s16162_s23  ;;  %1097 = vmatpush1.bf16.msra.mxu1 %v703_v52  ;;  %v877_v52 = vsel %vm875_vm9, %v16641_v53, %v16568_v50 }
 0x200   :  { %v16724_v13 = vpop.permute.xlu0 %809  ;;  %1098 = vmatprep.subr.bf16.mxu1 %v709_v14 }
 0x201   :  { %v16722_v12 = vpop.permute.xlu1 %865 }
 0x202   :  { %861 = vrot.lane.b32.xlu0 %v16412_v36, %s16155_s3 }
 0x203   :  { %894 = vrot.lane.b32.xlu1 %v16356_v49, %s16163_s24  ;;  %1099 = vmatpush1.bf16.msra.mxu1 %v708_v1 }
 0x204   :  { %v16738_v28 = vpop.permute.xlu0 %867  ;;  %1100 = vmatprep.subr.bf16.mxu1 %v761_v30 }
 0x205   :  { %v16736_v17 = vpop.permute.xlu1 %512  ;;  %v882_v30 = vsel %vm875_vm9, %v16722_v12, %v16738_v28 }
 0x206   :  { %v532_v32 = vsel %vm528_vm3, %v16607_v20, %v16736_v17  ;;  %873 = vrot.lane.b32.xlu0 %v16428_v55, %s16155_s3 }
 0x207   :  { %896 = vrot.lane.b32.xlu1 %v16386_v16, %s16163_s24  ;;  %1230 = vmatprep.subr.bf16.mxu0 %v532_v32 }
 0x208   :  { %1101 = vmatpush1.bf16.msra.mxu1 %v760_v15  ;;  %1231 = vmatpush1.bf16.msra.mxu0 %v531_v33  ;;  %v16758_v19 = vpop.permute.xlu0 %524  ;;  %v16866_v15 = vld [vmem:[#allocation2] ss:$12 sps:$4 sm:$0xff]  }
 0x209   :  { %v16756_v37 = vpop.permute.xlu1 %570  ;;  %1102 = vmatprep.subr.bf16.mxu1 %v766_v40  ;;  %v537_v41 = vsel %vm528_vm3, %v16658_v38, %v16758_v19  ;;  %v818_v38 = vsel %vm817_vm8, %v16562_v6, %v16629_v29  ;;  %v118_v6 = vld [vmem:[%s22185_s4 + $0x18] sm:$0xff]  ;;  %v594_v29 = vsel %vm586_vm4, %v16672_v43, %v16682_v46  ;;  %v119_v43 = vld [vmem:[%s22185_s4 + $0x20] sm:$0xff] }
 0x20a   :  { %919 = vrot.lane.b32.xlu0 %v16412_v36, %s16156_s13  ;;  %1232 = vmatprep.subr.bf16.mxu0 %v537_v41 }
 0x20b   :  { %952 = vrot.lane.b32.xlu1 %v16356_v49, %s16164_s25  ;;  %v590_v49 = vsel %vm586_vm4, %v16623_v27, %v16756_v37  ;;  %v823_v27 = vsel %vm817_vm8, %v16613_v21, %v16696_v58  ;;  %v120_v21 = vld [vmem:[%s22185_s4 + $0x28] sm:$0xff] }
 0x20c   :  { %1103 = vmatpush1.bf16.msra.mxu1 %v765_v57  ;;  %1233 = vmatpush1.bf16.msra.mxu0 %v536_v4  ;;  %v16781_v25 = vpop.permute.xlu0 %696 }
 0x20d   :  { %v16776_v20 = vpop.permute.xlu1 %628  ;;  %1234 = vmatprep.subr.bf16.mxu0 %v590_v49  ;;  %1104 = vmatprep.subr.bf16.mxu1 %v819_v44  ;;  %v710_v4 = vsel %vm702_vm6, %v16698_v60, %v16781_v25  ;;  %v16888_v49 = vld [vmem:[#allocation2 + $0x18] ss:$12 sps:$4 sm:$0xff]  }
 0x20e   :  { %931 = vrot.lane.b32.xlu0 %v16428_v55, %s16156_s13  ;;  %v648_v62 = vsel %vm644_vm5, %v16635_v31, %v16776_v20 }
 0x20f   :  { %954 = vrot.lane.b32.xlu1 %v16386_v16, %s16164_s25  ;;  %v824_v16 = vsel %vm817_vm8, %v16696_v58, %v16724_v13  ;;  %v647_v58 = vsel %vm644_vm5, %v16536_v61, %v16635_v31  ;;  %v881_v61 = vsel %vm875_vm9, %v16621_v26, %v16722_v12  ;;  %v122_v31 = vld [vmem:[%s22185_s4 + $0x38] sm:$0xff] }
 0x210   :  { %1105 = vmatpush1.bf16.msra.mxu1 %v818_v38  ;;  %1235 = vmatpush1.bf16.msra.mxu0 %v589_v42  ;;  %v16804_v48 = vpop.permute.xlu0 %582 }
 0x211   :  { %v16802_v45 = vpop.permute.xlu1 %686  ;;  %1106 = vmatprep.subr.bf16.mxu1 %v824_v16  ;;  %v595_v56 = vsel %vm586_vm4, %v16682_v46, %v16804_v48  ;;  %v876_v46 = vsel %vm875_vm9, %v16570_v7, %v16641_v53  ;;  %v652_v7 = vsel %vm644_vm5, %v16684_v47, %v16708_v9  ;;  %v121_v53 = vld [vmem:[%s22185_s4 + $0x30] sm:$0xff]  ;;  %v16873_v47 = vld [vmem:[#allocation2 + $0x1c] ss:$12 sps:$4 sm:$0xff]  }
 0x212   :  { %969 = vperm.xlu0 %14588, %v115_v34   ;;  %1236 = vmatprep.subr.bf16.mxu0 %v595_v56  ;;  %v706_v26 = vsel %vm702_vm6, %v16660_v39, %v16802_v45  ;;  %v16906_v16 = vld [vmem:[#allocation2 + $0x30] ss:$12 sps:$4 sm:$0xff]  }
 0x213   :  { %974 = vperm.xlu1 %14589, %v116_v18   ;;  %v16894_v18 = vld [vmem:[#allocation2 + $0x34] ss:$12 sps:$4 sm:$0xff]  }
 0x214   :  { %1107 = vmatpush1.bf16.msra.mxu1 %v823_v27  ;;  %1237 = vmatpush1.bf16.msra.mxu0 %v594_v29  ;;  %v742_v11 = vpop.permute.xlu0 %741 }
 0x215   :  { %v16824_v8 = vpop.permute.xlu1 %743  ;;  %1238 = vmatprep.subr.bf16.mxu0 %v648_v62  ;;  %1108 = vmatprep.subr.bf16.mxu1 %v877_v52  ;;  %v762_v34 = vsel %vm759_vm7, %v16552_v2, %v742_v11 }
 0x216   :  { %979 = vperm.xlu0 %14588, %v117_v59   ;;  %v16910_v59 = vld [vmem:[#allocation2 + $0x4c] ss:$12 sps:$4 sm:$0xff]  }
 0x217   :  { %984 = vperm.xlu1 %14589, %v118_v6  }
 0x218   :  { %1109 = vmatpush1.bf16.msra.mxu1 %v876_v46  ;;  %1239 = vmatpush1.bf16.msra.mxu0 %v647_v58  ;;  %v16846_v1 = vpop.permute.xlu0 %640 }
 0x219   :  { %v16844_v14 = vpop.permute.xlu1 %801  ;;  %1110 = vmatprep.subr.bf16.mxu1 %v882_v30  ;;  %v653_v32 = vsel %vm644_vm5, %v16708_v9, %v16846_v1  ;;  %v705_v9 = vsel %vm702_vm6, %v16544_v63, %v16660_v39  ;;  %v763_v63 = vsel %vm759_vm7, %v742_v11, %v16824_v8 }
 0x21a   :  { %989 = vperm.xlu0 %14588, %v119_v43   ;;  %1240 = vmatprep.subr.bf16.mxu0 %v653_v32  ;;  %v16925_v43 = vld [vmem:[#allocation2 + $0x48] ss:$12 sps:$4 sm:$0xff]  }
 0x21b   :  { %994 = vperm.xlu1 %14589, %v120_v21  }
 0x21c   :  { %1111 = vmatpush1.bf16.msra.mxu1 %v881_v61  ;;  %1241 = vmatpush1.bf16.msra.mxu0 %v652_v7  ;;  %v754_v12 = vpop.permute.xlu0 %753 }
 0x21d   :  { %v16868_v33 = vpop.permute.xlu1 %859  ;;  %1242 = vmatprep.subr.bf16.mxu0 %v706_v26  ;;  %v767_v42 = vsel %vm759_vm7, %v16710_v10, %v754_v12  ;;  %v16945_v26 = vld [vmem:[#allocation2 + $0x8] ss:$12 sps:$4 sm:$0xff]  }
 0x21e   :  { %999 = vperm.xlu0 %14588, %v121_v53  }
 0x21f   :  { %1004 = vperm.xlu1 %14589, %v122_v31   ;;  %1113 = vmatmul.mubr.bf16.vlgmr.msra.gmra.mrb[8].mxu1 %v16866_v15 }
 0x220   :  { %1243 = vmatpush1.bf16.msra.mxu0 %v705_v9  ;;  %v800_v41 = vpop.permute.xlu0 %799  ;;  %1122 = vmatprep.mubr.bf16.mxu1 %v16873_v47 }
 0x221   :  { %v16879_v40 = vpop.permute.xlu1 %698  ;;  %v821_v2 = vsel %vm817_vm8, %v800_v41, %v16844_v14  ;;  %v820_v10 = vsel %vm817_vm8, %v16560_v5, %v800_v41 }
 0x222   :  { %v711_v57 = vsel %vm702_vm6, %v16781_v25, %v16879_v40 }
 0x223   :  { %1244 = vmatprep.subr.bf16.mxu0 %v711_v57 }
 0x224   :  { %1245 = vmatpush1.bf16.msra.mxu0 %v710_v4  ;;  %v812_v39 = vpop.permute.xlu0 %811 }
 0x225   :  { %v16890_v44 = vpop.permute.xlu1 %913  ;;  %1246 = vmatprep.subr.bf16.mxu0 %v763_v63  ;;  %v825_v21 = vsel %vm817_vm8, %v16724_v13, %v812_v39 }
 0x227   :  { %1123 = vmatmul.mubr.bf16.gmra.mrb[12].mxu1 %v16888_v49 }
 0x228   :  { %1247 = vmatpush1.bf16.msra.mxu0 %v762_v34  ;;  %v858_v60 = vpop.permute.xlu0 %857  ;;  %1132 = vmatprep.mubr.bf16.mxu1 %v16894_v18  ;;  %v16968_v34 = vld [vmem:[#allocation2 + $0x38] ss:$12 sps:$4 sm:$0xff]  }
 0x229   :  { %v16899_v38 = vpop.permute.xlu1 %755  ;;  %v879_v46 = vsel %vm875_vm9, %v858_v60, %v16868_v33  ;;  %v878_v32 = vsel %vm875_vm9, %v16568_v50, %v858_v60 }
 0x22a   :  { %v768_v25 = vsel %vm759_vm7, %v754_v12, %v16899_v38 }
 0x22b   :  { %1248 = vmatprep.subr.bf16.mxu0 %v768_v25 }
 0x22c   :  { %1249 = vmatpush1.bf16.msra.mxu0 %v767_v42  ;;  %v912_v6 = vpop.permute.xlu0 %911 }
 0x22d   :  { %v870_v56 = vpop.permute.xlu1 %869  ;;  %1250 = vmatprep.subr.bf16.mxu0 %v821_v2  ;;  %v935_v27 = vsel %vm933_vm10, %v912_v6, %v16890_v44 }
 0x22e   :  { %1153 = vmatprep.subr.bf16.mxu1 %v935_v27  ;;  %v883_v53 = vsel %vm875_vm9, %v16738_v28, %v870_v56 }
 0x22f   :  { %1133 = vmatmul.mubr.bf16.gmra.mrb[16].mxu1 %v16906_v16 }
 0x230   :  { %1251 = vmatpush1.bf16.msra.mxu0 %v820_v10  ;;  %v910_v62 = vpop.permute.xlu0 %909  ;;  %1142 = vmatprep.mubr.bf16.mxu1 %v16910_v59  ;;  %v16987_v10 = vld [vmem:[#allocation2 + $0x50] ss:$12 sps:$4 sm:$0xff]  }
 0x231   :  { %v16917_v29 = vpop.permute.xlu1 %813  ;;  %v934_v11 = vsel %vm933_vm10, %v910_v62, %v912_v6 }
 0x232   :  { %v826_v52 = vsel %vm817_vm8, %v812_v39, %v16917_v29  ;;  %1154 = vmatpush1.bf16.msra.mxu1 %v934_v11 }
 0x233   :  { %1252 = vmatprep.subr.bf16.mxu0 %v826_v52 }
 0x234   :  { %1253 = vmatpush1.bf16.msra.mxu0 %v825_v21  ;;  %v16929_v58 = vpop.permute.xlu0 %925 }
 0x235   :  { %v924_v5 = vpop.permute.xlu1 %923  ;;  %1254 = vmatprep.subr.bf16.mxu0 %v879_v46 }
 0x236   :  { %v940_v30 = vsel %vm933_vm10, %v924_v5, %v16929_v58 }
 0x237   :  { %1155 = vmatprep.subr.bf16.mxu1 %v940_v30  ;;  %1143 = vmatmul.mubr.bf16.gmra.mrb[20].mxu1 %v16925_v43 }
 0x238   :  { %1255 = vmatpush1.bf16.msra.mxu0 %v878_v32  ;;  %v16936_v61 = vpop.permute.xlu0 %871  ;;  %1185 = vmatprep.mubr.bf16.mxu1 %v22194_v0  ;;  %v17003_v32 = vld [vmem:[#allocation2 + $0x4] ss:$12 sps:$4 sm:$0xff]  }
 0x239   :  { %v922_v13 = vpop.permute.xlu1 %921  ;;  %v884_v31 = vsel %vm875_vm9, %v870_v56, %v16936_v61 }
 0x23a   :  { %v939_v7 = vsel %vm933_vm10, %v922_v13, %v924_v5  ;;  %1256 = vmatprep.subr.bf16.mxu0 %v884_v31 }
 0x23b   :  { %1156 = vmatpush1.bf16.msra.mxu1 %v939_v7 }
 0x23c   :  { %1372 = vmatprep.subr.bf16.mxu1 %v16412_v36  ;;  %1257 = vmatpush1.bf16.msra.mxu0 %v883_v53  ;;  %v515_v12 = vpop.permute.xlu0 %514  ;;  %v16954_v36 = vld [vmem:[#allocation2 + $0x20] ss:$12 sps:$4 sm:$0xff]  }
 0x23d   :  { %v550_v50 = vpop.permute.xlu1 %549 }
 0x23e   :  { %v556_v28 = vsel %vm553_vm12, %v515_v12, %v550_v50 }
 0x23f   :  { %12752 = vmatmul.mubr.msk.bf16.vlgmr.msra.gmra.mrb[8].mxu1 %vm1067_vm11, %v16945_v26  ;;  %1259 = vmatmul.mubr.bf16.vlgmr.msra.gmra.mrb[16].mxu0 %v16866_v15 }
 0x240   :  { %1373 = vmatpush1.bf16.msra.mxu1 %v16410_v35  ;;  %v573_v41 = vpop.permute.xlu0 %572  ;;  %1195 = vmatprep.mubr.bf16.mxu1 %v22194_v0  ;;  %v533_v35 = vsel %vm528_vm3, %v16736_v17, %v515_v12 }
 0x241   :  { %v552_v9 = vpop.permute.xlu1 %551  ;;  %1374 = vmatprep.subr.bf16.mxu1 %v16428_v55  ;;  %1268 = vmatprep.mubr.bf16.mxu0 %v16873_v47 }
 0x244   :  { %1375 = vmatpush1.bf16.msra.mxu1 %v16426_v54  ;;  %v631_v4 = vpop.permute.xlu0 %630 }
 0x245   :  { %v608_v57 = vpop.permute.xlu1 %607  ;;  %1376 = vmatprep.subr.bf16.mxu1 %v556_v28 }
 0x246   :  { %v614_v17 = vsel %vm611_vm13, %v573_v41, %v608_v57 }
 0x247   :  { %12753 = vmatmul.mubr.msk.bf16.gmra.mrb[12].mxu1 %vm1067_vm11, %v16954_v36  ;;  %1269 = vmatmul.mubr.bf16.gmra.mrb[20].mxu0 %v16888_v49 }
 0x248   :  { %1377 = vmatpush1.bf16.msra.mxu1 %v533_v35  ;;  %v527_v63 = vpop.permute.xlu0 %526  ;;  %1205 = vmatprep.mubr.bf16.mxu1 %v22194_v0 }
 0x249   :  { %v610_v55 = vpop.permute.xlu1 %609  ;;  %v560_v54 = vsel %vm553_vm12, %v527_v63, %v552_v9  ;;  %v538_v39 = vsel %vm528_vm3, %v16758_v19, %v527_v63  ;;  %1278 = vmatprep.mubr.bf16.mxu0 %v16894_v18  ;;  %v591_v19 = vsel %vm586_vm4, %v16756_v37, %v573_v41 }
 0x24a   :  { %1378 = vmatprep.subr.bf16.mxu1 %v560_v54 }
 0x24c   :  { %1379 = vmatpush1.bf16.msra.mxu1 %v538_v39  ;;  %v916_v25 = vpop.permute.xlu0 %915 }
 0x24d   :  { %v666_v60 = vpop.permute.xlu1 %665  ;;  %1380 = vmatprep.subr.bf16.mxu1 %v614_v17  ;;  %v936_v37 = vsel %vm933_vm10, %v16890_v44, %v916_v25 }
 0x24e   :  { %v672_v52 = vsel %vm669_vm14, %v631_v4, %v666_v60 }
 0x24f   :  { %12754 = vmatmul.mubr.msk.bf16.gmra.mrb[16].mxu1 %vm1067_vm11, %v16968_v34  ;;  %1279 = vmatmul.mubr.bf16.gmra.mrb[24].mxu0 %v16906_v16 }
 0x250   :  { %1381 = vmatpush1.bf16.msra.mxu1 %v591_v19  ;;  %v585_v56 = vpop.permute.xlu0 %584  ;;  %1215 = vmatprep.mubr.bf16.mxu1 %v22194_v0 }
 0x251   :  { %v16976_v42 = vpop.permute.xlu1 %917  ;;  %v618_v6 = vsel %vm611_vm13, %v585_v56, %v610_v55  ;;  %v596_v27 = vsel %vm586_vm4, %v16804_v48, %v585_v56  ;;  %1288 = vmatprep.mubr.bf16.mxu0 %v16910_v59  ;;  %v649_v48 = vsel %vm644_vm5, %v16776_v20, %v631_v4 }
 0x252   :  { %v937_v2 = vsel %vm933_vm10, %v916_v25, %v16976_v42  ;;  %1382 = vmatprep.subr.bf16.mxu1 %v618_v6 }
 0x253   :  { %1299 = vmatprep.subr.bf16.mxu0 %v937_v2 }
 0x254   :  { %1300 = vmatpush1.bf16.msra.mxu0 %v936_v37  ;;  %1383 = vmatpush1.bf16.msra.mxu1 %v596_v27  ;;  %v928_v11 = vpop.permute.xlu0 %927 }
 0x255   :  { %v668_v62 = vpop.permute.xlu1 %667  ;;  %1384 = vmatprep.subr.bf16.mxu1 %v672_v52  ;;  %v941_v20 = vsel %vm933_vm10, %v16929_v58, %v928_v11 }
 0x257   :  { %12755 = vmatmul.mubr.msk.bf16.gmra.mrb[20].mxu1 %vm1067_vm11, %v16987_v10  ;;  %1289 = vmatmul.mubr.bf16.gmra.mrb[28].mxu0 %v16925_v43 }
 0x258   :  { %1385 = vmatpush1.bf16.msra.mxu1 %v649_v48  ;;  %v643_v44 = vpop.permute.xlu0 %642  ;;  %1331 = vmatprep.mubr.bf16.mxu0 %v22194_v0 }
 0x259   :  { %v16995_v21 = vpop.permute.xlu1 %929  ;;  %v676_v46 = vsel %vm669_vm14, %v643_v44, %v668_v62  ;;  %v654_v30 = vsel %vm644_vm5, %v16846_v1, %v643_v44  ;;  %1404 = vmatprep.mubr.bf16.mxu1 %v17003_v32 }
 0x25a   :  { %v942_v5 = vsel %vm933_vm10, %v928_v11, %v16995_v21  ;;  %1386 = vmatprep.subr.bf16.mxu1 %v676_v46  ;;  %v15179_v11 = vld [vmem:[%s22181_s0 + $0x34] ss:$24 sps:$4 sm:$0x1f]  }
 0x25b   :  { %1301 = vmatprep.subr.bf16.mxu0 %v942_v5 }
 0x25c   :  { %1302 = vmatpush1.bf16.msra.mxu0 %v941_v20  ;;  %1387 = vmatpush1.bf16.msra.mxu1 %v654_v30  ;;  %v689_v7 = vpop.permute.xlu0 %688 }
 0x25d   :  { %v724_v13 = vpop.permute.xlu1 %723  ;;  %v707_v53 = vsel %vm702_vm6, %v16802_v45, %v689_v7 }
 0x25e   :  { %v729_v31 = vsel %vm268_vm2, %v689_v7, %v724_v13 }
 0x25f   :  { %1388 = vmatprep.subr.bf16.mxu1 %v729_v31  ;;  %12756 = vmatmul.mubr.msk.bf16.vlgmr.msra.gmra.mrb[16].mxu0 %vm1067_vm11, %v16945_v26 }
 0x260   :  { %1389 = vmatpush1.bf16.msra.mxu1 %v707_v53  ;;  %v701_v50 = vpop.permute.xlu0 %700  ;;  %1341 = vmatprep.mubr.bf16.mxu0 %v22194_v0 }
 0x261   :  { %v726_v1 = vpop.permute.xlu1 %725  ;;  %v712_v12 = vsel %vm702_vm6, %v16879_v40, %v701_v50 }
 0x262   :  { %v733_v58 = vsel %vm268_vm2, %v701_v50, %v726_v1 }
 0x263   :  { %1390 = vmatprep.subr.bf16.mxu1 %v733_v58 }
 0x264   :  { %1391 = vmatpush1.bf16.msra.mxu1 %v712_v12  ;;  %v746_v41 = vpop.permute.xlu0 %745 }
 0x265   :  { %v781_v9 = vpop.permute.xlu1 %780  ;;  %v764_v28 = vsel %vm759_vm7, %v16824_v8, %v746_v41 }
 0x266   :  { %v787_v45 = vsel %vm784_vm15, %v746_v41, %v781_v9 }
 0x267   :  { %1392 = vmatprep.subr.bf16.mxu1 %v787_v45  ;;  %12757 = vmatmul.mubr.msk.bf16.gmra.mrb[20].mxu0 %vm1067_vm11, %v16954_v36 }
 0x268   :  { %1393 = vmatpush1.bf16.msra.mxu1 %v764_v28  ;;  %v758_v4 = vpop.permute.xlu0 %757  ;;  %1351 = vmatprep.mubr.bf16.mxu0 %v22194_v0 }
 0x269   :  { %v783_v57 = vpop.permute.xlu1 %782  ;;  %v769_v35 = vsel %vm759_vm7, %v16899_v38, %v758_v4 }
 0x26a   :  { %v791_v40 = vsel %vm784_vm15, %v758_v4, %v783_v57 }
 0x26b   :  { %1394 = vmatprep.subr.bf16.mxu1 %v791_v40 }
 0x26c   :  { %1395 = vmatpush1.bf16.msra.mxu1 %v769_v35  ;;  %v804_v63 = vpop.permute.xlu0 %803 }
 0x26d   :  { %v837_v55 = vpop.permute.xlu1 %836  ;;  %v822_v8 = vsel %vm817_vm8, %v16844_v14, %v804_v63 }
 0x26e   :  { %1396 = vmatprep.subr.bf16.mxu1 %v837_v55  ;;  %v845_v54 = vsel %vm22193_vm0, %v822_v8, %v837_v55 }
 0x26f   :  { %12758 = vmatmul.mubr.msk.bf16.gmra.mrb[24].mxu0 %vm1067_vm11, %v16968_v34 }
 0x270   :  { %1397 = vmatpush1.bf16.msra.mxu1 %v845_v54  ;;  %v816_v60 = vpop.permute.xlu0 %815  ;;  %1361 = vmatprep.mubr.bf16.mxu0 %v22194_v0 }
 0x271   :  { %v839_v39 = vpop.permute.xlu1 %838  ;;  %v827_v38 = vsel %vm817_vm8, %v16917_v29, %v816_v60 }
 0x272   :  { %1398 = vmatprep.subr.bf16.mxu1 %v839_v39  ;;  %v849_v25 = vsel %vm22193_vm0, %v827_v38, %v839_v39  ;;  %vm22347_vm0 = vcmask 900096  }
 0x274   :  { %1399 = vmatpush1.bf16.msra.mxu1 %v849_v25  ;;  %v862_v17 = vpop.permute.xlu0 %861 }
 0x275   :  { %v895_v14 = vpop.permute.xlu1 %894  ;;  %v880_v19 = vsel %vm875_vm9, %v16868_v33, %v862_v17 }
 0x276   :  { %1400 = vmatprep.subr.bf16.mxu1 %v895_v14  ;;  %v903_v56 = vsel %vm22353_vm1, %v880_v19, %v895_v14 }
 0x277   :  { %12759 = vmatmul.mubr.msk.bf16.gmra.mrb[28].mxu0 %vm1067_vm11, %v16987_v10 }
 0x278   :  { %1401 = vmatpush1.bf16.msra.mxu1 %v903_v56  ;;  %v874_v6 = vpop.permute.xlu0 %873 }
 0x279   :  { %v897_v2 = vpop.permute.xlu1 %896  ;;  %v885_v29 = vsel %vm875_vm9, %v16936_v61, %v874_v6 }
 0x27a   :  { %1402 = vmatprep.subr.bf16.mxu1 %v897_v2  ;;  %v907_v27 = vsel %vm22353_vm1, %v885_v29, %v897_v2  ;;  %vm2641_vm1 = vcmask 293888  }
 0x27c   :  { %1403 = vmatpush1.bf16.msra.mxu1 %v907_v27  ;;  %v920_v62 = vpop.permute.xlu0 %919 }
 0x27d   :  { %v953_v37 = vpop.permute.xlu1 %952  ;;  %v938_v33 = vsel %vm933_vm10, %v16976_v42, %v920_v62  ;;  %v3591_v42 = vand.u32 %v15179_v11, %v16288_v3 }
 0x27e   :  { %1445 = vmatprep.subr.bf16.mxu1 %v953_v37  ;;  %v961_v52 = vsel %vm22347_vm0, %v938_v33, %v953_v37 }
 0x27f   :  { %1405 = vmatmul.mubr.bf16.vlgmr.msra.gmra.mrb[24].mxu1 %v16866_v15  ;;  %v15177_v15 = vld [vmem:[%s22181_s0 + $0x30] ss:$24 sps:$4 sm:$0x1f]  }
 0x280   :  { %1446 = vmatpush1.bf16.msra.mxu1 %v961_v52  ;;  %v932_v48 = vpop.permute.xlu0 %931  ;;  %1414 = vmatprep.mubr.bf16.mxu1 %v16873_v47  ;;  %v15182_v47 = vld [vmem:[%s22181_s0 + $0x3c] ss:$24 sps:$4 sm:$0x1f]  }
 0x281   :  { %v955_v61 = vpop.permute.xlu1 %954  ;;  %v943_v44 = vsel %vm933_vm10, %v16995_v21, %v932_v48 }
 0x282   :  { %1447 = vmatprep.subr.bf16.mxu1 %v955_v61  ;;  %v965_v5 = vsel %vm22347_vm0, %v943_v44, %v955_v61  ;;  %vm2654_vm0 = vcmask 1041408  }
 0x284   :  { %1448 = vmatpush1.bf16.msra.mxu1 %v965_v5 }
 0x285   :  { %3605 = vmatprep.subr.bf16.mxu1 %v3591_v42 }
 0x287   :  { %1415 = vmatmul.mubr.bf16.gmra.mrb[28].mxu1 %v16888_v49  ;;  %v3588_v49 = vand.u32 %v15177_v15, %v16288_v3 }
 0x288   :  { %1424 = vmatprep.mubr.bf16.mxu1 %v16894_v18  ;;  %v3597_v18 = vand.u32 %v15182_v47, %v16288_v3 }
 0x28f   :  { %1425 = vmatmul.mubr.bf16.gmra.mrb[32].mxu1 %v16906_v16  ;;  %v15180_v16 = vld [vmem:[%s22181_s0 + $0x38] ss:$24 sps:$4 sm:$0x1f]  }
 0x290   :  { %1434 = vmatprep.mubr.bf16.mxu1 %v16910_v59  ;;  %v15185_v59 = vld [vmem:[%s22181_s0 + $0x44] ss:$24 sps:$4 sm:$0x1f]  }
 0x291   :  { %v17111_v46 = vpop.permute.xlu0 %969 }
 0x292   :  { %22448 = vst [vmem:[#allocation18_spill] sm:$0xff] %v17111_v46  ;;  %v17116_v13 = vpop.permute.xlu1 %974 }
 0x293   :  { %22449 = vst [vmem:[#allocation19_spill] sm:$0xff] %v17116_v13 }
 0x295   :  { %v17127_v58 = vpop.permute.xlu0 %979 }
 0x296   :  { %22450 = vst [vmem:[#allocation20_spill] sm:$0xff] %v17127_v58  ;;  %v17134_v45 = vpop.permute.xlu1 %984 }
 0x297   :  { %1435 = vmatmul.mubr.bf16.gmra.mrb[36].mxu1 %v16925_v43  ;;  %v3594_v43 = vand.u32 %v15180_v16, %v16288_v3  ;;  %22451 = vst [vmem:[#allocation21_spill] sm:$0xff] %v17134_v45 }
 0x298   :  { %1477 = vmatprep.mubr.bf16.mxu1 %v22194_v0 }
 0x299   :  { %v17172_v33 = vpop.permute.xlu0 %989 }
 0x29a   :  { %v17161_v2 = vpop.permute.xlu1 %994  ;;  %22453 = vst [vmem:[#allocation23_spill] sm:$0xff] %v17172_v33 }
 0x29b   :  { %22452 = vst [vmem:[#allocation22_spill] sm:$0xff] %v17161_v2 }
 0x29f   :  { %12760 = vmatmul.mubr.msk.bf16.vlgmr.msra.gmra.mrb[24].mxu1 %vm1067_vm11, %v16945_v26  ;;  %v3603_v26 = vand.u32 %v15185_v59, %v16288_v3 }
 0x2a0   :  { %1487 = vmatprep.mubr.bf16.mxu1 %v22194_v0  ;;  %3606 = vmatpush1.bf16.msra.mxu1 %v3588_v49 }
 0x2a1   :  { %3658 = vmatprep.subr.bf16.mxu1 %v3597_v18 }
 0x2a7   :  { %12761 = vmatmul.mubr.msk.bf16.gmra.mrb[28].mxu1 %vm1067_vm11, %v16954_v36  ;;  %v15899_v36 = vld [vmem:[%s22182_s1] sm:$0xff]  }
 0x2a8   :  { %1497 = vmatprep.mubr.bf16.mxu1 %v22194_v0 }
 0x2af   :  { %12762 = vmatmul.mubr.msk.bf16.gmra.mrb[32].mxu1 %vm1067_vm11, %v16968_v34  ;;  %v15900_v34 = vld [vmem:[%s22182_s1 + $0x8] sm:$0xff]  }
 0x2b0   :  { %1507 = vmatprep.mubr.bf16.mxu1 %v22194_v0 }
 0x2b7   :  { %12763 = vmatmul.mubr.msk.bf16.gmra.mrb[36].mxu1 %vm1067_vm11, %v16987_v10  ;;  %v15183_v10 = vld [vmem:[%s22181_s0 + $0x40] ss:$24 sps:$4 sm:$0x1f]  }
 0x2b8   :  { %3637 = vmatprep.mubr.bf16.mxu1 %v22194_v0  ;;  %v3600_v21 = vand.u32 %v15183_v10, %v16288_v3 }
 0x2bf   :  { %12867 = vmatmul.mubr.msk.bf16.vlgmr.msra.gmra.mrb[40].mxu1 %vm268_vm2, %v15899_v36 }
 0x2c0   :  { %3647 = vmatprep.mubr.bf16.mxu1 %v22194_v0  ;;  %3659 = vmatpush1.bf16.msra.mxu1 %v3594_v43 }
 0x2c1   :  { %3711 = vmatprep.subr.bf16.mxu1 %v3603_v26 }
 0x2c7   :  { %12868 = vmatmul.mubr.msk.bf16.gmra.mrb[44].mxu1 %vm268_vm2, %v15900_v34 }
 0x2c8   :  { %3690 = vmatprep.mubr.bf16.mxu1 %v22194_v0 }
 0x2cf   :  { %12869 = vmatmul.mubr.msk.bf16.vlgmr.msra.gmra.mrb[48].mxu1 %vm268_vm2, %v15899_v36 }
 0x2d0   :  { %3700 = vmatprep.mubr.bf16.mxu1 %v22194_v0  ;;  %3712 = vmatpush1.bf16.msra.mxu1 %v3600_v21 }
 0x2d7   :  { %12870 = vmatmul.mubr.msk.bf16.gmra.mrb[52].mxu1 %vm268_vm2, %v15900_v34 }
 0x2d8   :  { %3743 = vmatprep.mubr.bf16.mxu1 %v22194_v0 }
 0x2df   :  { %12871 = vmatmul.mubr.msk.bf16.vlgmr.msra.gmra.mrb[56].mxu1 %vm268_vm2, %v15899_v36 }
 0x2e0   :  { %3753 = vmatprep.mubr.bf16.mxu1 %v22194_v0 }
 0x2e7   :  { %12872 = vmatmul.mubr.msk.bf16.gmra.mrb[60].mxu1 %vm268_vm2, %v15900_v34 }
 0x2e8   :  { %4292 = vmatprep.mubr.bf16.mxu1 %v17003_v32 }
 0x312   :  { %v1187_v3 = vpop.f32.mrb[8].mxu1 }
 0x313   :  { %v17114_v30 = vadd.f32 %v1187_v3, %v17111_v46  ;;  %v1189_v20 = vpop.f32.mrb[9].mxu1 }
 0x314   :  { %v1191_v7 = vpop.f32.mrb[10].mxu1  ;;  %v17156_v17 = vadd.f32 %v1189_v20, %v17111_v46 }
 0x315   :  { %v17119_v31 = vadd.f32 %v1191_v7, %v17116_v13  ;;  %v1193_v53 = vpop.f32.mrb[11].mxu1  ;;  %v22233_v1 = vmax.f32 %v17114_v30, 0.0 }
 0x316   :  { %v17159_v19 = vadd.f32 %v1193_v53, %v17116_v13  ;;  %v22217_v11 = vmax.f32 %v17156_v17, 0.0 }
 0x317   :  { %v22230_v50 = vmax.f32 %v17119_v31, 0.0 }
 0x318   :  { %v22225_v44 = vmax.f32 %v17159_v19, 0.0 }
 0x319   :  { %v14595_v32 = vpack.i.bf16 %v22230_v50, %v22233_v1 }
 0x31a   :  { %v1197_v12 = vpop.f32.mrb[12].mxu1 }
 0x31b   :  { %v17130_v9 = vadd.f32 %v1197_v12, %v17127_v58  ;;  %v1199_v41 = vpop.f32.mrb[13].mxu1  ;;  %14596 = vrot.lane.b32.xlu0 %v14595_v32, %s16157_s20  ;;  %14591 = vrot.lane.b32.xlu1 %v14595_v32, %s16149_s2 }
 0x31c   :  { %v1201_v28 = vpop.f32.mrb[14].mxu1  ;;  %v17199_v43 = vadd.f32 %v1199_v41, %v17127_v58 }
 0x31d   :  { %v17137_v57 = vadd.f32 %v1201_v28, %v17134_v45  ;;  %v1203_v4 = vpop.f32.mrb[15].mxu1  ;;  %v22228_v40 = vmax.f32 %v17130_v9, 0.0  ;;  %v17224_v28 = vpop.permute.xlu1 %1004 }
 0x31e   :  { %v22200_v53 = vmax.f32 %v17199_v43, 0.0  ;;  %22455 = vst [vmem:[#allocation25_spill] sm:$0xff] %v17224_v28 }
 0x31f   :  { %v22229_v35 = vmax.f32 %v17137_v57, 0.0 }
 0x321   :  { %v14600_v55 = vpack.i.bf16 %v22229_v35, %v22228_v40 }
 0x322   :  { %v1207_v63 = vpop.f32.mrb[16].mxu1 }
 0x323   :  { %v17145_v8 = vpop.f32.mrb[17].mxu1  ;;  %14601 = vrot.lane.b32.xlu1 %v14600_v55, %s16149_s2  ;;  %v17181_v42 = vadd.f32 %v1207_v63, %v17172_v33 }
 0x324   :  { %v1211_v54 = vpop.f32.mrb[18].mxu1  ;;  %v17268_v0 = vadd.f32 %v17145_v8, %v17172_v33 }
 0x325   :  { %v17148_v39 = vpop.f32.mrb[19].mxu1  ;;  %v17167_v27 = vadd.f32 %v1211_v54, %v17161_v2  ;;  %v22221_v26 = vmax.f32 %v17181_v42, 0.0 }
 0x327   :  { %14606 = vrot.lane.b32.xlu1 %v14600_v55, %s16157_s20  ;;  %v22220_v18 = vmax.f32 %v17167_v27, 0.0  ;;  %v17227_v55 = vadd.f32 %v1203_v4, %v17134_v45 }
 0x329   :  { %v14625_v3 = vpack.i.bf16 %v22220_v18, %v22221_v26 }
 0x32a   :  { %v1217_v60 = vpop.f32.mrb[20].mxu1 }
 0x32b   :  { %v17151_v38 = vpop.f32.mrb[21].mxu1 }
 0x32c   :  { %v1221_v25 = vpop.f32.mrb[22].mxu1 }
 0x32d   :  { %v17153_v14 = vpop.f32.mrb[23].mxu1  ;;  %v17234_v54 = vadd.f32 %v1221_v25, %v17224_v28  ;;  %v22204_v25 = vmax.f32 %v17227_v55, 0.0 }
 0x332   :  { %v1333_v56 = vpop.f32.mrb[16].mxu0 }
 0x333   :  { %v17164_v6 = vadd.f32 %v1333_v56, %v17111_v46  ;;  %v1335_v29 = vpop.f32.mrb[17].mxu0 }
 0x334   :  { %v17170_v37 = vadd.f32 %v1335_v29, %v17111_v46  ;;  %v1337_v62 = vpop.f32.mrb[18].mxu0 }
 0x335   :  { %v22216_v52 = vmax.f32 %v17164_v6, 0.0  ;;  %v17177_v61 = vadd.f32 %v1337_v62, %v17116_v13  ;;  %v1339_v48 = vpop.f32.mrb[19].mxu0  ;;  %v17241_v62 = vpop.permute.xlu0 %999 }
 0x336   :  { %v22198_v5 = vmax.f32 %v17170_v37, 0.0  ;;  %v17185_v15 = vadd.f32 %v1339_v48, %v17116_v13  ;;  %22457 = vst [vmem:[#allocation27_spill] sm:$0xff] %v17241_v62 }
 0x337   :  { %v14610_v47 = vpack.i.bf16 %v22216_v52, %v22217_v11  ;;  %v22222_v49 = vmax.f32 %v17177_v61, 0.0 }
 0x338   :  { %v14615_v16 = vpack.i.bf16 %v22225_v44, %v22198_v5  ;;  %v22199_v59 = vmax.f32 %v17185_v15, 0.0 }
 0x339   :  { %14611 = vrot.lane.b32.xlu0 %v14610_v47, %s16149_s2  ;;  %v17246_v47 = vadd.f32 %v1217_v60, %v17241_v62 }
 0x33a   :  { %v14620_v36 = vpack.i.bf16 %v22199_v59, %v22222_v49  ;;  %v1343_v34 = vpop.f32.mrb[20].mxu0  ;;  %14616 = vrot.lane.b32.xlu1 %v14615_v16, %s16149_s2  ;;  %v17294_v59 = vadd.f32 %v17153_v14, %v17224_v28 }
 0x33b   :  { %v17209_v10 = vadd.f32 %v1343_v34, %v17127_v58  ;;  %v1345_v21 = vpop.f32.mrb[21].mxu0  ;;  %v22202_v34 = vmax.f32 %v17234_v54, 0.0 }
 0x33c   :  { %v17216_v20 = vadd.f32 %v1345_v21, %v17127_v58  ;;  %v1347_v7 = vpop.f32.mrb[22].mxu0 }
 0x33d   :  { %v22201_v32 = vmax.f32 %v17209_v10, 0.0  ;;  %v17221_v12 = vadd.f32 %v1347_v7, %v17134_v45  ;;  %v1349_v41 = vpop.f32.mrb[23].mxu0  ;;  %14621 = vrot.lane.b32.xlu0 %v14620_v36, %s16149_s2 }
 0x33e   :  { %22454 = vst [vmem:[#allocation24_spill] sm:$0xff] %v17216_v20  ;;  %v17230_v63 = vadd.f32 %v1349_v41, %v17134_v45  ;;  %14626 = vrot.lane.b32.xlu1 %v14625_v3, %s16149_s2  ;;  %v22197_v4 = vmax.f32 %v17216_v20, 0.0 }
 0x33f   :  { %v14635_v56 = vpack.i.bf16 %v22201_v32, %v22200_v53  ;;  %v22207_v29 = vmax.f32 %v17221_v12, 0.0 }
 0x340   :  { %22456 = vst [vmem:[#allocation26_spill] sm:$0xff] %v17230_v63  ;;  %v22196_v48 = vmax.f32 %v17230_v63, 0.0  ;;  %v14640_v60 = vpack.i.bf16 %v22204_v25, %v22197_v4 }
 0x341   :  { %14636 = vrot.lane.b32.xlu0 %v14635_v56, %s16149_s2 }
 0x342   :  { %v14645_v16 = vpack.i.bf16 %v22196_v48, %v22207_v29  ;;  %v1353_v36 = vpop.f32.mrb[24].mxu0  ;;  %14631 = vrot.lane.b32.xlu1 %v14625_v3, %s16157_s20  ;;  %v22203_v3 = vmax.f32 %v17246_v47, 0.0 }
 0x343   :  { %v17257_v21 = vadd.f32 %v1353_v36, %v17172_v33  ;;  %v1355_v7 = vpop.f32.mrb[25].mxu0  ;;  %v17274_v36 = vadd.f32 %v17148_v39, %v17161_v2  ;;  %v22206_v39 = vmax.f32 %v17268_v0, 0.0 }
 0x344   :  { %v17264_v41 = vadd.f32 %v1355_v7, %v17172_v33  ;;  %v1357_v56 = vpop.f32.mrb[26].mxu0  ;;  %v14655_v7 = vpack.i.bf16 %v22202_v34, %v22203_v3 }
 0x345   :  { %v1359_v48 = vpop.f32.mrb[27].mxu0  ;;  %14646 = vrot.lane.b32.xlu0 %v14645_v16, %s16149_s2  ;;  %v22205_v4 = vmax.f32 %v17257_v21, 0.0  ;;  %v17283_v8 = vadd.f32 %v1357_v56, %v17161_v2 }
 0x346   :  { %22458 = vst [vmem:[#allocation28_spill] sm:$0xff] %v17264_v41  ;;  %14641 = vrot.lane.b32.xlu1 %v14640_v60, %s16149_s2  ;;  %v17286_v5 = vadd.f32 %v1359_v48, %v17161_v2  ;;  %v22208_v16 = vmax.f32 %v17264_v41, 0.0  ;;  %v22209_v60 = vmax.f32 %v17274_v36, 0.0 }
 0x347   :  { %v14660_v48 = vpack.i.bf16 %v22205_v4, %v22206_v39  ;;  %v22215_v56 = vmax.f32 %v17283_v8, 0.0  ;;  %v17315_v4 = vadd.f32 %v17151_v38, %v17241_v62 }
 0x348   :  { %22459 = vst [vmem:[#allocation29_spill] sm:$0xff] %v17286_v5  ;;  %v22210_v32 = vmax.f32 %v17286_v5, 0.0  ;;  %v14665_v14 = vpack.i.bf16 %v22209_v60, %v22208_v16 }
 0x349   :  { %14656 = vrot.lane.b32.xlu0 %v14655_v7, %s16157_s20 }
 0x34a   :  { %v1363_v53 = vpop.f32.mrb[28].mxu0  ;;  %14651 = vrot.lane.b32.xlu1 %v14655_v7, %s16149_s2 }
 0x34b   :  { %v17304_v34 = vadd.f32 %v1363_v53, %v17241_v62  ;;  %v1365_v3 = vpop.f32.mrb[29].mxu0  ;;  %v22212_v53 = vmax.f32 %v17294_v59, 0.0 }
 0x34c   :  { %v17311_v7 = vadd.f32 %v1365_v3, %v17241_v62  ;;  %v1367_v25 = vpop.f32.mrb[30].mxu0  ;;  %v14670_v3 = vpack.i.bf16 %v22210_v32, %v22215_v56 }
 0x34d   :  { %v1369_v39 = vpop.f32.mrb[31].mxu0  ;;  %14661 = vrot.lane.b32.xlu0 %v14660_v48, %s16149_s2  ;;  %v22213_v16 = vmax.f32 %v17304_v34, 0.0  ;;  %v17327_v60 = vadd.f32 %v1367_v25, %v17224_v28 }
 0x34e   :  { %22460 = vst [vmem:[#allocation30_spill] sm:$0xff] %v17311_v7  ;;  %v22211_v29 = vmax.f32 %v17311_v7, 0.0  ;;  %14666 = vrot.lane.b32.xlu1 %v14665_v14, %s16149_s2  ;;  %v17330_v38 = vadd.f32 %v1369_v39, %v17224_v28  ;;  %v22214_v14 = vmax.f32 %v17315_v4, 0.0 }
 0x34f   :  { %v22219_v32 = vmax.f32 %v17327_v60, 0.0 }
 0x350   :  { %22461 = vst [vmem:[#allocation31_spill] sm:$0xff] %v17330_v38  ;;  %v14680_v48 = vpack.i.bf16 %v22212_v53, %v22211_v29  ;;  %v14675_v25 = vpack.i.bf16 %v22213_v16, %v22214_v14  ;;  %v22218_v39 = vmax.f32 %v17330_v38, 0.0  ;;  %v15200_v38 = vld [vmem:[%s22186_s5 + $0x44] ss:$8 sps:$4 sm:$0xff]  }
 0x351   :  { %14671 = vrot.lane.b32.xlu0 %v14670_v3, %s16149_s2 }
 0x352   :  { %14681 = vrot.lane.b32.xlu1 %v14680_v48, %s16149_s2  ;;  %v14685_v29 = vpack.i.bf16 %v22218_v39, %v22219_v32 }
 0x355   :  { %14676 = vrot.lane.b32.xlu0 %v14675_v25, %s16149_s2 }
 0x359   :  { %14686 = vrot.lane.b32.xlu0 %v14685_v29, %s16149_s2 }
 0x372   :  { %v1479_v3 = vpop.f32.mrb[24].mxu1 }
 0x373   :  { %v17352_v48 = vadd.f32 %v1479_v3, %v17111_v46  ;;  %v1481_v53 = vpop.f32.mrb[25].mxu1 }
 0x374   :  { %v17355_v16 = vadd.f32 %v1481_v53, %v17111_v46  ;;  %v1483_v14 = vpop.f32.mrb[26].mxu1  ;;  %v15189_v46 = vld [vmem:[%s22186_s5 + $0x10] ss:$8 sps:$4 sm:$0xff]  }
 0x375   :  { %22462 = vst [vmem:[#allocation32_spill] sm:$0xff] %v17352_v48  ;;  %v22224_v56 = vmax.f32 %v17352_v48, 0.0  ;;  %v17359_v25 = vadd.f32 %v1483_v14, %v17116_v13  ;;  %v1485_v52 = vpop.f32.mrb[27].mxu1 }
 0x376   :  { %22463 = vst [vmem:[#allocation33_spill] sm:$0xff] %v17355_v16  ;;  %v22223_v11 = vmax.f32 %v17355_v16, 0.0  ;;  %v17363_v39 = vadd.f32 %v1485_v52, %v17116_v13  ;;  %v22477_v16 = vmax.f32 %v17114_v30, 0.0  ;;  %v15209_v30 = vld [vmem:[%s22186_s5 + $0x74] ss:$8 sps:$4 sm:$0xff]  }
 0x377   :  { %v22227_v29 = vmax.f32 %v17359_v25, 0.0 }
 0x378   :  { %22464 = vst [vmem:[#allocation34_spill] sm:$0xff] %v17363_v39  ;;  %v14690_v53 = vpack.i.bf16 %v22223_v11, %v22224_v56  ;;  %v22226_v3 = vmax.f32 %v17363_v39, 0.0 }
 0x37a   :  { %v14695_v14 = vpack.i.bf16 %v22226_v3, %v22227_v29  ;;  %v1489_v32 = vpop.f32.mrb[28].mxu1  ;;  %14691 = vrot.lane.b32.xlu1 %v14690_v53, %s16149_s2 }
 0x37b   :  { %v17377_v52 = vadd.f32 %v1489_v32, %v17127_v58  ;;  %v1491_v18 = vpop.f32.mrb[29].mxu1 }
 0x37c   :  { %v17380_v26 = vadd.f32 %v1491_v18, %v17127_v58  ;;  %v1493_v49 = vpop.f32.mrb[30].mxu1  ;;  %14696 = vrot.lane.b32.xlu0 %v14695_v14, %s16149_s2 }
 0x37d   :  { %22465 = vst [vmem:[#allocation35_spill] sm:$0xff] %v17377_v52  ;;  %v22232_v11 = vmax.f32 %v17377_v52, 0.0  ;;  %v17385_v56 = vadd.f32 %v1493_v49, %v17134_v45  ;;  %v1495_v44 = vpop.f32.mrb[31].mxu1 }
 0x37e   :  { %22466 = vst [vmem:[#allocation36_spill] sm:$0xff] %v17380_v26  ;;  %v22231_v3 = vmax.f32 %v17380_v26, 0.0  ;;  %v17389_v53 = vadd.f32 %v1495_v44, %v17134_v45 }
 0x37f   :  { %22467 = vst [vmem:[#allocation37_spill] sm:$0xff] %v17385_v56  ;;  %v22235_v32 = vmax.f32 %v17385_v56, 0.0 }
 0x380   :  { %22468 = vst [vmem:[#allocation38_spill] sm:$0xff] %v17389_v53  ;;  %v14700_v18 = vpack.i.bf16 %v22231_v3, %v22232_v11  ;;  %v22234_v14 = vmax.f32 %v17389_v53, 0.0 }
 0x382   :  { %v14705_v49 = vpack.i.bf16 %v22234_v14, %v22235_v32  ;;  %v1499_v29 = vpop.f32.mrb[32].mxu1  ;;  %14701 = vrot.lane.b32.xlu1 %v14700_v18, %s16149_s2 }
 0x383   :  { %v17403_v44 = vadd.f32 %v1499_v29, %v17172_v33  ;;  %v1501_v40 = vpop.f32.mrb[33].mxu1 }
 0x384   :  { %v17406_v35 = vadd.f32 %v1501_v40, %v17172_v33  ;;  %v1503_v50 = vpop.f32.mrb[34].mxu1  ;;  %14706 = vrot.lane.b32.xlu0 %v14705_v49, %s16149_s2 }
 0x385   :  { %22469 = vst [vmem:[#allocation39_spill] sm:$0xff] %v17403_v44  ;;  %v22243_v3 = vmax.f32 %v17403_v44, 0.0  ;;  %v17411_v11 = vadd.f32 %v1503_v50, %v17161_v2  ;;  %v1505_v1 = vpop.f32.mrb[35].mxu1 }
 0x386   :  { %22470 = vst [vmem:[#allocation40_spill] sm:$0xff] %v17406_v35  ;;  %v22242_v14 = vmax.f32 %v17406_v35, 0.0  ;;  %v17415_v18 = vadd.f32 %v1505_v1, %v17161_v2 }
 0x387   :  { %22471 = vst [vmem:[#allocation41_spill] sm:$0xff] %v17411_v11  ;;  %v22245_v29 = vmax.f32 %v17411_v11, 0.0 }
 0x388   :  { %22472 = vst [vmem:[#allocation42_spill] sm:$0xff] %v17415_v18  ;;  %v14710_v40 = vpack.i.bf16 %v22242_v14, %v22243_v3  ;;  %v22244_v49 = vmax.f32 %v17415_v18, 0.0  ;;  %v15194_v18 = vld [vmem:[%s22186_s5 + $0x24] ss:$8 sps:$4 sm:$0xff]  }
 0x38a   :  { %v14715_v50 = vpack.i.bf16 %v22244_v49, %v22245_v29  ;;  %v1509_v32 = vpop.f32.mrb[36].mxu1  ;;  %14711 = vrot.lane.b32.xlu1 %v14710_v40, %s16149_s2  ;;  %v15188_v40 = vld [vmem:[%s22186_s5 + $0x4] ss:$8 sps:$4 sm:$0xff]  }
 0x38b   :  { %v17429_v1 = vadd.f32 %v1509_v32, %v17241_v62  ;;  %v1511_v33 = vpop.f32.mrb[37].mxu1  ;;  %2661 = vmatprep.subr.bf16.mxu0 %v15188_v40 }
 0x38c   :  { %v17432_v2 = vadd.f32 %v1511_v33, %v17241_v62  ;;  %v17434_v58 = vpop.f32.mrb[38].mxu1  ;;  %14716 = vrot.lane.b32.xlu0 %v14715_v50, %s16149_s2  ;;  %v15186_v33 = vld [vmem:[%s22186_s5] ss:$8 sps:$4 sm:$0xff]  }
 0x38d   :  { %22473 = vst [vmem:[#allocation43_spill] sm:$0xff] %v17429_v1  ;;  %v22253_v14 = vmax.f32 %v17429_v1, 0.0  ;;  %v17438_v3 = vpop.f32.mrb[39].mxu1  ;;  %2662 = vmatpush1.bf16.msra.mxu0 %v15186_v33 }
 0x38e   :  { %22474 = vst [vmem:[#allocation44_spill] sm:$0xff] %v17432_v2  ;;  %v22252_v49 = vmax.f32 %v17432_v2, 0.0  ;;  %v15191_v2 = vld [vmem:[%s22186_s5 + $0x14] ss:$8 sps:$4 sm:$0xff]  }
 0x38f   :  { %2663 = vmatprep.subr.bf16.mxu0 %v15191_v2 }
 0x390   :  { %v14720_v32 = vpack.i.bf16 %v22252_v49, %v22253_v14 }
 0x391   :  { %2664 = vmatpush1.bf16.msra.mxu0 %v15189_v46 }
 0x392   :  { %v3639_v50 = vpop.f32.mrb[40].mxu1  ;;  %14721 = vrot.lane.b32.xlu1 %v14720_v32, %s16149_s2  ;;  %2665 = vmatprep.subr.bf16.mxu0 %v15194_v18  ;;  %v17483_v18 = vpop.permute.xlu1 %14591 }
 0x393   :  { %v3640_v29 = vadd.f32 %v3639_v50, %v16342_v22  ;;  %v3641_v62 = vpop.f32.mrb[41].mxu1 }
 0x394   :  { %v3642_v45 = vadd.f32 %v3641_v62, %v16342_v22  ;;  %v3643_v13 = vpop.f32.mrb[42].mxu1 }
 0x395   :  { %v3644_v49 = vadd.f32 %v3643_v13, %v16344_v23  ;;  %v3645_v14 = vpop.f32.mrb[43].mxu1  ;;  %v3764_v50 = vmax.f32 %v3640_v29, 0.0  ;;  %v15192_v13 = vld [vmem:[%s22186_s5 + $0x20] ss:$8 sps:$4 sm:$0xff]  }
 0x396   :  { %v3646_v32 = vadd.f32 %v3645_v14, %v16344_v23  ;;  %v3765_v40 = vmax.f32 %v3642_v45, 0.0  ;;  %2666 = vmatpush1.bf16.msra.mxu0 %v15192_v13  ;;  %v17494_v1 = vpop.permute.xlu1 %14601 }
 0x397   :  { %v3770_v35 = vmax.f32 %v3644_v49, 0.0  ;;  %v15195_v49 = vld [vmem:[%s22186_s5 + $0x30] ss:$8 sps:$4 sm:$0xff]  }
 0x398   :  { %v3771_v62 = vmax.f32 %v3646_v32, 0.0 }
 0x399   :  { %v17462_v33 = vpack.c.bf16 %v3770_v35, %v3764_v50 }
 0x39a   :  { %v17470_v26 = vpack.c.bf16 %v3771_v62, %v3765_v40  ;;  %v3649_v53 = vpop.f32.mrb[44].mxu1 }
 0x39b   :  { %v3650_v14 = vadd.f32 %v3649_v53, %v16346_v24  ;;  %v3651_v29 = vpop.f32.mrb[45].mxu1  ;;  %v15197_v53 = vld [vmem:[%s22186_s5 + $0x34] ss:$8 sps:$4 sm:$0xff]  }
 0x39c   :  { %v3652_v45 = vadd.f32 %v3651_v29, %v16346_v24  ;;  %v3653_v46 = vpop.f32.mrb[46].mxu1  ;;  %4260 = vmatprep.subr.bf16.mxu1 %v17470_v26  ;;  %2667 = vmatprep.subr.bf16.mxu0 %v15197_v53 }
 0x39d   :  { %v3654_v35 = vadd.f32 %v3653_v46, %v16360_v51  ;;  %v3655_v2 = vpop.f32.mrb[47].mxu1  ;;  %4261 = vmatpush1.bf16.msra.mxu1 %v17462_v33  ;;  %v3776_v50 = vmax.f32 %v3650_v14, 0.0  ;;  %2668 = vmatpush1.bf16.msra.mxu0 %v15195_v49  ;;  %v15198_v46 = vld [vmem:[%s22186_s5 + $0x40] ss:$8 sps:$4 sm:$0xff]  }
 0x39e   :  { %v3656_v32 = vadd.f32 %v3655_v2, %v16360_v51  ;;  %v3777_v62 = vmax.f32 %v3652_v45, 0.0  ;;  %2669 = vmatprep.subr.bf16.mxu0 %v15200_v38 }
 0x39f   :  { %v3782_v40 = vmax.f32 %v3654_v35, 0.0 }
 0x3a0   :  { %v3783_v13 = vmax.f32 %v3656_v32, 0.0 }
 0x3a1   :  { %v17486_v29 = vpack.c.bf16 %v3782_v40, %v3776_v50  ;;  %2670 = vmatpush1.bf16.msra.mxu0 %v15198_v46  ;;  %v17504_v40 = vpop.permute.xlu0 %14596  ;;  %v15203_v46 = vld [vmem:[%s22186_s5 + $0x54] ss:$8 sps:$4 sm:$0xff]  }
 0x3a2   :  { %v17496_v7 = vpack.c.bf16 %v3783_v13, %v3777_v62  ;;  %v3692_v14 = vpop.f32.mrb[48].mxu1  ;;  %22475 = vst [vmem:[#allocation45_spill] sm:$0xff] %v17504_v40  ;;  %2671 = vmatprep.subr.bf16.mxu0 %v15203_v46  ;;  %v14594_v46 = vunpack.i.h.bf16 %v17483_v18 }
 0x3a3   :  { %v3693_v35 = vadd.f32 %v3692_v14, %v16342_v22  ;;  %v3694_v45 = vpop.f32.mrb[49].mxu1  ;;  %v17506_v14 = vpop.permute.xlu1 %14606 }
 0x3a4   :  { %v3695_v2 = vadd.f32 %v3694_v45, %v16342_v22  ;;  %v3696_v49 = vpop.f32.mrb[50].mxu1  ;;  %4262 = vmatprep.subr.bf16.mxu1 %v17496_v7  ;;  %22476 = vst [vmem:[#allocation46_spill] sm:$0xff] %v17506_v14  ;;  %v15201_v45 = vld [vmem:[%s22186_s5 + $0x50] ss:$8 sps:$4 sm:$0xff]  }
 0x3a5   :  { %v3697_v53 = vadd.f32 %v3696_v49, %v16344_v23  ;;  %v3698_v32 = vpop.f32.mrb[51].mxu1  ;;  %4263 = vmatpush1.bf16.msra.mxu1 %v17486_v29  ;;  %v3766_v62 = vmax.f32 %v3693_v35, 0.0  ;;  %2672 = vmatpush1.bf16.msra.mxu0 %v15201_v45 }
 0x3a6   :  { %v3699_v50 = vadd.f32 %v3698_v32, %v16344_v23  ;;  %v3767_v38 = vmax.f32 %v3695_v2, 0.0  ;;  %v14593_v2 = vunpack.i.l.bf16 %v17483_v18 }
 0x3a7   :  { %v3772_v13 = vmax.f32 %v3697_v53, 0.0 }
 0x3a8   :  { %v3773_v44 = vmax.f32 %v3699_v50, 0.0 }
 0x3a9   :  { %v17514_v49 = vpack.c.bf16 %v3772_v13, %v3766_v62  ;;  %v15206_v62 = vld [vmem:[%s22186_s5 + $0x64] ss:$8 sps:$4 sm:$0xff]  }
 0x3aa   :  { %v17516_v41 = vpack.c.bf16 %v3773_v44, %v3767_v38  ;;  %v3702_v32 = vpop.f32.mrb[52].mxu1  ;;  %v15204_v44 = vld [vmem:[%s22186_s5 + $0x60] ss:$8 sps:$4 sm:$0xff]   ;;  %2673 = vmatprep.subr.bf16.mxu0 %v15206_v62 }
 0x3ab   :  { %v3703_v35 = vadd.f32 %v3702_v32, %v16346_v24  ;;  %v3704_v53 = vpop.f32.mrb[53].mxu1  ;;  %v17519_v14 = vpop.permute.xlu0 %14611  ;;  %2674 = vmatpush1.bf16.msra.mxu0 %v15204_v44 }
 0x3ac   :  { %v3705_v50 = vadd.f32 %v3704_v53, %v16346_v24  ;;  %v22277_v11 = vunpack.i.l.bf16 %v17519_v14  ;;  %v3706_v5 = vpop.f32.mrb[54].mxu1  ;;  %v17524_v52 = vpop.permute.xlu1 %14616  ;;  %2675 = vmatprep.subr.bf16.mxu0 %v15209_v30 }
 0x3ad   :  { %v3707_v13 = vadd.f32 %v3706_v5, %v16360_v51  ;;  %v22278_v38 = vunpack.i.h.bf16 %v17524_v52  ;;  %v3708_v45 = vpop.f32.mrb[55].mxu1  ;;  %v3778_v20 = vmax.f32 %v3703_v35, 0.0  ;;  %v22479_v35 = vmax.f32 %v17119_v31, 0.0 }
 0x3ae   :  { %v1711_v32 = vsel %vm528_vm3, %v14593_v2, %v22277_v11  ;;  %v3709_v53 = vadd.f32 %v3708_v45, %v16360_v51  ;;  %v3779_v5 = vmax.f32 %v3705_v50, 0.0  ;;  %v17570_v31 = vadd.f32 %v17438_v3, %v17224_v28  ;;  %v15210_v3 = vld [vmem:[%s22186_s5 + $0x80] ss:$8 sps:$4 sm:$0xff]  }
 0x3af   :  { %v17541_v39 = vmax.f32 %v22477_v16, %v1711_v32  ;;  %v3784_v56 = vmax.f32 %v3707_v13, 0.0  ;;  %v17543_v63 = vpop.permute.xlu0 %14621  ;;  %v1716_v18 = vsel %vm528_vm3, %v14594_v46, %v22278_v38  ;;  %v17561_v16 = vadd.f32 %v17434_v58, %v17224_v28 }
 0x3b0   :  { %v3785_v40 = vmax.f32 %v3709_v53, 0.0  ;;  %v17548_v48 = vpop.permute.xlu1 %14626  ;;  %v17554_v62 = vmax.f32 %v22479_v35, %v1716_v18  ;;  %v15212_v53 = vld [vmem:[%s22186_s5 + $0x84] ss:$8 sps:$4 sm:$0xff]   ;;  %v14603_v38 = vunpack.i.l.bf16 %v17494_v1 }
 0x3b1   :  { %22478 = vst [vmem:[#allocation47_spill] sm:$0xff] %v17541_v39  ;;  %v17550_v2 = vpack.c.bf16 %v3784_v56, %v3778_v20  ;;  %v15207_v20 = vld [vmem:[%s22186_s5 + $0x70] ss:$8 sps:$4 sm:$0xff]  }
 0x3b2   :  { %v17563_v50 = vpack.c.bf16 %v3785_v40, %v3779_v5  ;;  %v3745_v44 = vpop.f32.mrb[56].mxu1  ;;  %v14725_v58 = vpack.i.bf16 %v17554_v62, %v17541_v39  ;;  %2676 = vmatpush1.bf16.msra.mxu0 %v15207_v20 }
 0x3b3   :  { %v3746_v56 = vadd.f32 %v3745_v44, %v16342_v22  ;;  %v3747_v13 = vpop.f32.mrb[57].mxu1  ;;  %v17573_v45 = vpop.permute.xlu0 %14636  ;;  %2677 = vmatprep.subr.bf16.mxu0 %v15212_v53  ;;  %v22283_v44 = vmax.f32 %v17570_v31, 0.0 }
 0x3b4   :  { %v3748_v40 = vadd.f32 %v3747_v13, %v16342_v22  ;;  %v3749_v46 = vpop.f32.mrb[58].mxu1  ;;  %v17578_v32 = vpop.permute.xlu1 %14631  ;;  %14726 = vrot.lane.b32.xlu0 %v14725_v58, %s16151_s15  ;;  %v22284_v22 = vunpack.i.l.bf16 %v17573_v45 }
 0x3b5   :  { %22480 = vst [vmem:[#allocation48_spill] sm:$0xff] %v17578_v32  ;;  %v3750_v5 = vadd.f32 %v3749_v46, %v16344_v23  ;;  %v3751_v18 = vpop.f32.mrb[59].mxu1  ;;  %v3768_v20 = vmax.f32 %v3746_v56, 0.0  ;;  %v15215_v46 = vld [vmem:[%s22186_s5 + $0x94] ss:$8 sps:$4 sm:$0xff]   ;;  %v14604_v56 = vunpack.i.h.bf16 %v17494_v1 }
 0x3b6   :  { %v3752_v30 = vadd.f32 %v3751_v18, %v16344_v23  ;;  %v3769_v28 = vmax.f32 %v3748_v40, 0.0  ;;  %2678 = vmatpush1.bf16.msra.mxu0 %v15210_v3  ;;  %v15213_v23 = vld [vmem:[%s22186_s5 + $0x90] ss:$8 sps:$4 sm:$0xff]   ;;  %v1721_v40 = vsel %vm528_vm3, %v14603_v38, %v22284_v22 }
 0x3b7   :  { %v3774_v13 = vmax.f32 %v3750_v5, 0.0  ;;  %v17592_v11 = vpop.permute.xlu0 %14646  ;;  %2679 = vmatprep.subr.bf16.mxu0 %v15215_v46 }
 0x3b8   :  { %v3775_v32 = vmax.f32 %v3752_v30, 0.0  ;;  %v17598_v35 = vpop.permute.xlu1 %14641  ;;  %14731 = vrot.lane.b32.xlu0 %v14725_v58, %s16159_s22  ;;  %v22483_v30 = vmax.f32 %v17561_v16, 0.0  ;;  %v15218_v58 = vld [vmem:[%s22186_s5 + $0xa4] ss:$8 sps:$4 sm:$0xff]  }
 0x3b9   :  { %v17604_v53 = vpack.c.bf16 %v3774_v13, %v3768_v20  ;;  %v22285_v5 = vunpack.i.h.bf16 %v17598_v35 }
 0x3ba   :  { %v17611_v18 = vpack.c.bf16 %v3775_v32, %v3769_v28  ;;  %v3755_v3 = vpop.f32.mrb[60].mxu1  ;;  %v14735_v39 = vpack.i.bf16 %v22283_v44, %v22483_v30  ;;  %v22484_v28 = vmax.f32 %v17137_v57, 0.0  ;;  %2680 = vmatpush1.bf16.msra.mxu0 %v15213_v23  ;;  %v15216_v30 = vld [vmem:[%s22186_s5 + $0xa0] ss:$8 sps:$4 sm:$0xff]  }
 0x3bb   :  { %22481 = vst [vmem:[#allocation49_spill] sm:$0xff] %v17604_v53  ;;  %v1726_v1 = vsel %vm528_vm3, %v14604_v56, %v22285_v5  ;;  %v3757_v20 = vpop.f32.mrb[61].mxu1  ;;  %v17620_v13 = vpop.permute.xlu0 %14656  ;;  %v22485_v56 = vmax.f32 %v17130_v9, 0.0  ;;  %v3756_v22 = vadd.f32 %v3755_v3, %v16346_v24  ;;  %2681 = vmatprep.subr.bf16.mxu0 %v15218_v58 }
 0x3bc   :  { %22482 = vst [vmem:[#allocation50_spill] sm:$0xff] %v17611_v18  ;;  %v17627_v38 = vmax.f32 %v22484_v28, %v1726_v1  ;;  %v3759_v32 = vpop.f32.mrb[62].mxu1  ;;  %v17629_v46 = vpop.permute.xlu1 %14651  ;;  %v3758_v5 = vadd.f32 %v3757_v20, %v16346_v24  ;;  %14736 = vrot.lane.b32.xlu0 %v14735_v39, %s16149_s2  ;;  %v22287_v28 = vunpack.i.h.bf16 %v17543_v63  ;;  %v14623_v18 = vunpack.i.l.bf16 %v17543_v63 }
 0x3bd   :  { %v17636_v44 = vmax.f32 %v22485_v56, %v1721_v40  ;;  %v3761_v57 = vpop.f32.mrb[63].mxu1  ;;  %v3760_v1 = vadd.f32 %v3759_v32, %v16360_v51  ;;  %v3780_v40 = vmax.f32 %v3756_v22, 0.0  ;;  %v22488_v32 = vunpack.i.h.bf16 %v17524_v52 }
 0x3be   :  { %v3762_v23 = vadd.f32 %v3761_v57, %v16360_v51  ;;  %v3781_v3 = vmax.f32 %v3758_v5, 0.0  ;;  %2682 = vmatpush1.bf16.msra.mxu0 %v15216_v30  ;;  %v15221_v51 = vld [vmem:[%s22186_s5 + $0xb4] ss:$8 sps:$4 sm:$0xff]   ;;  %v15219_v5 = vld [vmem:[%s22186_s5 + $0xb0] ss:$8 sps:$4 sm:$0xff]   ;;  %v1718_v57 = vsel %vm528_vm3, %v14623_v18, %v22287_v28 }
 0x3bf   :  { %v17647_v9 = vpack.i.bf16 %v17627_v38, %v17636_v44  ;;  %v3786_v56 = vmax.f32 %v3760_v1, 0.0  ;;  %v17649_v39 = vpop.permute.xlu0 %14661  ;;  %2683 = vmatprep.subr.bf16.mxu0 %v15221_v51  ;;  %v1717_v30 = vsel %vm528_vm3, %v22488_v32, %v14623_v18  ;;  %v14629_v18 = vunpack.i.h.bf16 %v17548_v48  ;;  %v15227_v28 = vld [vmem:[%s22186_s5 + $0xd4] ss:$8 sps:$4 sm:$0xff]  }
 0x3c0   :  { %v3787_v24 = vmax.f32 %v3762_v23, 0.0  ;;  %v17651_v20 = vpop.permute.xlu1 %14666  ;;  %3812 = vrot.lane.b32.xlu0 %v17462_v33, %s16149_s2  ;;  %v22291_v1 = vunpack.i.l.bf16 %v17649_v39 }
 0x3c1   :  { %14741 = vrot.lane.b32.xlu1 %v17647_v9, %s16151_s15  ;;  %v17660_v58 = vpack.c.bf16 %v3786_v56, %v3780_v40  ;;  %v15222_v40 = vld [vmem:[%s22186_s5 + $0xc0] ss:$8 sps:$4 sm:$0xff]   ;;  %v14628_v56 = vunpack.i.l.bf16 %v17548_v48 }
 0x3c2   :  { %v17662_v22 = vpack.c.bf16 %v3787_v24, %v3781_v3  ;;  %2684 = vmatpush1.bf16.msra.mxu0 %v15219_v5  ;;  %v15224_v3 = vld [vmem:[%s22186_s5 + $0xc4] ss:$8 sps:$4 sm:$0xff]   ;;  %v22489_v24 = vmax.f32 %v17159_v19, 0.0  ;;  %v22490_v5 = vmax.f32 %v17177_v61, 0.0  ;;  %v15225_v19 = vld [vmem:[%s22186_s5 + $0xd0] ss:$8 sps:$4 sm:$0xff]  }
 0x3c3   :  { %22486 = vst [vmem:[#allocation51_spill] sm:$0xff] %v17660_v58  ;;  %2685 = vmatprep.subr.bf16.mxu0 %v15224_v3  ;;  %v1731_v23 = vsel %vm528_vm3, %v14628_v56, %v22291_v1  ;;  %v22493_v61 = vmax.f32 %v17181_v42, 0.0  ;;  %v15230_v42 = vld [vmem:[%s22186_s5 + $0xe4] ss:$8 sps:$4 sm:$0xff]  }
 0x3c4   :  { %22487 = vst [vmem:[#allocation52_spill] sm:$0xff] %v17662_v22  ;;  %3924 = vrot.lane.b32.xlu0 %v17462_v33, %s16151_s15  ;;  %v17689_v51 = vmax.f32 %v22489_v24, %v1717_v30  ;;  %v17693_v32 = vmax.f32 %v22490_v5, %v1718_v57  ;;  %v22492_v22 = vunpack.i.h.bf16 %v17651_v20  ;;  %v22494_v57 = vmax.f32 %v17167_v27, 0.0  ;;  %v15228_v27 = vld [vmem:[%s22186_s5 + $0xe0] ss:$8 sps:$4 sm:$0xff]   ;;  %v15231_v5 = vld [vmem:[%s22186_s5 + $0xf0] ss:$8 sps:$4 sm:$0xff]  }
 0x3c5   :  { %3868 = vrot.lane.b32.xlu1 %v17462_v33, %s16150_s14  ;;  %v17713_v30 = vmax.f32 %v22493_v61, %v1731_v23  ;;  %v22495_v23 = vunpack.i.l.bf16 %v17519_v14  ;;  %v22497_v61 = vmax.f32 %v17164_v6, 0.0  ;;  %v17772_v6 = vpop.permute.xlu0 %14671 }
 0x3c6   :  { %22491 = vst [vmem:[#allocation53_spill] sm:$0xff] %v17693_v32  ;;  %v1736_v48 = vsel %vm528_vm3, %v14629_v18, %v22492_v22  ;;  %2686 = vmatpush1.bf16.msra.mxu0 %v15222_v40  ;;  %v14750_v22 = vpack.i.bf16 %v17693_v32, %v17689_v51  ;;  %v14614_v40 = vunpack.i.h.bf16 %v17519_v14  ;;  %v22290_v18 = vunpack.i.l.bf16 %v17524_v52  ;;  %v15233_v14 = vld [vmem:[%s22186_s5 + $0xf4] ss:$8 sps:$4 sm:$0xff]  }
 0x3c7   :  { %2687 = vmatprep.subr.bf16.mxu0 %v15227_v28  ;;  %v17717_v3 = vmax.f32 %v22494_v57, %v1736_v48  ;;  %v22496_v48 = vmax.f32 %v17156_v17, 0.0 }
 0x3c8   :  { %3980 = vrot.lane.b32.xlu0 %v17462_v33, %s16152_s16  ;;  %v1712_v56 = vsel %vm528_vm3, %v22495_v23, %v14614_v40  ;;  %v1713_v24 = vsel %vm528_vm3, %v14614_v40, %v22290_v18  ;;  %v22289_v40 = vunpack.i.h.bf16 %v17592_v11  ;;  %v17786_v23 = vpop.permute.xlu1 %14681 }
 0x3c9   :  { %3870 = vrot.lane.b32.xlu1 %v17470_v26, %s16150_s14  ;;  %v17734_v28 = vpack.i.bf16 %v17717_v3, %v17713_v30  ;;  %v17758_v57 = vmax.f32 %v22497_v61, %v1713_v24  ;;  %v22499_v24 = vunpack.i.h.bf16 %v17598_v35  ;;  %v14684_v61 = vunpack.i.h.bf16 %v17786_v23 }
 0x3ca   :  { %2688 = vmatpush1.bf16.msra.mxu0 %v15225_v19  ;;  %v17754_v19 = vmax.f32 %v22496_v48, %v1712_v56  ;;  %v14653_v48 = vunpack.i.l.bf16 %v17629_v46 }
 0x3cb   :  { %2689 = vmatprep.subr.bf16.mxu0 %v15230_v42  ;;  %22498 = vst [vmem:[#allocation54_spill] sm:$0xff] %v17758_v57  ;;  %v14648_v42 = vunpack.i.l.bf16 %v17592_v11 }
 0x3cc   :  { %3814 = vrot.lane.b32.xlu0 %v17470_v26, %s16149_s2  ;;  %v14745_v17 = vpack.i.bf16 %v17758_v57, %v17754_v19 }
 0x3cd   :  { %14751 = vrot.lane.b32.xlu1 %v14750_v22, %s16151_s15  ;;  %v15236_v22 = vld [vmem:[%s22186_s5 + $0x104] ss:$8 sps:$4 sm:$0xff]   ;;  %v1728_v56 = vsel %vm528_vm3, %v14648_v42, %v22289_v40  ;;  %v22502_v40 = vmax.f32 %v17227_v55, 0.0  ;;  %v22503_v55 = vmax.f32 %v17246_v47, 0.0  ;;  %v22507_v47 = vunpack.i.l.bf16 %v17573_v45 }
 0x3ce   :  { %2690 = vmatpush1.bf16.msra.mxu0 %v15228_v27  ;;  %v17780_v27 = vpop.permute.xlu0 %14676 }
 0x3cf   :  { %2691 = vmatprep.subr.bf16.mxu0 %v15233_v14  ;;  %v14678_v14 = vunpack.i.l.bf16 %v17780_v27 }
 0x3d0   :  { %3926 = vrot.lane.b32.xlu0 %v17470_v26, %s16151_s15 }
 0x3d1   :  { %14756 = vrot.lane.b32.xlu1 %v17734_v28, %s16151_s15  ;;  %v1741_v1 = vsel %vm528_vm3, %v14653_v48, %v14678_v14  ;;  %v22505_v48 = vmax.f32 %v17234_v54, 0.0  ;;  %v22296_v54 = vunpack.i.h.bf16 %v17772_v6 }
 0x3d2   :  { %2692 = vmatpush1.bf16.msra.mxu0 %v15231_v5  ;;  %v1727_v5 = vsel %vm528_vm3, %v22499_v24, %v14648_v42  ;;  %v22292_v42 = vunpack.i.l.bf16 %v17598_v35  ;;  %v14654_v24 = vunpack.i.h.bf16 %v17629_v46 }
 0x3d3   :  { %2734 = vmatprep.subr.bf16.mxu0 %v15236_v22  ;;  %v22500_v22 = vmax.f32 %v17221_v12, 0.0  ;;  %v17807_v18 = vmax.f32 %v22502_v40, %v1727_v5  ;;  %v14639_v12 = vunpack.i.h.bf16 %v17573_v45  ;;  %v17820_v40 = vmax.f32 %v22503_v55, %v1741_v1 }
 0x3d4   :  { %3982 = vrot.lane.b32.xlu0 %v17470_v26, %s16152_s16  ;;  %v22511_v45 = vunpack.i.h.bf16 %v17651_v20 }
 0x3d5   :  { %3880 = vrot.lane.b32.xlu1 %v17486_v29, %s16150_s14  ;;  %22504 = vst [vmem:[#allocation56_spill] sm:$0xff] %v17820_v40  ;;  %v1723_v46 = vsel %vm528_vm3, %v14639_v12, %v22292_v42  ;;  %v1722_v1 = vsel %vm528_vm3, %v22507_v47, %v14639_v12  ;;  %v22513_v47 = vmax.f32 %v17283_v8, 0.0 }
 0x3d8   :  { %14746 = vrot.lane.b32.xlu0 %v14745_v17, %s16151_s15  ;;  %v17803_v17 = vmax.f32 %v22500_v22, %v1728_v56  ;;  %v1746_v56 = vsel %vm528_vm3, %v14654_v24, %v14684_v61  ;;  %v22508_v24 = vmax.f32 %v17209_v10, 0.0 }
 0x3d9   :  { %3936 = vrot.lane.b32.xlu1 %v17486_v29, %s16151_s15  ;;  %v17829_v22 = vmax.f32 %v22505_v48, %v1746_v56  ;;  %v14673_v56 = vunpack.i.l.bf16 %v17772_v6  ;;  %v22510_v48 = vmax.f32 %v17199_v43, 0.0  ;;  %v22512_v43 = vmax.f32 %v17274_v36, 0.0 }
 0x3da   :  { %22501 = vst [vmem:[#allocation55_spill] sm:$0xff] %v17803_v17  ;;  %v14765_v5 = vpack.i.bf16 %v17803_v17, %v17807_v18  ;;  %v17839_v55 = vmax.f32 %v22508_v24, %v1723_v46  ;;  %v22515_v36 = vunpack.i.l.bf16 %v17649_v39 }
 0x3db   :  { %22506 = vst [vmem:[#allocation57_spill] sm:$0xff] %v17829_v22  ;;  %v17843_v42 = vpack.i.bf16 %v17829_v22, %v17820_v40  ;;  %v17849_v17 = vmax.f32 %v22510_v48, %v1722_v1  ;;  %v1737_v12 = vsel %vm528_vm3, %v22511_v45, %v14673_v56  ;;  %v22295_v48 = vunpack.i.l.bf16 %v17651_v20 }
 0x3dc   :  { %4038 = vrot.lane.b32.xlu0 %v17470_v26, %s16153_s17  ;;  %22509 = vst [vmem:[#allocation58_spill] sm:$0xff] %v17839_v55  ;;  %v17868_v46 = vmax.f32 %v22512_v43, %v1737_v12  ;;  %v22516_v45 = vmax.f32 %v17268_v0, 0.0 }
 0x3dd   :  { %3992 = vrot.lane.b32.xlu1 %v17486_v29, %s16152_s16  ;;  %v14760_v10 = vpack.i.bf16 %v17839_v55, %v17849_v17 }
 0x3e0   :  { %4036 = vrot.lane.b32.xlu0 %v17462_v33, %s16153_s17 }
 0x3e1   :  { %4048 = vrot.lane.b32.xlu1 %v17486_v29, %s16153_s17 }
 0x3e4   :  { %3824 = vrot.lane.b32.xlu0 %v17486_v29, %s16149_s2 }
 0x3e5   :  { %3826 = vrot.lane.b32.xlu1 %v17496_v7, %s16149_s2 }
 0x3e8   :  { %3882 = vrot.lane.b32.xlu0 %v17496_v7, %s16150_s14 }
 0x3e9   :  { %3938 = vrot.lane.b32.xlu1 %v17496_v7, %s16151_s15 }
 0x3ec   :  { %14766 = vrot.lane.b32.xlu0 %v14765_v5, %s16151_s15  ;;  %v1738_v5 = vsel %vm528_vm3, %v14673_v56, %v22296_v54  ;;  %v14664_v56 = vunpack.i.h.bf16 %v17649_v39  ;;  %v14679_v39 = vunpack.i.h.bf16 %v17780_v27 }
 0x3ed   :  { %3994 = vrot.lane.b32.xlu1 %v17496_v7, %s16152_s16  ;;  %v17872_v1 = vmax.f32 %v22513_v47, %v1738_v5  ;;  %v22517_v5 = vmax.f32 %v17257_v21, 0.0  ;;  %v17904_v47 = vpop.permute.xlu0 %14686 }
 0x3ee   :  { %v1732_v8 = vsel %vm528_vm3, %v22515_v36, %v14664_v56  ;;  %v22297_v27 = vunpack.i.h.bf16 %v17904_v47  ;;  %v14688_v36 = vunpack.i.l.bf16 %v17904_v47 }
 0x3ef   :  { %22514 = vst [vmem:[#allocation59_spill] sm:$0xff] %v17872_v1  ;;  %v14780_v24 = vpack.i.bf16 %v17872_v1, %v17868_v46  ;;  %v17897_v12 = vmax.f32 %v22516_v45, %v1732_v8 }
 0x3f0   :  { %14771 = vrot.lane.b32.xlu0 %v17843_v42, %s16151_s15 }
 0x3f1   :  { %4050 = vrot.lane.b32.xlu1 %v17496_v7, %s16153_s17  ;;  %v14697_v8 = vpop.permute.xlu0 %14696 }
 0x3f2   :  { %v14698_v54 = vunpack.i.l.bf16 %v14697_v8 }
 0x3f4   :  { %3872 = vrot.lane.b32.xlu0 %v17514_v49, %s16150_s14 }
 0x3f5   :  { %14761 = vrot.lane.b32.xlu1 %v14760_v10, %s16151_s15  ;;  %v1733_v10 = vsel %vm528_vm3, %v14664_v56, %v22295_v48  ;;  %v1742_v56 = vsel %vm528_vm3, %v14678_v14, %v14679_v39  ;;  %v22520_v14 = vmax.f32 %v17304_v34, 0.0  ;;  %v14699_v48 = vunpack.i.h.bf16 %v14697_v8 }
 0x3f6   :  { %v17901_v43 = vmax.f32 %v22517_v5, %v1733_v10  ;;  %v22519_v10 = vmax.f32 %v17315_v4, 0.0  ;;  %v22522_v4 = vmax.f32 %v17294_v59, 0.0  ;;  %v22526_v59 = vmax.f32 %v17185_v15, 0.0 }
 0x3f7   :  { %v22531_v15 = vmax.f32 %v17170_v37, 0.0 }
 0x3f8   :  { %3818 = vrot.lane.b32.xlu0 %v17516_v41, %s16149_s2  ;;  %22518 = vst [vmem:[#allocation60_spill] sm:$0xff] %v17901_v43  ;;  %v14775_v0 = vpack.i.bf16 %v17901_v43, %v17897_v12  ;;  %v17924_v45 = vmax.f32 %v22519_v10, %v1742_v56  ;;  %v22523_v56 = vmax.f32 %v17327_v60, 0.0  ;;  %v22525_v10 = vunpack.i.h.bf16 %v17543_v63 }
 0x3f9   :  { %3816 = vrot.lane.b32.xlu1 %v17514_v49, %s16149_s2 }
 0x3fc   :  { %14781 = vrot.lane.b32.xlu0 %v14780_v24, %s16151_s15  ;;  %v22294_v24 = vunpack.i.l.bf16 %v17786_v23 }
 0x3fd   :  { %3928 = vrot.lane.b32.xlu1 %v17514_v49, %s16151_s15 }
 0x3fe   :  { %v1743_v21 = vsel %vm528_vm3, %v14679_v39, %v22294_v24  ;;  %v1747_v39 = vsel %vm528_vm3, %v14684_v61, %v14688_v36  ;;  %v1748_v24 = vsel %vm528_vm3, %v14688_v36, %v22297_v27  ;;  %v1720_v27 = vsel %vm528_vm3, %v14698_v54, %v14699_v48 }
 0x3ff   :  { %v17928_v5 = vmax.f32 %v22520_v14, %v1743_v21  ;;  %v17940_v34 = vmax.f32 %v22522_v4, %v1747_v39  ;;  %v17944_v61 = vmax.f32 %v22523_v56, %v1748_v24  ;;  %v1719_v14 = vsel %vm528_vm3, %v22525_v10, %v14698_v54  ;;  %v17987_v10 = vpop.permute.xlu0 %14706 }
 0x400   :  { %3828 = vrot.lane.b32.xlu0 %v17550_v2, %s16149_s2  ;;  %v17957_v60 = vmax.f32 %v22526_v59, %v1719_v14  ;;  %v22528_v24 = vmax.f32 %v17359_v25, 0.0  ;;  %v22533_v25 = vld [vmem:[#allocation32_spill] sm:$0xff]  ;;  %v22298_v37 = vunpack.i.h.bf16 %v17987_v10  ;;  %v14708_v14 = vunpack.i.l.bf16 %v17987_v10 }
 0x401   :  { %3984 = vrot.lane.b32.xlu1 %v17514_v49, %s16152_s16  ;;  %22521 = vst [vmem:[#allocation61_spill] sm:$0xff] %v17928_v5  ;;  %22524 = vst [vmem:[#allocation62_spill] sm:$0xff] %v17944_v61  ;;  %v14785_v21 = vpack.i.bf16 %v17928_v5, %v17924_v45  ;;  %v14790_v63 = vpack.i.bf16 %v17944_v61, %v17940_v34  ;;  %v22551_v5 = vunpack.i.l.bf16 %v17598_v35 }
 0x402   :  { %22527 = vst [vmem:[#allocation63_spill] sm:$0xff] %v17957_v60  ;;  %v17961_v39 = vmax.f32 %v22528_v24, %v1720_v27  ;;  %v22534_v27 = vmax.f32 %v22533_v25, 0.0  ;;  %v22536_v24 = vunpack.i.h.bf16 %v17592_v11 }
 0x403   :  { %v17998_v59 = vpop.permute.xlu0 %14716 }
 0x404   :  { %3940 = vrot.lane.b32.xlu0 %v17550_v2, %s16151_s15  ;;  %22529 = vst [vmem:[#allocation64_spill] sm:$0xff] %v17961_v39 }
 0x405   :  { %4040 = vrot.lane.b32.xlu1 %v17514_v49, %s16153_s17 }
 0x408   :  { %3996 = vrot.lane.b32.xlu0 %v17550_v2, %s16152_s16 }
 0x409   :  { %14776 = vrot.lane.b32.xlu1 %v14775_v0, %s16151_s15  ;;  %v14692_v0 = vpop.permute.xlu1 %14691 }
 0x40a   :  { %v14694_v36 = vunpack.i.h.bf16 %v14692_v0  ;;  %v14693_v8 = vunpack.i.l.bf16 %v14692_v0  ;;  %v22530_v0 = vunpack.i.l.bf16 %v17524_v52  ;;  %v14800_v52 = vpack.i.bf16 %v17961_v39, %v17957_v60 }
 0x40c   :  { %4052 = vrot.lane.b32.xlu0 %v17550_v2, %s16153_s17  ;;  %v1714_v54 = vsel %vm528_vm3, %v22530_v0, %v14693_v8  ;;  %v1715_v4 = vsel %vm528_vm3, %v14693_v8, %v14694_v36  ;;  %v1730_v0 = vsel %vm528_vm3, %v14708_v14, %v22298_v37 }
 0x40d   :  { %3884 = vrot.lane.b32.xlu1 %v17550_v2, %s16150_s14  ;;  %v17974_v56 = vmax.f32 %v22531_v15, %v1714_v54  ;;  %v22537_v54 = vld [vmem:[#allocation45_spill] sm:$0xff]  ;;  %v18008_v25 = vpop.permute.xlu1 %14701 }
 0x40e   :  { %v14598_v15 = vunpack.i.l.bf16 %v22537_v54  ;;  %v14703_v61 = vunpack.i.l.bf16 %v18008_v25  ;;  %v22552_v1 = vunpack.i.h.bf16 %v18008_v25 }
 0x40f   :  { %22532 = vst [vmem:[#allocation65_spill] sm:$0xff] %v17974_v56 }
 0x410   :  { %14786 = vrot.lane.b32.xlu0 %v14785_v21, %s16151_s15  ;;  %v17978_v21 = vmax.f32 %v22534_v27, %v1715_v4  ;;  %v14599_v4 = vunpack.i.h.bf16 %v22537_v54  ;;  %v1823_v11 = vsel %vm553_vm12, %v14694_v36, %v14598_v15  ;;  %v14718_v36 = vunpack.i.l.bf16 %v17998_v59 }
 0x411   :  { %3830 = vrot.lane.b32.xlu1 %v17563_v50, %s16149_s2  ;;  %v18030_v15 = vpop.permute.xlu1 %14711  ;;  %v1725_v43 = vsel %vm528_vm3, %v14703_v61, %v22552_v1 }
 0x412   :  { %22535 = vst [vmem:[#allocation32_spill] sm:$0xff] %v17978_v21  ;;  %v14795_v8 = vpack.i.bf16 %v17978_v21, %v17974_v56  ;;  %v1824_v27 = vsel %vm553_vm12, %v14699_v48, %v14599_v4  ;;  %v22544_v48 = vld [vmem:[#allocation34_spill] sm:$0xff]  ;;  %v1724_v21 = vsel %vm528_vm3, %v22551_v5, %v14703_v61  ;;  %v22555_v5 = vld [vmem:[#allocation24_spill] sm:$0xff] }
 0x413   :  { %v22556_v1 = vmax.f32 %v22555_v5, 0.0  ;;  %v14713_v5 = vunpack.i.l.bf16 %v18030_v15 }
 0x414   :  { %3832 = vrot.lane.b32.xlu0 %v17660_v58, %s16149_s2 }
 0x415   :  { %14791 = vrot.lane.b32.xlu1 %v14790_v63, %s16151_s15  ;;  %v1729_v63 = vsel %vm528_vm3, %v22536_v24, %v14708_v14  ;;  %v22541_v14 = vld [vmem:[#allocation37_spill] sm:$0xff]  ;;  %v18069_v61 = vmax.f32 %v22556_v1, %v1724_v21 }
 0x416   :  { %v22542_v37 = vmax.f32 %v22541_v14, 0.0 }
 0x417   :  { %22557 = vst [vmem:[#allocation24_spill] sm:$0xff] %v18069_v61 }
 0x418   :  { %14801 = vrot.lane.b32.xlu0 %v14800_v52, %s16151_s15  ;;  %v22538_v52 = vld [vmem:[#allocation26_spill] sm:$0xff]  ;;  %v18022_v39 = vmax.f32 %v22542_v37, %v1730_v0  ;;  %v22545_v37 = vmax.f32 %v22544_v48, 0.0  ;;  %v22547_v0 = vld [vmem:[#allocation33_spill] sm:$0xff] }
 0x419   :  { %3820 = vrot.lane.b32.xlu1 %v17604_v53, %s16149_s2  ;;  %v22548_v4 = vmax.f32 %v22547_v0, 0.0  ;;  %v18060_v0 = vpop.permute.xlu1 %14721 }
 0x41a   :  { %22543 = vst [vmem:[#allocation26_spill] sm:$0xff] %v18022_v39  ;;  %v22317_v21 = vunpack.i.h.bf16 %v18060_v0  ;;  %v14723_v1 = vunpack.i.l.bf16 %v18060_v0 }
 0x41c   :  { %3874 = vrot.lane.b32.xlu0 %v17516_v41, %s16150_s14 }
 0x41d   :  { %14796 = vrot.lane.b32.xlu1 %v14795_v8, %s16151_s15  ;;  %v22539_v8 = vmax.f32 %v22538_v52, 0.0  ;;  %v18042_v52 = vmax.f32 %v22548_v4, %v1823_v11  ;;  %v22554_v11 = vunpack.i.h.bf16 %v17998_v59 }
 0x41f   :  { %v18018_v24 = vmax.f32 %v22539_v8, %v1729_v63  ;;  %v18038_v63 = vmax.f32 %v22545_v37, %v1824_v27  ;;  %22549 = vst [vmem:[#allocation34_spill] sm:$0xff] %v18042_v52  ;;  %v22553_v27 = vunpack.i.h.bf16 %v17772_v6  ;;  %v1740_v37 = vsel %vm528_vm3, %v14718_v36, %v22554_v11  ;;  %v22558_v6 = vld [vmem:[#allocation35_spill] sm:$0xff] }
 0x420   :  { %4094 = vrot.lane.b32.xlu0 %v17470_v26, %s16154_s19  ;;  %v22559_v4 = vmax.f32 %v22558_v6, 0.0  ;;  %v22568_v6 = vunpack.i.l.bf16 %v17786_v23 }
 0x421   :  { %3876 = vrot.lane.b32.xlu1 %v17604_v53, %s16150_s14  ;;  %22540 = vst [vmem:[#allocation45_spill] sm:$0xff] %v18018_v24  ;;  %22546 = vst [vmem:[#allocation37_spill] sm:$0xff] %v18038_v63  ;;  %v14815_v14 = vpack.i.bf16 %v18022_v39, %v18018_v24  ;;  %v1739_v48 = vsel %vm528_vm3, %v22553_v27, %v14718_v36  ;;  %v14805_v35 = vpack.i.bf16 %v18038_v63, %v18042_v52  ;;  %v22561_v39 = vld [vmem:[#allocation29_spill] sm:$0xff] }
 0x422   :  { %v18073_v27 = vmax.f32 %v22559_v4, %v1725_v43  ;;  %v22562_v36 = vmax.f32 %v22561_v39, 0.0  ;;  %v22314_v63 = vunpack.i.h.bf16 %v18030_v15  ;;  %v1744_v4 = vsel %vm528_vm3, %v22568_v6, %v14723_v1  ;;  %v22578_v6 = vld [vmem:[#allocation43_spill] sm:$0xff] }
 0x424   :  { %4092 = vrot.lane.b32.xlu0 %v17462_v33, %s16154_s19  ;;  %22560 = vst [vmem:[#allocation35_spill] sm:$0xff] %v18073_v27  ;;  %v18077_v11 = vmax.f32 %v22562_v36, %v1739_v48  ;;  %v22567_v48 = vunpack.i.l.bf16 %v17651_v20  ;;  %v1745_v36 = vsel %vm528_vm3, %v14723_v1, %v22317_v21 }
 0x425   :  { %4096 = vrot.lane.b32.xlu1 %v17514_v49, %s16154_s19 }
 0x426   :  { %v18024_v54 = vpop.permute.xlu0 %14726  ;;  %22563 = vst [vmem:[#allocation29_spill] sm:$0xff] %v18077_v11 }
 0x428   :  { %3888 = vrot.lane.b32.xlu0 %v17660_v58, %s16150_s14 }
 0x429   :  { %3886 = vrot.lane.b32.xlu1 %v17563_v50, %s16150_s14 }
 0x42a   :  { %v18044_v8 = vpop.permute.xlu0 %14731 }
 0x42b   :  { %22550 = vst [vmem:[#allocation33_spill] sm:$0xff] %v18044_v8  ;;  %v22564_v8 = vld [vmem:[#allocation41_spill] sm:$0xff] }
 0x42c   :  { %14816 = vrot.lane.b32.xlu0 %v14815_v14, %s16151_s15  ;;  %v22565_v55 = vmax.f32 %v22564_v8, 0.0 }
 0x42d   :  { %4106 = vrot.lane.b32.xlu1 %v17496_v7, %s16154_s19 }
 0x42e   :  { %v18081_v24 = vmax.f32 %v22565_v55, %v1740_v37  ;;  %v18083_v14 = vpop.permute.xlu0 %14736  ;;  %v14810_v55 = vpack.i.bf16 %v18073_v27, %v18069_v61  ;;  %v1734_v37 = vsel %vm528_vm3, %v22567_v48, %v14713_v5  ;;  %v22572_v48 = vld [vmem:[#allocation39_spill] sm:$0xff]  ;;  %v22579_v61 = vmax.f32 %v22578_v6, 0.0 }
 0x42f   :  { %v22573_v52 = vmax.f32 %v22572_v48, 0.0  ;;  %v22583_v48 = vld [vmem:[#allocation31_spill] sm:$0xff]  ;;  %v22586_v6 = vmax.f32 %v17561_v16, 0.0 }
 0x430   :  { %22566 = vst [vmem:[#allocation41_spill] sm:$0xff] %v18081_v24  ;;  %4108 = vrot.lane.b32.xlu0 %v17550_v2, %s16154_s19  ;;  %v14825_v8 = vpack.i.bf16 %v18081_v24, %v18077_v11  ;;  %v22569_v24 = vld [vmem:[#allocation28_spill] sm:$0xff]  ;;  %v18128_v60 = vmax.f32 %v22579_v61, %v1745_v36 }
 0x431   :  { %14806 = vrot.lane.b32.xlu1 %v14805_v35, %s16151_s15  ;;  %v1735_v35 = vsel %vm528_vm3, %v14713_v5, %v22314_v63  ;;  %v22570_v20 = vmax.f32 %v22569_v24, 0.0  ;;  %v22575_v5 = vld [vmem:[#allocation30_spill] sm:$0xff]  ;;  %v22319_v24 = vunpack.i.h.bf16 %v18083_v14 }
 0x432   :  { %v18094_v39 = vpop.permute.xlu0 %3812  ;;  %v18120_v11 = vmax.f32 %v22573_v52, %v1735_v35  ;;  %v22576_v23 = vmax.f32 %v22575_v5, 0.0  ;;  %22580 = vst [vmem:[#allocation43_spill] sm:$0xff] %v18128_v60  ;;  %v22584_v5 = vmax.f32 %v22583_v48, 0.0  ;;  %v22589_v48 = vld [vmem:[#allocation46_spill] sm:$0xff] }
 0x433   :  { %v18092_v43 = vpop.permute.xlu1 %14741  ;;  %v18116_v27 = vmax.f32 %v22570_v20, %v1734_v37 }
 0x434   :  { %14826 = vrot.lane.b32.xlu0 %v14825_v8, %s16151_s15  ;;  %22574 = vst [vmem:[#allocation39_spill] sm:$0xff] %v18120_v11  ;;  %v18124_v63 = vmax.f32 %v22576_v23, %v1744_v4  ;;  %v14738_v8 = vunpack.i.l.bf16 %v18083_v14  ;;  %v22582_v4 = vunpack.i.h.bf16 %v17904_v47 }
 0x435   :  { %14811 = vrot.lane.b32.xlu1 %v14810_v55, %s16151_s15  ;;  %22571 = vst [vmem:[#allocation28_spill] sm:$0xff] %v18116_v27  ;;  %v14820_v61 = vpack.i.bf16 %v18120_v11, %v18116_v27 }
 0x436   :  { %22577 = vst [vmem:[#allocation30_spill] sm:$0xff] %v18124_v63  ;;  %v18132_v55 = vpop.permute.xlu0 %3924  ;;  %v14830_v35 = vpack.i.bf16 %v18128_v60, %v18124_v63  ;;  %v1749_v36 = vsel %vm528_vm3, %v22582_v4, %v14738_v8  ;;  %v1750_v20 = vsel %vm528_vm3, %v14738_v8, %v22319_v24  ;;  %v22590_v24 = vunpack.i.h.bf16 %v17987_v10 }
 0x437   :  { %v18130_v1 = vpop.permute.xlu1 %3868  ;;  %v18158_v23 = vmax.f32 %v22584_v5, %v1749_v36  ;;  %v18162_v21 = vmax.f32 %v22586_v6, %v1750_v20  ;;  %v14609_v5 = vunpack.i.h.bf16 %v22589_v48  ;;  %v14729_v6 = vunpack.i.h.bf16 %v18024_v54 }
 0x438   :  { %3930 = vrot.lane.b32.xlu0 %v17516_v41, %s16151_s15  ;;  %v14728_v36 = vunpack.i.l.bf16 %v18024_v54  ;;  %v22592_v10 = vunpack.i.h.bf16 %v18008_v25 }
 0x439   :  { %4104 = vrot.lane.b32.xlu1 %v17486_v29, %s16154_s19  ;;  %22585 = vst [vmem:[#allocation31_spill] sm:$0xff] %v18158_v23  ;;  %22587 = vst [vmem:[#allocation67_spill] sm:$0xff] %v18162_v21 }
 0x43a   :  { %v18142_v37 = vpop.permute.xlu0 %3980 }
 0x43b   :  { %v18140_v52 = vpop.permute.xlu1 %3870  ;;  %22581 = vst [vmem:[#allocation66_spill] sm:$0xff] %v18142_v37 }
 0x43c   :  { %14831 = vrot.lane.b32.xlu0 %v14830_v35, %s16151_s15  ;;  %v14835_v35 = vpack.i.bf16 %v18162_v21, %v18158_v23  ;;  %v1826_v21 = vsel %vm553_vm12, %v22590_v24, %v14609_v5  ;;  %v22593_v24 = vld [vmem:[#allocation38_spill] sm:$0xff] }
 0x43d   :  { %14821 = vrot.lane.b32.xlu1 %v14820_v61, %s16151_s15  ;;  %v22594_v5 = vmax.f32 %v22593_v24, 0.0 }
 0x43e   :  { %v18166_v47 = vpop.permute.xlu0 %3814 }
 0x43f   :  { %v18164_v60 = vpop.permute.xlu1 %14751 }
 0x440   :  { %22588 = vst [vmem:[#allocation68_spill] sm:$0xff] %v18164_v60  ;;  %4150 = vrot.lane.b32.xlu0 %v17470_v26, %s16155_s3  ;;  %v14753_v20 = vunpack.i.l.bf16 %v18164_v60  ;;  %v22591_v57 = vunpack.i.h.bf16 %v18164_v60  ;;  %v22597_v60 = vld [vmem:[#allocation47_spill] sm:$0xff] }
 0x441   :  { %3932 = vrot.lane.b32.xlu1 %v17604_v53, %s16151_s15 }
 0x442   :  { %v18174_v61 = vpop.permute.xlu0 %3926  ;;  %v2029_v63 = vsel %vm644_vm5, %v14729_v6, %v14753_v20  ;;  %v18217_v6 = vmax.f32 %v22594_v5, %v1826_v21  ;;  %v22598_v21 = vld [vmem:[#allocation36_spill] sm:$0xff]  ;;  %v15242_v5 = vld [vmem:[%s22186_s5 + $0x124] ss:$8 sps:$4 sm:$0xff]  }
 0x443   :  { %v18172_v8 = vpop.permute.xlu1 %14756 }
 0x444   :  { %4148 = vrot.lane.b32.xlu0 %v17462_v33, %s16155_s3  ;;  %22595 = vst [vmem:[#allocation46_spill] sm:$0xff] %v18217_v6 }
 0x445   :  { %14836 = vrot.lane.b32.xlu1 %v14835_v35, %s16151_s15  ;;  %v14608_v35 = vunpack.i.l.bf16 %v22589_v48  ;;  %v2030_v48 = vsel %vm644_vm5, %v14753_v20, %v22591_v57  ;;  %v2150_v20 = vmax.f32 %v17554_v62, %v2029_v63  ;;  %v22601_v63 = vld [vmem:[#allocation48_spill] sm:$0xff] }
 0x446   :  { %v18183_v4 = vpop.permute.xlu0 %3982 }
 0x447   :  { %v18181_v16 = vpop.permute.xlu1 %3880  ;;  %v1825_v54 = vsel %vm553_vm12, %v22592_v10, %v14608_v35  ;;  %v2151_v35 = vmax.f32 %v17689_v51, %v2030_v48  ;;  %v22599_v10 = vmax.f32 %v22598_v21, 0.0 }
 0x448   :  { %3944 = vrot.lane.b32.xlu0 %v17660_v58, %s16151_s15 }
 0x449   :  { %4152 = vrot.lane.b32.xlu1 %v17514_v49, %s16155_s3  ;;  %v18233_v24 = vmax.f32 %v22599_v10, %v1825_v54  ;;  %v15240_v10 = vld [vmem:[%s22186_s5 + $0x120] ss:$8 sps:$4 sm:$0xff]  }
 0x44a   :  { %v18200_v23 = vpop.permute.xlu0 %14746 }
 0x44b   :  { %v18198_v11 = vpop.permute.xlu1 %3936  ;;  %v14748_v56 = vunpack.i.l.bf16 %v18200_v23  ;;  %v22596_v32 = vunpack.i.h.bf16 %v18200_v23  ;;  %22600 = vst [vmem:[#allocation38_spill] sm:$0xff] %v18233_v24  ;;  %v14840_v51 = vpack.i.bf16 %v18217_v6, %v18233_v24 }
 0x44c   :  { %4164 = vrot.lane.b32.xlu0 %v17550_v2, %s16155_s3 }
 0x44d   :  { %3942 = vrot.lane.b32.xlu1 %v17563_v50, %s16151_s15  ;;  %v2024_v27 = vsel %vm644_vm5, %v14728_v36, %v14748_v56  ;;  %v2025_v57 = vsel %vm644_vm5, %v14748_v56, %v22596_v32  ;;  %v15234_v32 = vld [vmem:[%s22186_s5 + $0x100] ss:$8 sps:$4 sm:$0xff]   ;;  %v15239_v56 = vld [vmem:[%s22186_s5 + $0x114] ss:$8 sps:$4 sm:$0xff]  }
 0x44e   :  { %v2144_v37 = vmax.f32 %v22597_v60, %v2024_v27  ;;  %v18227_v40 = vpop.permute.xlu0 %4038  ;;  %v2145_v25 = vmax.f32 %v17754_v19, %v2025_v57  ;;  %v14634_v27 = vunpack.i.h.bf16 %v22601_v63  ;;  %v14633_v57 = vunpack.i.l.bf16 %v22601_v63 }
 0x44f   :  { %v18225_v22 = vpop.permute.xlu1 %3992 }
 0x450   :  { %v2192_v36 = vpack.c.bf16 %v2150_v20, %v2144_v37  ;;  %3986 = vrot.lane.b32.xlu0 %v17516_v41, %s16152_s16  ;;  %v2193_v62 = vpack.c.bf16 %v2151_v35, %v2145_v25  ;;  %v15237_v37 = vld [vmem:[%s22186_s5 + $0x110] ss:$8 sps:$4 sm:$0xff]   ;;  %v22602_v20 = vunpack.i.h.bf16 %v17998_v59  ;;  %v22603_v35 = vunpack.i.h.bf16 %v18030_v15  ;;  %v15245_v15 = vld [vmem:[%s22186_s5 + $0x134] ss:$8 sps:$4 sm:$0xff]  }
 0x451   :  { %4162 = vrot.lane.b32.xlu1 %v17496_v7, %s16155_s3 }
 0x452   :  { %v18244_v19 = vpop.permute.xlu0 %4036  ;;  %2693 = vmatprep.mubr.bf16.mxu0 %v2193_v62  ;;  %v1828_v25 = vsel %vm553_vm12, %v22602_v20, %v14634_v27  ;;  %v1827_v21 = vsel %vm553_vm12, %v22603_v35, %v14633_v57 }
 0x453   :  { %v18242_v60 = vpop.permute.xlu1 %4048  ;;  %2694 = vmatmul.mubr.bf16.vlgmr.msra.gmra.mrb[32].mxu0 %v2192_v36  ;;  %v22604_v36 = vld [vmem:[#allocation42_spill] sm:$0xff] }
 0x454   :  { %14841 = vrot.lane.b32.xlu0 %v14840_v51, %s16151_s15  ;;  %2735 = vmatpush1.bf16.msra.mxu0 %v15234_v32  ;;  %v22605_v62 = vmax.f32 %v22604_v36, 0.0 }
 0x455   :  { %4160 = vrot.lane.b32.xlu1 %v17486_v29, %s16155_s3  ;;  %2736 = vmatprep.subr.bf16.mxu0 %v15239_v56  ;;  %v22607_v56 = vld [vmem:[#allocation40_spill] sm:$0xff] }
 0x456   :  { %v18260_v54 = vpop.permute.xlu0 %3824  ;;  %v18281_v59 = vmax.f32 %v22605_v62, %v1828_v25  ;;  %v22608_v63 = vmax.f32 %v22607_v56, 0.0  ;;  %v15248_v25 = vld [vmem:[%s22186_s5 + $0x144] ss:$8 sps:$4 sm:$0xff]   ;;  %v15249_v56 = vld [vmem:[%s22186_s5 + $0x150] ss:$8 sps:$4 sm:$0xff]  }
 0x457   :  { %v18258_v48 = vpop.permute.xlu1 %3826 }
 0x458   :  { %3998 = vrot.lane.b32.xlu0 %v17563_v50, %s16152_s16  ;;  %2737 = vmatpush1.bf16.msra.mxu0 %v15237_v37  ;;  %22606 = vst [vmem:[#allocation47_spill] sm:$0xff] %v18281_v59  ;;  %v18292_v27 = vmax.f32 %v22608_v63, %v1827_v21  ;;  %v15243_v37 = vld [vmem:[%s22186_s5 + $0x130] ss:$8 sps:$4 sm:$0xff]   ;;  %v14743_v63 = vunpack.i.l.bf16 %v18092_v43 }
 0x459   :  { %3988 = vrot.lane.b32.xlu1 %v17604_v53, %s16152_s16  ;;  %2738 = vmatprep.subr.bf16.mxu0 %v15242_v5 }
 0x45a   :  { %v18285_v51 = vpop.permute.xlu0 %3882  ;;  %22609 = vst [vmem:[#allocation36_spill] sm:$0xff] %v18292_v27  ;;  %v14850_v20 = vpack.i.bf16 %v18281_v59, %v18292_v27 }
 0x45b   :  { %v18283_v32 = vpop.permute.xlu1 %3938 }
 0x45c   :  { %4042 = vrot.lane.b32.xlu0 %v17516_v41, %s16153_s17  ;;  %2739 = vmatpush1.bf16.msra.mxu0 %v15240_v10  ;;  %v15251_v10 = vld [vmem:[%s22186_s5 + $0x154] ss:$8 sps:$4 sm:$0xff]  }
 0x45d   :  { %14846 = vrot.lane.b32.xlu1 %v17647_v9, %s16159_s22  ;;  %2740 = vmatprep.subr.bf16.mxu0 %v15245_v15  ;;  %v15246_v9 = vld [vmem:[%s22186_s5 + $0x140] ss:$8 sps:$4 sm:$0xff]   ;;  %v14744_v15 = vunpack.i.h.bf16 %v18092_v43 }
 0x45e   :  { %v18303_v57 = vpop.permute.xlu0 %14766 }
 0x45f   :  { %v18301_v5 = vpop.permute.xlu1 %3994  ;;  %22610 = vst [vmem:[#allocation48_spill] sm:$0xff] %v18303_v57  ;;  %v14768_v62 = vunpack.i.l.bf16 %v18303_v57 }
 0x460   :  { %14851 = vrot.lane.b32.xlu0 %v14850_v20, %s16151_s15  ;;  %2741 = vmatpush1.bf16.msra.mxu0 %v15243_v37 }
 0x461   :  { %4000 = vrot.lane.b32.xlu1 %v17660_v58, %s16152_s16  ;;  %2742 = vmatprep.subr.bf16.mxu0 %v15248_v25  ;;  %v15254_v25 = vld [vmem:[%s22186_s5 + $0x164] ss:$8 sps:$4 sm:$0xff]   ;;  %v2039_v24 = vsel %vm644_vm5, %v14744_v15, %v14768_v62  ;;  %v15252_v15 = vld [vmem:[%s22186_s5 + $0x160] ss:$8 sps:$4 sm:$0xff]  }
 0x462   :  { %v18318_v21 = vpop.permute.xlu0 %14771 }
 0x463   :  { %v18316_v35 = vpop.permute.xlu1 %4050 }
 0x464   :  { %4054 = vrot.lane.b32.xlu0 %v17563_v50, %s16153_s17  ;;  %2743 = vmatpush1.bf16.msra.mxu0 %v15246_v9  ;;  %v22611_v9 = vunpack.i.h.bf16 %v18303_v57 }
 0x465   :  { %4044 = vrot.lane.b32.xlu1 %v17604_v53, %s16153_s17  ;;  %2744 = vmatprep.subr.bf16.mxu0 %v15251_v10 }
 0x466   :  { %v18336_v20 = vpop.permute.xlu0 %3872  ;;  %v2040_v59 = vsel %vm644_vm5, %v14768_v62, %v22611_v9 }
 0x467   :  { %v18334_v37 = vpop.permute.xlu1 %14761  ;;  %v2163_v62 = vmax.f32 %v17807_v18, %v2040_v59  ;;  %v3836_v18 = vsel %vm528_vm3, %v18094_v39, %v18166_v47  ;;  %v14658_v39 = vunpack.i.l.bf16 %v17620_v13 }
 0x468   :  { %v14764_v36 = vunpack.i.h.bf16 %v18334_v37  ;;  %v14763_v27 = vunpack.i.l.bf16 %v18334_v37  ;;  %4098 = vrot.lane.b32.xlu0 %v17516_v41, %s16154_s19  ;;  %2745 = vmatpush1.bf16.msra.mxu0 %v15249_v56  ;;  %v2162_v56 = vmax.f32 %v17627_v38, %v2039_v24  ;;  %v14659_v38 = vunpack.i.h.bf16 %v17620_v13 }
 0x469   :  { %14856 = vrot.lane.b32.xlu1 %v17734_v28, %s16159_s22  ;;  %2746 = vmatprep.subr.bf16.mxu0 %v15254_v25  ;;  %v15255_v25 = vld [vmem:[%s22186_s5 + $0x170] ss:$8 sps:$4 sm:$0xff]   ;;  %v22614_v13 = vmax.f32 %v17570_v31, 0.0  ;;  %v15263_v31 = vld [vmem:[%s22186_s5 + $0x194] ss:$8 sps:$4 sm:$0xff]  }
 0x46a   :  { %v2035_v43 = vsel %vm644_vm5, %v14763_v27, %v14764_v36  ;;  %v2034_v10 = vsel %vm644_vm5, %v14743_v63, %v14763_v27  ;;  %v18357_v57 = vpop.permute.xlu0 %3818  ;;  %v15257_v63 = vld [vmem:[%s22186_s5 + $0x174] ss:$8 sps:$4 sm:$0xff]  }
 0x46b   :  { %v18355_v6 = vpop.permute.xlu1 %3816  ;;  %v2157_v9 = vmax.f32 %v17849_v17, %v2035_v43  ;;  %v2156_v28 = vmax.f32 %v17636_v44, %v2034_v10  ;;  %v15260_v10 = vld [vmem:[%s22186_s5 + $0x184] ss:$8 sps:$4 sm:$0xff]  }
 0x46c   :  { %v3837_v27 = vsel %vm528_vm3, %v18166_v47, %v18355_v6  ;;  %4110 = vrot.lane.b32.xlu0 %v17563_v50, %s16154_s19  ;;  %2747 = vmatpush1.bf16.msra.mxu0 %v15252_v15  ;;  %v22612_v47 = vunpack.i.h.bf16 %v18083_v14 }
 0x46d   :  { %4264 = vmatprep.subr.bf16.mxu1 %v3837_v27  ;;  %v2199_v17 = vpack.c.bf16 %v2163_v62, %v2157_v9  ;;  %v2198_v44 = vpack.c.bf16 %v2162_v56, %v2156_v28  ;;  %4056 = vrot.lane.b32.xlu1 %v17660_v58, %s16153_s17  ;;  %v22613_v9 = vunpack.i.h.bf16 %v18060_v0  ;;  %v15258_v56 = vld [vmem:[%s22186_s5 + $0x180] ss:$8 sps:$4 sm:$0xff]   ;;  %v22615_v27 = vld [vmem:[#allocation44_spill] sm:$0xff] }
 0x46e   :  { %4265 = vmatpush1.bf16.msra.mxu1 %v3836_v18  ;;  %v18382_v59 = vpop.permute.xlu0 %14781  ;;  %v1830_v43 = vsel %vm553_vm12, %v22612_v47, %v14659_v38  ;;  %2748 = vmatprep.subr.bf16.mxu0 %v15257_v63  ;;  %v22616_v63 = vmax.f32 %v22615_v27, 0.0  ;;  %v3892_v47 = vsel %vm586_vm4, %v18130_v1, %v18140_v52 }
 0x46f   :  { %v18380_v24 = vpop.permute.xlu1 %3928  ;;  %2703 = vmatprep.mubr.bf16.mxu0 %v2199_v17  ;;  %v1829_v62 = vsel %vm553_vm12, %v22613_v9, %v14658_v39  ;;  %v18403_v14 = vmax.f32 %v22614_v13, %v1830_v43  ;;  %v3841_v17 = vsel %vm528_vm3, %v18260_v54, %v18258_v48  ;;  %v14783_v54 = vunpack.i.l.bf16 %v18382_v59  ;;  %v15266_v39 = vld [vmem:[%s22186_s5 + $0x1a4] ss:$8 sps:$4 sm:$0xff]   ;;  %v15264_v13 = vld [vmem:[%s22186_s5 + $0x1a0] ss:$8 sps:$4 sm:$0xff]  }
 0x470   :  { %2704 = vmatmul.mubr.bf16.gmra.mrb[36].mxu0 %v2198_v44  ;;  %4154 = vrot.lane.b32.xlu0 %v17516_v41, %s16155_s3  ;;  %v18420_v18 = vmax.f32 %v22616_v63, %v1829_v62  ;;  %v3893_v44 = vsel %vm586_vm4, %v18140_v52, %v18336_v20  ;;  %v14759_v43 = vunpack.i.h.bf16 %v18172_v8 }
 0x471   :  { %4100 = vrot.lane.b32.xlu1 %v17604_v53, %s16154_s19  ;;  %2749 = vmatpush1.bf16.msra.mxu0 %v15255_v25 }
 0x472   :  { %v18407_v28 = vpop.permute.xlu0 %3828  ;;  %2750 = vmatprep.subr.bf16.mxu0 %v15260_v10  ;;  %v14758_v10 = vunpack.i.l.bf16 %v18172_v8  ;;  %v15269_v8 = vld [vmem:[%s22186_s5 + $0x1b4] ss:$8 sps:$4 sm:$0xff]  }
 0x473   :  { %v18405_v15 = vpop.permute.xlu1 %3984  ;;  %v3842_v0 = vsel %vm528_vm3, %v18258_v48, %v18407_v28  ;;  %v14865_v48 = vpack.i.bf16 %v18403_v14, %v18420_v18 }
 0x474   :  { %4206 = vrot.lane.b32.xlu0 %v17470_v26, %s16156_s13  ;;  %4266 = vmatprep.subr.bf16.mxu1 %v3842_v0  ;;  %v15261_v26 = vld [vmem:[%s22186_s5 + $0x190] ss:$8 sps:$4 sm:$0xff]   ;;  %v2049_v0 = vsel %vm644_vm5, %v14759_v43, %v14783_v54 }
 0x475   :  { %14861 = vrot.lane.b32.xlu1 %v17843_v42, %s16159_s22  ;;  %4267 = vmatpush1.bf16.msra.mxu1 %v3841_v17  ;;  %v22343_v42 = vunpack.i.h.bf16 %v18382_v59 }
 0x476   :  { %4268 = vmatprep.subr.bf16.mxu1 %v3893_v44  ;;  %v18434_v25 = vpop.permute.xlu0 %3940  ;;  %2751 = vmatpush1.bf16.msra.mxu0 %v15258_v56 }
 0x477   :  { %v18432_v38 = vpop.permute.xlu1 %4040  ;;  %2752 = vmatprep.subr.bf16.mxu0 %v15263_v31  ;;  %v2050_v52 = vsel %vm644_vm5, %v14783_v54, %v22343_v42  ;;  %v2174_v54 = vmax.f32 %v17717_v3, %v2049_v0  ;;  %v3949_v3 = vsel %vm644_vm5, %v18174_v61, %v18380_v24  ;;  %v3954_v0 = vsel %vm644_vm5, %v18283_v32, %v18434_v25  ;;  %v15300_v42 = vld [vmem:[%s22186_s5 + $0x260] ss:$8 sps:$4 sm:$0xff]  }
 0x478   :  { %14866 = vrot.lane.b32.xlu0 %v14865_v48, %s16151_s15  ;;  %v2175_v48 = vmax.f32 %v17868_v46, %v2050_v52  ;;  %v15270_v52 = vld [vmem:[%s22186_s5 + $0x1c0] ss:$8 sps:$4 sm:$0xff]  }
 0x479   :  { %4112 = vrot.lane.b32.xlu1 %v17660_v58, %s16154_s19  ;;  %4269 = vmatpush1.bf16.msra.mxu1 %v3892_v47  ;;  %v3897_v47 = vsel %vm586_vm4, %v18181_v16, %v18285_v51  ;;  %v15272_v16 = vld [vmem:[%s22186_s5 + $0x1c4] ss:$8 sps:$4 sm:$0xff]  }
 0x47a   :  { %v18456_v62 = vpop.permute.xlu0 %3996  ;;  %2753 = vmatpush1.bf16.msra.mxu0 %v15261_v26 }
 0x47b   :  { %v18454_v9 = vpop.permute.xlu1 %14776  ;;  %2754 = vmatprep.subr.bf16.mxu0 %v15266_v39 }
 0x47c   :  { %v22342_v56 = vunpack.i.h.bf16 %v18454_v9  ;;  %v14778_v1 = vunpack.i.l.bf16 %v18454_v9  ;;  %4204 = vrot.lane.b32.xlu0 %v17462_v33, %s16156_s13 }
 0x47d   :  { %4156 = vrot.lane.b32.xlu1 %v17604_v53, %s16155_s3 }
 0x47e   :  { %v2045_v31 = vsel %vm644_vm5, %v14778_v1, %v22342_v56  ;;  %v2044_v27 = vsel %vm644_vm5, %v14758_v10, %v14778_v1  ;;  %v18480_v17 = vpop.permute.xlu0 %4052  ;;  %2755 = vmatpush1.bf16.msra.mxu0 %v15264_v13  ;;  %v3948_v1 = vsel %vm644_vm5, %v18132_v55, %v18174_v61  ;;  %v15275_v55 = vld [vmem:[%s22186_s5 + $0x1d4] ss:$8 sps:$4 sm:$0xff]  }
 0x47f   :  { %v18478_v63 = vpop.permute.xlu1 %3884  ;;  %22617 = vst [vmem:[#allocation42_spill] sm:$0xff] %v18480_v17  ;;  %v2169_v44 = vmax.f32 %v17897_v12, %v2045_v31  ;;  %v2168_v26 = vmax.f32 %v17713_v30, %v2044_v27  ;;  %2756 = vmatprep.subr.bf16.mxu0 %v15269_v8  ;;  %v15267_v30 = vld [vmem:[%s22186_s5 + $0x1b0] ss:$8 sps:$4 sm:$0xff]   ;;  %v14773_v8 = vunpack.i.l.bf16 %v18318_v21 }
 0x480   :  { %v3898_v39 = vsel %vm586_vm4, %v18285_v51, %v18478_v63  ;;  %4168 = vrot.lane.b32.xlu0 %v17660_v58, %s16155_s3 }
 0x481   :  { %4270 = vmatprep.subr.bf16.mxu1 %v3898_v39  ;;  %v2205_v12 = vpack.c.bf16 %v2175_v48, %v2169_v44  ;;  %v2204_v46 = vpack.c.bf16 %v2174_v54, %v2168_v26  ;;  %4208 = vrot.lane.b32.xlu1 %v17514_v49, %s16156_s13  ;;  %v14774_v44 = vunpack.i.h.bf16 %v18318_v21  ;;  %v22618_v39 = vld [vmem:[#allocation50_spill] sm:$0xff]  ;;  %v15273_v21 = vld [vmem:[%s22186_s5 + $0x1d0] ss:$8 sps:$4 sm:$0xff]  }
 0x482   :  { %4271 = vmatpush1.bf16.msra.mxu1 %v3897_v47  ;;  %v18504_v10 = vpop.permute.xlu0 %14786  ;;  %2757 = vmatpush1.bf16.msra.mxu0 %v15267_v30  ;;  %v3953_v47 = vsel %vm644_vm5, %v18198_v11, %v18283_v32 }
 0x483   :  { %v18502_v43 = vpop.permute.xlu1 %3830  ;;  %4272 = vmatprep.subr.bf16.mxu1 %v3949_v3  ;;  %2713 = vmatprep.mubr.bf16.mxu0 %v2205_v12  ;;  %v22341_v51 = vunpack.i.h.bf16 %v18504_v10  ;;  %v14788_v13 = vunpack.i.l.bf16 %v18504_v10  ;;  %v4005_v12 = vsel %vm702_vm6, %v18183_v4, %v18405_v15 }
 0x484   :  { %2714 = vmatmul.mubr.bf16.gmra.mrb[40].mxu0 %v2204_v46  ;;  %4220 = vrot.lane.b32.xlu0 %v17550_v2, %s16156_s13 }
 0x485   :  { %4166 = vrot.lane.b32.xlu1 %v17563_v50, %s16155_s3  ;;  %2758 = vmatprep.subr.bf16.mxu0 %v15272_v16  ;;  %v2055_v61 = vsel %vm644_vm5, %v14788_v13, %v22341_v51  ;;  %v2054_v54 = vsel %vm644_vm5, %v14773_v8, %v14788_v13  ;;  %v22619_v13 = vld [vmem:[#allocation56_spill] sm:$0xff] }
 0x486   :  { %4273 = vmatpush1.bf16.msra.mxu1 %v3948_v1  ;;  %v18527_v27 = vpop.permute.xlu0 %3832  ;;  %2759 = vmatpush1.bf16.msra.mxu0 %v15270_v52  ;;  %v2181_v46 = vmax.f32 %v17924_v45, %v2055_v61  ;;  %v2180_v1 = vmax.f32 %v22619_v13, %v2054_v54  ;;  %v15278_v45 = vld [vmem:[%s22186_s5 + $0x1e4] ss:$8 sps:$4 sm:$0xff]   ;;  %v22621_v61 = vld [vmem:[#allocation52_spill] sm:$0xff] }
 0x487   :  { %v18525_v31 = vpop.permute.xlu1 %14791  ;;  %4274 = vmatprep.subr.bf16.mxu1 %v3954_v0  ;;  %2760 = vmatprep.subr.bf16.mxu0 %v15275_v55  ;;  %v22622_v55 = vld [vmem:[#allocation66_spill] sm:$0xff] }
 0x488   :  { %v22340_v48 = vunpack.i.h.bf16 %v18525_v31  ;;  %v14793_v26 = vunpack.i.l.bf16 %v18525_v31  ;;  %3822 = vrot.lane.b32.xlu0 %v22618_v39, %s16149_s2 }
 0x489   :  { %4218 = vrot.lane.b32.xlu1 %v17496_v7, %s16156_s13  ;;  %v22620_v7 = vld [vmem:[#allocation57_spill] sm:$0xff] }
 0x48a   :  { %4275 = vmatpush1.bf16.msra.mxu1 %v3953_v47  ;;  %v2060_v30 = vsel %vm644_vm5, %v14793_v26, %v22340_v48  ;;  %v2059_v11 = vsel %vm644_vm5, %v14774_v44, %v14793_v26  ;;  %v18559_v3 = vpop.permute.xlu0 %14801  ;;  %2761 = vmatpush1.bf16.msra.mxu0 %v15273_v21  ;;  %v15276_v26 = vld [vmem:[%s22186_s5 + $0x1e0] ss:$8 sps:$4 sm:$0xff]   ;;  %v4010_v47 = vsel %vm702_vm6, %v18301_v5, %v18456_v62  ;;  %v22637_v48 = vld [vmem:[#allocation55_spill] sm:$0xff] }
 0x48b   :  { %v18557_v32 = vpop.permute.xlu1 %3820  ;;  %4276 = vmatprep.subr.bf16.mxu1 %v4005_v12  ;;  %v2187_v16 = vmax.f32 %v17940_v34, %v2060_v30  ;;  %v2186_v52 = vmax.f32 %v22620_v7, %v2059_v11  ;;  %v22337_v8 = vunpack.i.h.bf16 %v18559_v3  ;;  %v14803_v0 = vunpack.i.l.bf16 %v18559_v3  ;;  %v22623_v12 = vld [vmem:[#allocation68_spill] sm:$0xff]  ;;  %2762 = vmatprep.subr.bf16.mxu0 %v15278_v45 }
 0x48c   :  { %3834 = vrot.lane.b32.xlu0 %v22621_v61, %s16149_s2  ;;  %v4004_v34 = vsel %vm702_vm6, %v22622_v55, %v18183_v4  ;;  %v22624_v21 = vunpack.i.h.bf16 %v22623_v12  ;;  %v4009_v7 = vsel %vm702_vm6, %v18225_v22, %v18301_v5  ;;  %v15279_v45 = vld [vmem:[%s22186_s5 + $0x1f0] ss:$8 sps:$4 sm:$0xff]   ;;  %v22625_v55 = vld [vmem:[#allocation53_spill] sm:$0xff]  ;;  %v22627_v5 = vld [vmem:[#allocation54_spill] sm:$0xff] }
 0x48d   :  { %v2211_v44 = vpack.c.bf16 %v2187_v16, %v2181_v46  ;;  %v2210_v54 = vpack.c.bf16 %v2186_v52, %v2180_v1  ;;  %4216 = vrot.lane.b32.xlu1 %v17486_v29, %s16156_s13  ;;  %v15281_v46 = vld [vmem:[%s22186_s5 + $0x1f4] ss:$8 sps:$4 sm:$0xff]   ;;  %v2032_v1 = vsel %vm644_vm5, %v14803_v0, %v22337_v8  ;;  %v4061_v52 = vsel %vm759_vm7, %v18227_v40, %v18432_v38  ;;  %v22628_v12 = vld [vmem:[#allocation65_spill] sm:$0xff] }
 0x48e   :  { %4277 = vmatpush1.bf16.msra.mxu1 %v4004_v34  ;;  %v2031_v30 = vsel %vm644_vm5, %v22624_v21, %v14803_v0  ;;  %v18587_v4 = vpop.permute.xlu0 %3874  ;;  %2763 = vmatpush1.bf16.msra.mxu0 %v15276_v26  ;;  %v22626_v0 = vunpack.i.h.bf16 %v18200_v23  ;;  %v22629_v23 = vld [vmem:[#allocation63_spill] sm:$0xff] }
 0x48f   :  { %v18585_v11 = vpop.permute.xlu1 %14796  ;;  %4278 = vmatprep.subr.bf16.mxu1 %v4010_v47  ;;  %2723 = vmatprep.mubr.bf16.mxu0 %v2211_v44  ;;  %v2152_v34 = vmax.f32 %v22625_v55, %v2031_v30  ;;  %v2153_v30 = vmax.f32 %v22629_v23, %v2032_v1  ;;  %v15284_v55 = vld [vmem:[%s22186_s5 + $0x204] ss:$8 sps:$4 sm:$0xff]   ;;  %v4066_v1 = vsel %vm759_vm7, %v18316_v35, %v18480_v17 }
 0x490   :  { %v22338_v16 = vunpack.i.h.bf16 %v18585_v11  ;;  %v14798_v13 = vunpack.i.l.bf16 %v18585_v11  ;;  %2724 = vmatmul.mubr.bf16.gmra.mrb[44].mxu0 %v2210_v54  ;;  %3878 = vrot.lane.b32.xlu0 %v22618_v39, %s16150_s14 }
 0x491   :  { %3856 = vrot.lane.b32.xlu1 %v17462_v33, %s16157_s20  ;;  %2764 = vmatprep.subr.bf16.mxu0 %v15281_v46  ;;  %v15282_v46 = vld [vmem:[%s22186_s5 + $0x200] ss:$8 sps:$4 sm:$0xff]  }
 0x492   :  { %v2026_v44 = vsel %vm644_vm5, %v22626_v0, %v14798_v13  ;;  %4279 = vmatpush1.bf16.msra.mxu1 %v4009_v7  ;;  %v2027_v22 = vsel %vm644_vm5, %v14798_v13, %v22338_v16  ;;  %v4095_v47 = vpop.permute.xlu0 %4094  ;;  %v4060_v7 = vsel %vm759_vm7, %v18244_v19, %v18227_v40  ;;  %2765 = vmatpush1.bf16.msra.mxu0 %v15279_v45  ;;  %v15287_v19 = vld [vmem:[%s22186_s5 + $0x214] ss:$8 sps:$4 sm:$0xff]   ;;  %v22636_v16 = vld [vmem:[#allocation58_spill] sm:$0xff] }
 0x493   :  { %v2146_v26 = vmax.f32 %v22627_v5, %v2026_v44  ;;  %v18618_v54 = vpop.permute.xlu1 %3876  ;;  %4280 = vmatprep.subr.bf16.mxu1 %v4061_v52  ;;  %v2147_v21 = vmax.f32 %v22628_v12, %v2027_v22  ;;  %2807 = vmatprep.subr.bf16.mxu0 %v15284_v55  ;;  %v4065_v45 = vsel %vm759_vm7, %v18242_v60, %v18316_v35  ;;  %v15290_v60 = vld [vmem:[%s22186_s5 + $0x224] ss:$8 sps:$4 sm:$0xff]   ;;  %v15293_v12 = vld [vmem:[%s22186_s5 + $0x234] ss:$8 sps:$4 sm:$0xff]  }
 0x494   :  { %3890 = vrot.lane.b32.xlu0 %v22621_v61, %s16150_s14 }
 0x495   :  { %v2194_v13 = vpack.c.bf16 %v2152_v34, %v2146_v26  ;;  %v2195_v52 = vpack.c.bf16 %v2153_v30, %v2147_v21  ;;  %3858 = vrot.lane.b32.xlu1 %v17486_v29, %s16157_s20  ;;  %v15285_v34 = vld [vmem:[%s22186_s5 + $0x210] ss:$8 sps:$4 sm:$0xff]   ;;  %v15288_v26 = vld [vmem:[%s22186_s5 + $0x220] ss:$8 sps:$4 sm:$0xff]  }
 0x496   :  { %4281 = vmatpush1.bf16.msra.mxu1 %v4060_v7  ;;  %v4093_v40 = vpop.permute.xlu0 %4092 }
 0x497   :  { %v18638_v0 = vpop.permute.xlu1 %4096  ;;  %4282 = vmatprep.subr.bf16.mxu1 %v4066_v1  ;;  %2766 = vmatprep.mubr.bf16.mxu0 %v2195_v52  ;;  %v4116_v35 = vsel %vm817_vm8, %v4093_v40, %v4095_v47  ;;  %v15294_v1 = vld [vmem:[%s22186_s5 + $0x240] ss:$8 sps:$4 sm:$0xff]   ;;  %v15299_v40 = vld [vmem:[%s22186_s5 + $0x254] ss:$8 sps:$4 sm:$0xff]  }
 0x498   :  { %22630 = vst [vmem:[#allocation40_spill] sm:$0xff] %v18638_v0  ;;  %2767 = vmatmul.mubr.bf16.vlgmr.msra.gmra.mrb[32].mxu0 %v2194_v13  ;;  %3934 = vrot.lane.b32.xlu0 %v22618_v39, %s16151_s15  ;;  %v4117_v44 = vsel %vm817_vm8, %v4095_v47, %v18638_v0  ;;  %v15291_v47 = vld [vmem:[%s22186_s5 + $0x230] ss:$8 sps:$4 sm:$0xff]  }
 0x499   :  { %2808 = vmatpush1.bf16.msra.mxu0 %v15282_v46  ;;  %3912 = vrot.lane.b32.xlu1 %v17462_v33, %s16158_s21  ;;  %v15296_v46 = vld [vmem:[%s22186_s5 + $0x244] ss:$8 sps:$4 sm:$0xff]  }
 0x49a   :  { %4283 = vmatpush1.bf16.msra.mxu1 %v4065_v45  ;;  %v18657_v5 = vpop.permute.xlu0 %3888  ;;  %2809 = vmatprep.subr.bf16.mxu0 %v15287_v19 }
 0x49b   :  { %v18655_v22 = vpop.permute.xlu1 %3886  ;;  %4284 = vmatprep.subr.bf16.mxu1 %v4117_v44 }
 0x49c   :  { %4210 = vrot.lane.b32.xlu0 %v17516_v41, %s16156_s13 }
 0x49d   :  { %2810 = vmatpush1.bf16.msra.mxu0 %v15285_v34  ;;  %3914 = vrot.lane.b32.xlu1 %v17486_v29, %s16158_s21 }
 0x49e   :  { %4285 = vmatpush1.bf16.msra.mxu1 %v4116_v35  ;;  %v18673_v23 = vpop.permute.xlu0 %14816  ;;  %2811 = vmatprep.subr.bf16.mxu0 %v15290_v60  ;;  %v22632_v35 = vld [vmem:[#allocation48_spill] sm:$0xff] }
 0x49f   :  { %v4107_v21 = vpop.permute.xlu1 %4106  ;;  %v22336_v7 = vunpack.i.h.bf16 %v18673_v23  ;;  %v14818_v13 = vunpack.i.l.bf16 %v18673_v23 }
 0x4a0   :  { %3946 = vrot.lane.b32.xlu0 %v22621_v61, %s16151_s15 }
 0x4a1   :  { %2812 = vmatpush1.bf16.msra.mxu0 %v15288_v26  ;;  %3968 = vrot.lane.b32.xlu1 %v17462_v33, %s16159_s22  ;;  %v2042_v60 = vsel %vm644_vm5, %v14818_v13, %v22336_v7  ;;  %v22633_v26 = vunpack.i.h.bf16 %v22632_v35  ;;  %v22635_v7 = vld [vmem:[#allocation45_spill] sm:$0xff] }
 0x4a2   :  { %2813 = vmatprep.subr.bf16.mxu0 %v15293_v12  ;;  %v18684_v55 = vpop.permute.xlu0 %4108  ;;  %v2165_v8 = vmax.f32 %v22635_v7, %v2042_v60 }
 0x4a3   :  { %v18682_v30 = vpop.permute.xlu1 %14806  ;;  %22631 = vst [vmem:[#allocation44_spill] sm:$0xff] %v18684_v55  ;;  %v4122_v52 = vsel %vm817_vm8, %v4107_v21, %v18684_v55  ;;  %v2041_v12 = vsel %vm644_vm5, %v22633_v26, %v14818_v13  ;;  %v22634_v26 = vld [vmem:[#allocation24_spill] sm:$0xff]  ;;  %v22655_v55 = vld [vmem:[#allocation62_spill] sm:$0xff] }
 0x4a4   :  { %4286 = vmatprep.subr.bf16.mxu1 %v4122_v52  ;;  %4222 = vrot.lane.b32.xlu0 %v17563_v50, %s16156_s13  ;;  %v2164_v51 = vmax.f32 %v22637_v48, %v2041_v12  ;;  %v15305_v48 = vld [vmem:[%s22186_s5 + $0x274] ss:$8 sps:$4 sm:$0xff]   ;;  %v15303_v12 = vld [vmem:[%s22186_s5 + $0x270] ss:$8 sps:$4 sm:$0xff]  }
 0x4a5   :  { %2814 = vmatpush1.bf16.msra.mxu0 %v15291_v47  ;;  %4212 = vrot.lane.b32.xlu1 %v17604_v53, %s16156_s13  ;;  %v15297_v47 = vld [vmem:[%s22186_s5 + $0x250] ss:$8 sps:$4 sm:$0xff]  }
 0x4a6   :  { %v18705_v45 = vpop.permute.xlu0 %14826  ;;  %2815 = vmatprep.subr.bf16.mxu0 %v15296_v46  ;;  %v15302_v46 = vld [vmem:[%s22186_s5 + $0x264] ss:$8 sps:$4 sm:$0xff]  }
 0x4a7   :  { %v18703_v19 = vpop.permute.xlu1 %14811  ;;  %v22344_v56 = vunpack.i.h.bf16 %v18705_v45  ;;  %v14828_v37 = vunpack.i.l.bf16 %v18705_v45 }
 0x4a8   :  { %v22339_v34 = vunpack.i.h.bf16 %v18703_v19  ;;  %v14813_v44 = vunpack.i.l.bf16 %v18703_v19  ;;  %3990 = vrot.lane.b32.xlu0 %v22618_v39, %s16152_s16 }
 0x4a9   :  { %2816 = vmatpush1.bf16.msra.mxu0 %v15294_v1  ;;  %3970 = vrot.lane.b32.xlu1 %v17486_v29, %s16159_s22  ;;  %v2052_v7 = vsel %vm644_vm5, %v14828_v37, %v22344_v56  ;;  %v22643_v56 = vld [vmem:[#allocation59_spill] sm:$0xff] }
 0x4aa   :  { %2817 = vmatprep.subr.bf16.mxu0 %v15299_v40  ;;  %v2037_v52 = vsel %vm644_vm5, %v14813_v44, %v22339_v34  ;;  %v2036_v13 = vsel %vm644_vm5, %v14764_v36, %v14813_v44  ;;  %v18731_v35 = vpop.permute.xlu0 %3930 }
 0x4ab   :  { %v4105_v1 = vpop.permute.xlu1 %4104  ;;  %v2159_v40 = vmax.f32 %v22634_v26, %v2037_v52  ;;  %v2158_v34 = vmax.f32 %v22636_v16, %v2036_v13 }
 0x4ac   :  { %v4121_v36 = vsel %vm817_vm8, %v4105_v1, %v4107_v21  ;;  %4002 = vrot.lane.b32.xlu0 %v22621_v61, %s16152_s16 }
 0x4ad   :  { %2818 = vmatpush1.bf16.msra.mxu0 %v15297_v47  ;;  %4287 = vmatpush1.bf16.msra.mxu1 %v4121_v36  ;;  %v2201_v44 = vpack.c.bf16 %v2165_v8, %v2159_v40  ;;  %v2200_v52 = vpack.c.bf16 %v2164_v51, %v2158_v34  ;;  %v22638_v34 = vunpack.i.h.bf16 %v18382_v59  ;;  %v15308_v59 = vld [vmem:[%s22186_s5 + $0x284] ss:$8 sps:$4 sm:$0xff]  }
 0x4ae   :  { %2819 = vmatprep.subr.bf16.mxu0 %v15302_v46  ;;  %4224 = vrot.lane.b32.xlu1 %v17660_v58, %s16156_s13  ;;  %v18752_v21 = vpop.permute.xlu0 %14831  ;;  %v22644_v47 = vld [vmem:[#allocation33_spill] sm:$0xff] }
 0x4af   :  { %v18750_v16 = vpop.permute.xlu1 %14821  ;;  %2776 = vmatprep.mubr.bf16.mxu0 %v2201_v44  ;;  %v2051_v60 = vsel %vm644_vm5, %v22638_v34, %v14828_v37  ;;  %v22640_v37 = vld [vmem:[#allocation28_spill] sm:$0xff]  ;;  %v22641_v44 = vld [vmem:[#allocation29_spill] sm:$0xff]  ;;  %v14733_v46 = vunpack.i.l.bf16 %v22644_v47 }
 0x4b0   :  { %v22345_v8 = vunpack.i.h.bf16 %v18750_v16  ;;  %v14823_v51 = vunpack.i.l.bf16 %v18750_v16  ;;  %2777 = vmatmul.mubr.bf16.gmra.mrb[36].mxu0 %v2200_v52  ;;  %4046 = vrot.lane.b32.xlu0 %v22618_v39, %s16153_s17  ;;  %v2177_v52 = vmax.f32 %v22641_v44, %v2052_v7  ;;  %v22645_v7 = vunpack.i.l.bf16 %v18682_v30 }
 0x4b1   :  { %2820 = vmatpush1.bf16.msra.mxu0 %v15300_v42  ;;  %v22639_v42 = vunpack.i.h.bf16 %v18454_v9  ;;  %v22348_v9 = vunpack.i.h.bf16 %v18752_v21 }
 0x4b2   :  { %2821 = vmatprep.subr.bf16.mxu0 %v15305_v48  ;;  %v2047_v13 = vsel %vm644_vm5, %v14823_v51, %v22345_v8  ;;  %4024 = vrot.lane.b32.xlu1 %v17462_v33, %s16160_s6  ;;  %v4151_v40 = vpop.permute.xlu0 %4150  ;;  %v22642_v48 = vld [vmem:[#allocation60_spill] sm:$0xff]  ;;  %v2176_v8 = vmax.f32 %v22643_v56, %v2051_v60  ;;  %v207_v60 = vld [vmem:[%s22186_s5 + $0x2a0] sm:$0x33] }
 0x4b3   :  { %v2046_v1 = vsel %vm644_vm5, %v22639_v42, %v14823_v51  ;;  %v18780_v26 = vpop.permute.xlu1 %3932  ;;  %v2171_v36 = vmax.f32 %v22640_v37, %v2047_v13  ;;  %v14833_v51 = vunpack.i.l.bf16 %v18752_v21  ;;  %v14734_v42 = vunpack.i.h.bf16 %v22644_v47  ;;  %v15306_v13 = vld [vmem:[%s22186_s5 + $0x280] ss:$8 sps:$4 sm:$0xff]   ;;  %v15311_v56 = vld [vmem:[%s22186_s5 + $0x294] ss:$8 sps:$4 sm:$0xff]  }
 0x4b4   :  { %v2170_v34 = vmax.f32 %v22642_v48, %v2046_v1  ;;  %v2136_v1 = vsel %vm669_vm14, %v22645_v7, %v14733_v46  ;;  %4058 = vrot.lane.b32.xlu0 %v22621_v61, %s16153_s17  ;;  %v12848_v7 = vcombine.low %v207_v60, %v207_v60  ;;  %v18844_v0 = vcombine.high %v207_v60, %v207_v60  ;;  %s16166_s17 = smov 32  }
 0x4b5   :  { %2822 = vmatpush1.bf16.msra.mxu0 %v15303_v12  ;;  %v2207_v58 = vpack.c.bf16 %v2177_v52, %v2171_v36  ;;  %v22646_v12 = vunpack.i.h.bf16 %v18682_v30  ;;  %v2057_v44 = vsel %vm644_vm5, %v14833_v51, %v22348_v9  ;;  %v22647_v52 = vunpack.i.h.bf16 %v18504_v10  ;;  %v22654_v9 = vld [vmem:[#allocation61_spill] sm:$0xff] }
 0x4b6   :  { %v2206_v37 = vpack.c.bf16 %v2176_v8, %v2170_v34  ;;  %2823 = vmatprep.subr.bf16.mxu0 %v15308_v59  ;;  %4026 = vrot.lane.b32.xlu1 %v17486_v29, %s16160_s6  ;;  %v4149_v47 = vpop.permute.xlu0 %4148  ;;  %v22648_v34 = vld [vmem:[#allocation34_spill] sm:$0xff]  ;;  %22656 = vst [vmem:[#allocation50_spill] sm:$0xff] %v18844_v0 }
 0x4b7   :  { %v2137_v8 = vsel %vm669_vm14, %v22646_v12, %v14734_v42  ;;  %v18809_v46 = vpop.permute.xlu1 %14836  ;;  %2786 = vmatprep.mubr.bf16.mxu0 %v2207_v58  ;;  %v2056_v48 = vsel %vm644_vm5, %v22647_v52, %v14833_v51  ;;  %v2149_v42 = vmax.f32 %v22648_v34, %v2136_v1  ;;  %v15309_v58 = vld [vmem:[%s22186_s5 + $0x290] ss:$8 sps:$4 sm:$0xff]   ;;  %v22649_v12 = vld [vmem:[#allocation37_spill] sm:$0xff]  ;;  %v22651_v51 = vunpack.i.h.bf16 %v18525_v31 }
 0x4b8   :  { %v14838_v36 = vunpack.i.l.bf16 %v18809_v46  ;;  %2787 = vmatmul.mubr.bf16.gmra.mrb[40].mxu0 %v2206_v37  ;;  %v2155_v59 = vmax.f32 %v22649_v12, %v2137_v8  ;;  %4102 = vrot.lane.b32.xlu0 %v22618_v39, %s16154_s19  ;;  %v22650_v37 = vunpack.i.h.bf16 %v18809_v46  ;;  %v22652_v8 = vld [vmem:[#allocation30_spill] sm:$0xff]  ;;  %v22653_v12 = vld [vmem:[#allocation31_spill] sm:$0xff]  ;;  %v2182_v53 = vmax.f32 %v22654_v9, %v2056_v48 }
 0x4b9   :  { %2824 = vmatpush1.bf16.msra.mxu0 %v15306_v13  ;;  %v2183_v34 = vmax.f32 %v22652_v8, %v2057_v44  ;;  %v18850_v44 = vsel %vm2654_vm0, %v12848_v7, 0  ;;  %v22659_v9 = vunpack.i.h.bf16 %v18585_v11 }
 0x4ba   :  { %2825 = vmatprep.subr.bf16.mxu0 %v15311_v56  ;;  %v2062_v10 = vsel %vm644_vm5, %v14838_v36, %v22650_v37  ;;  %v2061_v13 = vsel %vm644_vm5, %v22651_v51, %v14838_v36  ;;  %4080 = vrot.lane.b32.xlu1 %v17462_v33, %s16161_s18  ;;  %v18834_v1 = vpop.permute.xlu0 %3944  ;;  %v4172_v36 = vsel %vm875_vm9, %v4149_v47, %v4151_v40  ;;  %v22661_v47 = vunpack.i.h.bf16 %v18559_v3  ;;  %v22662_v3 = vld [vmem:[#allocation32_spill] sm:$0xff] }
 0x4bb   :  { %v18836_v52 = vpop.permute.xlu1 %4152  ;;  %v2189_v56 = vmax.f32 %v22653_v12, %v2062_v10  ;;  %v2188_v37 = vmax.f32 %v22655_v55, %v2061_v13  ;;  %22657 = vst [vmem:[#allocation56_spill] sm:$0xff] %v18850_v44  ;;  %v22658_v55 = vunpack.i.l.bf16 %v18682_v30  ;;  %v2197_v7 = vpack.c.bf16 %v2155_v59, %v2149_v42 }
 0x4bc   :  { %v4173_v31 = vsel %vm875_vm9, %v4151_v40, %v18836_v52  ;;  %4114 = vrot.lane.b32.xlu0 %v22621_v61, %s16154_s19  ;;  %v22660_v40 = vunpack.i.h.bf16 %v18682_v30  ;;  %v22663_v30 = vld [vmem:[#allocation64_spill] sm:$0xff] }
 0x4bd   :  { %2826 = vmatpush1.bf16.msra.mxu0 %v15309_v58  ;;  %4288 = vmatprep.subr.bf16.mxu1 %v4173_v31  ;;  %v2213_v51 = vpack.c.bf16 %v2189_v56, %v2183_v34  ;;  %v2212_v17 = vpack.c.bf16 %v2188_v37, %v2182_v53  ;;  %v2028_v60 = vsel %vm644_vm5, %v22659_v9, %v22658_v55 }
 0x4be   :  { %4289 = vmatpush1.bf16.msra.mxu1 %v4172_v36  ;;  %v2033_v53 = vsel %vm644_vm5, %v22661_v47, %v22660_v40  ;;  %4082 = vrot.lane.b32.xlu1 %v17486_v29, %s16161_s18  ;;  %v18864_v48 = vpop.permute.xlu0 %4164  ;;  %v2148_v11 = vmax.f32 %v22662_v3, %v2028_v60  ;;  %v18898_v36 = vld [vmem:[#allocation2] ss:$12 sps:$4 sm:$0xff]   ;;  %v22665_v60 = vunpack.i.h.bf16 %v18673_v23  ;;  %v3844_v3 = vsel %vm528_vm3, %v18502_v43, %v18527_v27 }
 0x4bf   :  { %v18866_v58 = vpop.permute.xlu1 %3942  ;;  %2796 = vmatprep.mubr.bf16.mxu0 %v2213_v51  ;;  %12850 = vmatprep.subr.msk.bf16.mxu0 %vm2654_vm0, %v18844_v0  ;;  %v2154_v10 = vmax.f32 %v22663_v30, %v2033_v53  ;;  %v22666_v30 = vld [vmem:[#allocation35_spill] sm:$0xff] }
 0x4c0   :  { %2797 = vmatmul.mubr.bf16.gmra.mrb[44].mxu0 %v2212_v17  ;;  %4158 = vrot.lane.b32.xlu0 %v22618_v39, %s16155_s3 }
 0x4c1   :  { %2828 = vmatpush1.bf16.msra.mxu0 %v18850_v44  ;;  %12851 = vmatprep.mubr.msk.bf16.mxu0 %vm2641_vm1, %v2197_v7  ;;  %v2196_v13 = vpack.c.bf16 %v2154_v10, %v2148_v11  ;;  %v3838_v7 = vsel %vm528_vm3, %v18355_v6, %v18357_v57  ;;  %v22667_v10 = vld [vmem:[#allocation26_spill] sm:$0xff] }
 0x4c2   :  { %4406 = vmatprep.subr.bf16.mxu0 %v17516_v41  ;;  %4134 = vrot.lane.b32.xlu1 %v17462_v33, %s16162_s23  ;;  %v18879_v59 = vpop.permute.xlu0 %3986 }
 0x4c3   :  { %v4163_v42 = vpop.permute.xlu1 %4162 }
 0x4c4   :  { %v4178_v17 = vsel %vm875_vm9, %v4163_v42, %v18864_v48  ;;  %4170 = vrot.lane.b32.xlu0 %v22621_v61, %s16155_s3 }
 0x4c5   :  { %4290 = vmatprep.subr.bf16.mxu1 %v4178_v17  ;;  %v22668_v17 = vld [vmem:[#allocation46_spill] sm:$0xff] }
 0x4c6   :  { %4136 = vrot.lane.b32.xlu1 %v17486_v29, %s16162_s23  ;;  %v14842_v8 = vpop.permute.xlu0 %14841 }
 0x4c7   :  { %v4161_v34 = vpop.permute.xlu1 %4160  ;;  %v14844_v12 = vunpack.i.h.bf16 %v14842_v8  ;;  %v14843_v56 = vunpack.i.l.bf16 %v14842_v8  ;;  %v22669_v8 = vld [vmem:[#allocation38_spill] sm:$0xff] }
 0x4c8   :  { %v4177_v41 = vsel %vm875_vm9, %v4161_v34, %v4163_v42  ;;  %2840 = vmatmul.mubr.bf16.vlgmr.msra.gmra.mrb[32].mxu0 %v2196_v13  ;;  %4214 = vrot.lane.b32.xlu0 %v22618_v39, %s16156_s13 }
 0x4c9   :  { %4407 = vmatpush1.bf16.msra.mxu0 %v17514_v49  ;;  %4291 = vmatpush1.bf16.msra.mxu1 %v4177_v41  ;;  %v3839_v49 = vsel %vm528_vm3, %v18357_v57, %v18557_v32  ;;  %v2043_v40 = vsel %vm644_vm5, %v22665_v60, %v14844_v12  ;;  %v3843_v41 = vsel %vm528_vm3, %v18407_v28, %v18502_v43 }
 0x4ca   :  { %4408 = vmatprep.subr.bf16.mxu0 %v17563_v50  ;;  %4190 = vrot.lane.b32.xlu1 %v17462_v33, %s16163_s24  ;;  %v18894_v37 = vpop.permute.xlu0 %3998  ;;  %v18905_v50 = vld [vmem:[#allocation2 + $0x1c] ss:$12 sps:$4 sm:$0xff]   ;;  %v2166_v42 = vmax.f32 %v22667_v10, %v2043_v40  ;;  %v3894_v60 = vsel %vm586_vm4, %v18336_v20, %v18587_v4  ;;  %v3900_v40 = vsel %vm586_vm4, %v18655_v22, %v18657_v5 }
 0x4cb   :  { %v18896_v31 = vpop.permute.xlu1 %3988  ;;  %v3899_v20 = vsel %vm586_vm4, %v18478_v63, %v18655_v22  ;;  %v22673_v22 = vld [vmem:[#allocation41_spill] sm:$0xff] }
 0x4cc   :  { %4293 = vmatmul.mubr.bf16.vlgmr.msra.gmra.mrb[64].mxu1 %v18898_v36  ;;  %4226 = vrot.lane.b32.xlu0 %v22621_v61, %s16156_s13 }
 0x4cd   :  { %4409 = vmatpush1.bf16.msra.mxu0 %v17550_v2  ;;  %4302 = vmatprep.mubr.bf16.mxu1 %v18905_v50  ;;  %v22664_v2 = vunpack.i.h.bf16 %v18703_v19 }
 0x4ce   :  { %4410 = vmatprep.subr.bf16.mxu0 %v3839_v49  ;;  %4192 = vrot.lane.b32.xlu1 %v17486_v29, %s16163_s24  ;;  %v18912_v51 = vpop.permute.xlu0 %4042 }
 0x4cf   :  { %v14847_v55 = vpop.permute.xlu1 %14846  ;;  %v2038_v9 = vsel %vm644_vm5, %v22664_v2, %v14843_v56 }
 0x4d0   :  { %v14849_v47 = vunpack.i.h.bf16 %v14847_v55  ;;  %v14848_v53 = vunpack.i.l.bf16 %v14847_v55  ;;  %v2160_v23 = vmax.f32 %v22666_v30, %v2038_v9  ;;  %v18945_v55 = vld [vmem:[#allocation2 + $0x34] ss:$12 sps:$4 sm:$0xff]  }
 0x4d1   :  { %4411 = vmatpush1.bf16.msra.mxu0 %v3838_v7 }
 0x4d2   :  { %v2139_v11 = vsel %vm669_vm14, %v14844_v12, %v14849_v47  ;;  %v2138_v19 = vsel %vm669_vm14, %v14843_v56, %v14848_v53  ;;  %4412 = vmatprep.subr.bf16.mxu0 %v3844_v3  ;;  %4246 = vrot.lane.b32.xlu1 %v17462_v33, %s16164_s25  ;;  %v14852_v6 = vpop.permute.xlu0 %14851  ;;  %v18939_v12 = vld [vmem:[#allocation2 + $0x18] ss:$12 sps:$4 sm:$0xff]   ;;  %v3895_v56 = vsel %vm586_vm4, %v18587_v4, %v18618_v54  ;;  %v22670_v53 = vunpack.i.h.bf16 %v18750_v16  ;;  %v18972_v4 = vld [vmem:[#allocation2 + $0x30] ss:$12 sps:$4 sm:$0xff]  }
 0x4d3   :  { %v2167_v13 = vmax.f32 %v22668_v17, %v2139_v11  ;;  %v2161_v34 = vmax.f32 %v22669_v8, %v2138_v19  ;;  %v18934_v57 = vpop.permute.xlu1 %4000  ;;  %v2202_v33 = vpack.c.bf16 %v2166_v42, %v2160_v23  ;;  %v14854_v2 = vunpack.i.h.bf16 %v14852_v6  ;;  %v18978_v23 = vld [vmem:[#allocation2 + $0x4c] ss:$12 sps:$4 sm:$0xff]   ;;  %v22672_v42 = vld [vmem:[#allocation39_spill] sm:$0xff] }
 0x4d4   :  { %4303 = vmatmul.mubr.bf16.gmra.mrb[68].mxu1 %v18939_v12  ;;  %v14853_v9 = vunpack.i.l.bf16 %v14852_v6  ;;  %v22671_v3 = vunpack.i.h.bf16 %v18705_v45  ;;  %v3951_v16 = vsel %vm644_vm5, %v18731_v35, %v18780_v26 }
 0x4d5   :  { %4413 = vmatpush1.bf16.msra.mxu0 %v3843_v41  ;;  %v2203_v49 = vpack.c.bf16 %v2167_v13, %v2161_v34  ;;  %4312 = vmatprep.mubr.bf16.mxu1 %v18945_v55  ;;  %v22674_v13 = vld [vmem:[#allocation47_spill] sm:$0xff]  ;;  %v22675_v34 = vld [vmem:[#allocation36_spill] sm:$0xff] }
 0x4d6   :  { %4414 = vmatprep.subr.bf16.mxu0 %v3895_v56  ;;  %4248 = vrot.lane.b32.xlu1 %v17486_v29, %s16164_s25  ;;  %v18950_v28 = vpop.permute.xlu0 %4054  ;;  %v2048_v7 = vsel %vm644_vm5, %v22670_v53, %v14853_v9  ;;  %v2053_v11 = vsel %vm644_vm5, %v22671_v3, %v14854_v2  ;;  %v22676_v53 = vmov 0  }
 0x4d7   :  { %v18952_v43 = vpop.permute.xlu1 %4044  ;;  %12852 = vmatprep.mubr.msk.bf16.mxu0 %vm2641_vm1, %v2203_v49  ;;  %v2172_v63 = vmax.f32 %v22672_v42, %v2048_v7  ;;  %v2178_v17 = vmax.f32 %v22673_v22, %v2053_v11  ;;  %v3950_v49 = vsel %vm644_vm5, %v18380_v24, %v18731_v35  ;;  %v19005_v24 = vld [vmem:[#allocation2 + $0x48] ss:$12 sps:$4 sm:$0xff]   ;;  %v4007_v35 = vsel %vm702_vm6, %v18879_v59, %v18896_v31 }
 0x4d8   :  { %2850 = vmatmul.mubr.bf16.gmra.mrb[36].mxu0 %v2202_v33  ;;  %v3956_v33 = vsel %vm644_vm5, %v18866_v58, %v18834_v1  ;;  %v4006_v11 = vsel %vm702_vm6, %v18405_v15, %v18879_v59  ;;  %v4063_v15 = vsel %vm759_vm7, %v18912_v51, %v18952_v43 }
 0x4d9   :  { %4415 = vmatpush1.bf16.msra.mxu0 %v3894_v60 }
 0x4da   :  { %4416 = vmatprep.subr.bf16.mxu0 %v3900_v40  ;;  %v18961_v47 = vpop.permute.xlu0 %4098 }
 0x4db   :  { %v14857_v29 = vpop.permute.xlu1 %14856 }
 0x4dc   :  { %v14859_v19 = vunpack.i.h.bf16 %v14857_v29  ;;  %v14858_v30 = vunpack.i.l.bf16 %v14857_v29  ;;  %4313 = vmatmul.mubr.bf16.gmra.mrb[72].mxu1 %v18972_v4  ;;  %v3955_v29 = vsel %vm644_vm5, %v18434_v25, %v18866_v58  ;;  %v4012_v25 = vsel %vm702_vm6, %v18894_v37, %v18934_v57 }
 0x4dd   :  { %4417 = vmatpush1.bf16.msra.mxu0 %v3899_v20  ;;  %4322 = vmatprep.mubr.bf16.mxu1 %v18978_v23 }
 0x4de   :  { %v2141_v45 = vsel %vm669_vm14, %v14854_v2, %v14859_v19  ;;  %v2140_v10 = vsel %vm669_vm14, %v14853_v9, %v14858_v30  ;;  %4418 = vmatprep.subr.bf16.mxu0 %v3951_v16  ;;  %v18987_v41 = vpop.permute.xlu0 %4110  ;;  %v2208_v9 = vpack.c.bf16 %v2178_v17, %v2172_v63  ;;  %v4011_v19 = vsel %vm702_vm6, %v18456_v62, %v18894_v37 }
 0x4df   :  { %v2179_v8 = vmax.f32 %v22674_v13, %v2141_v45  ;;  %v2173_v6 = vmax.f32 %v22675_v34, %v2140_v10  ;;  %v18989_v56 = vpop.permute.xlu1 %4056  ;;  %v22677_v63 = vunpack.i.h.bf16 %v18752_v21  ;;  %v22678_v37 = vunpack.i.h.bf16 %v18809_v46  ;;  %v22679_v34 = vld [vmem:[#allocation43_spill] sm:$0xff] }
 0x4e0   :  { %v4062_v21 = vsel %vm759_vm7, %v18432_v38, %v18912_v51  ;;  %v4068_v46 = vsel %vm759_vm7, %v18950_v28, %v18989_v56 }
 0x4e1   :  { %4419 = vmatpush1.bf16.msra.mxu0 %v3950_v49  ;;  %v2209_v2 = vpack.c.bf16 %v2179_v8, %v2173_v6  ;;  %v22680_v49 = vld [vmem:[#allocation67_spill] sm:$0xff] }
 0x4e2   :  { %4420 = vmatprep.subr.bf16.mxu0 %v3956_v33  ;;  %v18997_v60 = vpop.permute.xlu0 %4154 }
 0x4e3   :  { %12853 = vmatprep.mubr.msk.bf16.mxu0 %vm2641_vm1, %v2209_v2  ;;  %v19000_v40 = vpop.permute.xlu1 %4100 }
 0x4e4   :  { %2860 = vmatmul.mubr.bf16.gmra.mrb[40].mxu0 %v2208_v9  ;;  %4323 = vmatmul.mubr.bf16.gmra.mrb[76].mxu1 %v19005_v24  ;;  %v4119_v51 = vsel %vm817_vm8, %v18961_v47, %v19000_v40 }
 0x4e5   :  { %4421 = vmatpush1.bf16.msra.mxu0 %v3955_v29  ;;  %4365 = vmatprep.mubr.bf16.mxu1 %v22676_v53 }
 0x4e6   :  { %4422 = vmatprep.subr.bf16.mxu0 %v4007_v35  ;;  %v4207_v7 = vpop.permute.xlu0 %4206  ;;  %v22681_v35 = vld [vmem:[#allocation42_spill] sm:$0xff] }
 0x4e7   :  { %v14862_v3 = vpop.permute.xlu1 %14861 }
 0x4e8   :  { %v14864_v30 = vunpack.i.h.bf16 %v14862_v3  ;;  %v14863_v20 = vunpack.i.l.bf16 %v14862_v3  ;;  %v4067_v3 = vsel %vm759_vm7, %v22681_v35, %v18950_v28 }
 0x4e9   :  { %4423 = vmatpush1.bf16.msra.mxu0 %v4006_v11  ;;  %v19059_v11 = vld [vmem:[#allocation2 + $0x4] ss:$12 sps:$4 sm:$0xff]  }
 0x4ea   :  { %4424 = vmatprep.subr.bf16.mxu0 %v4012_v25  ;;  %v14867_v58 = vpop.permute.xlu0 %14866 }
 0x4eb   :  { %v14869_v16 = vunpack.i.h.bf16 %v14867_v58  ;;  %v14868_v45 = vunpack.i.l.bf16 %v14867_v58  ;;  %v19021_v10 = vpop.permute.xlu1 %4112 }
 0x4ed   :  { %4425 = vmatpush1.bf16.msra.mxu0 %v4011_v19  ;;  %v2142_v59 = vsel %vm669_vm14, %v14868_v45, %v14863_v20  ;;  %v2143_v42 = vsel %vm669_vm14, %v14869_v16, %v14864_v30  ;;  %v2058_v62 = vsel %vm644_vm5, %v22677_v63, %v14868_v45  ;;  %v2063_v22 = vsel %vm644_vm5, %v22678_v37, %v14869_v16  ;;  %v22682_v19 = vld [vmem:[#allocation40_spill] sm:$0xff] }
 0x4ee   :  { %4426 = vmatprep.subr.bf16.mxu0 %v4063_v15  ;;  %v2185_v17 = vmax.f32 %v18420_v18, %v2142_v59  ;;  %v2191_v13 = vmax.f32 %v18403_v14, %v2143_v42  ;;  %v4205_v8 = vpop.permute.xlu0 %4204  ;;  %v2184_v6 = vmax.f32 %v22679_v34, %v2058_v62  ;;  %v2190_v33 = vmax.f32 %v22680_v49, %v2063_v22 }
 0x4ef   :  { %v19038_v2 = vpop.permute.xlu1 %4156  ;;  %v4228_v25 = vsel %vm933_vm10, %v4205_v8, %v4207_v7  ;;  %v4118_v30 = vsel %vm817_vm8, %v22682_v19, %v18961_v47  ;;  %v4124_v20 = vsel %vm817_vm8, %v18987_v41, %v19021_v10  ;;  %v4174_v62 = vsel %vm875_vm9, %v18836_v52, %v18997_v60  ;;  %v19088_v8 = vld [vmem:[#allocation2 + $0x8] ss:$12 sps:$4 sm:$0xff]   ;;  %v22684_v52 = vld [vmem:[#allocation49_spill] sm:$0xff] }
 0x4f0   :  { %v2215_v9 = vpack.c.bf16 %v2191_v13, %v2185_v17  ;;  %v2214_v18 = vpack.c.bf16 %v2190_v33, %v2184_v6  ;;  %v4175_v47 = vsel %vm875_vm9, %v18997_v60, %v19038_v2  ;;  %v19099_v33 = vld [vmem:[#allocation2 + $0x20] ss:$12 sps:$4 sm:$0xff]  }
 0x4f1   :  { %4427 = vmatpush1.bf16.msra.mxu0 %v4062_v21 }
 0x4f2   :  { %4428 = vmatprep.subr.bf16.mxu0 %v4068_v46  ;;  %v19046_v14 = vpop.permute.xlu0 %4168  ;;  %12854 = vmatprep.mubr.msk.bf16.mxu0 %vm2641_vm1, %v2215_v9 }
 0x4f3   :  { %v19049_v29 = vpop.permute.xlu1 %4208  ;;  %2870 = vmatmul.mubr.bf16.gmra.mrb[44].mxu0 %v2214_v18 }
 0x4f4   :  { %v4229_v38 = vsel %vm933_vm10, %v4207_v7, %v19049_v29  ;;  %4438 = vmatprep.mubr.bf16.mxu0 %v19059_v11  ;;  %v22683_v7 = vld [vmem:[#allocation44_spill] sm:$0xff] }
 0x4f5   :  { %4429 = vmatpush1.bf16.msra.mxu0 %v4067_v3  ;;  %4333 = vmatprep.subr.bf16.mxu1 %v4229_v38  ;;  %v4123_v15 = vsel %vm817_vm8, %v22683_v7, %v18987_v41  ;;  %v19112_v38 = vld [vmem:[#allocation2 + $0x38] ss:$12 sps:$4 sm:$0xff]   ;;  %v19131_v7 = vld [vmem:[#allocation2 + $0x50] ss:$12 sps:$4 sm:$0xff]  }
 0x4f6   :  { %4430 = vmatprep.subr.bf16.mxu0 %v4119_v51  ;;  %4334 = vmatpush1.bf16.msra.mxu1 %v4228_v25  ;;  %v19063_v58 = vpop.permute.xlu0 %4220 }
 0x4f7   :  { %v4167_v28 = vpop.permute.xlu1 %4166 }
 0x4f8   :  { %v4180_v41 = vsel %vm875_vm9, %v4167_v28, %v19046_v14  ;;  %v4179_v13 = vsel %vm875_vm9, %v18864_v48, %v4167_v28 }
 0x4f9   :  { %4431 = vmatpush1.bf16.msra.mxu0 %v4118_v30 }
 0x4fa   :  { %4432 = vmatprep.subr.bf16.mxu0 %v4124_v20  ;;  %v3823_v16 = vpop.permute.xlu0 %3822 }
 0x4fb   :  { %v4219_v45 = vpop.permute.xlu1 %4218 }
 0x4fc   :  { %v4234_v59 = vsel %vm933_vm10, %v4219_v45, %v19063_v58 }
 0x4fd   :  { %4433 = vmatpush1.bf16.msra.mxu0 %v4123_v15  ;;  %4335 = vmatprep.subr.bf16.mxu1 %v4234_v59 }
 0x4fe   :  { %4434 = vmatprep.subr.bf16.mxu0 %v4175_v47  ;;  %v3835_v42 = vpop.permute.xlu0 %3834 }
 0x4ff   :  { %v4217_v63 = vpop.permute.xlu1 %4216  ;;  %v3845_v18 = vsel %vm528_vm3, %v18527_v27, %v3835_v42 }
 0x500   :  { %v4233_v37 = vsel %vm933_vm10, %v4217_v63, %v4219_v45 }
 0x501   :  { %4435 = vmatpush1.bf16.msra.mxu0 %v4174_v62  ;;  %4336 = vmatpush1.bf16.msra.mxu1 %v4233_v37  ;;  %v15913_v62 = vld [vmem:[%s22186_s5 + $0x4] ss:$8 sps:$4 sm:$0xff]  }
 0x502   :  { %4436 = vmatprep.subr.bf16.mxu0 %v4180_v41  ;;  %4552 = vmatprep.subr.bf16.mxu1 %v22618_v39  ;;  %v3879_v22 = vpop.permute.xlu0 %3878  ;;  %v22685_v39 = vld [vmem:[#allocation51_spill] sm:$0xff] }
 0x503   :  { %v3857_v17 = vpop.permute.xlu1 %3856  ;;  %v3896_v51 = vsel %vm586_vm4, %v18618_v54, %v3879_v22 }
 0x504   :  { %12873 = vmatmul.mubr.msk.bf16.vlgmr.msra.gmra.mrb[64].mxu1 %vm1067_vm11, %v19088_v8  ;;  %v3862_v48 = vsel %vm553_vm12, %v3823_v16, %v3857_v17 }
 0x505   :  { %4437 = vmatpush1.bf16.msra.mxu0 %v4179_v13  ;;  %4553 = vmatpush1.bf16.msra.mxu1 %v22684_v52  ;;  %v15915_v13 = vld [vmem:[%s22186_s5 + $0x14] ss:$8 sps:$4 sm:$0xff]  }
 0x506   :  { %4375 = vmatprep.mubr.bf16.mxu1 %v22676_v53  ;;  %4554 = vmatprep.subr.bf16.mxu1 %v22621_v61  ;;  %v3891_v60 = vpop.permute.xlu0 %3890  ;;  %v3840_v61 = vsel %vm528_vm3, %v18557_v32, %v3823_v16 }
 0x507   :  { %v3859_v34 = vpop.permute.xlu1 %3858  ;;  %v3901_v19 = vsel %vm586_vm4, %v18657_v5, %v3891_v60 }
 0x508   :  { %4439 = vmatmul.mubr.bf16.vlgmr.msra.gmra.mrb[48].mxu0 %v18898_v36  ;;  %v3866_v21 = vsel %vm553_vm12, %v3835_v42, %v3859_v34  ;;  %v15916_v34 = vld [vmem:[%s22186_s5 + $0x10] ss:$8 sps:$4 sm:$0xff]  }
 0x509   :  { %4448 = vmatprep.mubr.bf16.mxu0 %v18905_v50  ;;  %4555 = vmatpush1.bf16.msra.mxu1 %v22685_v39 }
 0x50a   :  { %4556 = vmatprep.subr.bf16.mxu1 %v3862_v48  ;;  %v3935_v6 = vpop.permute.xlu0 %3934  ;;  %v15917_v48 = vld [vmem:[%s22186_s5 + $0x24] ss:$8 sps:$4 sm:$0xff]  }
 0x50b   :  { %v3913_v49 = vpop.permute.xlu1 %3912  ;;  %v3952_v5 = vsel %vm644_vm5, %v18780_v26, %v3935_v6 }
 0x50c   :  { %12874 = vmatmul.mubr.msk.bf16.gmra.mrb[68].mxu1 %vm1067_vm11, %v19099_v33  ;;  %v3918_v35 = vsel %vm611_vm13, %v3879_v22, %v3913_v49  ;;  %v15914_v22 = vld [vmem:[%s22186_s5] ss:$8 sps:$4 sm:$0xff]  }
 0x50d   :  { %4557 = vmatpush1.bf16.msra.mxu1 %v3840_v61  ;;  %4385 = vmatprep.mubr.bf16.mxu1 %v22676_v53  ;;  %v15918_v61 = vld [vmem:[%s22186_s5 + $0x20] ss:$8 sps:$4 sm:$0xff]  }
 0x50e   :  { %4558 = vmatprep.subr.bf16.mxu1 %v3866_v21  ;;  %v4211_v46 = vpop.permute.xlu0 %4210 }
 0x50f   :  { %v3915_v9 = vpop.permute.xlu1 %3914  ;;  %v4230_v20 = vsel %vm933_vm10, %v19049_v29, %v4211_v46 }
 0x510   :  { %4449 = vmatmul.mubr.bf16.gmra.mrb[52].mxu0 %v18939_v12  ;;  %v3922_v25 = vsel %vm611_vm13, %v3891_v60, %v3915_v9  ;;  %vm2898_vm13 = vcmask 130048  }
 0x511   :  { %4458 = vmatprep.mubr.bf16.mxu0 %v18945_v55  ;;  %4559 = vmatpush1.bf16.msra.mxu1 %v3845_v18 }
 0x512   :  { %4560 = vmatprep.subr.bf16.mxu1 %v3918_v35  ;;  %v3947_v32 = vpop.permute.xlu0 %3946 }
 0x513   :  { %v3969_v3 = vpop.permute.xlu1 %3968  ;;  %v3957_v47 = vsel %vm644_vm5, %v18834_v1, %v3947_v32 }
 0x514   :  { %12875 = vmatmul.mubr.msk.bf16.gmra.mrb[72].mxu1 %vm1067_vm11, %v19112_v38  ;;  %v3974_v54 = vsel %vm669_vm14, %v3935_v6, %v3969_v3 }
 0x515   :  { %4561 = vmatpush1.bf16.msra.mxu1 %v3896_v51  ;;  %4395 = vmatprep.mubr.bf16.mxu1 %v22676_v53  ;;  %v15921_v51 = vld [vmem:[%s22186_s5 + $0x44] ss:$8 sps:$4 sm:$0xff]  }
 0x516   :  { %4562 = vmatprep.subr.bf16.mxu1 %v3922_v25  ;;  %v4223_v27 = vpop.permute.xlu0 %4222  ;;  %v15922_v25 = vld [vmem:[%s22186_s5 + $0x40] ss:$8 sps:$4 sm:$0xff]  }
 0x517   :  { %v19121_v28 = vpop.permute.xlu1 %4212  ;;  %v4235_v26 = vsel %vm933_vm10, %v19063_v58, %v4223_v27 }
 0x518   :  { %4459 = vmatmul.mubr.bf16.gmra.mrb[56].mxu0 %v18972_v4  ;;  %v4231_v30 = vsel %vm933_vm10, %v4211_v46, %v19121_v28  ;;  %v15919_v46 = vld [vmem:[%s22186_s5 + $0x34] ss:$8 sps:$4 sm:$0xff]  }
 0x519   :  { %4468 = vmatprep.mubr.bf16.mxu0 %v18978_v23  ;;  %4563 = vmatpush1.bf16.msra.mxu1 %v3901_v19 }
 0x51a   :  { %4479 = vmatprep.subr.bf16.mxu0 %v4231_v30  ;;  %4564 = vmatprep.subr.bf16.mxu1 %v3974_v54  ;;  %v3991_v16 = vpop.permute.xlu0 %3990  ;;  %v15923_v30 = vld [vmem:[%s22186_s5 + $0x54] ss:$8 sps:$4 sm:$0xff]  }
 0x51b   :  { %4480 = vmatpush1.bf16.msra.mxu0 %v4230_v20  ;;  %v3971_v45 = vpop.permute.xlu1 %3970  ;;  %v4008_v37 = vsel %vm702_vm6, %v18896_v31, %v3991_v16  ;;  %v15924_v20 = vld [vmem:[%s22186_s5 + $0x50] ss:$8 sps:$4 sm:$0xff]  }
 0x51c   :  { %12876 = vmatmul.mubr.msk.bf16.gmra.mrb[76].mxu1 %vm1067_vm11, %v19131_v7  ;;  %v3978_v15 = vsel %vm669_vm14, %v3947_v32, %v3971_v45  ;;  %v15920_v32 = vld [vmem:[%s22186_s5 + $0x30] ss:$8 sps:$4 sm:$0xff]   ;;  %v15925_v45 = vld [vmem:[%s22186_s5 + $0x64] ss:$8 sps:$4 sm:$0xff]  }
 0x51d   :  { %4565 = vmatpush1.bf16.msra.mxu1 %v3952_v5  ;;  %4584 = vmatprep.mubr.bf16.mxu1 %v19059_v11 }
 0x51e   :  { %4566 = vmatprep.subr.bf16.mxu1 %v3978_v15  ;;  %v4003_v59 = vpop.permute.xlu0 %4002 }
 0x51f   :  { %v4013_v31 = vsel %vm702_vm6, %v18934_v57, %v4003_v59  ;;  %vm22688_vm6 = vcmask 908288  }
 0x520   :  { %4469 = vmatmul.mubr.bf16.gmra.mrb[60].mxu0 %v19005_v24  ;;  %v19140_v29 = vpop.permute.xlu1 %4224 }
 0x521   :  { %4511 = vmatprep.mubr.bf16.mxu0 %v22676_v53  ;;  %v4236_v42 = vsel %vm933_vm10, %v4223_v27, %v19140_v29  ;;  %4567 = vmatpush1.bf16.msra.mxu1 %v3957_v47 }
 0x522   :  { %4481 = vmatprep.subr.bf16.mxu0 %v4236_v42  ;;  %v4047_v11 = vpop.permute.xlu0 %4046  ;;  %v15927_v42 = vld [vmem:[%s22186_s5 + $0x74] ss:$8 sps:$4 sm:$0xff]  }
 0x523   :  { %4482 = vmatpush1.bf16.msra.mxu0 %v4235_v26  ;;  %v4064_v6 = vsel %vm759_vm7, %v18952_v43, %v4047_v11 }
 0x524   :  { %v4025_v63 = vpop.permute.xlu1 %4024  ;;  %5406 = vmatprep.subr.bf16.mxu0 %v15913_v62 }
 0x525   :  { %v4030_v1 = vsel %vm268_vm2, %v3991_v16, %v4025_v63 }
 0x526   :  { %4568 = vmatprep.subr.bf16.mxu1 %v4030_v1  ;;  %v4059_v41 = vpop.permute.xlu0 %4058  ;;  %v15929_v1 = vld [vmem:[%s22186_s5 + $0x84] ss:$8 sps:$4 sm:$0xff]  }
 0x527   :  { %4569 = vmatpush1.bf16.msra.mxu1 %v4008_v37  ;;  %v4069_v43 = vsel %vm759_vm7, %v18989_v56, %v4059_v41  ;;  %vm22689_vm7 = vmmov %vm22688_vm6 }
 0x528   :  { %12877 = vmatmul.mubr.msk.bf16.vlgmr.msra.gmra.mrb[48].mxu0 %vm1067_vm11, %v19088_v8  ;;  %v4027_v58 = vpop.permute.xlu1 %4026 }
 0x529   :  { %4521 = vmatprep.mubr.bf16.mxu0 %v22676_v53  ;;  %5407 = vmatpush1.bf16.msra.mxu0 %v15914_v22  ;;  %v4034_v17 = vsel %vm268_vm2, %v4003_v59, %v4027_v58  ;;  %vm22686_vm2 = vcmask 916480   ;;  %v15926_v59 = vld [vmem:[%s22186_s5 + $0x60] ss:$8 sps:$4 sm:$0xff]   ;;  %v15931_v22 = vld [vmem:[%s22186_s5 + $0x94] ss:$8 sps:$4 sm:$0xff]  }
 0x52a   :  { %5408 = vmatprep.subr.bf16.mxu0 %v15915_v13  ;;  %4570 = vmatprep.subr.bf16.mxu1 %v4034_v17  ;;  %v4103_v52 = vpop.permute.xlu0 %4102  ;;  %vm22687_vm4 = vmmov %vm22686_vm2  ;;  %v15935_v17 = vld [vmem:[%s22186_s5 + $0xb4] ss:$8 sps:$4 sm:$0xff]   ;;  %v15936_v13 = vld [vmem:[%s22186_s5 + $0xb0] ss:$8 sps:$4 sm:$0xff]  }
 0x52b   :  { %4571 = vmatpush1.bf16.msra.mxu1 %v4013_v31  ;;  %v4120_v18 = vsel %vm817_vm8, %v19000_v40, %v4103_v52  ;;  %v15939_v31 = vld [vmem:[%s22186_s5 + $0xd4] ss:$8 sps:$4 sm:$0xff]   ;;  %v15940_v52 = vld [vmem:[%s22186_s5 + $0xd0] ss:$8 sps:$4 sm:$0xff]  }
 0x52c   :  { %v4081_v60 = vpop.permute.xlu1 %4080 }
 0x52d   :  { %5409 = vmatpush1.bf16.msra.mxu0 %v15916_v34  ;;  %v4086_v39 = vsel %vm784_vm15, %v4047_v11, %v4081_v60  ;;  %v15943_v60 = vld [vmem:[%s22186_s5 + $0xf4] ss:$8 sps:$4 sm:$0xff]   ;;  %v15944_v34 = vld [vmem:[%s22186_s5 + $0xf0] ss:$8 sps:$4 sm:$0xff]  }
 0x52e   :  { %5410 = vmatprep.subr.bf16.mxu0 %v15917_v48  ;;  %4572 = vmatprep.subr.bf16.mxu1 %v4086_v39  ;;  %v4115_v57 = vpop.permute.xlu0 %4114 }
 0x52f   :  { %4573 = vmatpush1.bf16.msra.mxu1 %v4064_v6  ;;  %v4125_v56 = vsel %vm817_vm8, %v19021_v10, %v4115_v57  ;;  %vm22690_vm8 = vcmask 900096  }
 0x530   :  { %12878 = vmatmul.mubr.msk.bf16.gmra.mrb[52].mxu0 %vm1067_vm11, %v19099_v33  ;;  %v4083_v49 = vpop.permute.xlu1 %4082 }
 0x531   :  { %4531 = vmatprep.mubr.bf16.mxu0 %v22676_v53  ;;  %5411 = vmatpush1.bf16.msra.mxu0 %v15918_v61  ;;  %v4090_v21 = vsel %vm784_vm15, %v4059_v41, %v4083_v49  ;;  %v15930_v41 = vld [vmem:[%s22186_s5 + $0x80] ss:$8 sps:$4 sm:$0xff]  }
 0x532   :  { %5412 = vmatprep.subr.bf16.mxu0 %v15919_v46  ;;  %4574 = vmatprep.subr.bf16.mxu1 %v4090_v21  ;;  %v4159_v9 = vpop.permute.xlu0 %4158 }
 0x533   :  { %4575 = vmatpush1.bf16.msra.mxu1 %v4069_v43  ;;  %v4176_v10 = vsel %vm875_vm9, %v19038_v2, %v4159_v9 }
 0x534   :  { %v4135_v35 = vpop.permute.xlu1 %4134 }
 0x535   :  { %5413 = vmatpush1.bf16.msra.mxu0 %v15920_v32  ;;  %4576 = vmatprep.subr.bf16.mxu1 %v4135_v35  ;;  %v4142_v3 = vsel %vm22686_vm2, %v4120_v18, %v4135_v35  ;;  %vm2932_vm2 = vcmask 654336  }
 0x536   :  { %5414 = vmatprep.subr.bf16.mxu0 %v15921_v51  ;;  %v4171_v27 = vpop.permute.xlu0 %4170 }
 0x537   :  { %4577 = vmatpush1.bf16.msra.mxu1 %v4142_v3  ;;  %v4181_v2 = vsel %vm875_vm9, %v19046_v14, %v4171_v27  ;;  %v15928_v14 = vld [vmem:[%s22186_s5 + $0x70] ss:$8 sps:$4 sm:$0xff]   ;;  %vm22691_vm9 = vmmov %vm22690_vm8 }
 0x538   :  { %12879 = vmatmul.mubr.msk.bf16.gmra.mrb[56].mxu0 %vm1067_vm11, %v19112_v38  ;;  %v4137_v40 = vpop.permute.xlu1 %4136 }
 0x539   :  { %4541 = vmatprep.mubr.bf16.mxu0 %v22676_v53  ;;  %5415 = vmatpush1.bf16.msra.mxu0 %v15922_v25  ;;  %v4146_v19 = vsel %vm22687_vm4, %v4125_v56, %v4137_v40  ;;  %vm2940_vm4 = vcmask 785408  }
 0x53a   :  { %4578 = vmatprep.subr.bf16.mxu1 %v4137_v40  ;;  %5416 = vmatprep.subr.bf16.mxu0 %v15923_v30  ;;  %v4215_v5 = vpop.permute.xlu0 %4214 }
 0x53b   :  { %4579 = vmatpush1.bf16.msra.mxu1 %v4146_v19  ;;  %v4232_v26 = vsel %vm933_vm10, %v19121_v28, %v4215_v5 }
 0x53c   :  { %v4191_v54 = vpop.permute.xlu1 %4190 }
 0x53d   :  { %5417 = vmatpush1.bf16.msra.mxu0 %v15924_v20  ;;  %4580 = vmatprep.subr.bf16.mxu1 %v4191_v54  ;;  %v4198_v16 = vsel %vm22688_vm6, %v4176_v10, %v4191_v54  ;;  %vm22851_vm6 = vcmask 916480  }
 0x53e   :  { %5418 = vmatprep.subr.bf16.mxu0 %v15925_v45  ;;  %v4227_v63 = vpop.permute.xlu0 %4226 }
 0x53f   :  { %4581 = vmatpush1.bf16.msra.mxu1 %v4198_v16  ;;  %v4237_v28 = vsel %vm933_vm10, %v19140_v29, %v4227_v63  ;;  %v15934_v29 = vld [vmem:[%s22186_s5 + $0xa0] ss:$8 sps:$4 sm:$0xff]   ;;  %vm6450_vm10 = vsmask.f32 256 }
 0x540   :  { %12880 = vmatmul.mubr.msk.bf16.gmra.mrb[60].mxu0 %vm1067_vm11, %v19131_v7  ;;  %v4193_v15 = vpop.permute.xlu1 %4192  ;;  %v22700_v63 = vld [vmem:[#allocation18_spill] sm:$0xff] }
 0x541   :  { %5419 = vmatpush1.bf16.msra.mxu0 %v15926_v59  ;;  %4582 = vmatprep.subr.bf16.mxu1 %v4193_v15  ;;  %v4202_v47 = vsel %vm22689_vm7, %v4181_v2, %v4193_v15  ;;  %vm22852_vm7 = vmmov %vm22851_vm6 }
 0x542   :  { %5420 = vmatprep.subr.bf16.mxu0 %v15927_v42 }
 0x543   :  { %4583 = vmatpush1.bf16.msra.mxu1 %v4202_v47 }
 0x544   :  { %v4247_v11 = vpop.permute.xlu1 %4246 }
 0x545   :  { %5421 = vmatpush1.bf16.msra.mxu0 %v15928_v14  ;;  %4625 = vmatprep.subr.bf16.mxu1 %v4247_v11  ;;  %v4254_v62 = vsel %vm22690_vm8, %v4232_v26, %v4247_v11 }
 0x546   :  { %5422 = vmatprep.subr.bf16.mxu0 %v15929_v1  ;;  %4585 = vmatmul.mubr.bf16.vlgmr.msra.gmra.mrb[80].mxu1 %v18898_v36  ;;  %v15932_v36 = vld [vmem:[%s22186_s5 + $0x90] ss:$8 sps:$4 sm:$0xff]  }
 0x547   :  { %4626 = vmatpush1.bf16.msra.mxu1 %v4254_v62  ;;  %4594 = vmatprep.mubr.bf16.mxu1 %v18905_v50  ;;  %v15933_v50 = vld [vmem:[%s22186_s5 + $0xa4] ss:$8 sps:$4 sm:$0xff]   ;;  %v22701_v1 = vld [vmem:[#allocation19_spill] sm:$0xff] }
 0x548   :  { %v4249_v37 = vpop.permute.xlu1 %4248 }
 0x549   :  { %5423 = vmatpush1.bf16.msra.mxu0 %v15930_v41  ;;  %4627 = vmatprep.subr.bf16.mxu1 %v4249_v37  ;;  %v4258_v58 = vsel %vm22691_vm9, %v4237_v28, %v4249_v37 }
 0x54a   :  { %5424 = vmatprep.subr.bf16.mxu0 %v15931_v22 }
 0x54b   :  { %4628 = vmatpush1.bf16.msra.mxu1 %v4258_v58 }
 0x54d   :  { %5425 = vmatpush1.bf16.msra.mxu0 %v15932_v36 }
 0x54e   :  { %5426 = vmatprep.subr.bf16.mxu0 %v15933_v50  ;;  %4595 = vmatmul.mubr.bf16.gmra.mrb[84].mxu1 %v18939_v12  ;;  %v15937_v12 = vld [vmem:[%s22186_s5 + $0xc4] ss:$8 sps:$4 sm:$0xff]  }
 0x54f   :  { %4604 = vmatprep.mubr.bf16.mxu1 %v18945_v55  ;;  %v15938_v55 = vld [vmem:[%s22186_s5 + $0xc0] ss:$8 sps:$4 sm:$0xff]  }
 0x551   :  { %5427 = vmatpush1.bf16.msra.mxu0 %v15934_v29 }
 0x552   :  { %5428 = vmatprep.subr.bf16.mxu0 %v15935_v17 }
 0x555   :  { %5429 = vmatpush1.bf16.msra.mxu0 %v15936_v13 }
 0x556   :  { %5430 = vmatprep.subr.bf16.mxu0 %v15937_v12  ;;  %4605 = vmatmul.mubr.bf16.gmra.mrb[88].mxu1 %v18972_v4  ;;  %v15941_v4 = vld [vmem:[%s22186_s5 + $0xe4] ss:$8 sps:$4 sm:$0xff]  }
 0x557   :  { %4614 = vmatprep.mubr.bf16.mxu1 %v18978_v23  ;;  %v15942_v23 = vld [vmem:[%s22186_s5 + $0xe0] ss:$8 sps:$4 sm:$0xff]  }
 0x559   :  { %5431 = vmatpush1.bf16.msra.mxu0 %v15938_v55 }
 0x55a   :  { %5432 = vmatprep.subr.bf16.mxu0 %v15939_v31 }
 0x55d   :  { %5433 = vmatpush1.bf16.msra.mxu0 %v15940_v52 }
 0x55e   :  { %5434 = vmatprep.subr.bf16.mxu0 %v15941_v4  ;;  %4615 = vmatmul.mubr.bf16.gmra.mrb[92].mxu1 %v19005_v24  ;;  %v15945_v24 = vld [vmem:[%s22186_s5 + $0x104] ss:$8 sps:$4 sm:$0xff]  }
 0x55f   :  { %4657 = vmatprep.mubr.bf16.mxu1 %v22676_v53 }
 0x561   :  { %5435 = vmatpush1.bf16.msra.mxu0 %v15942_v23 }
 0x562   :  { %5436 = vmatprep.subr.bf16.mxu0 %v15943_v60 }
 0x565   :  { %5437 = vmatpush1.bf16.msra.mxu0 %v15944_v34 }
 0x566   :  { %5479 = vmatprep.subr.bf16.mxu0 %v15945_v24  ;;  %12881 = vmatmul.mubr.msk.bf16.vlgmr.msra.gmra.mrb[80].mxu1 %vm1067_vm11, %v19088_v8  ;;  %v22704_v24 = vld [vmem:[#allocation21_spill] sm:$0xff] }
 0x567   :  { %4667 = vmatprep.mubr.bf16.mxu1 %v22676_v53 }
 0x56e   :  { %12882 = vmatmul.mubr.msk.bf16.gmra.mrb[84].mxu1 %vm1067_vm11, %v19099_v33 }
 0x56f   :  { %4677 = vmatprep.mubr.bf16.mxu1 %v22676_v53 }
 0x576   :  { %12883 = vmatmul.mubr.msk.bf16.gmra.mrb[88].mxu1 %vm1067_vm11, %v19112_v38 }
 0x577   :  { %4687 = vmatprep.mubr.bf16.mxu1 %v22676_v53 }
 0x57e   :  { %12884 = vmatmul.mubr.msk.bf16.gmra.mrb[92].mxu1 %vm1067_vm11, %v19131_v7 }
 0x59b   :  { %v2841_v39 = vpop.f32.mrb[32].mxu0 }
 0x59c   :  { %v2843_v48 = vpop.f32.mrb[33].mxu0 }
 0x59d   :  { %v2845_v6 = vpop.f32.mrb[34].mxu0 }
 0x59e   :  { %v19308_v57 = vpack.c.bf16 %v2845_v6, %v2841_v39  ;;  %v2847_v8 = vpop.f32.mrb[35].mxu0 }
 0x59f   :  { %v19310_v49 = vpack.c.bf16 %v2847_v8, %v2843_v48  ;;  %v22705_v8 = vld [vmem:[#allocation20_spill] sm:$0xff] }
 0x5a0   :  { %22692 = vst [vmem:[#allocation57_spill] sm:$0xff] %v19308_v57 }
 0x5a1   :  { %22693 = vst [vmem:[#allocation52_spill] sm:$0xff] %v19310_v49 }
 0x5ab   :  { %v2851_v61 = vpop.f32.mrb[36].mxu0 }
 0x5ac   :  { %v2853_v33 = vpop.f32.mrb[37].mxu0 }
 0x5ad   :  { %v2855_v21 = vpop.f32.mrb[38].mxu0 }
 0x5ae   :  { %v19312_v46 = vpack.c.bf16 %v2855_v21, %v2851_v61  ;;  %v2857_v43 = vpop.f32.mrb[39].mxu0 }
 0x5af   :  { %v19314_v38 = vpack.c.bf16 %v2857_v43, %v2853_v33 }
 0x5b0   :  { %22694 = vst [vmem:[#allocation66_spill] sm:$0xff] %v19312_v46 }
 0x5b1   :  { %22695 = vst [vmem:[#allocation68_spill] sm:$0xff] %v19314_v38 }
 0x5b7   :  { %v2861_v53 = vpop.f32.mrb[40].mxu0 }
 0x5b8   :  { %v2863_v9 = vpop.f32.mrb[41].mxu0 }
 0x5b9   :  { %v2865_v18 = vpop.f32.mrb[42].mxu0 }
 0x5ba   :  { %v19316_v7 = vpack.c.bf16 %v2865_v18, %v2861_v53  ;;  %v2867_v35 = vpop.f32.mrb[43].mxu0 }
 0x5bb   :  { %v19318_v32 = vpack.c.bf16 %v2867_v35, %v2863_v9 }
 0x5bc   :  { %22696 = vst [vmem:[#allocation53_spill] sm:$0xff] %v19316_v7 }
 0x5bd   :  { %22697 = vst [vmem:[#allocation54_spill] sm:$0xff] %v19318_v32 }
 0x5c6   :  { %v2871_v3 = vpop.f32.mrb[44].mxu0 }
 0x5c7   :  { %v2873_v51 = vpop.f32.mrb[45].mxu0 }
 0x5c8   :  { %v2875_v56 = vpop.f32.mrb[46].mxu0 }
 0x5c9   :  { %v19320_v40 = vpack.c.bf16 %v2875_v56, %v2871_v3  ;;  %v2877_v25 = vpop.f32.mrb[47].mxu0 }
 0x5ca   :  { %v19322_v27 = vpack.c.bf16 %v2877_v25, %v2873_v51 }
 0x5cb   :  { %22698 = vst [vmem:[#allocation65_spill] sm:$0xff] %v19320_v40 }
 0x5cc   :  { %22699 = vst [vmem:[#allocation63_spill] sm:$0xff] %v19322_v27 }
 0x5d7   :  { %v4367_v19 = vpop.f32.mrb[64].mxu1 }
 0x5d8   :  { %v4369_v30 = vpop.f32.mrb[65].mxu1  ;;  %v19355_v55 = vadd.f32 %v4367_v19, %v22700_v63 }
 0x5d9   :  { %v4371_v10 = vpop.f32.mrb[66].mxu1  ;;  %v19335_v62 = vadd.f32 %v4369_v30, %v22700_v63 }
 0x5da   :  { %v4373_v54 = vpop.f32.mrb[67].mxu1  ;;  %v19344_v22 = vadd.f32 %v4371_v10, %v22701_v1  ;;  %v22373_v33 = vmax.f32 %v19355_v55, 0.0 }
 0x5db   :  { %v19338_v28 = vadd.f32 %v4373_v54, %v22701_v1  ;;  %v22369_v29 = vmax.f32 %v19335_v62, 0.0 }
 0x5dc   :  { %v22370_v34 = vmax.f32 %v19344_v22, 0.0 }
 0x5dd   :  { %v22377_v31 = vmax.f32 %v19338_v28, 0.0 }
 0x5de   :  { %v19396_v35 = vpack.i.bf16 %v22370_v34, %v22373_v33 }
 0x5df   :  { %v4377_v20 = vpop.f32.mrb[68].mxu1 }
 0x5e0   :  { %v4379_v16 = vpop.f32.mrb[69].mxu1  ;;  %v19382_v21 = vadd.f32 %v4377_v20, %v22705_v8  ;;  %22706 = vst [vmem:[#allocation45_spill] sm:$0xff] %v19396_v35 }
 0x5e1   :  { %v4381_v45 = vpop.f32.mrb[70].mxu1  ;;  %v19377_v61 = vadd.f32 %v4379_v16, %v22705_v8 }
 0x5e2   :  { %v4383_v5 = vpop.f32.mrb[71].mxu1  ;;  %v19369_v39 = vadd.f32 %v4381_v45, %v22704_v24  ;;  %v22358_v54 = vmax.f32 %v19382_v21, 0.0 }
 0x5e3   :  { %v22362_v25 = vmax.f32 %v19377_v61, 0.0  ;;  %v19410_v20 = vadd.f32 %v4383_v5, %v22704_v24  ;;  %v22710_v5 = vld [vmem:[#allocation22_spill] sm:$0xff] }
 0x5e4   :  { %v22359_v3 = vmax.f32 %v19369_v39, 0.0 }
 0x5e7   :  { %v4387_v2 = vpop.f32.mrb[72].mxu1 }
 0x5e8   :  { %v4389_v15 = vpop.f32.mrb[73].mxu1 }
 0x5e9   :  { %v4391_v59 = vpop.f32.mrb[74].mxu1 }
 0x5ea   :  { %v19324_v47 = vpop.f32.mrb[75].mxu1 }
 0x5ef   :  { %v19326_v42 = vpop.f32.mrb[76].mxu1 }
 0x5f0   :  { %v19328_v26 = vpop.f32.mrb[77].mxu1 }
 0x5f1   :  { %v19330_v11 = vpop.f32.mrb[78].mxu1 }
 0x5f2   :  { %v19332_v14 = vpop.f32.mrb[79].mxu1 }
 0x5fb   :  { %v4513_v37 = vpop.f32.mrb[48].mxu0 }
 0x5fc   :  { %v19341_v41 = vadd.f32 %v4513_v37, %v22700_v63  ;;  %v4515_v58 = vpop.f32.mrb[49].mxu0 }
 0x5fd   :  { %v19347_v36 = vadd.f32 %v4515_v58, %v22700_v63  ;;  %v4517_v50 = vpop.f32.mrb[50].mxu0  ;;  %v19426_v58 = vpack.i.bf16 %v22359_v3, %v22358_v54  ;;  %v19464_v3 = vadd.f32 %v19324_v47, %v22710_v5 }
 0x5fe   :  { %v22368_v17 = vmax.f32 %v19341_v41, 0.0  ;;  %v19352_v13 = vadd.f32 %v4517_v50, %v22701_v1  ;;  %v4519_v12 = vpop.f32.mrb[51].mxu0  ;;  %v19429_v50 = vadd.f32 %v4391_v59, %v22710_v5 }
 0x5ff   :  { %22702 = vst [vmem:[#allocation48_spill] sm:$0xff] %v19347_v36  ;;  %v22355_v52 = vmax.f32 %v19347_v36, 0.0  ;;  %v19360_v4 = vadd.f32 %v4519_v12, %v22701_v1  ;;  %22709 = vst [vmem:[#allocation28_spill] sm:$0xff] %v19426_v58 }
 0x600   :  { %v14870_v23 = vpack.i.bf16 %v22368_v17, %v22369_v29  ;;  %v22376_v60 = vmax.f32 %v19352_v13, 0.0  ;;  %22713 = vst [vmem:[#allocation60_spill] sm:$0xff] %v19464_v3 }
 0x601   :  { %22703 = vst [vmem:[#allocation24_spill] sm:$0xff] %v19360_v4  ;;  %v14875_v48 = vpack.i.bf16 %v22377_v31, %v22355_v52  ;;  %v22354_v6 = vmax.f32 %v19360_v4, 0.0 }
 0x602   :  { %14871 = vrot.lane.b32.xlu0 %v14870_v23, %s16149_s2 }
 0x603   :  { %v14880_v43 = vpack.i.bf16 %v22354_v6, %v22376_v60  ;;  %v4523_v53 = vpop.f32.mrb[52].mxu0  ;;  %14876 = vrot.lane.b32.xlu1 %v14875_v48, %s16149_s2  ;;  %v22711_v48 = vld [vmem:[#allocation23_spill] sm:$0xff] }
 0x604   :  { %v19390_v9 = vadd.f32 %v4523_v53, %v22705_v8  ;;  %v4525_v18 = vpop.f32.mrb[53].mxu0  ;;  %v22361_v53 = vmax.f32 %v19410_v20, 0.0 }
 0x605   :  { %v19400_v51 = vadd.f32 %v4525_v18, %v22705_v8  ;;  %v4527_v56 = vpop.f32.mrb[54].mxu0  ;;  %v19439_v18 = vadd.f32 %v4387_v2, %v22711_v48 }
 0x606   :  { %v22363_v19 = vmax.f32 %v19390_v9, 0.0  ;;  %v19405_v30 = vadd.f32 %v4527_v56, %v22704_v24  ;;  %v4529_v10 = vpop.f32.mrb[55].mxu0  ;;  %14881 = vrot.lane.b32.xlu0 %v14880_v43, %s16149_s2  ;;  %v19434_v43 = vadd.f32 %v4389_v15, %v22711_v48 }
 0x607   :  { %22707 = vst [vmem:[#allocation58_spill] sm:$0xff] %v19400_v51  ;;  %v19413_v16 = vadd.f32 %v4529_v10, %v22704_v24  ;;  %14886 = vrot.lane.b32.xlu1 %v19396_v35, %s16149_s2  ;;  %v22360_v12 = vmax.f32 %v19400_v51, 0.0 }
 0x608   :  { %v14895_v45 = vpack.i.bf16 %v22363_v19, %v22362_v25  ;;  %v22357_v37 = vmax.f32 %v19405_v30, 0.0  ;;  %v22717_v25 = vld [vmem:[#allocation27_spill] sm:$0xff] }
 0x609   :  { %22708 = vst [vmem:[#allocation55_spill] sm:$0xff] %v19413_v16  ;;  %v22356_v23 = vmax.f32 %v19413_v16, 0.0  ;;  %v14900_v2 = vpack.i.bf16 %v22361_v53, %v22360_v12  ;;  %v19486_v19 = vadd.f32 %v19326_v42, %v22717_v25 }
 0x60a   :  { %14896 = vrot.lane.b32.xlu0 %v14895_v45, %s16149_s2  ;;  %v22366_v45 = vmax.f32 %v19429_v50, 0.0 }
 0x60b   :  { %v14910_v59 = vpack.i.bf16 %v22356_v23, %v22357_v37  ;;  %v4533_v56 = vpop.f32.mrb[56].mxu0  ;;  %14891 = vrot.lane.b32.xlu1 %v19426_v58, %s16149_s2  ;;  %v22364_v23 = vmax.f32 %v19434_v43, 0.0  ;;  %22718 = vst [vmem:[#allocation34_spill] sm:$0xff] %v19486_v19  ;;  %v22374_v42 = vmax.f32 %v19486_v19, 0.0 }
 0x60c   :  { %v19448_v10 = vadd.f32 %v4533_v56, %v22711_v48  ;;  %v4535_v15 = vpop.f32.mrb[57].mxu0  ;;  %v22365_v56 = vmax.f32 %v19439_v18, 0.0 }
 0x60d   :  { %v19456_v6 = vadd.f32 %v4535_v15, %v22711_v48  ;;  %v4537_v52 = vpop.f32.mrb[58].mxu0 }
 0x60e   :  { %v22367_v37 = vmax.f32 %v19448_v10, 0.0  ;;  %v4539_v54 = vpop.f32.mrb[59].mxu0  ;;  %14911 = vrot.lane.b32.xlu0 %v14910_v59, %s16149_s2  ;;  %v19475_v12 = vpack.i.bf16 %v22366_v45, %v22365_v56  ;;  %v22715_v59 = vld [vmem:[#allocation25_spill] sm:$0xff]  ;;  %v19554_v19 = vadd.f32 %v4537_v52, %v22710_v5 }
 0x60f   :  { %22712 = vst [vmem:[#allocation29_spill] sm:$0xff] %v19456_v6  ;;  %14901 = vrot.lane.b32.xlu1 %v14900_v2, %s16149_s2  ;;  %v19479_v53 = vadd.f32 %v19330_v11, %v22715_v59  ;;  %v22371_v47 = vmax.f32 %v19456_v6, 0.0  ;;  %v22372_v2 = vmax.f32 %v19464_v3, 0.0  ;;  %v19503_v29 = vadd.f32 %v19332_v14, %v22715_v59 }
 0x610   :  { %v14915_v15 = vpack.i.bf16 %v22367_v37, %v22364_v23  ;;  %22714 = vst [vmem:[#allocation59_spill] sm:$0xff] %v19475_v12 }
 0x611   :  { %22716 = vst [vmem:[#allocation33_spill] sm:$0xff] %v19479_v53  ;;  %v22375_v45 = vmax.f32 %v19479_v53, 0.0  ;;  %v14920_v11 = vpack.i.bf16 %v22372_v2, %v22371_v47  ;;  %22720 = vst [vmem:[#allocation30_spill] sm:$0xff] %v19503_v29  ;;  %v22722_v53 = vmax.f32 %v19338_v28, 0.0  ;;  %v22727_v28 = vmax.f32 %v19344_v22, 0.0 }
 0x612   :  { %14916 = vrot.lane.b32.xlu0 %v14915_v15, %s16149_s2 }
 0x613   :  { %v19488_v23 = vpop.f32.mrb[60].mxu0  ;;  %14906 = vrot.lane.b32.xlu1 %v19475_v12, %s16149_s2  ;;  %v19510_v34 = vpack.i.bf16 %v22375_v45, %v22374_v42 }
 0x614   :  { %v4545_v56 = vpop.f32.mrb[61].mxu0 }
 0x615   :  { %v19498_v15 = vadd.f32 %v4545_v56, %v22717_v25  ;;  %v4547_v37 = vpop.f32.mrb[62].mxu0  ;;  %22721 = vst [vmem:[#allocation31_spill] sm:$0xff] %v19510_v34  ;;  %v22384_v56 = vmax.f32 %v19503_v29, 0.0 }
 0x616   :  { %v4549_v17 = vpop.f32.mrb[63].mxu0 }
 0x617   :  { %22719 = vst [vmem:[#allocation37_spill] sm:$0xff] %v19498_v15  ;;  %14921 = vrot.lane.b32.xlu1 %v14920_v11, %s16149_s2  ;;  %v22383_v47 = vmax.f32 %v19498_v15, 0.0 }
 0x619   :  { %v14945_v14 = vpack.i.bf16 %v22384_v56, %v22383_v47 }
 0x61b   :  { %14926 = vrot.lane.b32.xlu1 %v19510_v34, %s16149_s2 }
 0x61f   :  { %14946 = vrot.lane.b32.xlu1 %v14945_v14, %s16149_s2 }
 0x639   :  { %v4659_v11 = vpop.f32.mrb[80].mxu1 }
 0x63a   :  { %v4661_v2 = vpop.f32.mrb[81].mxu1  ;;  %v19544_v44 = vadd.f32 %v4659_v11, %v22700_v63  ;;  %v19557_v11 = vadd.f32 %v4539_v54, %v22710_v5 }
 0x63b   :  { %v19521_v33 = vpop.f32.mrb[82].mxu1  ;;  %v19550_v16 = vadd.f32 %v4661_v2, %v22700_v63  ;;  %v22723_v2 = vmax.f32 %v19352_v13, 0.0 }
 0x63c   :  { %v19523_v42 = vpop.f32.mrb[83].mxu1  ;;  %v22406_v13 = vmax.f32 %v19544_v44, 0.0 }
 0x641   :  { %v4669_v45 = vpop.f32.mrb[84].mxu1 }
 0x642   :  { %v4671_v60 = vpop.f32.mrb[85].mxu1  ;;  %v19574_v54 = vadd.f32 %v4669_v45, %v22705_v8  ;;  %v19612_v45 = vadd.f32 %v4549_v17, %v22715_v59 }
 0x643   :  { %v19525_v31 = vpop.f32.mrb[86].mxu1  ;;  %v19577_v35 = vadd.f32 %v4671_v60, %v22705_v8  ;;  %v22408_v60 = vmax.f32 %v19554_v19, 0.0  ;;  %v22407_v8 = vmax.f32 %v19557_v11, 0.0 }
 0x644   :  { %v19527_v27 = vpop.f32.mrb[87].mxu1 }
 0x645   :  { %22725 = vst [vmem:[#allocation62_spill] sm:$0xff] %v19577_v35 }
 0x649   :  { %v4679_v40 = vpop.f32.mrb[88].mxu1 }
 0x64a   :  { %v4681_v32 = vpop.f32.mrb[89].mxu1 }
 0x64b   :  { %v19529_v7 = vpop.f32.mrb[90].mxu1  ;;  %v19628_v17 = vadd.f32 %v4681_v32, %v22711_v48 }
 0x64c   :  { %v19531_v38 = vpop.f32.mrb[91].mxu1 }
 0x64d   :  { %22728 = vst [vmem:[#allocation32_spill] sm:$0xff] %v19628_v17 }
 0x651   :  { %v4689_v47 = vpop.f32.mrb[92].mxu1 }
 0x652   :  { %v4691_v14 = vpop.f32.mrb[93].mxu1 }
 0x653   :  { %v19533_v56 = vpop.f32.mrb[94].mxu1 }
 0x654   :  { %v19535_v46 = vpop.f32.mrb[95].mxu1 }
 0x674   :  { %v19537_v34 = vpop.permute.xlu0 %14871 }
 0x675   :  { %v19539_v49 = vpop.permute.xlu1 %14876  ;;  %v14873_v6 = vunpack.i.l.bf16 %v19537_v34 }
 0x676   :  { %v14879_v0 = vunpack.i.h.bf16 %v19539_v49 }
 0x678   :  { %v19541_v12 = vpop.permute.xlu0 %14881 }
 0x679   :  { %v22404_v57 = vunpack.i.h.bf16 %v19541_v12  ;;  %v14883_v58 = vunpack.i.l.bf16 %v19541_v12  ;;  %v14887_v15 = vpop.permute.xlu1 %14886 }
 0x67a   :  { %v14889_v4 = vunpack.i.h.bf16 %v14887_v15  ;;  %v14888_v51 = vunpack.i.l.bf16 %v14887_v15 }
 0x67b   :  { %v4896_v29 = vsel %vm528_vm3, %v14879_v0, %v14883_v58  ;;  %v4897_v36 = vsel %vm528_vm3, %v14883_v58, %v22404_v57  ;;  %v22726_v58 = vmax.f32 %v19355_v55, 0.0  ;;  %v19597_v55 = vadd.f32 %v19488_v23, %v22717_v25 }
 0x67c   :  { %v19565_v63 = vmax.f32 %v22722_v53, %v4896_v29  ;;  %v19569_v3 = vmax.f32 %v22723_v2, %v4897_v36  ;;  %v4890_v52 = vsel %vm528_vm3, %v14888_v51, %v14873_v6  ;;  %v4895_v15 = vsel %vm528_vm3, %v14889_v4, %v14879_v0 }
 0x67d   :  { %v19581_v57 = vmax.f32 %v22726_v58, %v4890_v52  ;;  %v19585_v29 = vmax.f32 %v22727_v28, %v4895_v15  ;;  %v19587_v36 = vpop.permute.xlu1 %14891  ;;  %v22405_v0 = vmax.f32 %v19550_v16, 0.0  ;;  %v19605_v51 = vadd.f32 %v19328_v26, %v22717_v25  ;;  %v14897_v15 = vpop.permute.xlu0 %14896 }
 0x67e   :  { %22724 = vst [vmem:[#allocation61_spill] sm:$0xff] %v19569_v3  ;;  %v14960_v4 = vpack.i.bf16 %v19569_v3, %v19565_v63  ;;  %v19609_v53 = vadd.f32 %v4547_v37, %v22715_v59  ;;  %v22409_v2 = vmax.f32 %v19574_v54, 0.0  ;;  %v19625_v37 = vadd.f32 %v4679_v40, %v22711_v48 }
 0x67f   :  { %v19601_v22 = vpack.i.bf16 %v19585_v29, %v19581_v57  ;;  %v14965_v26 = vpack.i.bf16 %v22405_v0, %v22406_v13  ;;  %v14935_v58 = vpack.i.bf16 %v22407_v8, %v22408_v60  ;;  %v22411_v28 = vmax.f32 %v19597_v55, 0.0 }
 0x680   :  { %14961 = vrot.lane.b32.xlu1 %v14960_v4, %s16151_s15  ;;  %v14874_v4 = vunpack.i.h.bf16 %v19537_v34  ;;  %v22412_v23 = vunpack.i.l.bf16 %v19539_v49  ;;  %v22410_v40 = vmax.f32 %v19605_v51, 0.0  ;;  %v22729_v48 = vmax.f32 %v19577_v35, 0.0 }
 0x681   :  { %v19616_v52 = vpop.permute.xlu1 %14901  ;;  %14931 = vrot.lane.b32.xlu0 %v19601_v22, %s16151_s15  ;;  %v22415_v8 = vmax.f32 %v19625_v37, 0.0  ;;  %v19649_v60 = vadd.f32 %v4689_v47, %v22717_v25  ;;  %v19665_v47 = vpop.permute.xlu0 %14911 }
 0x682   :  { %v14975_v13 = vpack.i.bf16 %v22729_v48, %v22409_v2  ;;  %v14940_v32 = vpack.i.bf16 %v22411_v28, %v22410_v40  ;;  %v4892_v2 = vsel %vm528_vm3, %v14874_v4, %v22412_v23  ;;  %v19674_v40 = vadd.f32 %v19521_v33, %v22701_v1 }
 0x683   :  { %v14899_v28 = vunpack.i.h.bf16 %v14897_v15  ;;  %v14898_v48 = vunpack.i.l.bf16 %v14897_v15  ;;  %v22417_v23 = vmax.f32 %v19649_v60, 0.0  ;;  %v22734_v33 = vmax.f32 %v19335_v62, 0.0 }
 0x684   :  { %14966 = vrot.lane.b32.xlu1 %v14965_v26, %s16149_s2  ;;  %v19652_v26 = vadd.f32 %v4691_v14, %v22717_v25  ;;  %v22731_v25 = vmax.f32 %v19609_v53, 0.0  ;;  %v22732_v14 = vmax.f32 %v19612_v45, 0.0  ;;  %v22735_v15 = vmax.f32 %v19341_v41, 0.0 }
 0x685   :  { %14936 = vrot.lane.b32.xlu0 %v14935_v58, %s16149_s2  ;;  %v19654_v0 = vpop.permute.xlu1 %14906  ;;  %v4891_v58 = vsel %vm528_vm3, %v14873_v6, %v14874_v4  ;;  %v19679_v6 = vadd.f32 %v19523_v42, %v22701_v1  ;;  %v14904_v1 = vunpack.i.h.bf16 %v19616_v52  ;;  %v22737_v42 = vunpack.i.l.bf16 %v19616_v52 }
 0x686   :  { %22730 = vst [vmem:[#allocation64_spill] sm:$0xff] %v19652_v26  ;;  %v14950_v34 = vpack.i.bf16 %v22732_v14, %v22731_v25  ;;  %v22416_v25 = vmax.f32 %v19652_v26, 0.0  ;;  %v19689_v14 = vmax.f32 %v22734_v33, %v4891_v58  ;;  %v4901_v62 = vsel %vm528_vm3, %v14898_v48, %v14899_v28 }
 0x687   :  { %v4902_v35 = vsel %vm528_vm3, %v14899_v28, %v22737_v42  ;;  %v14894_v41 = vunpack.i.h.bf16 %v19587_v36  ;;  %v22426_v58 = vmax.f32 %v19674_v40, 0.0  ;;  %v19713_v33 = vadd.f32 %v19527_v27, %v22704_v24 }
 0x688   :  { %14976 = vrot.lane.b32.xlu1 %v14975_v13, %s16149_s2  ;;  %v22733_v13 = vmax.f32 %v19628_v17, 0.0 }
 0x689   :  { %14941 = vrot.lane.b32.xlu0 %v14940_v32, %s16149_s2  ;;  %v19693_v32 = vmax.f32 %v22735_v15, %v4892_v2  ;;  %v19699_v17 = vpop.permute.xlu1 %14921  ;;  %v14893_v2 = vunpack.i.l.bf16 %v19587_v36  ;;  %22738 = vst [vmem:[#allocation26_spill] sm:$0xff] %v19713_v33  ;;  %v14917_v15 = vpop.permute.xlu0 %14916  ;;  %v22421_v36 = vmax.f32 %v19679_v6, 0.0 }
 0x68a   :  { %v14985_v4 = vpack.i.bf16 %v22733_v13, %v22415_v8  ;;  %v19704_v13 = vadd.f32 %v19525_v31, %v22704_v24  ;;  %v14995_v31 = vpack.i.bf16 %v22416_v25, %v22417_v23  ;;  %v22427_v42 = vunpack.i.l.bf16 %v19699_v17 }
 0x68b   :  { %22736 = vst [vmem:[#allocation35_spill] sm:$0xff] %v19693_v32  ;;  %v14955_v27 = vpack.i.bf16 %v19693_v32, %v19689_v14  ;;  %v22741_v24 = vmax.f32 %v19377_v61, 0.0  ;;  %v14918_v25 = vunpack.i.l.bf16 %v14917_v15  ;;  %v19739_v23 = vadd.f32 %v19529_v7, %v22710_v5 }
 0x68c   :  { %14986 = vrot.lane.b32.xlu1 %v14985_v4, %s16149_s2  ;;  %v22739_v4 = vmax.f32 %v19390_v9, 0.0  ;;  %v22424_v9 = vmax.f32 %v19704_v13, 0.0  ;;  %v22742_v61 = vmax.f32 %v19369_v39, 0.0  ;;  %v22744_v39 = vmax.f32 %v19382_v21, 0.0 }
 0x68d   :  { %14951 = vrot.lane.b32.xlu0 %v14950_v34, %s16149_s2  ;;  %v4905_v34 = vsel %vm528_vm3, %v14894_v41, %v14904_v1  ;;  %v19730_v8 = vmax.f32 %v22741_v24, %v4901_v62  ;;  %v22418_v41 = vmax.f32 %v19713_v33, 0.0  ;;  %v14909_v24 = vunpack.i.h.bf16 %v19654_v0 }
 0x68e   :  { %v19721_v28 = vmax.f32 %v22739_v4, %v4902_v35  ;;  %v4900_v35 = vsel %vm528_vm3, %v14893_v2, %v14898_v48  ;;  %v14919_v4 = vunpack.i.h.bf16 %v14917_v15  ;;  %v19743_v62 = vmax.f32 %v22742_v61, %v4905_v34 }
 0x68f   :  { %v14970_v48 = vpack.i.bf16 %v22421_v36, %v22426_v58  ;;  %v19753_v2 = vadd.f32 %v19531_v38, %v22710_v5  ;;  %v14924_v15 = vunpack.i.h.bf16 %v19699_v17  ;;  %v19761_v34 = vmax.f32 %v22744_v39, %v4900_v35  ;;  %v22758_v58 = vld [vmem:[#allocation60_spill] sm:$0xff] }
 0x690   :  { %22740 = vst [vmem:[#allocation46_spill] sm:$0xff] %v19721_v28  ;;  %14996 = vrot.lane.b32.xlu1 %v14995_v31, %s16149_s2  ;;  %v15005_v31 = vpack.i.bf16 %v19721_v28, %v19730_v8  ;;  %v4912_v7 = vsel %vm528_vm3, %v14919_v4, %v22427_v42  ;;  %v14908_v61 = vunpack.i.l.bf16 %v19654_v0  ;;  %v14980_v38 = vpack.i.bf16 %v22418_v41, %v22424_v9 }
 0x691   :  { %14956 = vrot.lane.b32.xlu0 %v14955_v27, %s16151_s15  ;;  %22743 = vst [vmem:[#allocation38_spill] sm:$0xff] %v19753_v2  ;;  %v4911_v27 = vsel %vm528_vm3, %v14918_v25, %v14919_v4  ;;  %v22423_v5 = vmax.f32 %v19739_v23, 0.0  ;;  %v22745_v21 = vmax.f32 %v19448_v10, 0.0  ;;  %v19779_v4 = vpack.i.bf16 %v19743_v62, %v19761_v34 }
 0x692   :  { %v19784_v0 = vadd.f32 %v19533_v56, %v22715_v59  ;;  %v4915_v39 = vsel %vm528_vm3, %v14909_v24, %v14924_v15  ;;  %v22425_v10 = vunpack.i.h.bf16 %v19665_v47  ;;  %v4910_v56 = vsel %vm528_vm3, %v14908_v61, %v14918_v25 }
 0x693   :  { %v19775_v35 = vmax.f32 %v22745_v21, %v4912_v7  ;;  %v14913_v7 = vunpack.i.l.bf16 %v19665_v47  ;;  %v22748_v21 = vmax.f32 %v19434_v43, 0.0  ;;  %v22751_v61 = vmax.f32 %v19439_v18, 0.0 }
 0x694   :  { %15006 = vrot.lane.b32.xlu1 %v15005_v31, %s16151_s15  ;;  %v22419_v31 = vmax.f32 %v19753_v2, 0.0  ;;  %v22755_v18 = vmax.f32 %v19410_v20, 0.0  ;;  %v22759_v42 = vmax.f32 %v22758_v58, 0.0  ;;  %v22762_v58 = vld [vmem:[#allocation33_spill] sm:$0xff] }
 0x695   :  { %14971 = vrot.lane.b32.xlu0 %v14970_v48, %s16149_s2  ;;  %22746 = vst [vmem:[#allocation39_spill] sm:$0xff] %v19775_v35  ;;  %v19788_v48 = vadd.f32 %v19535_v46, %v22715_v59  ;;  %v19795_v41 = vmax.f32 %v22748_v21, %v4911_v27  ;;  %v22749_v46 = vmax.f32 %v19429_v50, 0.0  ;;  %v22422_v27 = vmax.f32 %v19784_v0, 0.0 }
 0x696   :  { %v14990_v43 = vpack.i.bf16 %v22419_v31, %v22423_v5  ;;  %v4907_v25 = vsel %vm528_vm3, %v14913_v7, %v22425_v10  ;;  %v4906_v50 = vsel %vm528_vm3, %v14904_v1, %v14913_v7  ;;  %v22753_v31 = vmax.f32 %v19405_v30, 0.0  ;;  %v14927_v30 = vpop.permute.xlu1 %14926 }
 0x697   :  { %22747 = vst [vmem:[#allocation41_spill] sm:$0xff] %v19788_v48  ;;  %v19803_v59 = vmax.f32 %v22749_v46, %v4915_v39  ;;  %v15025_v24 = vpack.i.bf16 %v19775_v35, %v19795_v41  ;;  %v22420_v21 = vmax.f32 %v19788_v48, 0.0  ;;  %v19837_v7 = vmax.f32 %v22755_v18, %v4906_v50 }
 0x698   :  { %15011 = vrot.lane.b32.xlu1 %v19779_v4, %s16151_s15  ;;  %v19833_v1 = vmax.f32 %v22753_v31, %v4907_v25  ;;  %v14928_v33 = vunpack.i.l.bf16 %v14927_v30 }
 0x699   :  { %14981 = vrot.lane.b32.xlu0 %v14980_v38, %s16149_s2  ;;  %22750 = vst [vmem:[#allocation47_spill] sm:$0xff] %v19803_v59  ;;  %v19819_v38 = vmax.f32 %v22751_v61, %v4910_v56  ;;  %v15000_v46 = vpack.i.bf16 %v22420_v21, %v22422_v27 }
 0x69a   :  { %22754 = vst [vmem:[#allocation43_spill] sm:$0xff] %v19833_v1  ;;  %v15015_v56 = vpack.i.bf16 %v19833_v1, %v19837_v7  ;;  %v19847_v31 = vpop.permute.xlu1 %14946 }
 0x69b   :  { %v19825_v39 = vpack.i.bf16 %v19803_v59, %v19819_v38  ;;  %v14949_v25 = vunpack.i.h.bf16 %v19847_v31 }
 0x69c   :  { %15026 = vrot.lane.b32.xlu1 %v15025_v24, %s16151_s15  ;;  %v22756_v24 = vld [vmem:[#allocation45_spill] sm:$0xff] }
 0x69d   :  { %14991 = vrot.lane.b32.xlu0 %v14990_v43, %s16149_s2  ;;  %22752 = vst [vmem:[#allocation36_spill] sm:$0xff] %v19825_v39 }
 0x6a0   :  { %15036 = vrot.lane.b32.xlu1 %v19825_v39, %s16151_s15 }
 0x6a1   :  { %15001 = vrot.lane.b32.xlu0 %v15000_v46, %s16149_s2  ;;  %v14929_v46 = vunpack.i.h.bf16 %v14927_v30  ;;  %s16169_s2 = smov 96  }
 0x6a3   :  { %v4925_v21 = vsel %vm528_vm3, %v14929_v46, %v14949_v25 }
 0x6a5   :  { %15016 = vrot.lane.b32.xlu0 %v15015_v56, %s16151_s15 }
 0x6a9   :  { %15021 = vrot.lane.b32.xlu0 %v22756_v24, %s16157_s20  ;;  %v22760_v24 = vmax.f32 %v19554_v19, 0.0 }
 0x6f2   :  { %v19849_v43 = vpop.permute.xlu1 %14961 }
 0x6f3   :  { %22757 = vst [vmem:[#allocation67_spill] sm:$0xff] %v19849_v43  ;;  %v19851_v20 = vpop.permute.xlu0 %14931  ;;  %v14963_v2 = vunpack.i.l.bf16 %v19849_v43 }
 0x6f4   :  { %v14934_v39 = vunpack.i.h.bf16 %v19851_v20  ;;  %v14933_v19 = vunpack.i.l.bf16 %v19851_v20  ;;  %v22770_v20 = vld [vmem:[#allocation48_spill] sm:$0xff] }
 0x6f6   :  { %v19854_v50 = vpop.permute.xlu1 %14966 }
 0x6f7   :  { %v19856_v61 = vpop.permute.xlu0 %14936  ;;  %v14968_v10 = vunpack.i.l.bf16 %v19854_v50  ;;  %v22766_v35 = vunpack.i.h.bf16 %v19854_v50 }
 0x6f8   :  { %v22431_v18 = vunpack.i.h.bf16 %v19856_v61  ;;  %v14938_v56 = vunpack.i.l.bf16 %v19856_v61 }
 0x6f9   :  { %v4894_v28 = vsel %vm528_vm3, %v14968_v10, %v22766_v35 }
 0x6fa   :  { %v4916_v36 = vsel %vm528_vm3, %v14924_v15, %v14938_v56  ;;  %v4917_v27 = vsel %vm528_vm3, %v14938_v56, %v22431_v18  ;;  %v19866_v5 = vpop.permute.xlu1 %14976  ;;  %v22765_v15 = vunpack.i.l.bf16 %v19539_v49  ;;  %v22771_v49 = vmax.f32 %v22770_v20, 0.0 }
 0x6fb   :  { %v19872_v26 = vmax.f32 %v22759_v42, %v4916_v36  ;;  %v19876_v48 = vmax.f32 %v22760_v24, %v4917_v27  ;;  %v14942_v46 = vpop.permute.xlu0 %14941  ;;  %v22763_v36 = vmax.f32 %v22762_v58, 0.0  ;;  %v22764_v27 = vunpack.i.l.bf16 %v19847_v31 }
 0x6fc   :  { %v14944_v56 = vunpack.i.h.bf16 %v14942_v46  ;;  %v14943_v18 = vunpack.i.l.bf16 %v14942_v46  ;;  %v4893_v46 = vsel %vm528_vm3, %v22765_v15, %v14968_v10  ;;  %v14978_v30 = vunpack.i.l.bf16 %v19866_v5 }
 0x6fd   :  { %22761 = vst [vmem:[#allocation42_spill] sm:$0xff] %v19876_v48  ;;  %v15030_v9 = vpack.i.bf16 %v19876_v48, %v19872_v26  ;;  %v19885_v42 = vmax.f32 %v22763_v36, %v4925_v21  ;;  %v5207_v10 = vsel %vm644_vm5, %v14934_v39, %v14963_v2  ;;  %v19922_v3 = vmax.f32 %v22771_v49, %v4893_v46  ;;  %v22779_v49 = vld [vmem:[#allocation34_spill] sm:$0xff] }
 0x6fe   :  { %v4922_v24 = vsel %vm528_vm3, %v14944_v56, %v22764_v27  ;;  %v4921_v58 = vsel %vm528_vm3, %v14943_v18, %v14944_v56  ;;  %v19899_v21 = vpop.permute.xlu1 %14986  ;;  %v22767_v27 = vunpack.i.h.bf16 %v19849_v43  ;;  %v22768_v56 = vmax.f32 %v19597_v55, 0.0 }
 0x6ff   :  { %v19901_v36 = vpop.permute.xlu0 %14951  ;;  %15031 = vrot.lane.b32.xlu0 %v15030_v9, %s16151_s15  ;;  %v4920_v1 = vsel %vm528_vm3, %v14928_v33, %v14943_v18  ;;  %v22769_v9 = vmax.f32 %v19605_v51, 0.0  ;;  %v22772_v43 = vmax.f32 %v19544_v44, 0.0  ;;  %v22774_v33 = vunpack.i.l.bf16 %v19616_v52  ;;  %v22775_v18 = vld [vmem:[#allocation30_spill] sm:$0xff] }
 0x700   :  { %v14953_v15 = vunpack.i.l.bf16 %v19901_v36  ;;  %v5208_v35 = vsel %vm644_vm5, %v14963_v2, %v22767_v27  ;;  %v19913_v48 = vmax.f32 %v22768_v56, %v4922_v24  ;;  %v22773_v55 = vunpack.i.h.bf16 %v19901_v36 }
 0x701   :  { %v19918_v32 = vmax.f32 %v22769_v9, %v4921_v58  ;;  %v19926_v59 = vmax.f32 %v22772_v43, %v4894_v28  ;;  %v4903_v51 = vsel %vm528_vm3, %v22774_v33, %v14978_v30  ;;  %v22776_v24 = vmax.f32 %v22775_v18, 0.0  ;;  %v22781_v33 = vld [vmem:[#allocation58_spill] sm:$0xff] }
 0x702   :  { %v4926_v2 = vsel %vm528_vm3, %v14949_v25, %v14953_v15  ;;  %v4927_v39 = vsel %vm528_vm3, %v14953_v15, %v22773_v55  ;;  %v22777_v46 = vmax.f32 %v19609_v53, 0.0  ;;  %v5329_v28 = vmax.f32 %v19565_v63, %v5208_v35 }
 0x703   :  { %v19937_v58 = vmax.f32 %v22776_v24, %v4926_v2  ;;  %v19943_v44 = vpop.permute.xlu0 %14956  ;;  %v22778_v43 = vunpack.i.h.bf16 %v19866_v5  ;;  %v22780_v52 = vmax.f32 %v22779_v49, 0.0  ;;  %v22443_v53 = vunpack.i.h.bf16 %v19899_v21  ;;  %v19957_v2 = vpop.permute.xlu1 %14996 }
 0x704   :  { %v19941_v20 = vmax.f32 %v22777_v46, %v4927_v39  ;;  %v14959_v27 = vunpack.i.h.bf16 %v19943_v44  ;;  %v14958_v56 = vunpack.i.l.bf16 %v19943_v44  ;;  %v14988_v9 = vunpack.i.l.bf16 %v19899_v21 }
 0x705   :  { %v4904_v25 = vsel %vm528_vm3, %v14978_v30, %v22778_v43  ;;  %v19951_v15 = vmax.f32 %v22780_v52, %v4920_v1  ;;  %v15040_v63 = vpack.i.bf16 %v19913_v48, %v19918_v32  ;;  %v5328_v35 = vmax.f32 %v19585_v29, %v5207_v10 }
 0x706   :  { %v15045_v30 = vpack.i.bf16 %v19941_v20, %v19937_v58  ;;  %v5202_v1 = vsel %vm644_vm5, %v14933_v19, %v14958_v56  ;;  %v5203_v55 = vsel %vm644_vm5, %v14958_v56, %v14959_v27  ;;  %v15055_v39 = vpack.i.bf16 %v19926_v59, %v19922_v3 }
 0x707   :  { %v22782_v18 = vmax.f32 %v22781_v33, 0.0  ;;  %v22783_v46 = vmax.f32 %v19574_v54, 0.0  ;;  %v5322_v49 = vmax.f32 %v19581_v57, %v5202_v1  ;;  %15041 = vrot.lane.b32.xlu0 %v15040_v63, %s16151_s15  ;;  %v19980_v29 = vpop.permute.xlu0 %14971  ;;  %v5323_v54 = vmax.f32 %v19689_v14, %v5203_v55  ;;  %v20004_v55 = vpop.permute.xlu1 %15006 }
 0x708   :  { %15046 = vrot.lane.b32.xlu1 %v15045_v30, %s16151_s15  ;;  %v14974_v19 = vunpack.i.h.bf16 %v19980_v29  ;;  %v14973_v10 = vunpack.i.l.bf16 %v19980_v29  ;;  %v4914_v52 = vsel %vm528_vm3, %v14988_v9, %v22443_v53  ;;  %v22442_v56 = vunpack.i.h.bf16 %v19957_v2 }
 0x709   :  { %v19972_v24 = vmax.f32 %v22782_v18, %v4903_v51  ;;  %v19976_v43 = vmax.f32 %v22783_v46, %v4904_v25  ;;  %v19987_v51 = vpack.i.bf16 %v19885_v42, %v19951_v15  ;;  %v22784_v25 = vunpack.i.l.bf16 %v19699_v17  ;;  %v22786_v18 = vld [vmem:[#allocation24_spill] sm:$0xff] }
 0x70a   :  { %v5370_v63 = vpack.c.bf16 %v5328_v35, %v5322_v49  ;;  %v14998_v30 = vunpack.i.l.bf16 %v19957_v2  ;;  %v22785_v1 = vunpack.i.h.bf16 %v19541_v12  ;;  %v4899_v14 = vsel %vm528_vm3, %v14973_v10, %v14974_v19 }
 0x70b   :  { %v4913_v57 = vsel %vm528_vm3, %v22784_v25, %v14988_v9  ;;  %v5371_v17 = vpack.c.bf16 %v5329_v28, %v5323_v54  ;;  %v22787_v46 = vmax.f32 %v22786_v18, 0.0  ;;  %v22788_v9 = vmax.f32 %v19674_v40, 0.0  ;;  %15051 = vrot.lane.b32.xlu0 %v19987_v51, %s16151_s15  ;;  %v20016_v12 = vpop.permute.xlu0 %14981 }
 0x70c   :  { %v4898_v33 = vsel %vm528_vm3, %v22785_v1, %v14973_v10  ;;  %15056 = vrot.lane.b32.xlu1 %v15055_v39, %s16151_s15  ;;  %v22446_v49 = vunpack.i.h.bf16 %v20016_v12  ;;  %v14983_v28 = vunpack.i.l.bf16 %v20016_v12  ;;  %v22789_v10 = vld [vmem:[#allocation29_spill] sm:$0xff]  ;;  %v22791_v40 = vmax.f32 %v19625_v37, 0.0 }
 0x70d   :  { %v20008_v25 = vmax.f32 %v22787_v46, %v4898_v33  ;;  %v20012_v35 = vmax.f32 %v22788_v9, %v4899_v14  ;;  %5438 = vmatprep.mubr.bf16.mxu0 %v5371_v17  ;;  %v22790_v54 = vmax.f32 %v22789_v10, 0.0  ;;  %v15065_v14 = vpack.i.bf16 %v19976_v43, %v19972_v24 }
 0x70e   :  { %v20027_v33 = vmax.f32 %v22791_v40, %v4914_v52  ;;  %5439 = vmatmul.mubr.bf16.vlgmr.msra.gmra.mrb[64].mxu0 %v5370_v63  ;;  %v22792_v18 = vunpack.i.l.bf16 %v19847_v31  ;;  %v22793_v17 = vunpack.i.h.bf16 %v19665_v47  ;;  %v4909_v52 = vsel %vm528_vm3, %v14983_v28, %v22446_v49  ;;  %v15946_v63 = vld [vmem:[%s22186_s5 + $0x100] ss:$8 sps:$4 sm:$0xff]   ;;  %v22794_v31 = vld [vmem:[#allocation55_spill] sm:$0xff] }
 0x70f   :  { %v20023_v1 = vmax.f32 %v22790_v54, %v4913_v57  ;;  %v15060_v39 = vpack.i.bf16 %v20012_v35, %v20008_v25  ;;  %v4924_v57 = vsel %vm528_vm3, %v14998_v30, %v22442_v56  ;;  %5480 = vmatpush1.bf16.msra.mxu0 %v15946_v63  ;;  %v22795_v9 = vmax.f32 %v22794_v31, 0.0  ;;  %v20056_v47 = vpop.permute.xlu0 %14991 }
 0x710   :  { %v4923_v46 = vsel %vm528_vm3, %v22792_v18, %v14998_v30  ;;  %v4908_v37 = vsel %vm528_vm3, %v22793_v17, %v14983_v28  ;;  %v22796_v54 = vmax.f32 %v19704_v13, 0.0  ;;  %15066 = vrot.lane.b32.xlu1 %v15065_v14, %s16151_s15  ;;  %v22444_v28 = vunpack.i.h.bf16 %v20056_v47  ;;  %v15947_v18 = vld [vmem:[%s22186_s5 + $0x114] ss:$8 sps:$4 sm:$0xff]   ;;  %v22797_v17 = vld [vmem:[#allocation37_spill] sm:$0xff]  ;;  %v15012_v14 = vpop.permute.xlu1 %15011 }
 0x711   :  { %v20050_v10 = vmax.f32 %v22795_v9, %v4908_v37  ;;  %15061 = vrot.lane.b32.xlu0 %v15060_v39, %s16151_s15  ;;  %v14993_v40 = vunpack.i.l.bf16 %v20056_v47  ;;  %5481 = vmatprep.subr.bf16.mxu0 %v15947_v18  ;;  %v22798_v37 = vmax.f32 %v22797_v17, 0.0  ;;  %v15075_v39 = vpack.i.bf16 %v20027_v33, %v20023_v1 }
 0x712   :  { %v20054_v30 = vmax.f32 %v22796_v54, %v4909_v52  ;;  %v22799_v52 = vmax.f32 %v19649_v60, 0.0  ;;  %v22800_v9 = vunpack.i.h.bf16 %v19856_v61  ;;  %v15948_v60 = vld [vmem:[%s22186_s5 + $0x110] ss:$8 sps:$4 sm:$0xff]   ;;  %v15008_v18 = vunpack.i.l.bf16 %v20004_v55 }
 0x713   :  { %v20067_v13 = vmax.f32 %v22798_v37, %v4923_v46  ;;  %v4919_v46 = vsel %vm528_vm3, %v14993_v40, %v22444_v28  ;;  %5482 = vmatpush1.bf16.msra.mxu0 %v15948_v60  ;;  %v22801_v17 = vmax.f32 %v19557_v11, 0.0  ;;  %v22802_v61 = vmax.f32 %v19739_v23, 0.0  ;;  %v15949_v11 = vld [vmem:[%s22186_s5 + $0x124] ss:$8 sps:$4 sm:$0xff]  }
 0x714   :  { %v20071_v63 = vmax.f32 %v22799_v52, %v4924_v57  ;;  %v15070_v31 = vpack.i.bf16 %v20054_v30, %v20050_v10  ;;  %v4918_v54 = vsel %vm528_vm3, %v22800_v9, %v14993_v40  ;;  %v15009_v57 = vunpack.i.h.bf16 %v20004_v55  ;;  %v20096_v9 = vpop.permute.xlu0 %15001  ;;  %15076 = vrot.lane.b32.xlu1 %v15075_v39, %s16151_s15  ;;  %5483 = vmatprep.subr.bf16.mxu0 %v15949_v11 }
 0x715   :  { %v20090_v37 = vmax.f32 %v22801_v17, %v4918_v54  ;;  %v20094_v52 = vmax.f32 %v22802_v61, %v4919_v46  ;;  %v15013_v40 = vunpack.i.l.bf16 %v15012_v14  ;;  %v22445_v60 = vunpack.i.h.bf16 %v20096_v9  ;;  %v15950_v17 = vld [vmem:[%s22186_s5 + $0x120] ss:$8 sps:$4 sm:$0xff]  }
 0x716   :  { %15071 = vrot.lane.b32.xlu0 %v15070_v31, %s16151_s15  ;;  %v15003_v56 = vunpack.i.l.bf16 %v20096_v9  ;;  %v15085_v23 = vpack.i.bf16 %v20071_v63, %v20067_v13  ;;  %v22803_v39 = vunpack.i.h.bf16 %v19901_v36  ;;  %v22804_v61 = vmax.f32 %v19612_v45, 0.0 }
 0x717   :  { %v15080_v54 = vpack.i.bf16 %v20094_v52, %v20090_v37  ;;  %5484 = vmatpush1.bf16.msra.mxu0 %v15950_v17  ;;  %v22805_v53 = vmax.f32 %v19784_v0, 0.0  ;;  %v15951_v0 = vld [vmem:[%s22186_s5 + $0x134] ss:$8 sps:$4 sm:$0xff]  }
 0x718   :  { %v4928_v31 = vsel %vm528_vm3, %v22803_v39, %v15003_v56  ;;  %v4929_v46 = vsel %vm528_vm3, %v15003_v56, %v22445_v60  ;;  %v20126_v36 = vpop.permute.xlu0 %15016  ;;  %15086 = vrot.lane.b32.xlu1 %v15085_v23, %s16151_s15  ;;  %v5213_v56 = vsel %vm644_vm5, %v15008_v18, %v15009_v57  ;;  %v15014_v39 = vunpack.i.h.bf16 %v15012_v14  ;;  %5485 = vmatprep.subr.bf16.mxu0 %v15951_v0 }
 0x719   :  { %v20120_v11 = vmax.f32 %v22804_v61, %v4928_v31  ;;  %v20124_v28 = vmax.f32 %v22805_v53, %v4929_v46  ;;  %v15019_v17 = vunpack.i.h.bf16 %v20126_v36  ;;  %v15018_v45 = vunpack.i.l.bf16 %v20126_v36  ;;  %v15979_v36 = vld [vmem:[%s22186_s5 + $0x214] ss:$8 sps:$4 sm:$0xff]  }
 0x71a   :  { %15081 = vrot.lane.b32.xlu0 %v15080_v54, %s16151_s15  ;;  %v5212_v31 = vsel %vm644_vm5, %v15013_v40, %v15008_v18  ;;  %v5335_v14 = vmax.f32 %v19730_v8, %v5213_v56  ;;  %v15952_v18 = vld [vmem:[%s22186_s5 + $0x130] ss:$8 sps:$4 sm:$0xff]   ;;  %v15953_v8 = vld [vmem:[%s22186_s5 + $0x144] ss:$8 sps:$4 sm:$0xff]   ;;  %vm6449_vm3 = vcmask 1040384  }
 0x71b   :  { %v15090_v53 = vpack.i.bf16 %v20124_v28, %v20120_v11  ;;  %v5218_v23 = vsel %vm644_vm5, %v15018_v45, %v15019_v17  ;;  %v5217_v54 = vsel %vm644_vm5, %v15014_v39, %v15018_v45  ;;  %5486 = vmatpush1.bf16.msra.mxu0 %v15952_v18  ;;  %v5334_v61 = vmax.f32 %v19761_v34, %v5212_v31  ;;  %vm20605_vm15 = vmand %vm6449_vm3, %vm6450_vm10 }
 0x71c   :  { %v15022_v40 = vpop.permute.xlu0 %15021  ;;  %v5341_v46 = vmax.f32 %v19837_v7, %v5218_v23  ;;  %v5340_v0 = vmax.f32 %v19743_v62, %v5217_v54  ;;  %5487 = vmatprep.subr.bf16.mxu0 %v15953_v8  ;;  %v22806_v18 = vunpack.i.h.bf16 %v19854_v50  ;;  %v15954_v62 = vld [vmem:[%s22186_s5 + $0x140] ss:$8 sps:$4 sm:$0xff]   ;;  %v22807_v34 = vmax.f32 %v19550_v16, 0.0  ;;  %v15955_v50 = vld [vmem:[%s22186_s5 + $0x154] ss:$8 sps:$4 sm:$0xff]  }
 0x71d   :  { %v15024_v56 = vunpack.i.h.bf16 %v15022_v40  ;;  %v15023_v39 = vunpack.i.l.bf16 %v15022_v40  ;;  %v15956_v16 = vld [vmem:[%s22186_s5 + $0x150] ss:$8 sps:$4 sm:$0xff]   ;;  %v22810_v54 = vld [vmem:[#allocation57_spill] sm:$0xff] }
 0x71e   :  { %15091 = vrot.lane.b32.xlu0 %v15090_v53, %s16151_s15  ;;  %v5377_v45 = vpack.c.bf16 %v5341_v46, %v5335_v14  ;;  %v5376_v60 = vpack.c.bf16 %v5340_v0, %v5334_v61  ;;  %v22808_v53 = vmax.f32 %v19679_v6, 0.0  ;;  %v15958_v6 = vld [vmem:[%s22186_s5 + $0x160] ss:$8 sps:$4 sm:$0xff]   ;;  %v15961_v14 = vld [vmem:[%s22186_s5 + $0x184] ss:$8 sps:$4 sm:$0xff]   ;;  %v20204_v40 = vshrl.u32 %v22810_v54, 16 }
 0x71f   :  { %v5002_v49 = vsel %vm553_vm12, %v22806_v18, %v15023_v39  ;;  %v5003_v7 = vsel %vm553_vm12, %v14974_v19, %v15024_v56  ;;  %5488 = vmatpush1.bf16.msra.mxu0 %v15954_v62  ;;  %v22809_v19 = vld [vmem:[#allocation28_spill] sm:$0xff]  ;;  %v15962_v46 = vld [vmem:[%s22186_s5 + $0x180] ss:$8 sps:$4 sm:$0xff]   ;;  %v2902_v61 = vrot.slane %v22810_v54, 1  ;;  %v15965_v8 = vld [vmem:[%s22186_s5 + $0x1a4] ss:$8 sps:$4 sm:$0xff]  }
 0x720   :  { %v20167_v31 = vmax.f32 %v22807_v34, %v5002_v49  ;;  %v20171_v23 = vmax.f32 %v22808_v53, %v5003_v7  ;;  %5448 = vmatprep.mubr.bf16.mxu0 %v5377_v45  ;;  %5489 = vmatprep.subr.bf16.mxu0 %v15955_v50  ;;  %v15959_v49 = vld [vmem:[%s22186_s5 + $0x174] ss:$8 sps:$4 sm:$0xff]   ;;  %v15964_v0 = vld [vmem:[%s22186_s5 + $0x190] ss:$8 sps:$4 sm:$0xff]   ;;  %v15966_v56 = vld [vmem:[%s22186_s5 + $0x1a0] ss:$8 sps:$4 sm:$0xff]  }
 0x721   :  { %5449 = vmatmul.mubr.bf16.gmra.mrb[68].mxu0 %v5376_v60  ;;  %v15960_v60 = vld [vmem:[%s22186_s5 + $0x170] ss:$8 sps:$4 sm:$0xff]   ;;  %v15967_v39 = vld [vmem:[%s22186_s5 + $0x1b4] ss:$8 sps:$4 sm:$0xff]   ;;  %v15969_v18 = vld [vmem:[%s22186_s5 + $0x1c4] ss:$8 sps:$4 sm:$0xff]  }
 0x722   :  { %15101 = vrot.lane.b32.xlu0 %v19601_v22, %s16159_s22  ;;  %v15095_v29 = vpack.i.bf16 %v20171_v23, %v20167_v31  ;;  %v15957_v22 = vld [vmem:[%s22186_s5 + $0x164] ss:$8 sps:$4 sm:$0xff]   ;;  %v15968_v45 = vld [vmem:[%s22186_s5 + $0x1b0] ss:$8 sps:$4 sm:$0xff]   ;;  %v15970_v7 = vld [vmem:[%s22186_s5 + $0x1c0] ss:$8 sps:$4 sm:$0xff]  }
 0x723   :  { %5490 = vmatpush1.bf16.msra.mxu0 %v15956_v16  ;;  %v15971_v62 = vld [vmem:[%s22186_s5 + $0x1d4] ss:$8 sps:$4 sm:$0xff]   ;;  %v15972_v34 = vld [vmem:[%s22186_s5 + $0x1d0] ss:$8 sps:$4 sm:$0xff]   ;;  %v15973_v53 = vld [vmem:[%s22186_s5 + $0x1e4] ss:$8 sps:$4 sm:$0xff]  }
 0x724   :  { %15096 = vrot.lane.b32.xlu1 %v15095_v29, %s16151_s15  ;;  %5491 = vmatprep.subr.bf16.mxu0 %v15957_v22  ;;  %v15974_v50 = vld [vmem:[%s22186_s5 + $0x1e0] ss:$8 sps:$4 sm:$0xff]   ;;  %v15975_v29 = vld [vmem:[%s22186_s5 + $0x1f4] ss:$8 sps:$4 sm:$0xff]   ;;  %v15976_v16 = vld [vmem:[%s22186_s5 + $0x1f0] ss:$8 sps:$4 sm:$0xff]  }
 0x725   :  { %v15977_v22 = vld [vmem:[%s22186_s5 + $0x204] ss:$8 sps:$4 sm:$0xff]  }
 0x727   :  { %5492 = vmatpush1.bf16.msra.mxu0 %v15958_v6  ;;  %v20258_v6 = vpop.permute.xlu1 %15026 }
 0x728   :  { %15106 = vrot.lane.b32.xlu1 %v22809_v19, %s16157_s20  ;;  %5493 = vmatprep.subr.bf16.mxu0 %v15959_v49  ;;  %v15029_v49 = vunpack.i.h.bf16 %v20258_v6 }
 0x72b   :  { %5494 = vmatpush1.bf16.msra.mxu0 %v15960_v60  ;;  %v15037_v19 = vpop.permute.xlu1 %15036  ;;  %v15028_v60 = vunpack.i.l.bf16 %v20258_v6 }
 0x72c   :  { %15116 = vrot.lane.b32.xlu1 %v19779_v4, %s16159_s22  ;;  %5495 = vmatprep.subr.bf16.mxu0 %v15961_v14  ;;  %v15963_v4 = vld [vmem:[%s22186_s5 + $0x194] ss:$8 sps:$4 sm:$0xff]   ;;  %v15038_v14 = vunpack.i.l.bf16 %v15037_v19 }
 0x72f   :  { %5496 = vmatpush1.bf16.msra.mxu0 %v15962_v46 }
 0x730   :  { %2894 = vrot.lane.b32.xlu1 %v20204_v40, %s16165_s29  ;;  %5497 = vmatprep.subr.bf16.mxu0 %v15963_v4  ;;  %v5223_v4 = vsel %vm644_vm5, %v15028_v60, %v15029_v49 }
 0x733   :  { %5498 = vmatpush1.bf16.msra.mxu0 %v15964_v0 }
 0x734   :  { %2904 = vrot.lane.b32.xlu1 %v2902_v61, %s16166_s17  ;;  %5499 = vmatprep.subr.bf16.mxu0 %v15965_v8  ;;  %v15039_v61 = vunpack.i.h.bf16 %v15037_v19 }
 0x737   :  { %5500 = vmatpush1.bf16.msra.mxu0 %v15966_v56  ;;  %v5222_v56 = vsel %vm644_vm5, %v15038_v14, %v15028_v60 }
 0x738   :  { %5501 = vmatprep.subr.bf16.mxu0 %v15967_v39 }
 0x73b   :  { %5502 = vmatpush1.bf16.msra.mxu0 %v15968_v45 }
 0x73c   :  { %5503 = vmatprep.subr.bf16.mxu0 %v15969_v18  ;;  %v5347_v18 = vmax.f32 %v19795_v41, %v5223_v4 }
 0x73f   :  { %5504 = vmatpush1.bf16.msra.mxu0 %v15970_v7 }
 0x740   :  { %5505 = vmatprep.subr.bf16.mxu0 %v15971_v62  ;;  %v5346_v62 = vmax.f32 %v19819_v38, %v5222_v56 }
 0x743   :  { %5506 = vmatpush1.bf16.msra.mxu0 %v15972_v34  ;;  %v22811_v34 = vld [vmem:[#allocation47_spill] sm:$0xff] }
 0x744   :  { %5507 = vmatprep.subr.bf16.mxu0 %v15973_v53 }
 0x747   :  { %5508 = vmatpush1.bf16.msra.mxu0 %v15974_v50 }
 0x748   :  { %5509 = vmatprep.subr.bf16.mxu0 %v15975_v29 }
 0x74b   :  { %5510 = vmatpush1.bf16.msra.mxu0 %v15976_v16 }
 0x74c   :  { %5552 = vmatprep.subr.bf16.mxu0 %v15977_v22 }
 0x771   :  { %v20262_v46 = vpop.permute.xlu0 %15031 }
 0x772   :  { %v15034_v0 = vunpack.i.h.bf16 %v20262_v46  ;;  %v15033_v8 = vunpack.i.l.bf16 %v20262_v46  ;;  %v15983_v46 = vld [vmem:[%s22186_s5 + $0x234] ss:$8 sps:$4 sm:$0xff]  }
 0x774   :  { %v5228_v39 = vsel %vm644_vm5, %v15033_v8, %v15034_v0  ;;  %v5227_v45 = vsel %vm644_vm5, %v15039_v61, %v15033_v8 }
 0x775   :  { %v5353_v7 = vmax.f32 %v19872_v26, %v5228_v39  ;;  %v5352_v53 = vmax.f32 %v22811_v34, %v5227_v45 }
 0x777   :  { %v5383_v50 = vpack.c.bf16 %v5353_v7, %v5347_v18  ;;  %v5382_v29 = vpack.c.bf16 %v5352_v53, %v5346_v62 }
 0x779   :  { %v20278_v16 = vpop.permute.xlu0 %15041  ;;  %5458 = vmatprep.mubr.bf16.mxu0 %v5383_v50 }
 0x77a   :  { %v20280_v22 = vpop.permute.xlu1 %15046  ;;  %v15044_v19 = vunpack.i.h.bf16 %v20278_v16  ;;  %v15043_v60 = vunpack.i.l.bf16 %v20278_v16  ;;  %5459 = vmatmul.mubr.bf16.gmra.mrb[72].mxu0 %v5382_v29  ;;  %v15988_v16 = vld [vmem:[%s22186_s5 + $0x250] ss:$8 sps:$4 sm:$0xff]  }
 0x77b   :  { %v15049_v14 = vunpack.i.h.bf16 %v20280_v22  ;;  %v15048_v41 = vunpack.i.l.bf16 %v20280_v22 }
 0x77c   :  { %v5233_v26 = vsel %vm644_vm5, %v15043_v60, %v15044_v19 }
 0x77d   :  { %v5238_v38 = vsel %vm644_vm5, %v15048_v41, %v15049_v14  ;;  %v15052_v4 = vpop.permute.xlu0 %15051  ;;  %v5359_v8 = vmax.f32 %v19918_v32, %v5233_v26 }
 0x77e   :  { %v20292_v61 = vpop.permute.xlu1 %15056  ;;  %v5365_v56 = vmax.f32 %v19937_v58, %v5238_v38  ;;  %v15054_v39 = vunpack.i.h.bf16 %v15052_v4  ;;  %v15053_v45 = vunpack.i.l.bf16 %v15052_v4 }
 0x77f   :  { %v22447_v18 = vunpack.i.h.bf16 %v20292_v61  ;;  %v15058_v7 = vunpack.i.l.bf16 %v20292_v61 }
 0x780   :  { %v5389_v62 = vpack.c.bf16 %v5365_v56, %v5359_v8  ;;  %v5232_v34 = vsel %vm644_vm5, %v15053_v45, %v15043_v60  ;;  %v5237_v53 = vsel %vm644_vm5, %v15054_v39, %v15048_v41 }
 0x781   :  { %v5358_v32 = vmax.f32 %v19951_v15, %v5232_v34  ;;  %v5364_v58 = vmax.f32 %v19885_v42, %v5237_v53  ;;  %v5205_v26 = vsel %vm644_vm5, %v15058_v7, %v22447_v18  ;;  %v5204_v56 = vsel %vm644_vm5, %v14959_v27, %v15058_v7  ;;  %v22812_v15 = vld [vmem:[#allocation67_spill] sm:$0xff] }
 0x782   :  { %v20300_v50 = vpop.permute.xlu1 %15066  ;;  %5468 = vmatprep.mubr.bf16.mxu0 %v5389_v62  ;;  %v22813_v39 = vunpack.i.h.bf16 %v22812_v15  ;;  %v22814_v62 = vld [vmem:[#allocation61_spill] sm:$0xff]  ;;  %v5325_v18 = vmax.f32 %v19922_v3, %v5205_v26 }
 0x783   :  { %v20302_v29 = vpop.permute.xlu0 %15061  ;;  %v15069_v38 = vunpack.i.h.bf16 %v20300_v50  ;;  %v15068_v4 = vunpack.i.l.bf16 %v20300_v50  ;;  %v5388_v8 = vpack.c.bf16 %v5364_v58, %v5358_v32  ;;  %v22815_v58 = vld [vmem:[#allocation35_spill] sm:$0xff]  ;;  %v15316_v50 = vld [vmem:[#allocation5 + $0x48] sm:$0xff]  }
 0x784   :  { %v15064_v60 = vunpack.i.h.bf16 %v20302_v29  ;;  %v15063_v41 = vunpack.i.l.bf16 %v20302_v29  ;;  %v5324_v15 = vmax.f32 %v22815_v58, %v5204_v56 }
 0x785   :  { %5469 = vmatmul.mubr.bf16.gmra.mrb[76].mxu0 %v5388_v8  ;;  %v5215_v7 = vsel %vm644_vm5, %v15068_v4, %v15069_v38  ;;  %v5214_v58 = vsel %vm644_vm5, %v15009_v57, %v15068_v4  ;;  %v22817_v57 = vld [vmem:[#allocation46_spill] sm:$0xff] }
 0x786   :  { %v5209_v42 = vsel %vm644_vm5, %v22813_v39, %v15063_v41  ;;  %v5210_v45 = vsel %vm644_vm5, %v15063_v41, %v15064_v60  ;;  %v20333_v39 = vpop.permute.xlu1 %15076  ;;  %v5336_v4 = vmax.f32 %v22817_v57, %v5214_v58 }
 0x787   :  { %v5330_v34 = vmax.f32 %v22814_v62, %v5209_v42  ;;  %v5331_v32 = vmax.f32 %v20008_v25, %v5210_v45  ;;  %v5337_v25 = vmax.f32 %v19972_v24, %v5215_v7  ;;  %v15078_v56 = vunpack.i.l.bf16 %v20333_v39 }
 0x788   :  { %v20323_v53 = vpop.permute.xlu0 %15071 }
 0x789   :  { %v15074_v44 = vunpack.i.h.bf16 %v20323_v53  ;;  %v15073_v27 = vunpack.i.l.bf16 %v20323_v53  ;;  %v5373_v41 = vpack.c.bf16 %v5331_v32, %v5325_v18  ;;  %v5372_v3 = vpack.c.bf16 %v5330_v34, %v5324_v15  ;;  %v15318_v53 = vld [vmem:[#allocation5 + $0x50] sm:$0xff]  }
 0x78a   :  { %v15079_v18 = vunpack.i.h.bf16 %v20333_v39 }
 0x78b   :  { %v5220_v8 = vsel %vm644_vm5, %v15073_v27, %v15074_v44  ;;  %5511 = vmatprep.mubr.bf16.mxu0 %v5373_v41  ;;  %v5219_v34 = vsel %vm644_vm5, %v15019_v17, %v15073_v27  ;;  %v22816_v17 = vld [vmem:[#allocation43_spill] sm:$0xff]  ;;  %v20367_v41 = vpop.permute.xlu1 %15086 }
 0x78c   :  { %v20338_v26 = vpop.permute.xlu0 %15081  ;;  %v5343_v42 = vmax.f32 %v20050_v10, %v5220_v8  ;;  %v15978_v10 = vld [vmem:[%s22186_s5 + $0x200] ss:$8 sps:$4 sm:$0xff]   ;;  %v5342_v27 = vmax.f32 %v22816_v17, %v5219_v34  ;;  %v5225_v15 = vsel %vm644_vm5, %v15078_v56, %v15079_v18  ;;  %v15088_v34 = vunpack.i.l.bf16 %v20367_v41 }
 0x78d   :  { %v15084_v45 = vunpack.i.h.bf16 %v20338_v26  ;;  %v15083_v62 = vunpack.i.l.bf16 %v20338_v26  ;;  %5512 = vmatmul.mubr.bf16.vlgmr.msra.gmra.mrb[64].mxu0 %v5372_v3  ;;  %v15982_v17 = vld [vmem:[%s22186_s5 + $0x220] ss:$8 sps:$4 sm:$0xff]  }
 0x78e   :  { %v5379_v32 = vpack.c.bf16 %v5343_v42, %v5337_v25  ;;  %5553 = vmatpush1.bf16.msra.mxu0 %v15978_v10  ;;  %v15980_v25 = vld [vmem:[%s22186_s5 + $0x210] ss:$8 sps:$4 sm:$0xff]   ;;  %v5349_v42 = vmax.f32 %v20023_v1, %v5225_v15  ;;  %v5234_v22 = vsel %vm644_vm5, %v15044_v19, %v15088_v34  ;;  %v15989_v19 = vld [vmem:[%s22186_s5 + $0x264] ss:$8 sps:$4 sm:$0xff]  }
 0x78f   :  { %v5230_v24 = vsel %vm644_vm5, %v15083_v62, %v15084_v45  ;;  %5554 = vmatprep.subr.bf16.mxu0 %v15979_v36  ;;  %v5229_v58 = vsel %vm644_vm5, %v15034_v0, %v15083_v62  ;;  %v22818_v0 = vld [vmem:[#allocation42_spill] sm:$0xff] }
 0x790   :  { %v20355_v7 = vpop.permute.xlu0 %15091  ;;  %5521 = vmatprep.mubr.bf16.mxu0 %v5379_v32  ;;  %v5355_v8 = vmax.f32 %v20090_v37, %v5230_v24  ;;  %v15089_v32 = vunpack.i.h.bf16 %v20367_v41  ;;  %v15981_v37 = vld [vmem:[%s22186_s5 + $0x224] ss:$8 sps:$4 sm:$0xff]   ;;  %v5378_v24 = vpack.c.bf16 %v5342_v27, %v5336_v4  ;;  %v5224_v27 = vsel %vm644_vm5, %v15029_v49, %v15078_v56  ;;  %v22819_v49 = vld [vmem:[#allocation39_spill] sm:$0xff] }
 0x791   :  { %v15094_v3 = vunpack.i.h.bf16 %v20355_v7  ;;  %v15093_v55 = vunpack.i.l.bf16 %v20355_v7  ;;  %v5354_v62 = vmax.f32 %v22818_v0, %v5229_v58  ;;  %v5348_v56 = vmax.f32 %v22819_v49, %v5224_v27 }
 0x792   :  { %5555 = vmatpush1.bf16.msra.mxu0 %v15980_v25  ;;  %v5385_v10 = vpack.c.bf16 %v5355_v8, %v5349_v42  ;;  %v5235_v15 = vsel %vm644_vm5, %v15088_v34, %v15089_v32  ;;  %v15984_v42 = vld [vmem:[%s22186_s5 + $0x230] ss:$8 sps:$4 sm:$0xff]  }
 0x793   :  { %5556 = vmatprep.subr.bf16.mxu0 %v15981_v37  ;;  %v5240_v1 = vsel %vm644_vm5, %v15093_v55, %v15094_v3 }
 0x794   :  { %v15102_v8 = vpop.permute.xlu0 %15101  ;;  %v5367_v57 = vmax.f32 %v20120_v11, %v5240_v1  ;;  %v15985_v11 = vld [vmem:[%s22186_s5 + $0x244] ss:$8 sps:$4 sm:$0xff]   ;;  %v22820_v1 = vunpack.i.h.bf16 %v20016_v12 }
 0x795   :  { %5522 = vmatmul.mubr.bf16.gmra.mrb[68].mxu0 %v5378_v24  ;;  %v15104_v58 = vunpack.i.h.bf16 %v15102_v8 }
 0x796   :  { %v20385_v36 = vpop.permute.xlu1 %15096  ;;  %5557 = vmatpush1.bf16.msra.mxu0 %v15982_v17  ;;  %5531 = vmatprep.mubr.bf16.mxu0 %v5385_v10  ;;  %v5361_v10 = vmax.f32 %v20067_v13, %v5235_v15  ;;  %v15103_v17 = vunpack.i.l.bf16 %v15102_v8  ;;  %v5239_v13 = vsel %vm644_vm5, %v15049_v14, %v15093_v55  ;;  %v15987_v14 = vld [vmem:[%s22186_s5 + $0x254] ss:$8 sps:$4 sm:$0xff]  }
 0x797   :  { %5558 = vmatprep.subr.bf16.mxu0 %v15983_v46  ;;  %v15099_v4 = vunpack.i.h.bf16 %v20385_v36  ;;  %v15098_v6 = vunpack.i.l.bf16 %v20385_v36  ;;  %v5384_v36 = vpack.c.bf16 %v5354_v62, %v5348_v56  ;;  %v22821_v46 = vunpack.i.h.bf16 %v19866_v5  ;;  %v22824_v56 = vld [vmem:[#allocation62_spill] sm:$0xff] }
 0x798   :  { %v5391_v49 = vpack.c.bf16 %v5367_v57, %v5361_v10  ;;  %v22825_v12 = vmax.f32 %v22824_v56, 0.0  ;;  %v15986_v5 = vld [vmem:[%s22186_s5 + $0x240] ss:$8 sps:$4 sm:$0xff]   ;;  %v5366_v57 = vmax.f32 %v19941_v20, %v5239_v13  ;;  %v5360_v10 = vmax.f32 %v19913_v48, %v5234_v22  ;;  %v15991_v48 = vld [vmem:[%s22186_s5 + $0x274] ss:$8 sps:$4 sm:$0xff]  }
 0x799   :  { %v5314_v15 = vsel %vm669_vm14, %v15098_v6, %v15103_v17  ;;  %v5315_v8 = vsel %vm669_vm14, %v15099_v4, %v15104_v58  ;;  %v15993_v58 = vld [vmem:[%s22186_s5 + $0x284] ss:$8 sps:$4 sm:$0xff]   ;;  %v15994_v17 = vld [vmem:[%s22186_s5 + $0x280] ss:$8 sps:$4 sm:$0xff]  }
 0x79a   :  { %v15107_v25 = vpop.permute.xlu1 %15106  ;;  %5559 = vmatpush1.bf16.msra.mxu0 %v15984_v42  ;;  %v5390_v34 = vpack.c.bf16 %v5366_v57, %v5360_v10  ;;  %v15315_v10 = vld [vmem:[#allocation5] sm:$0xff]  }
 0x79b   :  { %v15109_v37 = vunpack.i.h.bf16 %v15107_v25  ;;  %v15108_v24 = vunpack.i.l.bf16 %v15107_v25  ;;  %5560 = vmatprep.subr.bf16.mxu0 %v15985_v11  ;;  %v22822_v25 = vld [vmem:[#allocation26_spill] sm:$0xff] }
 0x79c   :  { %v22823_v42 = vmax.f32 %v22822_v25, 0.0 }
 0x79d   :  { %v5005_v27 = vsel %vm553_vm12, %v22820_v1, %v15109_v37  ;;  %v5004_v0 = vsel %vm553_vm12, %v22821_v46, %v15108_v24  ;;  %5532 = vmatmul.mubr.bf16.gmra.mrb[72].mxu0 %v5384_v36  ;;  %v5327_v37 = vmax.f32 %v20167_v31, %v5314_v15  ;;  %v5333_v24 = vmax.f32 %v20171_v23, %v5315_v8  ;;  %v15990_v31 = vld [vmem:[%s22186_s5 + $0x260] ss:$8 sps:$4 sm:$0xff]   ;;  %v15992_v23 = vld [vmem:[%s22186_s5 + $0x270] ss:$8 sps:$4 sm:$0xff]   ;;  %v15995_v36 = vld [vmem:[%s22186_s5 + $0x294] ss:$8 sps:$4 sm:$0xff]  }
 0x79e   :  { %v5033_v62 = vmax.f32 %v22823_v42, %v5005_v27  ;;  %v5027_v11 = vmax.f32 %v22825_v12, %v5004_v0  ;;  %5561 = vmatpush1.bf16.msra.mxu0 %v15986_v5  ;;  %5541 = vmatprep.mubr.bf16.mxu0 %v5391_v49  ;;  %v22826_v1 = vunpack.i.h.bf16 %v20292_v61  ;;  %v5211_v46 = vsel %vm644_vm5, %v15064_v60, %v15099_v4  ;;  %v15996_v0 = vld [vmem:[%s22186_s5 + $0x290] ss:$8 sps:$4 sm:$0xff]   ;;  %v22827_v15 = vld [vmem:[#allocation50_spill] sm:$0xff]  ;;  %s16167_s5 = smov 48  }
 0x79f   :  { %5562 = vmatprep.subr.bf16.mxu0 %v15987_v14  ;;  %v5375_v20 = vpack.c.bf16 %v5333_v24, %v5327_v37  ;;  %v5332_v13 = vmax.f32 %v20012_v35, %v5211_v46  ;;  %v22828_v8 = vld [vmem:[#allocation56_spill] sm:$0xff]  ;;  %v15314_v24 = vld [vmem:[#allocation5 + $0x40] sm:$0xff]  }
 0x7a0   :  { %v15110_v55 = vpack.i.bf16 %v5033_v62, %v5027_v11  ;;  %v5206_v27 = vsel %vm644_vm5, %v22826_v1, %v15098_v6  ;;  %v15117_v6 = vpop.permute.xlu1 %15116  ;;  %13476 = vmatprep.subr.bf16.mxu1 %v15314_v24 }
 0x7a1   :  { %v5326_v49 = vmax.f32 %v19926_v59, %v5206_v27  ;;  %v15119_v25 = vunpack.i.h.bf16 %v15117_v6  ;;  %v15118_v60 = vunpack.i.l.bf16 %v15117_v6  ;;  %13477 = vmatpush3.bf16.msra.mxu1 %v15315_v10  ;;  %v2942_v10 = vrot.slane %v20204_v40, 3 }
 0x7a2   :  { %15111 = vrot.lane.b32.xlu0 %v15110_v55, %s16151_s15  ;;  %5563 = vmatpush1.bf16.msra.mxu0 %v15988_v16  ;;  %v15324_v16 = vld [vmem:[#allocation5 + $0x68] sm:$0xff]  }
 0x7a3   :  { %5564 = vmatprep.subr.bf16.mxu0 %v15989_v19  ;;  %v5374_v61 = vpack.c.bf16 %v5332_v13, %v5326_v49  ;;  %13478 = vmatprep.subr.bf16.mxu1 %v15316_v50  ;;  %v15325_v19 = vld [vmem:[#allocation5 + $0x28] sm:$0xff]  }
 0x7a5   :  { %5542 = vmatmul.mubr.bf16.gmra.mrb[76].mxu0 %v5390_v34  ;;  %v15326_v34 = vld [vmem:[#allocation5 + $0x70] sm:$0xff]  }
 0x7a6   :  { %5565 = vmatpush1.bf16.msra.mxu0 %v15990_v31  ;;  %12886 = vmatprep.mubr.msk.bf16.mxu0 %vm2641_vm1, %v5375_v20  ;;  %v15327_v20 = vld [vmem:[#allocation5 + $0x30] sm:$0xff]   ;;  %v15328_v31 = vld [vmem:[#allocation5 + $0x78] sm:$0xff]  }
 0x7a7   :  { %5566 = vmatprep.subr.bf16.mxu0 %v15991_v48  ;;  %v15329_v48 = vld [vmem:[#allocation5 + $0x38] sm:$0xff]  }
 0x7aa   :  { %5567 = vmatpush1.bf16.msra.mxu0 %v15992_v23  ;;  %v15330_v23 = vld [vmem:[#allocation5 + $0xc0] sm:$0xff]  }
 0x7ab   :  { %5568 = vmatprep.subr.bf16.mxu0 %v15993_v58 }
 0x7ae   :  { %5569 = vmatpush1.bf16.msra.mxu0 %v15994_v17 }
 0x7af   :  { %5570 = vmatprep.subr.bf16.mxu0 %v15995_v36 }
 0x7b2   :  { %5571 = vmatpush1.bf16.msra.mxu0 %v15996_v0 }
 0x7b3   :  { %12885 = vmatprep.subr.msk.bf16.mxu0 %vm2654_vm0, %v22827_v15  ;;  %v22829_v15 = vld [vmem:[#allocation59_spill] sm:$0xff]  ;;  %vm2916_vm0 = vcmask 392192  }
 0x7b6   :  { %5573 = vmatpush1.bf16.msra.mxu0 %v22828_v8  ;;  %v22830_v8 = vld [vmem:[#allocation52_spill] sm:$0xff] }
 0x7b7   :  { %v20513_v6 = vshrl.u32 %v22830_v8, 16  ;;  %v2935_v24 = vrot.slane %v22830_v8, 3 }
 0x7b9   :  { %5585 = vmatmul.mubr.bf16.vlgmr.msra.gmra.mrb[64].mxu0 %v5374_v61  ;;  %v2903_v61 = vrot.slane %v22830_v8, 1 }
 0x814   :  { %v15112_v29 = vpop.permute.xlu0 %15111 }
 0x815   :  { %v15114_v4 = vunpack.i.h.bf16 %v15112_v29  ;;  %v15113_v42 = vunpack.i.l.bf16 %v15112_v29 }
 0x817   :  { %v5317_v56 = vsel %vm669_vm14, %v15114_v4, %v15119_v25  ;;  %v5316_v12 = vsel %vm669_vm14, %v15113_v42, %v15118_v60  ;;  %v5216_v59 = vsel %vm644_vm5, %v15069_v38, %v15113_v42  ;;  %v5221_v35 = vsel %vm644_vm5, %v15074_v44, %v15114_v4  ;;  %v15317_v38 = vld [vmem:[#allocation5 + $0x8] sm:$0xff]   ;;  %v15319_v44 = vld [vmem:[#allocation5 + $0x10] sm:$0xff]  }
 0x818   :  { %v5345_v5 = vmax.f32 %v5033_v62, %v5317_v56  ;;  %v5339_v22 = vmax.f32 %v5027_v11, %v5316_v12  ;;  %v5338_v14 = vmax.f32 %v19976_v43, %v5216_v59  ;;  %v5344_v55 = vmax.f32 %v20054_v30, %v5221_v35  ;;  %13479 = vmatpush3.bf16.msra.mxu1 %v15317_v38  ;;  %v15320_v43 = vld [vmem:[#allocation5 + $0x58] sm:$0xff]   ;;  %v15322_v30 = vld [vmem:[#allocation5 + $0x60] sm:$0xff]   ;;  %v22831_v25 = vld [vmem:[#allocation31_spill] sm:$0xff] }
 0x819   :  { %13480 = vmatprep.subr.bf16.mxu1 %v15318_v53  ;;  %v15321_v62 = vld [vmem:[#allocation5 + $0x18] sm:$0xff]   ;;  %v15323_v11 = vld [vmem:[#allocation5 + $0x20] sm:$0xff]   ;;  %v2910_v42 = vrot.slane %v20204_v40, 1  ;;  %v2919_v56 = vrot.slane %v22830_v8, 2  ;;  %v2926_v59 = vrot.slane %v20204_v40, 2  ;;  %v2918_v35 = vrot.slane %v22810_v54, 2 }
 0x81a   :  { %v5381_v57 = vpack.c.bf16 %v5345_v5, %v5339_v22  ;;  %v5380_v37 = vpack.c.bf16 %v5344_v55, %v5338_v14  ;;  %v2911_v22 = vrot.slane %v20513_v6, 1  ;;  %v22832_v14 = vld [vmem:[#allocation36_spill] sm:$0xff]  ;;  %v2954_v53 = vrot.slane %v20204_v40, 4 }
 0x81c   :  { %12887 = vmatprep.mubr.msk.bf16.mxu0 %vm2641_vm1, %v5381_v57  ;;  %13481 = vmatpush3.bf16.msra.mxu1 %v15319_v44  ;;  %v2961_v44 = vrot.slane %v22810_v54, 5 }
 0x81d   :  { %5595 = vmatmul.mubr.bf16.gmra.mrb[68].mxu0 %v5380_v37  ;;  %13482 = vmatprep.subr.bf16.mxu1 %v15320_v43 }
 0x820   :  { %13483 = vmatpush3.bf16.msra.mxu1 %v15321_v62  ;;  %v2975_v62 = vrot.slane %v22810_v54, 6 }
 0x821   :  { %13484 = vmatprep.subr.bf16.mxu1 %v15322_v30 }
 0x824   :  { %13485 = vmatpush3.bf16.msra.mxu1 %v15323_v11  ;;  %v2983_v11 = vrot.slane %v20513_v6, 6 }
 0x825   :  { %13486 = vmatprep.subr.bf16.mxu1 %v15324_v16 }
 0x828   :  { %13487 = vmatpush3.bf16.msra.mxu1 %v15325_v19 }
 0x829   :  { %13488 = vmatprep.subr.bf16.mxu1 %v15326_v34 }
 0x82c   :  { %13489 = vmatpush3.bf16.msra.mxu1 %v15327_v20 }
 0x82d   :  { %13490 = vmatprep.subr.bf16.mxu1 %v15328_v31 }
 0x830   :  { %13491 = vmatpush3.bf16.msra.mxu1 %v15329_v48 }
 0x831   :  { %13498 = vmatprep.subr.bf16.mxu1 %v15330_v23 }
 0x88c   :  { %v5586_v58 = vpop.f32.mrb[64].mxu0 }
 0x88d   :  { %v5588_v17 = vpop.f32.mrb[65].mxu0 }
 0x88e   :  { %v5590_v36 = vpop.f32.mrb[66].mxu0 }
 0x88f   :  { %v20493_v1 = vpack.c.bf16 %v5590_v36, %v5586_v58  ;;  %v5592_v27 = vpop.f32.mrb[67].mxu0 }
 0x890   :  { %v20495_v46 = vpack.c.bf16 %v5592_v27, %v5588_v17  ;;  %v2989_v17 = vrot.slane %v22810_v54, 7  ;;  %v20583_v27 = vpop.permute.xlu1 %2894 }
 0x891   :  { %v5646_v0 = vrot.slane %v20493_v1, 1  ;;  %v20499_v49 = vshrl.u32 %v20493_v1, 16  ;;  %v5660_v12 = vrot.slane %v20493_v1, 2  ;;  %v5697_v38 = vrot.slane %v20493_v1, 5 }
 0x892   :  { %v20505_v13 = vshrl.u32 %v20495_v46, 16  ;;  %v5647_v29 = vrot.slane %v20495_v46, 1  ;;  %v5661_v4 = vrot.slane %v20495_v46, 2  ;;  %v5675_v55 = vrot.slane %v20495_v46, 3 }
 0x893   :  { %5648 = vrot.lane.b32.xlu1 %v5646_v0, %s16166_s17  ;;  %5639 = vrot.lane.b32.xlu0 %v20499_v49, %s16165_s29  ;;  %v5653_v60 = vrot.slane %v20499_v49, 1  ;;  %v5667_v5 = vrot.slane %v20499_v49, 2  ;;  %v5681_v37 = vrot.slane %v20499_v49, 3  ;;  %v5690_v50 = vrot.slane %v20499_v49, 4 }
 0x894   :  { %v5654_v57 = vrot.slane %v20505_v13, 1  ;;  %v5711_v43 = vrot.slane %v20493_v1, 6  ;;  %v5725_v30 = vrot.slane %v20493_v1, 7  ;;  %v5705_v16 = vrot.slane %v20505_v13, 5 }
 0x895   :  { %v5719_v20 = vrot.slane %v20505_v13, 6  ;;  %v5732_v36 = vrot.slane %v20499_v49, 7  ;;  %v2990_v0 = vrot.slane %v22830_v8, 7 }
 0x897   :  { %15121 = vrot.lane.b32.xlu0 %v22829_v15, %s16157_s20  ;;  %5641 = vrot.lane.b32.xlu1 %v20505_v13, %s16165_s29  ;;  %v20588_v15 = vpop.permute.xlu1 %2904 }
 0x89b   :  { %2906 = vrot.lane.b32.xlu0 %v2903_v61, %s16166_s17  ;;  %2896 = vrot.lane.b32.xlu1 %v20513_v6, %s16165_s29  ;;  %v2997_v61 = vrot.slane %v20513_v6, 7 }
 0x89f   :  { %5650 = vrot.lane.b32.xlu0 %v5647_v29, %s16166_s17  ;;  %15126 = vrot.lane.b32.xlu1 %v22831_v25, %s16157_s20  ;;  %s16168_s20 = smov 80  }
 0x8a3   :  { %5655 = vrot.lane.b32.xlu0 %v5653_v60, %s16167_s5  ;;  %5664 = vrot.lane.b32.xlu1 %v5661_v4, %s16140_s27  ;;  %v22833_v60 = vld [vmem:[#allocation66_spill] sm:$0xff] }
 0x8a4   :  { %v20597_v4 = vshrl.u32 %v22833_v60, 16 }
 0x8a7   :  { %2912 = vrot.lane.b32.xlu0 %v2910_v42, %s16167_s5  ;;  %2922 = vrot.lane.b32.xlu1 %v2919_v56, %s16140_s27  ;;  %v6221_v56 = vshll.u32 %v20493_v1, 16 }
 0x8ab   :  { %5662 = vrot.lane.b32.xlu0 %v5660_v12, %s16140_s27  ;;  %2928 = vrot.lane.b32.xlu1 %v2926_v59, %s16168_s20 }
 0x8af   :  { %2920 = vrot.lane.b32.xlu0 %v2918_v35, %s16140_s27  ;;  %5669 = vrot.lane.b32.xlu1 %v5667_v5, %s16168_s20  ;;  %v15372_v35 = vld [vmem:[#allocation5 + $0x240] sm:$0xff]   ;;  %v3006_v5 = vsel %vm2898_vm13, %v22830_v8, %v20583_v27 }
 0x8b0   :  { %13564 = vmatprep.subr.bf16.mxu0 %v15372_v35 }
 0x8b3   :  { %2914 = vrot.lane.b32.xlu0 %v2911_v22, %s16167_s5  ;;  %15136 = vrot.lane.b32.xlu1 %v22832_v14, %s16159_s22  ;;  %v15331_v22 = vld [vmem:[#allocation5 + $0x80] sm:$0xff]  }
 0x8b7   :  { %5678 = vrot.lane.b32.xlu1 %v5675_v55, %s16169_s2  ;;  %5657 = vrot.lane.b32.xlu0 %v5654_v57, %s16167_s5 }
 0x8bb   :  { %5683 = vrot.lane.b32.xlu1 %v5681_v37, %s16162_s23  ;;  %v22836_v37 = vld [vmem:[#allocation68_spill] sm:$0xff] }
 0x8bf   :  { %2938 = vrot.lane.b32.xlu1 %v2935_v24, %s16169_s2  ;;  %v3078_v24 = vrot.slane %v22836_v37, 1 }
 0x8c3   :  { %2944 = vrot.lane.b32.xlu1 %v2942_v10, %s16162_s23  ;;  %v15332_v10 = vld [vmem:[#allocation5 + $0xc8] sm:$0xff]  }
 0x8c7   :  { %15146 = vrot.lane.b32.xlu1 %v19987_v51, %s16159_s22  ;;  %v2969_v51 = vrot.slane %v20513_v6, 5 }
 0x8cb   :  { %5692 = vrot.lane.b32.xlu1 %v5690_v50, %s16165_s29 }
 0x8cf   :  { %5699 = vrot.lane.b32.xlu1 %v5697_v38, %s16166_s17 }
 0x8d3   :  { %2956 = vrot.lane.b32.xlu1 %v2954_v53, %s16165_s29  ;;  %v6452_v53 = vsel %vm20605_vm15, %v22810_v54, %v6221_v56  ;;  %v15380_v56 = vld [vmem:[#allocation5 + $0x250] sm:$0xff]  }
 0x8d7   :  { %2963 = vrot.lane.b32.xlu1 %v2961_v44, %s16166_s17  ;;  %v15373_v44 = vld [vmem:[#allocation5 + $0x200] sm:$0xff]  }
 0x8d8   :  { %13565 = vmatpush3.bf16.msra.mxu0 %v15373_v44 }
 0x8db   :  { %5713 = vrot.lane.b32.xlu1 %v5711_v43, %s16140_s27  ;;  %v15376_v43 = vld [vmem:[#allocation5 + $0x248] sm:$0xff]  }
 0x8dc   :  { %13566 = vmatprep.subr.bf16.mxu0 %v15376_v43 }
 0x8df   :  { %2972 = vrot.lane.b32.xlu1 %v2969_v51, %s16167_s5  ;;  %v22837_v51 = vunpack.i.h.bf16 %v20056_v47 }
 0x8e3   :  { %2977 = vrot.lane.b32.xlu1 %v2975_v62, %s16140_s27 }
 0x8e7   :  { %5727 = vrot.lane.b32.xlu1 %v5725_v30, %s16169_s2  ;;  %v22838_v30 = vunpack.i.h.bf16 %v19899_v21  ;;  %v3084_v21 = vrot.slane %v20597_v4, 1 }
 0x8eb   :  { %2986 = vrot.lane.b32.xlu1 %v2983_v11, %s16168_s20 }
 0x8ef   :  { %5708 = vrot.lane.b32.xlu1 %v5705_v16, %s16167_s5  ;;  %v15333_v16 = vld [vmem:[#allocation5 + $0x88] sm:$0xff]  }
 0x8f0   :  { %v5596_v19 = vpop.f32.mrb[68].mxu0 }
 0x8f1   :  { %v5598_v34 = vpop.f32.mrb[69].mxu0 }
 0x8f2   :  { %v5600_v31 = vpop.f32.mrb[70].mxu0 }
 0x8f3   :  { %v20575_v48 = vpack.c.bf16 %v5600_v31, %v5596_v19  ;;  %v5602_v23 = vpop.f32.mrb[71].mxu0  ;;  %5722 = vrot.lane.b32.xlu1 %v5719_v20, %s16168_s20  ;;  %v15377_v19 = vld [vmem:[#allocation5 + $0x208] sm:$0xff]  }
 0x8f4   :  { %v20578_v58 = vpack.c.bf16 %v5602_v23, %v5598_v34  ;;  %v22839_v34 = vld [vmem:[#allocation38_spill] sm:$0xff]  ;;  %v22841_v23 = vld [vmem:[#allocation32_spill] sm:$0xff]  ;;  %13567 = vmatpush3.bf16.msra.mxu0 %v15377_v19 }
 0x8f5   :  { %v22840_v20 = vmax.f32 %v22839_v34, 0.0  ;;  %13568 = vmatprep.subr.bf16.mxu0 %v15380_v56  ;;  %v15340_v56 = vld [vmem:[#allocation5 + $0xe8] sm:$0xff]  }
 0x8f6   :  { %v5794_v43 = vrot.slane %v20578_v58, 1 }
 0x8f7   :  { %2991 = vrot.lane.b32.xlu1 %v2989_v17, %s16169_s2  ;;  %v22842_v17 = vmax.f32 %v22841_v23, 0.0 }
 0x8fb   :  { %5734 = vrot.lane.b32.xlu1 %v5732_v36, %s16162_s23 }
 0x8ff   :  { %2993 = vrot.lane.b32.xlu1 %v2990_v0, %s16169_s2 }
 0x903   :  { %3000 = vrot.lane.b32.xlu1 %v2997_v61, %s16162_s23  ;;  %v15334_v61 = vld [vmem:[#allocation5 + $0xd0] sm:$0xff]  }
 0x905   :  { %v20592_v29 = vpop.permute.xlu1 %5648  ;;  %v20594_v25 = vpop.permute.xlu0 %5639 }
 0x906   :  { %v5740_v42 = vsel %vm2898_vm13, %v20495_v46, %v20594_v25 }
 0x907   :  { %v6223_v12 = vshll.u32 %v5740_v42, 16  ;;  %3070 = vrot.lane.b32.xlu1 %v20597_v4, %s16165_s29 }
 0x909   :  { %v15122_v14 = vpop.permute.xlu0 %15121  ;;  %v20612_v55 = vpop.permute.xlu1 %5641  ;;  %v6453_v57 = vsel %vm20605_vm15, %v3006_v5, %v6223_v12  ;;  %v15335_v12 = vld [vmem:[#allocation5 + $0x90] sm:$0xff]  }
 0x90a   :  { %v15124_v50 = vunpack.i.h.bf16 %v15122_v14  ;;  %v15123_v38 = vunpack.i.l.bf16 %v15122_v14  ;;  %11171 = vmatprep.mubr.bf16.mxu1 %v6453_v57  ;;  %v15336_v14 = vld [vmem:[#allocation5 + $0xd8] sm:$0xff]   ;;  %v15381_v57 = vld [vmem:[#allocation5 + $0x210] sm:$0xff]  }
 0x90b   :  { %11172 = vmatmul.mubr.bf16.vlgmr.msra.gmra.mrb[96].mxu1 %v6452_v53  ;;  %3081 = vrot.lane.b32.xlu1 %v3078_v24, %s16166_s17  ;;  %v5674_v24 = vrot.slane %v20493_v1, 3 }
 0x90c   :  { %v5007_v62 = vsel %vm553_vm12, %v22837_v51, %v15124_v50  ;;  %v5006_v11 = vsel %vm553_vm12, %v22838_v30, %v15123_v38  ;;  %13499 = vmatpush3.bf16.msra.mxu1 %v15331_v22  ;;  %v3092_v22 = vrot.slane %v22836_v37, 2  ;;  %v15337_v50 = vld [vmem:[#allocation5 + $0x98] sm:$0xff]   ;;  %13569 = vmatpush3.bf16.msra.mxu0 %v15381_v57  ;;  %v15338_v51 = vld [vmem:[#allocation5 + $0xe0] sm:$0xff]   ;;  %v22843_v57 = vunpack.i.h.bf16 %v20096_v9  ;;  %v15393_v9 = vld [vmem:[#allocation5 + $0x228] sm:$0xff]  }
 0x90d   :  { %v20629_v31 = vmax.f32 %v22840_v20, %v5007_v62  ;;  %v20633_v36 = vmax.f32 %v22842_v17, %v5006_v11  ;;  %v2907_v0 = vpop.permute.xlu0 %2906  ;;  %v20635_v47 = vpop.permute.xlu1 %2896  ;;  %13500 = vmatprep.subr.bf16.mxu1 %v15332_v10  ;;  %v15384_v10 = vld [vmem:[#allocation5 + $0x258] sm:$0xff]   ;;  %v2934_v11 = vrot.slane %v22810_v54, 3  ;;  %v15339_v20 = vld [vmem:[#allocation5 + $0xa0] sm:$0xff]  }
 0x90e   :  { %v15385_v62 = vld [vmem:[#allocation5 + $0x218] sm:$0xff]   ;;  %13570 = vmatprep.subr.bf16.mxu0 %v15384_v10  ;;  %v2909_v23 = vsel %vm1067_vm11, %v20588_v15, %v2907_v0  ;;  %v22844_v10 = vunpack.i.h.bf16 %v19957_v2 }
 0x90f   :  { %3086 = vrot.lane.b32.xlu1 %v3084_v21, %s16167_s5  ;;  %v15130_v42 = vpack.i.bf16 %v20629_v31, %v20633_v36 }
 0x910   :  { %13501 = vmatpush3.bf16.msra.mxu1 %v15333_v16  ;;  %v15387_v16 = vld [vmem:[#allocation5 + $0x260] sm:$0xff]   ;;  %13571 = vmatpush3.bf16.msra.mxu0 %v15385_v62 }
 0x911   :  { %v5651_v35 = vpop.permute.xlu0 %5650  ;;  %v15127_v5 = vpop.permute.xlu1 %15126  ;;  %15131 = vrot.lane.b32.xlu0 %v15130_v42, %s16151_s15  ;;  %13502 = vmatprep.subr.bf16.mxu1 %v15334_v61  ;;  %v5808_v42 = vrot.slane %v20578_v58, 2 }
 0x912   :  { %v5652_v38 = vsel %vm1067_vm11, %v20592_v29, %v5651_v35  ;;  %v15129_v19 = vunpack.i.h.bf16 %v15127_v5  ;;  %v15128_v34 = vunpack.i.l.bf16 %v15127_v5  ;;  %13572 = vmatprep.subr.bf16.mxu0 %v15387_v16  ;;  %v5668_v5 = vrot.slane %v20505_v13, 2 }
 0x913   :  { %3095 = vrot.lane.b32.xlu1 %v3092_v22, %s16140_s27  ;;  %v15389_v22 = vld [vmem:[#allocation5 + $0x220] sm:$0xff]  }
 0x914   :  { %13503 = vmatpush3.bf16.msra.mxu1 %v15335_v12  ;;  %v20664_v12 = vshrl.u32 %v20575_v48, 16  ;;  %13573 = vmatpush3.bf16.msra.mxu0 %v15389_v22 }
 0x915   :  { %v20647_v53 = vpop.permute.xlu0 %5655  ;;  %v20649_v44 = vpop.permute.xlu1 %5664  ;;  %5676 = vrot.lane.b32.xlu0 %v5674_v24, %s16169_s2  ;;  %13504 = vmatprep.subr.bf16.mxu1 %v15336_v14  ;;  %v15391_v14 = vld [vmem:[#allocation5 + $0x268] sm:$0xff]   ;;  %v5009_v24 = vsel %vm553_vm12, %v22843_v57, %v15129_v19  ;;  %v22847_v19 = vld [vmem:[#allocation64_spill] sm:$0xff] }
 0x916   :  { %v5746_v30 = vsel %vm2916_vm0, %v5652_v38, %v20647_v53  ;;  %v15341_v38 = vld [vmem:[#allocation5 + $0xa8] sm:$0xff]   ;;  %v5800_v62 = vrot.slane %v20664_v12, 1  ;;  %13574 = vmatprep.subr.bf16.mxu0 %v15391_v14  ;;  %v15397_v14 = vld [vmem:[#allocation5 + $0x230] sm:$0xff]  }
 0x917   :  { %5797 = vrot.lane.b32.xlu1 %v5794_v43, %s16166_s17  ;;  %v6227_v17 = vshll.u32 %v5746_v30, 16  ;;  %v15342_v30 = vld [vmem:[#allocation5 + $0xf0] sm:$0xff]  }
 0x918   :  { %13505 = vmatpush3.bf16.msra.mxu1 %v15337_v50  ;;  %v5008_v50 = vsel %vm553_vm12, %v22844_v10, %v15128_v34  ;;  %v22848_v34 = vmax.f32 %v22847_v19, 0.0  ;;  %vm2924_vm12 = vcmask 523264   ;;  %13575 = vmatpush3.bf16.msra.mxu0 %v15393_v9  ;;  %v15399_v10 = vld [vmem:[#allocation5 + $0x278] sm:$0xff]   ;;  %v5822_v19 = vrot.slane %v20578_v58, 3 }
 0x919   :  { %v20659_v21 = vpop.permute.xlu0 %2912  ;;  %v2923_v61 = vpop.permute.xlu1 %2922  ;;  %2936 = vrot.lane.b32.xlu0 %v2934_v11, %s16169_s2  ;;  %13506 = vmatprep.subr.bf16.mxu1 %v15338_v51  ;;  %v22845_v11 = vld [vmem:[#allocation41_spill] sm:$0xff]  ;;  %v15401_v9 = vld [vmem:[#allocation5 + $0x238] sm:$0xff]  }
 0x91a   :  { %v3015_v35 = vsel %vm2916_vm0, %v2909_v23, %v20659_v21  ;;  %v22846_v16 = vmax.f32 %v22845_v11, 0.0  ;;  %v2927_v23 = vrot.slane %v20513_v6, 2  ;;  %v2943_v11 = vrot.slane %v20513_v6, 3 }
 0x91b   :  { %5811 = vrot.lane.b32.xlu1 %v5808_v42, %s16140_s27  ;;  %v6455_v0 = vsel %vm20605_vm15, %v3015_v35, %v6227_v17  ;;  %v15395_v17 = vld [vmem:[#allocation5 + $0x270] sm:$0xff]   ;;  %v5814_v35 = vrot.slane %v20664_v12, 2 }
 0x91c   :  { %13507 = vmatpush3.bf16.msra.mxu1 %v15339_v20  ;;  %11211 = vmatprep.mubr.bf16.mxu1 %v6455_v0  ;;  %v20686_v2 = vmax.f32 %v22846_v16, %v5009_v24  ;;  %v20690_v20 = vmax.f32 %v22848_v34, %v5008_v50  ;;  %v15343_v42 = vld [vmem:[#allocation5 + $0xb0] sm:$0xff]   ;;  %v15344_v0 = vld [vmem:[#allocation5 + $0xf8] sm:$0xff]   ;;  %v2899_v50 = vsel %vm2898_vm13, %v20583_v27, %v20635_v47  ;;  %v15348_v34 = vld [vmem:[#allocation5 + $0x148] sm:$0xff]  }
 0x91d   :  { %v20678_v43 = vpop.permute.xlu0 %5662  ;;  %v20680_v51 = vpop.permute.xlu1 %2928  ;;  %5671 = vrot.lane.b32.xlu0 %v5668_v5, %s16168_s20  ;;  %13508 = vmatprep.subr.bf16.mxu1 %v15340_v56  ;;  %v5643_v5 = vsel %vm2898_vm13, %v20594_v25, %v20612_v55  ;;  %v15345_v55 = vld [vmem:[#allocation5 + $0xb8] sm:$0xff]   ;;  %v3010_v27 = vsel %vm1067_vm11, %v2899_v50, %v20588_v15  ;;  %v3106_v50 = vrot.slane %v22836_v37, 3 }
 0x91e   :  { %v5666_v57 = vsel %vm2924_vm12, %v20678_v43, %v20649_v44  ;;  %v15140_v24 = vpack.i.bf16 %v20686_v2, %v20690_v20  ;;  %13576 = vmatprep.subr.bf16.mxu0 %v15395_v17  ;;  %v15404_v17 = vld [vmem:[#allocation5 + $0x340] sm:$0xff]  }
 0x91f   :  { %5802 = vrot.lane.b32.xlu1 %v5800_v62, %s16167_s5  ;;  %v3098_v62 = vrot.slane %v20597_v4, 2  ;;  %13577 = vmatpush3.bf16.msra.mxu0 %v15397_v14  ;;  %v15350_v14 = vld [vmem:[#allocation5 + $0x150] sm:$0xff]  }
 0x920   :  { %13509 = vmatpush3.bf16.msra.mxu1 %v15341_v38  ;;  %v5743_v38 = vsel %vm1067_vm11, %v5643_v5, %v20592_v29  ;;  %13578 = vmatprep.subr.bf16.mxu0 %v15399_v10  ;;  %v5828_v5 = vrot.slane %v20664_v12, 3  ;;  %v15351_v10 = vld [vmem:[#allocation5 + $0x110] sm:$0xff]  }
 0x921   :  { %v20694_v56 = vpop.permute.xlu1 %5669  ;;  %2930 = vrot.lane.b32.xlu0 %v2927_v23, %s16168_s20  ;;  %13510 = vmatprep.subr.bf16.mxu1 %v15342_v30  ;;  %v20701_v22 = vpop.permute.xlu0 %2920  ;;  %v15346_v30 = vld [vmem:[#allocation5 + $0x140] sm:$0xff]   ;;  %v6225_v29 = vshll.u32 %v5743_v38, 16  ;;  %v15353_v38 = vld [vmem:[#allocation5 + $0x118] sm:$0xff]  }
 0x922   :  { %v5752_v25 = vsel %vm2932_vm2, %v5666_v57, %v20694_v56  ;;  %v2925_v44 = vsel %vm2924_vm12, %v20701_v22, %v2923_v61  ;;  %v15347_v61 = vld [vmem:[#allocation5 + $0x100] sm:$0xff]   ;;  %v5691_v57 = vrot.slane %v20505_v13, 4 }
 0x923   :  { %5816 = vrot.lane.b32.xlu1 %v5814_v35, %s16168_s20  ;;  %v6231_v47 = vshll.u32 %v5752_v25, 16  ;;  %v3025_v16 = vsel %vm2932_vm2, %v2925_v44, %v20680_v51  ;;  %v6454_v15 = vsel %vm20605_vm15, %v3010_v27, %v6225_v29  ;;  %13579 = vmatpush3.bf16.msra.mxu0 %v15401_v9  ;;  %v5682_v35 = vrot.slane %v20505_v13, 3  ;;  %v15352_v25 = vld [vmem:[#allocation5 + $0x158] sm:$0xff]   ;;  %v15356_v29 = vld [vmem:[#allocation5 + $0x168] sm:$0xff]  }
 0x924   :  { %13511 = vmatpush3.bf16.msra.mxu1 %v15343_v42  ;;  %13608 = vmatprep.subr.bf16.mxu0 %v15404_v17  ;;  %v3112_v44 = vrot.slane %v20597_v4, 3  ;;  %v15358_v17 = vld [vmem:[#allocation5 + $0x170] sm:$0xff]  }
 0x925   :  { %15141 = vrot.lane.b32.xlu0 %v15140_v24, %s16151_s15  ;;  %13512 = vmatprep.subr.bf16.mxu1 %v15344_v0  ;;  %v20728_v23 = vpop.permute.xlu1 %15136  ;;  %v6457_v42 = vsel %vm20605_vm15, %v3025_v16, %v6231_v47  ;;  %v15349_v0 = vld [vmem:[#allocation5 + $0x108] sm:$0xff]   ;;  %v2915_v27 = vpop.permute.xlu0 %2914  ;;  %v5704_v47 = vrot.slane %v20499_v49, 5 }
 0x927   :  { %3100 = vrot.lane.b32.xlu1 %v3098_v62, %s16168_s20  ;;  %v15354_v62 = vld [vmem:[#allocation5 + $0x160] sm:$0xff]  }
 0x928   :  { %13513 = vmatpush3.bf16.msra.mxu1 %v15345_v55  ;;  %v2955_v55 = vrot.slane %v20513_v6, 4  ;;  %v15355_v6 = vld [vmem:[#allocation5 + $0x120] sm:$0xff]  }
 0x929   :  { %2946 = vrot.lane.b32.xlu0 %v2943_v11, %s16162_s23  ;;  %13520 = vmatprep.subr.bf16.mxu1 %v15346_v30  ;;  %v20740_v24 = vpop.permute.xlu1 %5678  ;;  %v20749_v30 = vshrl.u32 %v22836_v37, 16 }
 0x92b   :  { %11212 = vmatmul.mubr.bf16.vlgmr.msra.gmra.mrb[100].mxu1 %v6454_v15  ;;  %5825 = vrot.lane.b32.xlu1 %v5822_v19, %s16169_s2  ;;  %v3113_v11 = vrot.slane %v20749_v30, 3  ;;  %v15357_v19 = vld [vmem:[#allocation5 + $0x128] sm:$0xff]   ;;  %v3123_v15 = vrot.slane %v20597_v4, 4 }
 0x92c   :  { %13521 = vmatpush3.bf16.msra.mxu1 %v15347_v61  ;;  %11251 = vmatprep.mubr.bf16.mxu1 %v6457_v42  ;;  %v5698_v61 = vrot.slane %v20495_v46, 5  ;;  %v2968_v42 = vrot.slane %v20204_v40, 5 }
 0x92d   :  { %5685 = vrot.lane.b32.xlu0 %v5682_v35, %s16162_s23  ;;  %13522 = vmatprep.subr.bf16.mxu1 %v15348_v34  ;;  %v20751_v9 = vpop.permute.xlu1 %5683  ;;  %v5658_v34 = vpop.permute.xlu0 %5657 }
 0x92e   :  { %v5659_v35 = vsel %vm2916_vm0, %v20647_v53, %v5658_v34  ;;  %v3130_v53 = vrot.slane %v22833_v60, 5 }
 0x92f   :  { %5830 = vrot.lane.b32.xlu1 %v5828_v5, %s16162_s23  ;;  %v5851_v5 = vrot.slane %v20664_v12, 5 }
 0x930   :  { %13523 = vmatpush3.bf16.msra.mxu1 %v15349_v0  ;;  %v15359_v0 = vld [vmem:[#allocation5 + $0x130] sm:$0xff]  }
 0x931   :  { %5694 = vrot.lane.b32.xlu0 %v5691_v57, %s16165_s29  ;;  %13524 = vmatprep.subr.bf16.mxu1 %v15350_v14  ;;  %v20759_v16 = vpop.permute.xlu1 %2938  ;;  %v15360_v14 = vld [vmem:[#allocation5 + $0x178] sm:$0xff]  }
 0x933   :  { %3109 = vrot.lane.b32.xlu1 %v3106_v50, %s16169_s2  ;;  %v5718_v50 = vrot.slane %v20499_v49, 6  ;;  %v15363_v49 = vld [vmem:[#allocation5 + $0x180] sm:$0xff]  }
 0x934   :  { %13525 = vmatpush3.bf16.msra.mxu1 %v15351_v10  ;;  %v5749_v10 = vsel %vm2924_vm12, %v5659_v35, %v20678_v43  ;;  %v2962_v43 = vrot.slane %v22830_v8, 5  ;;  %v15368_v35 = vld [vmem:[#allocation5 + $0x1d8] sm:$0xff]  }
 0x935   :  { %2958 = vrot.lane.b32.xlu0 %v2955_v55, %s16165_s29  ;;  %13526 = vmatprep.subr.bf16.mxu1 %v15352_v25  ;;  %v20769_v57 = vpop.permute.xlu1 %2944  ;;  %v15361_v25 = vld [vmem:[#allocation5 + $0x138] sm:$0xff]   ;;  %v15362_v55 = vld [vmem:[#allocation5 + $0x1c0] sm:$0xff]  }
 0x937   :  { %3114 = vrot.lane.b32.xlu1 %v3112_v44, %s16162_s23  ;;  %v6229_v44 = vshll.u32 %v5749_v10, 16  ;;  %v3144_v10 = vrot.slane %v22833_v60, 6 }
 0x938   :  { %13527 = vmatpush3.bf16.msra.mxu1 %v15353_v38  ;;  %v2917_v38 = vsel %vm2916_vm0, %v20659_v21, %v2915_v27  ;;  %v15364_v21 = vld [vmem:[#allocation5 + $0x1c8] sm:$0xff]  }
 0x939   :  { %5706 = vrot.lane.b32.xlu0 %v5704_v47, %s16167_s5  ;;  %13528 = vmatprep.subr.bf16.mxu1 %v15354_v62  ;;  %v20781_v62 = vpop.permute.xlu1 %15146  ;;  %v3020_v47 = vsel %vm2924_vm12, %v2917_v38, %v20701_v22  ;;  %v15374_v38 = vld [vmem:[#allocation5 + $0x1e8] sm:$0xff]  }
 0x93a   :  { %v6456_v27 = vsel %vm20605_vm15, %v3020_v47, %v6229_v44  ;;  %v3152_v47 = vrot.slane %v20749_v30, 6 }
 0x93b   :  { %3116 = vrot.lane.b32.xlu1 %v3113_v11, %s16162_s23  ;;  %v20788_v11 = vshrl.u32 %v20578_v58, 16 }
 0x93c   :  { %13529 = vmatpush3.bf16.msra.mxu1 %v15355_v6  ;;  %v5858_v6 = vrot.slane %v20575_v48, 6 }
 0x93d   :  { %5701 = vrot.lane.b32.xlu0 %v5698_v61, %s16166_s17  ;;  %13530 = vmatprep.subr.bf16.mxu1 %v15356_v29  ;;  %v5712_v29 = vrot.slane %v20495_v46, 6  ;;  %v15365_v61 = vld [vmem:[#allocation5 + $0x188] sm:$0xff]   ;;  %v5838_v22 = vrot.slane %v20788_v11, 4  ;;  %v20796_v34 = vpop.permute.xlu1 %5692 }
 0x93f   :  { %3125 = vrot.lane.b32.xlu1 %v3123_v15, %s16165_s29  ;;  %v2982_v15 = vrot.slane %v20204_v40, 6 }
 0x940   :  { %13531 = vmatpush3.bf16.msra.mxu1 %v15357_v19  ;;  %v15366_v19 = vld [vmem:[#allocation5 + $0x1d0] sm:$0xff]  }
 0x941   :  { %2970 = vrot.lane.b32.xlu0 %v2968_v42, %s16167_s5  ;;  %13532 = vmatprep.subr.bf16.mxu1 %v15358_v17  ;;  %v15367_v17 = vld [vmem:[#allocation5 + $0x190] sm:$0xff]   ;;  %v3138_v42 = vrot.slane %v20749_v30, 5 }
 0x943   :  { %5853 = vrot.lane.b32.xlu1 %v5851_v5, %s16167_s5  ;;  %v20804_v5 = vpop.permute.xlu1 %5699 }
 0x944   :  { %13533 = vmatpush3.bf16.msra.mxu1 %v15359_v0  ;;  %v2976_v0 = vrot.slane %v22830_v8, 6 }
 0x945   :  { %5720 = vrot.lane.b32.xlu0 %v5718_v50, %s16168_s20  ;;  %13534 = vmatprep.subr.bf16.mxu1 %v15360_v14  ;;  %v15369_v14 = vld [vmem:[#allocation5 + $0x198] sm:$0xff]   ;;  %v15370_v50 = vld [vmem:[#allocation5 + $0x1e0] sm:$0xff]  }
 0x947   :  { %3132 = vrot.lane.b32.xlu1 %v3130_v53, %s16166_s17  ;;  %v15371_v53 = vld [vmem:[#allocation5 + $0x1a0] sm:$0xff]   ;;  %v20812_v44 = vpop.permute.xlu1 %2956 }
 0x948   :  { %13535 = vmatpush3.bf16.msra.mxu1 %v15361_v25  ;;  %v5726_v25 = vrot.slane %v20495_v46, 7 }
 0x949   :  { %2965 = vrot.lane.b32.xlu0 %v2962_v43, %s16166_s17  ;;  %13542 = vmatprep.subr.bf16.mxu1 %v15362_v55  ;;  %v5872_v55 = vrot.slane %v20575_v48, 7  ;;  %v2996_v43 = vrot.slane %v20204_v40, 7  ;;  %v3158_v40 = vrot.slane %v22833_v60, 7 }
 0x94b   :  { %11252 = vmatmul.mubr.bf16.vlgmr.msra.gmra.mrb[104].mxu1 %v6456_v27  ;;  %5860 = vrot.lane.b32.xlu1 %v5858_v6, %s16140_s27  ;;  %v15378_v6 = vld [vmem:[#allocation5 + $0x1f0] sm:$0xff]   ;;  %v20820_v27 = vpop.permute.xlu1 %2963 }
 0x94c   :  { %13543 = vmatpush3.bf16.msra.mxu1 %v15363_v49  ;;  %v15375_v49 = vld [vmem:[#allocation5 + $0x1a8] sm:$0xff]  }
 0x94d   :  { %5715 = vrot.lane.b32.xlu0 %v5712_v29, %s16140_s27  ;;  %13544 = vmatprep.subr.bf16.mxu1 %v15364_v21  ;;  %v5733_v21 = vrot.slane %v20505_v13, 7  ;;  %v15379_v29 = vld [vmem:[#allocation5 + $0x1b0] sm:$0xff]   ;;  %v15386_v13 = vld [vmem:[#allocation5 + $0x2c0] sm:$0xff]  }
 0x94f   :  { %5841 = vrot.lane.b32.xlu1 %v5838_v22, %s16165_s29  ;;  %v15383_v22 = vld [vmem:[#allocation5 + $0x1b8] sm:$0xff]  }
 0x950   :  { %13545 = vmatpush3.bf16.msra.mxu1 %v15365_v61  ;;  %v15382_v61 = vld [vmem:[#allocation5 + $0x1f8] sm:$0xff]  }
 0x951   :  { %2984 = vrot.lane.b32.xlu0 %v2982_v15, %s16168_s20  ;;  %13546 = vmatprep.subr.bf16.mxu1 %v15366_v19  ;;  %v5879_v19 = vrot.slane %v20664_v12, 7  ;;  %v20828_v15 = vpop.permute.xlu1 %5713 }
 0x953   :  { %3141 = vrot.lane.b32.xlu1 %v3138_v42, %s16167_s5  ;;  %v5866_v42 = vrot.slane %v20788_v11, 6 }
 0x954   :  { %13547 = vmatpush3.bf16.msra.mxu1 %v15367_v17  ;;  %v3077_v17 = vrot.slane %v22833_v60, 1 }
 0x955   :  { %2979 = vrot.lane.b32.xlu0 %v2976_v0, %s16140_s27  ;;  %13548 = vmatprep.subr.bf16.mxu1 %v15368_v35  ;;  %v20835_v35 = vpop.permute.xlu1 %2972  ;;  %v3159_v0 = vrot.slane %v22836_v37, 7 }
 0x957   :  { %3146 = vrot.lane.b32.xlu1 %v3144_v10, %s16140_s27  ;;  %v3166_v10 = vrot.slane %v20749_v30, 7 }
 0x958   :  { %13549 = vmatpush3.bf16.msra.mxu1 %v15369_v14  ;;  %v3091_v14 = vrot.slane %v22833_v60, 2 }
 0x959   :  { %5729 = vrot.lane.b32.xlu0 %v5726_v25, %s16169_s2  ;;  %13550 = vmatprep.subr.bf16.mxu1 %v15370_v50  ;;  %v20844_v50 = vpop.permute.xlu1 %2977  ;;  %v5793_v25 = vrot.slane %v20575_v48, 1 }
 0x95b   :  { %5874 = vrot.lane.b32.xlu1 %v5872_v55, %s16169_s2 }
 0x95c   :  { %13551 = vmatpush3.bf16.msra.mxu1 %v15371_v53  ;;  %v22849_v53 = vld [vmem:[#allocation53_spill] sm:$0xff] }
 0x95d   :  { %2998 = vrot.lane.b32.xlu0 %v2996_v43, %s16162_s23  ;;  %13552 = vmatprep.subr.bf16.mxu1 %v15374_v38  ;;  %v20850_v55 = vshrl.u32 %v22849_v53, 16  ;;  %v5807_v38 = vrot.slane %v20575_v48, 2  ;;  %v20855_v43 = vpop.permute.xlu1 %5727 }
 0x95f   :  { %3155 = vrot.lane.b32.xlu1 %v3152_v47, %s16168_s20 }
 0x960   :  { %13553 = vmatpush3.bf16.msra.mxu1 %v15375_v49  ;;  %v22850_v49 = vld [vmem:[#allocation54_spill] sm:$0xff] }
 0x961   :  { %5736 = vrot.lane.b32.xlu0 %v5733_v21, %s16162_s23  ;;  %13554 = vmatprep.subr.bf16.mxu1 %v15378_v6  ;;  %v3242_v47 = vrot.slane %v22850_v49, 1  ;;  %v20862_v6 = vpop.permute.xlu1 %2986  ;;  %v5801_v21 = vrot.slane %v20788_v11, 1 }
 0x963   :  { %3160 = vrot.lane.b32.xlu1 %v3158_v40, %s16169_s2  ;;  %v3085_v40 = vrot.slane %v20749_v30, 1 }
 0x964   :  { %13555 = vmatpush3.bf16.msra.mxu1 %v15379_v29 }
 0x965   :  { %5786 = vrot.lane.b32.xlu0 %v20664_v12, %s16165_s29  ;;  %13556 = vmatprep.subr.bf16.mxu1 %v15382_v61  ;;  %v15139_v61 = vunpack.i.h.bf16 %v20728_v23 }
 0x967   :  { %5881 = vrot.lane.b32.xlu1 %v5879_v19, %s16162_s23  ;;  %v20869_v19 = vpop.permute.xlu1 %5708 }
 0x968   :  { %13557 = vmatpush3.bf16.msra.mxu1 %v15383_v22  ;;  %v15138_v22 = vunpack.i.l.bf16 %v20728_v23 }
 0x969   :  { %3079 = vrot.lane.b32.xlu0 %v3077_v17, %s16166_s17  ;;  %13586 = vmatprep.subr.bf16.mxu1 %v15386_v13 }
 0x96b   :  { %5869 = vrot.lane.b32.xlu1 %v5866_v42, %s16168_s20  ;;  %v5821_v42 = vrot.slane %v20575_v48, 3 }
 0x96d   :  { %3072 = vrot.lane.b32.xlu0 %v20749_v30, %s16165_s29 }
 0x96f   :  { %3162 = vrot.lane.b32.xlu1 %v3159_v0, %s16169_s2 }
 0x971   :  { %3093 = vrot.lane.b32.xlu0 %v3091_v14, %s16140_s27 }
 0x973   :  { %3169 = vrot.lane.b32.xlu1 %v3166_v10, %s16162_s23 }
 0x975   :  { %5795 = vrot.lane.b32.xlu0 %v5793_v25, %s16166_s17 }
 0x977   :  { %3234 = vrot.lane.b32.xlu1 %v20850_v55, %s16165_s29 }
 0x979   :  { %5809 = vrot.lane.b32.xlu0 %v5807_v38, %s16140_s27 }
 0x97b   :  { %3245 = vrot.lane.b32.xlu1 %v3242_v47, %s16166_s17 }
 0x97d   :  { %5788 = vrot.lane.b32.xlu0 %v20788_v11, %s16165_s29 }
 0x981   :  { %5804 = vrot.lane.b32.xlu0 %v5801_v21, %s16167_s5 }
 0x983   :  { %v15132_v29 = vpop.permute.xlu0 %15131 }
 0x984   :  { %v15134_v13 = vunpack.i.h.bf16 %v15132_v29  ;;  %v15133_v17 = vunpack.i.l.bf16 %v15132_v29 }
 0x985   :  { %3088 = vrot.lane.b32.xlu0 %v3085_v40, %s16167_s5 }
 0x986   :  { %v5319_v0 = vsel %vm669_vm14, %v15134_v13, %v15139_v61  ;;  %v5318_v14 = vsel %vm669_vm14, %v15133_v17, %v15138_v22  ;;  %v5226_v10 = vsel %vm644_vm5, %v15079_v18, %v15133_v17  ;;  %v5231_v23 = vsel %vm644_vm5, %v15084_v45, %v15134_v13  ;;  %v20890_v45 = vpop.permute.xlu1 %5722 }
 0x987   :  { %v5357_v25 = vmax.f32 %v20629_v31, %v5319_v0  ;;  %v5351_v38 = vmax.f32 %v20633_v36, %v5318_v14  ;;  %v5677_v47 = vpop.permute.xlu0 %5676  ;;  %v5350_v21 = vmax.f32 %v20027_v33, %v5226_v10  ;;  %v5356_v29 = vmax.f32 %v20094_v52, %v5231_v23 }
 0x988   :  { %v5680_v40 = vsel %vm2940_vm4, %v5677_v47, %v20740_v24  ;;  %v3105_v36 = vrot.slane %v22833_v60, 3  ;;  %v3099_v13 = vrot.slane %v20749_v30, 2  ;;  %v5815_v14 = vrot.slane %v20788_v11, 2 }
 0x989   :  { %v5758_v39 = vsel %vm22851_vm6, %v5680_v40, %v20751_v9  ;;  %5823 = vrot.lane.b32.xlu0 %v5821_v42, %s16169_s2  ;;  %v5387_v26 = vpack.c.bf16 %v5357_v25, %v5351_v38  ;;  %v5386_v18 = vpack.c.bf16 %v5356_v29, %v5350_v21  ;;  %v15388_v25 = vld [vmem:[#allocation5 + $0x280] sm:$0xff]   ;;  %v15390_v21 = vld [vmem:[#allocation5 + $0x2c8] sm:$0xff]   ;;  %v5829_v40 = vrot.slane %v20788_v11, 3 }
 0x98a   :  { %v6235_v33 = vshll.u32 %v5758_v39, 16  ;;  %v20902_v17 = vpop.permute.xlu1 %2991  ;;  %v5688_v39 = vrot.slane %v20493_v1, 4 }
 0x98b   :  { %v2937_v31 = vpop.permute.xlu0 %2936  ;;  %12888 = vmatprep.mubr.msk.bf16.mxu0 %vm2641_vm1, %v5387_v26  ;;  %v15149_v26 = vunpack.i.h.bf16 %v20781_v62 }
 0x98c   :  { %v2941_v52 = vsel %vm2940_vm4, %v2937_v31, %v20759_v16  ;;  %5605 = vmatmul.mubr.bf16.gmra.mrb[72].mxu0 %v5386_v18  ;;  %v6241_v41 = vshll.u32 %v5688_v39, 16 }
 0x98d   :  { %3107 = vrot.lane.b32.xlu0 %v3105_v36, %s16169_s2  ;;  %v3034_v24 = vsel %vm22852_vm7, %v2941_v52, %v20769_v57  ;;  %v15392_v36 = vld [vmem:[#allocation5 + $0x288] sm:$0xff]   ;;  %v15394_v52 = vld [vmem:[#allocation5 + $0x2d0] sm:$0xff]  }
 0x98e   :  { %v6459_v61 = vsel %vm20605_vm15, %v3034_v24, %v6235_v33  ;;  %v20913_v29 = vpop.permute.xlu1 %5734  ;;  %v5837_v33 = vrot.slane %v20664_v12, 4 }
 0x98f   :  { %11291 = vmatprep.mubr.bf16.mxu1 %v6459_v61  ;;  %v5672_v22 = vpop.permute.xlu0 %5671 }
 0x990   :  { %v5673_v42 = vsel %vm2932_vm2, %v20694_v56, %v5672_v22 }
 0x991   :  { %v5755_v16 = vsel %vm2940_vm4, %v5673_v42, %v5677_v47  ;;  %3102 = vrot.lane.b32.xlu0 %v3099_v13, %s16168_s20 }
 0x992   :  { %v6233_v10 = vshll.u32 %v5755_v16, 16 }
 0x993   :  { %v2931_v0 = vpop.permute.xlu0 %2930 }
 0x994   :  { %v2933_v23 = vsel %vm2932_vm2, %v20680_v51, %v2931_v0  ;;  %v15148_v51 = vunpack.i.l.bf16 %v20781_v62 }
 0x995   :  { %v3030_v38 = vsel %vm2940_vm4, %v2933_v23, %v2937_v31  ;;  %5818 = vrot.lane.b32.xlu0 %v5815_v14, %s16168_s20  ;;  %v20935_v14 = vpop.permute.xlu1 %2993 }
 0x996   :  { %v6458_v56 = vsel %vm20605_vm15, %v3030_v38, %v6233_v10  ;;  %v15396_v10 = vld [vmem:[#allocation5 + $0x290] sm:$0xff]   ;;  %v15402_v38 = vld [vmem:[#allocation5 + $0x2e0] sm:$0xff]  }
 0x997   :  { %11292 = vmatmul.mubr.bf16.vlgmr.msra.gmra.mrb[108].mxu1 %v6458_v56  ;;  %v15142_v47 = vpop.permute.xlu0 %15141 }
 0x998   :  { %13587 = vmatpush3.bf16.msra.mxu1 %v15388_v25  ;;  %v15144_v18 = vunpack.i.h.bf16 %v15142_v47  ;;  %v15143_v31 = vunpack.i.l.bf16 %v15142_v47  ;;  %v15400_v25 = vld [vmem:[#allocation5 + $0x298] sm:$0xff]   ;;  %v3124_v47 = vrot.slane %v20749_v30, 4 }
 0x999   :  { %5832 = vrot.lane.b32.xlu0 %v5829_v40, %s16162_s23  ;;  %13588 = vmatprep.subr.bf16.mxu1 %v15390_v21  ;;  %v15403_v40 = vld [vmem:[#allocation5 + $0x2a0] sm:$0xff]  }
 0x99a   :  { %v5321_v24 = vsel %vm669_vm14, %v15144_v18, %v15149_v26  ;;  %v5320_v61 = vsel %vm669_vm14, %v15143_v31, %v15148_v51  ;;  %v5236_v1 = vsel %vm644_vm5, %v15089_v32, %v15143_v31  ;;  %v5241_v62 = vsel %vm644_vm5, %v15094_v3, %v15144_v18  ;;  %vm22853_vm5 = vmmov %vm22851_vm6  ;;  %v15405_v26 = vld [vmem:[#allocation5 + $0x300] sm:$0xff]   ;;  %v15406_v18 = vld [vmem:[#allocation5 + $0x2e8] sm:$0xff]  }
 0x99b   :  { %v5369_v22 = vmax.f32 %v20686_v2, %v5321_v24  ;;  %v5363_v13 = vmax.f32 %v20690_v20, %v5320_v61  ;;  %v2947_v42 = vpop.permute.xlu0 %2946  ;;  %v5362_v16 = vmax.f32 %v20071_v63, %v5236_v1  ;;  %v5368_v0 = vmax.f32 %v20124_v28, %v5241_v62  ;;  %v15398_v2 = vld [vmem:[#allocation5 + $0x2d8] sm:$0xff]   ;;  %vm22854_vm14 = vmmov %vm22853_vm5  ;;  %v15408_v31 = vld [vmem:[#allocation5 + $0x348] sm:$0xff]  }
 0x99c   :  { %13589 = vmatpush3.bf16.msra.mxu1 %v15392_v36  ;;  %v2951_v3 = vrot.slane %v22810_v54, 4  ;;  %v5844_v63 = vrot.slane %v20575_v48, 5  ;;  %v20946_v54 = vpop.permute.xlu1 %3000  ;;  %v2949_v51 = vsel %vm22854_vm14, %v20769_v57, %v2947_v42  ;;  %v15407_v1 = vld [vmem:[#allocation5 + $0x2a8] sm:$0xff]   ;;  %v15412_v42 = vld [vmem:[#allocation5 + $0x350] sm:$0xff]  }
 0x99d   :  { %5839 = vrot.lane.b32.xlu0 %v5837_v33, %s16165_s29  ;;  %13590 = vmatprep.subr.bf16.mxu1 %v15394_v52  ;;  %v5393_v7 = vpack.c.bf16 %v5369_v22, %v5363_v13  ;;  %v5392_v32 = vpack.c.bf16 %v5368_v0, %v5362_v16  ;;  %v5845_v33 = vrot.slane %v20578_v58, 5  ;;  %v15409_v62 = vld [vmem:[#allocation5 + $0x308] sm:$0xff]   ;;  %v15410_v13 = vld [vmem:[#allocation5 + $0x2f0] sm:$0xff]   ;;  %v3137_v0 = vrot.slane %v20597_v4, 5 }
 0x99e   :  { %v6461_v20 = vsel %vm20605_vm15, %v2951_v3, %v6241_v41  ;;  %v15413_v41 = vld [vmem:[#allocation5 + $0x310] sm:$0xff]   ;;  %v15414_v3 = vld [vmem:[#allocation5 + $0x2f8] sm:$0xff]  }
 0x99f   :  { %v5686_v23 = vpop.permute.xlu0 %5685  ;;  %12889 = vmatprep.mubr.msk.bf16.mxu0 %vm2641_vm1, %v5393_v7  ;;  %vm22855_vm1 = vmmov %vm22853_vm5 }
 0x9a0   :  { %13591 = vmatpush3.bf16.msra.mxu1 %v15396_v10  ;;  %v5687_v28 = vsel %vm22853_vm5, %v20751_v9, %v5686_v23  ;;  %5615 = vmatmul.mubr.bf16.gmra.mrb[76].mxu0 %v5392_v32  ;;  %v20959_v52 = vpop.permute.xlu1 %3070  ;;  %v15411_v10 = vld [vmem:[#allocation5 + $0x2b0] sm:$0xff]   ;;  %v5689_v23 = vrot.slane %v20495_v46, 4  ;;  %v15418_v46 = vld [vmem:[#allocation5 + $0x3c0] sm:$0xff]   ;;  %vm22856_vm8 = vmmov %vm22855_vm1 }
 0x9a1   :  { %11331 = vmatprep.mubr.bf16.mxu0 %v6461_v20  ;;  %5846 = vrot.lane.b32.xlu0 %v5844_v63, %s16166_s17  ;;  %v6238_v21 = vshll.u32 %v5687_v28, 16  ;;  %v5852_v28 = vrot.slane %v20788_v11, 5  ;;  %v15415_v20 = vld [vmem:[#allocation5 + $0x2b8] sm:$0xff]   ;;  %vm22857_vm9 = vmmov %vm22855_vm1 }
 0x9a2   :  { %13592 = vmatprep.subr.bf16.mxu1 %v15398_v2  ;;  %v15416_v2 = vld [vmem:[#allocation5 + $0x358] sm:$0xff]   ;;  %vm22858_vm3 = vmmov %vm22855_vm1 }
 0x9a3   :  { %v5695_v56 = vpop.permute.xlu0 %5694  ;;  %v6460_v30 = vsel %vm20605_vm15, %v2949_v51, %v6238_v21  ;;  %v15419_v51 = vld [vmem:[#allocation5 + $0x380] sm:$0xff]   ;;  %vm22859_vm10 = vmmov %vm22855_vm1 }
 0x9a4   :  { %13593 = vmatpush3.bf16.msra.mxu1 %v15400_v25  ;;  %v5696_v9 = vsel %vm2898_vm13, %v20796_v34, %v5695_v56  ;;  %v20972_v7 = vpop.permute.xlu1 %3081  ;;  %v5761_v25 = vsel %vm2898_vm13, %v5689_v23, %v20796_v34  ;;  %v15420_v56 = vld [vmem:[#allocation5 + $0x360] sm:$0xff]   ;;  %v3131_v34 = vrot.slane %v22836_v37, 5  ;;  %v3151_v23 = vrot.slane %v20597_v4, 6  ;;  %vm22860_vm6 = vmmov %vm22855_vm1 }
 0x9a5   :  { %v5764_v39 = vsel %vm1067_vm11, %v5696_v9, %v20804_v5  ;;  %3127 = vrot.lane.b32.xlu0 %v3124_v47, %s16165_s29  ;;  %13594 = vmatprep.subr.bf16.mxu1 %v15402_v38  ;;  %v2952_v38 = vrot.slane %v22830_v8, 4  ;;  %vm22861_vm7 = vmmov %vm22855_vm1 }
 0x9a6   :  { %v6245_v24 = vshll.u32 %v5764_v39, 16  ;;  %vm22862_vm5 = vmmov %vm22855_vm1 }
 0x9a7   :  { %v2959_v36 = vpop.permute.xlu0 %2958  ;;  %v3038_v47 = vsel %vm2898_vm13, %v2952_v38, %v20812_v44  ;;  %v15433_v38 = vld [vmem:[#allocation5 + $0x338] sm:$0xff]   ;;  %vm22863_vm14 = vmmov %vm22855_vm1 }
 0x9a8   :  { %13595 = vmatpush3.bf16.msra.mxu1 %v15403_v40  ;;  %v2960_v61 = vsel %vm2898_vm13, %v20812_v44, %v2959_v36  ;;  %11332 = vmatmul.mubr.bf16.vlgmr.msra.gmra.mrb[80].mxu0 %v6460_v30  ;;  %v6243_v40 = vshll.u32 %v5761_v25, 16  ;;  %v20990_v8 = vpop.permute.xlu1 %3086  ;;  %v15422_v30 = vld [vmem:[#allocation5 + $0x3c8] sm:$0xff]  }
 0x9a9   :  { %13609 = vmatpush3.bf16.msra.mxu0 %v15405_v26  ;;  %5848 = vrot.lane.b32.xlu0 %v5845_v33, %s16166_s17  ;;  %v3042_v57 = vsel %vm1067_vm11, %v2960_v61, %v20820_v27  ;;  %v15424_v33 = vld [vmem:[#allocation5 + $0x368] sm:$0xff]  }
 0x9aa   :  { %13596 = vmatprep.subr.bf16.mxu1 %v15406_v18  ;;  %v6463_v22 = vsel %vm20605_vm15, %v3042_v57, %v6245_v24  ;;  %13610 = vmatprep.subr.bf16.mxu0 %v15408_v31  ;;  %v15421_v18 = vld [vmem:[#allocation5 + $0x320] sm:$0xff]   ;;  %v6462_v31 = vsel %vm20605_vm15, %v3038_v47, %v6243_v40  ;;  %v5865_v24 = vrot.slane %v20664_v12, 6  ;;  %v15423_v61 = vld [vmem:[#allocation5 + $0x388] sm:$0xff]   ;;  %v15429_v12 = vld [vmem:[#allocation5 + $0x330] sm:$0xff]  }
 0x9ab   :  { %11371 = vmatprep.mubr.bf16.mxu1 %v6463_v22  ;;  %v20968_v16 = vpop.permute.xlu0 %5706  ;;  %v15428_v22 = vld [vmem:[#allocation5 + $0x370] sm:$0xff]  }
 0x9ac   :  { %13597 = vmatpush3.bf16.msra.mxu1 %v15407_v1  ;;  %v5710_v32 = vsel %vm2916_vm0, %v20968_v16, %v20869_v19  ;;  %v15417_v19 = vld [vmem:[#allocation5 + $0x318] sm:$0xff]   ;;  %v15425_v1 = vld [vmem:[#allocation5 + $0x328] sm:$0xff]   ;;  %v21006_v57 = vpop.permute.xlu1 %3095 }
 0x9ad   :  { %13611 = vmatpush3.bf16.msra.mxu0 %v15409_v62  ;;  %3139 = vrot.lane.b32.xlu0 %v3137_v0, %s16167_s5  ;;  %v5770_v21 = vsel %vm2924_vm12, %v5710_v32, %v20828_v15  ;;  %v15426_v62 = vld [vmem:[#allocation5 + $0x3d0] sm:$0xff]   ;;  %v15432_v32 = vld [vmem:[#allocation5 + $0x378] sm:$0xff]  }
 0x9ae   :  { %13598 = vmatprep.subr.bf16.mxu1 %v15410_v13  ;;  %13612 = vmatprep.subr.bf16.mxu0 %v15412_v42  ;;  %v6249_v39 = vshll.u32 %v5770_v21, 16  ;;  %v5859_v42 = vrot.slane %v20578_v58, 6  ;;  %v15427_v0 = vld [vmem:[#allocation5 + $0x390] sm:$0xff]   ;;  %v15436_v21 = vld [vmem:[#allocation5 + $0x440] sm:$0xff]  }
 0x9af   :  { %v5702_v63 = vpop.permute.xlu0 %5701 }
 0x9b0   :  { %13599 = vmatpush3.bf16.msra.mxu1 %v15411_v10 }
 0x9b1   :  { %13613 = vmatpush3.bf16.msra.mxu0 %v15413_v41  ;;  %5855 = vrot.lane.b32.xlu0 %v5852_v28, %s16167_s5  ;;  %v15430_v41 = vld [vmem:[#allocation5 + $0x3d8] sm:$0xff]   ;;  %v21016_v28 = vpop.permute.xlu1 %5797 }
 0x9b2   :  { %13600 = vmatprep.subr.bf16.mxu1 %v15414_v3  ;;  %13614 = vmatprep.subr.bf16.mxu0 %v15416_v2  ;;  %v5703_v3 = vsel %vm1067_vm11, %v20804_v5, %v5702_v63  ;;  %v15434_v63 = vld [vmem:[#allocation5 + $0x3e0] sm:$0xff]  }
 0x9b3   :  { %v20987_v9 = vpop.permute.xlu0 %2970  ;;  %v5767_v5 = vsel %vm2916_vm0, %v5703_v3, %v20968_v16 }
 0x9b4   :  { %13601 = vmatpush3.bf16.msra.mxu1 %v15415_v20  ;;  %v2974_v26 = vsel %vm2916_vm0, %v20987_v9, %v20835_v35  ;;  %v15431_v20 = vld [vmem:[#allocation5 + $0x398] sm:$0xff]   ;;  %v6247_v40 = vshll.u32 %v5767_v5, 16 }
 0x9b5   :  { %13615 = vmatpush3.bf16.msra.mxu0 %v15417_v19  ;;  %3134 = vrot.lane.b32.xlu0 %v3131_v34, %s16166_s17  ;;  %v3050_v44 = vsel %vm2924_vm12, %v2974_v26, %v20844_v50  ;;  %v15435_v34 = vld [vmem:[#allocation5 + $0x3a0] sm:$0xff]   ;;  %v21033_v26 = vpop.permute.xlu1 %5811 }
 0x9b6   :  { %13630 = vmatprep.subr.bf16.mxu1 %v15418_v46  ;;  %13616 = vmatprep.subr.bf16.mxu0 %v15420_v56  ;;  %v6465_v36 = vsel %vm20605_vm15, %v3050_v44, %v6249_v39  ;;  %v3145_v46 = vrot.slane %v22836_v37, 6  ;;  %v15437_v39 = vld [vmem:[#allocation5 + $0x400] sm:$0xff]   ;;  %v15440_v44 = vld [vmem:[#allocation5 + $0x448] sm:$0xff]  }
 0x9b7   :  { %11372 = vmatmul.mubr.bf16.vlgmr.msra.gmra.mrb[112].mxu1 %v6462_v31  ;;  %v21002_v35 = vpop.permute.xlu0 %5720  ;;  %11411 = vmatprep.mubr.bf16.mxu0 %v6465_v36  ;;  %v5873_v31 = vrot.slane %v20578_v58, 7  ;;  %v15439_v36 = vld [vmem:[#allocation5 + $0x3a8] sm:$0xff]  }
 0x9b8   :  { %13631 = vmatpush3.bf16.msra.mxu1 %v15419_v51  ;;  %v5724_v10 = vsel %vm2932_vm2, %v21002_v35, %v20890_v45 }
 0x9b9   :  { %13617 = vmatpush3.bf16.msra.mxu0 %v15421_v18  ;;  %5867 = vrot.lane.b32.xlu0 %v5865_v24, %s16168_s20  ;;  %v5776_v25 = vsel %vm2940_vm4, %v5724_v10, %v20855_v43  ;;  %v15444_v24 = vld [vmem:[#allocation5 + $0x450] sm:$0xff]  }
 0x9ba   :  { %13632 = vmatprep.subr.bf16.mxu1 %v15422_v30  ;;  %13618 = vmatprep.subr.bf16.mxu0 %v15424_v33  ;;  %v6253_v56 = vshll.u32 %v5776_v25, 16  ;;  %v15441_v30 = vld [vmem:[#allocation5 + $0x408] sm:$0xff]   ;;  %v15442_v33 = vld [vmem:[#allocation5 + $0x3f0] sm:$0xff]  }
 0x9bb   :  { %v2966_v13 = vpop.permute.xlu0 %2965 }
 0x9bc   :  { %13633 = vmatpush3.bf16.msra.mxu1 %v15423_v61  ;;  %v2967_v45 = vsel %vm1067_vm11, %v20820_v27, %v2966_v13  ;;  %v15445_v13 = vld [vmem:[#allocation5 + $0x410] sm:$0xff]  }
 0x9bd   :  { %13619 = vmatpush3.bf16.msra.mxu0 %v15425_v1  ;;  %5862 = vrot.lane.b32.xlu0 %v5859_v42, %s16140_s27  ;;  %v3046_v47 = vsel %vm2916_vm0, %v2967_v45, %v20987_v9  ;;  %v15438_v9 = vld [vmem:[#allocation5 + $0x3e8] sm:$0xff]   ;;  %v5880_v1 = vrot.slane %v20788_v11, 7 }
 0x9be   :  { %13634 = vmatprep.subr.bf16.mxu1 %v15426_v62  ;;  %13620 = vmatprep.subr.bf16.mxu0 %v15428_v22  ;;  %v6464_v18 = vsel %vm20605_vm15, %v3046_v47, %v6247_v40  ;;  %v21044_v62 = vpop.permute.xlu1 %5802  ;;  %v15443_v22 = vld [vmem:[#allocation5 + $0x3b0] sm:$0xff]  }
 0x9bf   :  { %v5716_v2 = vpop.permute.xlu0 %5715 }
 0x9c0   :  { %13635 = vmatpush3.bf16.msra.mxu1 %v15427_v0  ;;  %v5717_v42 = vsel %vm2924_vm12, %v20828_v15, %v5716_v2  ;;  %v15446_v0 = vld [vmem:[#allocation5 + $0x3f8] sm:$0xff]  }
 0x9c1   :  { %13621 = vmatpush3.bf16.msra.mxu0 %v15429_v12  ;;  %3153 = vrot.lane.b32.xlu0 %v3151_v23, %s16168_s20  ;;  %v15448_v12 = vld [vmem:[#allocation5 + $0x458] sm:$0xff]   ;;  %v5773_v3 = vsel %vm2932_vm2, %v5717_v42, %v21002_v35  ;;  %v15450_v23 = vld [vmem:[#allocation5 + $0x4c0] sm:$0xff]  }
 0x9c2   :  { %13636 = vmatprep.subr.bf16.mxu1 %v15430_v41  ;;  %13622 = vmatprep.subr.bf16.mxu0 %v15432_v32  ;;  %v3165_v41 = vrot.slane %v20597_v4, 7  ;;  %v15447_v32 = vld [vmem:[#allocation5 + $0x3b8] sm:$0xff]   ;;  %v21057_v2 = vpop.permute.xlu1 %5816  ;;  %v6251_v45 = vshll.u32 %v5773_v3, 16  ;;  %v15468_v3 = vld [vmem:[#allocation5 + $0x540] sm:$0xff]  }
 0x9c3   :  { %v2985_v19 = vpop.permute.xlu0 %2984  ;;  %v15449_v15 = vld [vmem:[#allocation5 + $0x418] sm:$0xff]  }
 0x9c4   :  { %13637 = vmatpush3.bf16.msra.mxu1 %v15431_v20  ;;  %v2988_v27 = vsel %vm2932_vm2, %v2985_v19, %v20862_v6  ;;  %v15451_v20 = vld [vmem:[#allocation5 + $0x460] sm:$0xff]  }
 0x9c5   :  { %13623 = vmatpush3.bf16.msra.mxu0 %v15433_v38  ;;  %3148 = vrot.lane.b32.xlu0 %v3145_v46, %s16140_s27  ;;  %v3058_v16 = vsel %vm2940_vm4, %v2988_v27, %v20902_v17  ;;  %v15452_v38 = vld [vmem:[#allocation5 + $0x480] sm:$0xff]  }
 0x9c6   :  { %13638 = vmatprep.subr.bf16.mxu1 %v15434_v63  ;;  %v6467_v51 = vsel %vm20605_vm15, %v3058_v16, %v6253_v56  ;;  %13652 = vmatprep.subr.bf16.mxu0 %v15436_v21  ;;  %v15453_v63 = vld [vmem:[#allocation5 + $0x420] sm:$0xff]   ;;  %v15454_v21 = vld [vmem:[#allocation5 + $0x4c8] sm:$0xff]  }
 0x9c7   :  { %11451 = vmatprep.mubr.bf16.mxu1 %v6467_v51  ;;  %v2980_v6 = vpop.permute.xlu0 %2979  ;;  %v15455_v56 = vld [vmem:[#allocation5 + $0x468] sm:$0xff]   ;;  %v15458_v51 = vld [vmem:[#allocation5 + $0x4d0] sm:$0xff]  }
 0x9c8   :  { %13639 = vmatpush3.bf16.msra.mxu1 %v15435_v34  ;;  %11412 = vmatmul.mubr.bf16.vlgmr.msra.gmra.mrb[84].mxu0 %v6464_v18  ;;  %v2981_v11 = vsel %vm2924_vm12, %v20844_v50, %v2980_v6  ;;  %v3241_v50 = vrot.slane %v22849_v53, 1  ;;  %v21073_v34 = vpop.permute.xlu1 %3100 }
 0x9c9   :  { %13653 = vmatpush3.bf16.msra.mxu0 %v15437_v39  ;;  %5876 = vrot.lane.b32.xlu0 %v5873_v31, %s16169_s2  ;;  %v3054_v4 = vsel %vm2932_vm2, %v2981_v11, %v2985_v19  ;;  %v15457_v39 = vld [vmem:[#allocation5 + $0x428] sm:$0xff]   ;;  %v15460_v31 = vld [vmem:[#allocation5 + $0x490] sm:$0xff]   ;;  %v15465_v11 = vld [vmem:[#allocation5 + $0x438] sm:$0xff]  }
 0x9ca   :  { %13640 = vmatprep.subr.bf16.mxu1 %v15438_v9  ;;  %13654 = vmatprep.subr.bf16.mxu0 %v15440_v44  ;;  %v6466_v19 = vsel %vm20605_vm15, %v3054_v4, %v6251_v45  ;;  %v3174_v9 = vsel %vm2898_vm13, %v22836_v37, %v20959_v52  ;;  %v15459_v44 = vld [vmem:[#allocation5 + $0x470] sm:$0xff]   ;;  %v15467_v4 = vld [vmem:[#allocation5 + $0x4a0] sm:$0xff]   ;;  %v15470_v45 = vld [vmem:[#allocation5 + $0x4e8] sm:$0xff]  }
 0x9cb   :  { %v21041_v61 = vpop.permute.xlu0 %5729 }
 0x9cc   :  { %13641 = vmatpush3.bf16.msra.mxu1 %v15439_v36  ;;  %v5731_v36 = vsel %vm2940_vm4, %v20855_v43, %v21041_v61  ;;  %v15464_v43 = vld [vmem:[#allocation5 + $0x498] sm:$0xff]  }
 0x9cd   :  { %13655 = vmatpush3.bf16.msra.mxu0 %v15441_v30  ;;  %5883 = vrot.lane.b32.xlu0 %v5880_v1, %s16162_s23  ;;  %v15461_v30 = vld [vmem:[#allocation5 + $0x430] sm:$0xff]  }
 0x9ce   :  { %13642 = vmatprep.subr.bf16.mxu1 %v15442_v33  ;;  %13656 = vmatprep.subr.bf16.mxu0 %v15444_v24  ;;  %v15462_v33 = vld [vmem:[#allocation5 + $0x4d8] sm:$0xff]   ;;  %v21088_v24 = vpop.permute.xlu1 %5825 }
 0x9cf   :  { %v21049_v10 = vpop.permute.xlu0 %2998 }
 0x9d0   :  { %13643 = vmatpush3.bf16.msra.mxu1 %v15443_v22  ;;  %v3002_v46 = vsel %vm22856_vm8, %v21049_v10, %v20946_v54  ;;  %v15456_v54 = vld [vmem:[#allocation5 + $0x488] sm:$0xff]   ;;  %v15463_v22 = vld [vmem:[#allocation5 + $0x478] sm:$0xff]   ;;  %vm22864_vm8 = vmmov %vm22855_vm1 }
 0x9d1   :  { %13657 = vmatpush3.bf16.msra.mxu0 %v15445_v13  ;;  %3167 = vrot.lane.b32.xlu0 %v3165_v41, %s16162_s23 }
 0x9d2   :  { %13644 = vmatprep.subr.bf16.mxu1 %v15446_v0  ;;  %13658 = vmatprep.subr.bf16.mxu0 %v15448_v12  ;;  %v5779_v0 = vsel %vm22857_vm9, %v5731_v36, %v20913_v29  ;;  %vm22865_vm9 = vmmov %vm22855_vm1 }
 0x9d3   :  { %v5737_v25 = vpop.permute.xlu0 %5736 }
 0x9d4   :  { %13645 = vmatpush3.bf16.msra.mxu1 %v15447_v32  ;;  %v5738_v35 = vsel %vm22855_vm1, %v20913_v29, %v5737_v25  ;;  %v15466_v32 = vld [vmem:[#allocation5 + $0x4e0] sm:$0xff]   ;;  %v21103_v25 = vpop.permute.xlu1 %5830 }
 0x9d5   :  { %v6258_v5 = vshll.u32 %v5738_v35, 16  ;;  %13659 = vmatpush3.bf16.msra.mxu0 %v15449_v15  ;;  %3243 = vrot.lane.b32.xlu0 %v3241_v50, %s16166_s17  ;;  %v2995_v15 = vsel %vm2940_vm4, %v20902_v17, %v20935_v14  ;;  %v15469_v50 = vld [vmem:[#allocation5 + $0x500] sm:$0xff]   ;;  %v15472_v35 = vld [vmem:[#allocation5 + $0x548] sm:$0xff]  }
 0x9d6   :  { %13674 = vmatprep.subr.bf16.mxu1 %v15450_v23  ;;  %13660 = vmatprep.subr.bf16.mxu0 %v15451_v20  ;;  %v6255_v23 = vshll.u32 %v5779_v0, 16  ;;  %v3062_v29 = vsel %vm22858_vm3, %v2995_v15, %v21049_v10  ;;  %vm22868_vm3 = vmmov %vm22855_vm1 }
 0x9d7   :  { %11452 = vmatmul.mubr.bf16.vlgmr.msra.gmra.mrb[116].mxu1 %v6466_v19  ;;  %v21069_v47 = vpop.permute.xlu0 %5786  ;;  %v6469_v27 = vsel %vm20605_vm15, %v3002_v46, %v6258_v5  ;;  %v15471_v5 = vld [vmem:[#allocation5 + $0x4a8] sm:$0xff]   ;;  %v15474_v19 = vld [vmem:[#allocation5 + $0x4f0] sm:$0xff]  }
 0x9d8   :  { %13675 = vmatpush3.bf16.msra.mxu1 %v15452_v38  ;;  %v5887_v40 = vsel %vm2898_vm13, %v20578_v58, %v21069_v47  ;;  %11491 = vmatprep.mubr.bf16.mxu0 %v6469_v27  ;;  %v6468_v38 = vsel %vm20605_vm15, %v3062_v29, %v6255_v23  ;;  %v21117_v27 = vpop.permute.xlu1 %3109  ;;  %v15488_v29 = vld [vmem:[#allocation5 + $0x588] sm:$0xff]  }
 0x9d9   :  { %v6262_v16 = vshll.u32 %v5887_v40, 16  ;;  %13661 = vmatpush3.bf16.msra.mxu0 %v15453_v63  ;;  %13676 = vmatprep.subr.bf16.mxu1 %v15454_v21  ;;  %v15473_v21 = vld [vmem:[#allocation5 + $0x508] sm:$0xff]  }
 0x9da   :  { %13662 = vmatprep.subr.bf16.mxu0 %v15455_v56  ;;  %v15476_v56 = vld [vmem:[#allocation5 + $0x550] sm:$0xff]  }
 0x9db   :  { %v21081_v6 = vpop.permute.xlu0 %3079  ;;  %v6471_v18 = vsel %vm20605_vm15, %v3174_v9, %v6262_v16  ;;  %v15480_v9 = vld [vmem:[#allocation5 + $0x558] sm:$0xff]  }
 0x9dc   :  { %13677 = vmatpush3.bf16.msra.mxu1 %v15456_v54  ;;  %11531 = vmatprep.mubr.bf16.mxu1 %v6471_v18  ;;  %v3083_v14 = vsel %vm1067_vm11, %v21081_v6, %v20972_v7  ;;  %v15475_v54 = vld [vmem:[#allocation5 + $0x4b0] sm:$0xff]   ;;  %v21130_v36 = vpop.permute.xlu1 %3114 }
 0x9dd   :  { %13663 = vmatpush3.bf16.msra.mxu0 %v15457_v39  ;;  %13678 = vmatprep.subr.bf16.mxu1 %v15458_v51  ;;  %v3182_v40 = vsel %vm2916_vm0, %v3083_v14, %v20990_v8  ;;  %v15477_v39 = vld [vmem:[#allocation5 + $0x510] sm:$0xff]   ;;  %v15478_v51 = vld [vmem:[#allocation5 + $0x4f8] sm:$0xff]  }
 0x9de   :  { %v13492_v1 = vpop.f32.mrb[96].mxu1  ;;  %13664 = vmatprep.subr.bf16.mxu0 %v15459_v44 }
 0x9df   :  { %v13493_v13 = vpop.f32.mrb[97].mxu1  ;;  %v21090_v42 = vpop.permute.xlu0 %3072 }
 0x9e0   :  { %v21094_v12 = vadd.f32 %v13493_v13, %v13492_v1  ;;  %13679 = vmatpush3.bf16.msra.mxu1 %v15460_v31  ;;  %v13495_v41 = vpop.f32.mrb[98].mxu1  ;;  %v15479_v31 = vld [vmem:[#allocation5 + $0x4b8] sm:$0xff]   ;;  %v15483_v1 = vld [vmem:[#allocation5 + $0x560] sm:$0xff]   ;;  %v21143_v15 = vpop.permute.xlu1 %3116 }
 0x9e1   :  { %13665 = vmatpush3.bf16.msra.mxu0 %v15461_v30  ;;  %v13496_v61 = vpop.f32.mrb[99].mxu1  ;;  %13680 = vmatprep.subr.bf16.mxu1 %v15462_v33  ;;  %v15481_v30 = vld [vmem:[#allocation5 + $0x518] sm:$0xff]   ;;  %v15482_v33 = vld [vmem:[#allocation5 + $0x5c0] sm:$0xff]  }
 0x9e2   :  { %13666 = vmatprep.subr.bf16.mxu0 %v15463_v22  ;;  %v15484_v41 = vld [vmem:[#allocation5 + $0x580] sm:$0xff]   ;;  %v15486_v61 = vld [vmem:[#allocation5 + $0x5c8] sm:$0xff]  }
 0x9e3   :  { %v21099_v20 = vpop.permute.xlu0 %3093 }
 0x9e4   :  { %13681 = vmatpush3.bf16.msra.mxu1 %v15464_v43  ;;  %v3097_v22 = vsel %vm2924_vm12, %v21099_v20, %v21006_v57  ;;  %v15485_v43 = vld [vmem:[#allocation5 + $0x520] sm:$0xff]   ;;  %v21151_v14 = vpop.permute.xlu1 %3125 }
 0x9e5   :  { %13667 = vmatpush3.bf16.msra.mxu0 %v15465_v11  ;;  %13682 = vmatprep.subr.bf16.mxu1 %v15466_v32  ;;  %v3190_v32 = vsel %vm2932_vm2, %v3097_v22, %v21073_v34  ;;  %v15499_v22 = vld [vmem:[#allocation5 + $0x5a0] sm:$0xff]  }
 0x9e6   :  { %13696 = vmatprep.subr.bf16.mxu0 %v15468_v3  ;;  %v15487_v3 = vld [vmem:[#allocation5 + $0x568] sm:$0xff]  }
 0x9e7   :  { %v21107_v17 = vpop.permute.xlu0 %5795 }
 0x9e8   :  { %11492 = vmatmul.mubr.bf16.vlgmr.msra.gmra.mrb[88].mxu0 %v6468_v38  ;;  %13683 = vmatpush3.bf16.msra.mxu1 %v15467_v4  ;;  %v5799_v10 = vsel %vm1067_vm11, %v21107_v17, %v21016_v28  ;;  %v15489_v4 = vld [vmem:[#allocation5 + $0x528] sm:$0xff]   ;;  %v15492_v38 = vld [vmem:[#allocation5 + $0x590] sm:$0xff]  }
 0x9e9   :  { %v5893_v63 = vsel %vm2916_vm0, %v5799_v10, %v21044_v62  ;;  %13697 = vmatpush3.bf16.msra.mxu0 %v15469_v50  ;;  %13684 = vmatprep.subr.bf16.mxu1 %v15470_v45  ;;  %v15490_v50 = vld [vmem:[#allocation5 + $0x5d0] sm:$0xff]   ;;  %v12890_v10 = vld [vmem:[#allocation7] ss:$0 sm:$0xff] }
 0x9ea   :  { %v6266_v46 = vshll.u32 %v5893_v63, 16  ;;  %13698 = vmatprep.subr.bf16.mxu0 %v15472_v35  ;;  %v15491_v45 = vld [vmem:[#allocation5 + $0x570] sm:$0xff]  }
 0x9eb   :  { %v21119_v7 = vpop.permute.xlu0 %5809  ;;  %v15493_v63 = vld [vmem:[#allocation5 + $0x530] sm:$0xff]  }
 0x9ec   :  { %13685 = vmatpush3.bf16.msra.mxu1 %v15471_v5  ;;  %v6473_v28 = vsel %vm20605_vm15, %v3182_v40, %v6266_v46  ;;  %v5813_v16 = vsel %vm2924_vm12, %v21119_v7, %v21033_v26  ;;  %v6260_v26 = vshll.u32 %v20575_v48, 16 }
 0x9ed   :  { %13699 = vmatpush3.bf16.msra.mxu0 %v15473_v21  ;;  %11571 = vmatprep.mubr.bf16.mxu0 %v6473_v28  ;;  %v5899_v18 = vsel %vm2932_vm2, %v5813_v16, %v21057_v2  ;;  %v15494_v21 = vld [vmem:[#allocation5 + $0x5d8] sm:$0xff]   ;;  %v11174_v28 = vadd.f32 %v21094_v12, %v12890_v10 }
 0x9ee   :  { %13686 = vmatprep.subr.bf16.mxu1 %v15474_v19  ;;  %13700 = vmatprep.subr.bf16.mxu0 %v15476_v56  ;;  %v6270_v13 = vshll.u32 %v5899_v18, 16  ;;  %v6470_v11 = vsel %vm20605_vm15, %v22833_v60, %v6260_v26  ;;  %v15495_v19 = vld [vmem:[#allocation5 + $0x578] sm:$0xff]   ;;  %v15498_v18 = vld [vmem:[#allocation5 + $0x5e0] sm:$0xff]  }
 0x9ef   :  { %v5789_v44 = vpop.permute.xlu0 %5788  ;;  %v15510_v10 = vld [vmem:[#allocation5 + $0x5f8] sm:$0xff]  }
 0x9f0   :  { %13687 = vmatpush3.bf16.msra.mxu1 %v15475_v54  ;;  %v6475_v57 = vsel %vm20605_vm15, %v3190_v32, %v6270_v13  ;;  %v5790_v5 = vsel %vm2898_vm13, %v21069_v47, %v5789_v44  ;;  %v15497_v44 = vld [vmem:[#allocation5 + $0x538] sm:$0xff]   ;;  %v15501_v13 = vld [vmem:[#allocation5 + $0x600] sm:$0xff]  }
 0x9f1   :  { %13701 = vmatpush3.bf16.msra.mxu0 %v15477_v39  ;;  %13688 = vmatprep.subr.bf16.mxu1 %v15478_v51  ;;  %v5890_v54 = vsel %vm1067_vm11, %v5790_v5, %v21107_v17  ;;  %v15496_v51 = vld [vmem:[#allocation5 + $0x598] sm:$0xff]   ;;  %v15500_v17 = vld [vmem:[#allocation5 + $0x640] sm:$0xff]  }
 0x9f2   :  { %13702 = vmatprep.subr.bf16.mxu0 %v15480_v9 }
 0x9f3   :  { %v21136_v0 = vpop.permute.xlu0 %5804 }
 0x9f4   :  { %13689 = vmatpush3.bf16.msra.mxu1 %v15479_v31  ;;  %v5806_v5 = vsel %vm2916_vm0, %v21044_v62, %v21136_v0  ;;  %v15513_v62 = vld [vmem:[#allocation5 + $0x618] sm:$0xff]   ;;  %v15514_v0 = vld [vmem:[#allocation5 + $0x6c0] sm:$0xff]  }
 0x9f5   :  { %13703 = vmatpush3.bf16.msra.mxu0 %v15481_v30  ;;  %13718 = vmatprep.subr.bf16.mxu1 %v15482_v33  ;;  %v21168_v30 = vpop.permute.xlu1 %5853  ;;  %v6264_v33 = vshll.u32 %v5890_v54, 16  ;;  %v5896_v54 = vsel %vm2924_vm12, %v5806_v5, %v21119_v7  ;;  %v3120_v7 = vrot.slane %v22833_v60, 4  ;;  %v15523_v60 = vld [vmem:[#allocation5 + $0x670] sm:$0xff]  }
 0x9f6   :  { %13704 = vmatprep.subr.bf16.mxu0 %v15483_v1 }
 0x9f7   :  { %11532 = vmatmul.mubr.bf16.vlgmr.msra.gmra.mrb[120].mxu1 %v6470_v11  ;;  %v21147_v23 = vpop.permute.xlu0 %3088 }
 0x9f8   :  { %13719 = vmatpush3.bf16.msra.mxu1 %v15484_v41  ;;  %11611 = vmatprep.mubr.bf16.mxu1 %v6475_v57 }
 0x9f9   :  { %13705 = vmatpush3.bf16.msra.mxu0 %v15485_v43  ;;  %13720 = vmatprep.subr.bf16.mxu1 %v15486_v61  ;;  %v21187_v57 = vpop.permute.xlu1 %3132 }
 0x9fa   :  { %13706 = vmatprep.subr.bf16.mxu0 %v15487_v3  ;;  %v15503_v3 = vld [vmem:[#allocation5 + $0x5a8] sm:$0xff]  }
 0x9fb   :  { %v21149_v35 = vpop.permute.xlu0 %5823 }
 0x9fc   :  { %13721 = vmatpush3.bf16.msra.mxu1 %v15488_v29  ;;  %v5827_v16 = vsel %vm2940_vm4, %v21149_v35, %v21088_v24  ;;  %v3074_v24 = vsel %vm2898_vm13, %v20959_v52, %v21090_v42  ;;  %v15502_v52 = vld [vmem:[#allocation5 + $0x5e8] sm:$0xff]   ;;  %v15506_v29 = vld [vmem:[#allocation5 + $0x5f0] sm:$0xff]  }
 0x9fd   :  { %13707 = vmatpush3.bf16.msra.mxu0 %v15489_v4  ;;  %13722 = vmatprep.subr.bf16.mxu1 %v15490_v50  ;;  %v5905_v26 = vsel %vm22859_vm10, %v5827_v16, %v21103_v25  ;;  %v3178_v41 = vsel %vm1067_vm11, %v3074_v24, %v21081_v6  ;;  %v15504_v42 = vld [vmem:[#allocation5 + $0x648] sm:$0xff]   ;;  %v15508_v4 = vld [vmem:[#allocation5 + $0x650] sm:$0xff]   ;;  %v15515_v16 = vld [vmem:[#allocation5 + $0x660] sm:$0xff]  }
 0x9fe   :  { %v13514_v46 = vpop.f32.mrb[100].mxu1  ;;  %13708 = vmatprep.subr.bf16.mxu0 %v15491_v45  ;;  %v6274_v43 = vshll.u32 %v5905_v26, 16  ;;  %v6472_v61 = vsel %vm20605_vm15, %v3178_v41, %v6264_v33  ;;  %v15505_v6 = vld [vmem:[#allocation5 + $0x608] sm:$0xff]   ;;  %v15507_v45 = vld [vmem:[#allocation5 + $0x5b0] sm:$0xff]   ;;  %vm22869_vm10 = vmmov %vm22855_vm1 }
 0x9ff   :  { %v13515_v56 = vpop.f32.mrb[101].mxu1  ;;  %v21155_v40 = vpop.permute.xlu0 %3107  ;;  %v15520_v24 = vld [vmem:[#allocation5 + $0x688] sm:$0xff]   ;;  %v15522_v26 = vld [vmem:[#allocation5 + $0x6d0] sm:$0xff]  }
 0xa00   :  { %v13516_v47 = vadd.f32 %v13515_v56, %v13514_v46  ;;  %v13517_v39 = vpop.f32.mrb[102].mxu1  ;;  %13723 = vmatpush3.bf16.msra.mxu1 %v15492_v38  ;;  %v3111_v12 = vsel %vm2940_vm4, %v21155_v40, %v21117_v27  ;;  %v15509_v38 = vld [vmem:[#allocation5 + $0x610] sm:$0xff]   ;;  %v3090_v56 = vsel %vm2916_vm0, %v20990_v8, %v21147_v23  ;;  %v15516_v8 = vld [vmem:[#allocation5 + $0x680] sm:$0xff]   ;;  %v15521_v33 = vld [vmem:[#allocation5 + $0x628] sm:$0xff]  }
 0xa01   :  { %v13518_v9 = vpop.f32.mrb[103].mxu1  ;;  %13709 = vmatpush3.bf16.msra.mxu0 %v15493_v63  ;;  %13724 = vmatprep.subr.bf16.mxu1 %v15494_v21  ;;  %v3198_v27 = vsel %vm22860_vm6, %v3111_v12, %v21130_v36  ;;  %v15512_v63 = vld [vmem:[#allocation5 + $0x658] sm:$0xff]   ;;  %v21194_v21 = vpop.permute.xlu1 %5860  ;;  %v15519_v12 = vld [vmem:[#allocation5 + $0x668] sm:$0xff]   ;;  %vm22870_vm6 = vmmov %vm22855_vm1 }
 0xa02   :  { %v21163_v31 = vadd.f32 %v13516_v47, %v11174_v28  ;;  %13710 = vmatprep.subr.bf16.mxu0 %v15495_v19  ;;  %v6477_v32 = vsel %vm20605_vm15, %v3198_v27, %v6274_v43  ;;  %v5835_v19 = vrot.slane %v20575_v48, 4  ;;  %v15511_v28 = vld [vmem:[#allocation5 + $0x5b8] sm:$0xff]   ;;  %v3186_v47 = vsel %vm2924_vm12, %v3090_v56, %v21099_v20  ;;  %v15517_v9 = vld [vmem:[#allocation5 + $0x620] sm:$0xff]   ;;  %v15524_v27 = vld [vmem:[#allocation5 + $0x690] sm:$0xff]  }
 0xa03   :  { %v21175_v1 = vpop.permute.xlu0 %3102  ;;  %v15525_v43 = vld [vmem:[#allocation5 + $0x630] sm:$0xff]  }
 0xa04   :  { %13725 = vmatpush3.bf16.msra.mxu1 %v15496_v51  ;;  %v6280_v48 = vshll.u32 %v5835_v19, 16  ;;  %v6268_v51 = vshll.u32 %v5896_v54, 16  ;;  %v3104_v56 = vsel %vm2932_vm2, %v21073_v34, %v21175_v1  ;;  %v15536_v34 = vld [vmem:[#allocation5 + $0x748] sm:$0xff]  }
 0xa05   :  { %13711 = vmatpush3.bf16.msra.mxu0 %v15497_v44  ;;  %13726 = vmatprep.subr.bf16.mxu1 %v15498_v18  ;;  %v5842_v23 = vpop.permute.xlu1 %5841  ;;  %v15518_v44 = vld [vmem:[#allocation5 + $0x6c8] sm:$0xff]  }
 0xa06   :  { %13740 = vmatprep.subr.bf16.mxu0 %v15500_v17  ;;  %v6474_v18 = vsel %vm20605_vm15, %v3186_v47, %v6268_v51  ;;  %v6479_v20 = vsel %vm20605_vm15, %v3120_v7, %v6280_v48  ;;  %v3194_v47 = vsel %vm2940_vm4, %v3104_v56, %v21155_v40  ;;  %v15534_v51 = vld [vmem:[#allocation5 + $0x6e8] sm:$0xff]  }
 0xa07   :  { %v21183_v11 = vpop.permute.xlu0 %5818  ;;  %v15537_v40 = vld [vmem:[#allocation5 + $0x708] sm:$0xff]  }
 0xa08   :  { %11572 = vmatmul.mubr.bf16.vlgmr.msra.gmra.mrb[92].mxu0 %v6472_v61  ;;  %13727 = vmatpush3.bf16.msra.mxu1 %v15499_v22  ;;  %v5820_v41 = vsel %vm2932_vm2, %v21057_v2, %v21183_v11  ;;  %v15527_v61 = vld [vmem:[#allocation5 + $0x678] sm:$0xff]   ;;  %v15553_v56 = vld [vmem:[#allocation5 + $0x728] sm:$0xff]  }
 0xa09   :  { %13741 = vmatpush3.bf16.msra.mxu0 %v15501_v13  ;;  %11651 = vmatprep.mubr.bf16.mxu0 %v6477_v32  ;;  %v21213_v22 = vpop.permute.xlu1 %3141  ;;  %v15529_v11 = vld [vmem:[#allocation5 + $0x638] sm:$0xff]  }
 0xa0a   :  { %13728 = vmatprep.subr.bf16.mxu1 %v15502_v52  ;;  %13742 = vmatprep.subr.bf16.mxu0 %v15504_v42  ;;  %v15526_v52 = vld [vmem:[#allocation5 + $0x6d8] sm:$0xff]  }
 0xa0b   :  { %v21189_v50 = vpop.permute.xlu0 %5832 }
 0xa0c   :  { %13729 = vmatpush3.bf16.msra.mxu1 %v15503_v3 }
 0xa0d   :  { %13743 = vmatpush3.bf16.msra.mxu0 %v15505_v6  ;;  %13730 = vmatprep.subr.bf16.mxu1 %v15506_v29  ;;  %v5902_v6 = vsel %vm2940_vm4, %v5820_v41, %v21149_v35  ;;  %v15532_v35 = vld [vmem:[#allocation5 + $0x740] sm:$0xff]  }
 0xa0e   :  { %13744 = vmatprep.subr.bf16.mxu0 %v15508_v4 }
 0xa0f   :  { %v21196_v46 = vpop.permute.xlu0 %5839 }
 0xa10   :  { %13731 = vmatpush3.bf16.msra.mxu1 %v15507_v45  ;;  %v15528_v45 = vld [vmem:[#allocation5 + $0x698] sm:$0xff]   ;;  %v5843_v5 = vsel %vm2898_vm13, %v21196_v46, %v5842_v23 }
 0xa11   :  { %13745 = vmatpush3.bf16.msra.mxu0 %v15509_v38  ;;  %13732 = vmatprep.subr.bf16.mxu1 %v15510_v10  ;;  %v21224_v38 = vpop.permute.xlu1 %3146  ;;  %v15530_v10 = vld [vmem:[#allocation5 + $0x6e0] sm:$0xff]  }
 0xa12   :  { %13746 = vmatprep.subr.bf16.mxu0 %v15512_v63 }
 0xa13   :  { %v21206_v39 = vpop.permute.xlu0 %5846 }
 0xa14   :  { %13733 = vmatpush3.bf16.msra.mxu1 %v15511_v28  ;;  %v6272_v28 = vshll.u32 %v5902_v6, 16  ;;  %v5911_v54 = vsel %vm1067_vm11, %v5843_v5, %v21206_v39  ;;  %v15551_v5 = vld [vmem:[#allocation5 + $0x768] sm:$0xff]  }
 0xa15   :  { %13747 = vmatpush3.bf16.msra.mxu0 %v15513_v62  ;;  %13762 = vmatprep.subr.bf16.mxu1 %v15514_v0  ;;  %v15531_v0 = vld [vmem:[#allocation5 + $0x6a0] sm:$0xff]   ;;  %v6284_v48 = vshll.u32 %v5911_v54, 16  ;;  %v21242_v1 = vpop.permute.xlu1 %5874  ;;  %v15555_v54 = vld [vmem:[#allocation5 + $0x770] sm:$0xff]  }
 0xa16   :  { %13748 = vmatprep.subr.bf16.mxu0 %v15515_v16  ;;  %v15533_v16 = vld [vmem:[#allocation5 + $0x700] sm:$0xff]  }
 0xa17   :  { %11612 = vmatmul.mubr.bf16.vlgmr.msra.gmra.mrb[124].mxu1 %v6474_v18  ;;  %v3128_v17 = vpop.permute.xlu0 %3127  ;;  %v15540_v18 = vld [vmem:[#allocation5 + $0x750] sm:$0xff]  }
 0xa18   :  { %13763 = vmatpush3.bf16.msra.mxu1 %v15516_v8  ;;  %11691 = vmatprep.mubr.bf16.mxu1 %v6479_v20  ;;  %v3129_v63 = vsel %vm2898_vm13, %v21151_v14, %v3128_v17  ;;  %v6476_v8 = vsel %vm20605_vm15, %v3194_v47, %v6272_v28  ;;  %v15554_v28 = vld [vmem:[#allocation5 + $0x7d0] sm:$0xff]   ;;  %v15559_v47 = vld [vmem:[#allocation5 + $0x778] sm:$0xff]  }
 0xa19   :  { %13749 = vmatpush3.bf16.msra.mxu0 %v15517_v9  ;;  %13764 = vmatprep.subr.bf16.mxu1 %v15518_v44  ;;  %v15535_v9 = vld [vmem:[#allocation5 + $0x6a8] sm:$0xff]   ;;  %v15538_v44 = vld [vmem:[#allocation5 + $0x6f0] sm:$0xff]   ;;  %v21250_v20 = vpop.permute.xlu1 %3155 }
 0xa1a   :  { %13750 = vmatprep.subr.bf16.mxu0 %v15519_v12  ;;  %v15539_v12 = vld [vmem:[#allocation5 + $0x6b0] sm:$0xff]  }
 0xa1b   :  { %v21215_v13 = vpop.permute.xlu0 %5848 }
 0xa1c   :  { %13765 = vmatpush3.bf16.msra.mxu1 %v15520_v24 }
 0xa1d   :  { %13751 = vmatpush3.bf16.msra.mxu0 %v15521_v33  ;;  %13766 = vmatprep.subr.bf16.mxu1 %v15522_v26  ;;  %v15541_v33 = vld [vmem:[#allocation5 + $0x710] sm:$0xff]   ;;  %v15542_v26 = vld [vmem:[#allocation5 + $0x6f8] sm:$0xff]   ;;  %v21261_v6 = vpop.permute.xlu1 %3160 }
 0xa1e   :  { %v13536_v42 = vpop.f32.mrb[104].mxu1  ;;  %13752 = vmatprep.subr.bf16.mxu0 %v15523_v60  ;;  %v15544_v60 = vld [vmem:[#allocation5 + $0x758] sm:$0xff]  }
 0xa1f   :  { %v13537_v32 = vpop.f32.mrb[105].mxu1  ;;  %v21220_v3 = vpop.permute.xlu0 %3139 }
 0xa20   :  { %v13538_v29 = vadd.f32 %v13537_v32, %v13536_v42  ;;  %v13539_v4 = vpop.f32.mrb[106].mxu1  ;;  %13767 = vmatpush3.bf16.msra.mxu1 %v15524_v27  ;;  %v5834_v27 = vsel %vm22861_vm7, %v21103_v25, %v21189_v50  ;;  %v15546_v42 = vld [vmem:[#allocation5 + $0x7c0] sm:$0xff]   ;;  %vm22871_vm7 = vmmov %vm22855_vm1 }
 0xa21   :  { %v13540_v2 = vpop.f32.mrb[107].mxu1  ;;  %13753 = vmatpush3.bf16.msra.mxu0 %v15525_v43  ;;  %13768 = vmatprep.subr.bf16.mxu1 %v15526_v52  ;;  %v15543_v43 = vld [vmem:[#allocation5 + $0x6b8] sm:$0xff]   ;;  %v15547_v32 = vld [vmem:[#allocation5 + $0x760] sm:$0xff]  }
 0xa22   :  { %v21231_v19 = vadd.f32 %v13538_v29, %v21163_v31  ;;  %13754 = vmatprep.subr.bf16.mxu0 %v15527_v61  ;;  %v3206_v31 = vsel %vm1067_vm11, %v3129_v63, %v21187_v57  ;;  %v15545_v52 = vld [vmem:[#allocation5 + $0x718] sm:$0xff]   ;;  %v6277_v61 = vshll.u32 %v5834_v27, 16  ;;  %v3143_v29 = vsel %vm2916_vm0, %v21220_v3, %v21213_v22  ;;  %v15548_v50 = vld [vmem:[#allocation5 + $0x780] sm:$0xff]  }
 0xa23   :  { %v5856_v62 = vpop.permute.xlu0 %5855  ;;  %v6481_v7 = vsel %vm20605_vm15, %v3206_v31, %v6284_v48  ;;  %v15549_v2 = vld [vmem:[#allocation5 + $0x720] sm:$0xff]   ;;  %v3214_v22 = vsel %vm2924_vm12, %v3143_v29, %v21224_v38  ;;  %v5836_v31 = vrot.slane %v20578_v58, 4 }
 0xa24   :  { %13769 = vmatpush3.bf16.msra.mxu1 %v15528_v45  ;;  %v5857_v17 = vsel %vm2916_vm0, %v21168_v30, %v5856_v62  ;;  %v3118_v45 = vsel %vm22862_vm5, %v21130_v36, %v21143_v15  ;;  %v21277_v36 = vpop.permute.xlu1 %5881  ;;  %v15556_v62 = vld [vmem:[#allocation5 + $0x790] sm:$0xff]   ;;  %vm22872_vm5 = vmmov %vm22855_vm1 }
 0xa25   :  { %13755 = vmatpush3.bf16.msra.mxu0 %v15529_v11  ;;  %13770 = vmatprep.subr.bf16.mxu1 %v15530_v10  ;;  %v5917_v41 = vsel %vm2924_vm12, %v5857_v17, %v21194_v21  ;;  %v15550_v11 = vld [vmem:[#allocation5 + $0x7c8] sm:$0xff]   ;;  %v6478_v10 = vsel %vm20605_vm15, %v3118_v45, %v6277_v61  ;;  %v15563_v17 = vld [vmem:[#allocation5 + $0x7a0] sm:$0xff]   ;;  %v15573_v45 = vld [vmem:[#allocation5 + $0x810] sm:$0xff]  }
 0xa26   :  { %13784 = vmatprep.subr.bf16.mxu0 %v15532_v35  ;;  %v6288_v4 = vshll.u32 %v5917_v41, 16  ;;  %v15552_v35 = vld [vmem:[#allocation5 + $0x788] sm:$0xff]  }
 0xa27   :  { %v21246_v23 = vpop.permute.xlu0 %3134  ;;  %v15566_v41 = vld [vmem:[#allocation5 + $0x7e8] sm:$0xff]  }
 0xa28   :  { %11652 = vmatmul.mubr.bf16.vlgmr.msra.gmra.mrb[96].mxu0 %v6476_v8  ;;  %13771 = vmatpush3.bf16.msra.mxu1 %v15531_v0  ;;  %v6483_v63 = vsel %vm20605_vm15, %v3214_v22, %v6288_v4  ;;  %v15557_v0 = vld [vmem:[#allocation5 + $0x730] sm:$0xff]   ;;  %v5870_v48 = vpop.permute.xlu1 %5869  ;;  %v15569_v61 = vld [vmem:[#allocation5 + $0x808] sm:$0xff]   ;;  %v3136_v22 = vsel %vm1067_vm11, %v21187_v57, %v21246_v23 }
 0xa29   :  { %13785 = vmatpush3.bf16.msra.mxu0 %v15533_v16  ;;  %11731 = vmatprep.mubr.bf16.mxu0 %v6481_v7  ;;  %v15558_v16 = vld [vmem:[#allocation5 + $0x7d8] sm:$0xff]   ;;  %v15571_v4 = vld [vmem:[#allocation5 + $0x7b0] sm:$0xff]   ;;  %v3210_v57 = vsel %vm2916_vm0, %v3136_v22, %v21220_v3 }
 0xa2a   :  { %13772 = vmatprep.subr.bf16.mxu1 %v15534_v51  ;;  %13786 = vmatprep.subr.bf16.mxu0 %v15536_v34  ;;  %v5908_v34 = vsel %vm2898_vm13, %v5836_v31, %v21196_v46  ;;  %v15560_v7 = vld [vmem:[#allocation5 + $0x798] sm:$0xff]   ;;  %v3121_v46 = vrot.slane %v22836_v37, 4  ;;  %v15582_v31 = vld [vmem:[#allocation5 + $0x8c8] sm:$0xff]  }
 0xa2b   :  { %v21254_v24 = vpop.permute.xlu0 %5867 }
 0xa2c   :  { %13773 = vmatpush3.bf16.msra.mxu1 %v15535_v9  ;;  %v5871_v8 = vsel %vm2932_vm2, %v21254_v24, %v5870_v48  ;;  %v15561_v9 = vld [vmem:[#allocation5 + $0x738] sm:$0xff]   ;;  %v15583_v48 = vld [vmem:[#allocation5 + $0x868] sm:$0xff]  }
 0xa2d   :  { %13787 = vmatpush3.bf16.msra.mxu0 %v15537_v40  ;;  %13774 = vmatprep.subr.bf16.mxu1 %v15538_v44  ;;  %v15562_v40 = vld [vmem:[#allocation5 + $0x7e0] sm:$0xff]  }
 0xa2e   :  { %13788 = vmatprep.subr.bf16.mxu0 %v15540_v18  ;;  %v15564_v44 = vld [vmem:[#allocation5 + $0x840] sm:$0xff]   ;;  %v6282_v18 = vshll.u32 %v5908_v34, 16  ;;  %v15584_v34 = vld [vmem:[#allocation5 + $0x888] sm:$0xff]  }
 0xa2f   :  { %v21266_v25 = vpop.permute.xlu0 %5862 }
 0xa30   :  { %13775 = vmatpush3.bf16.msra.mxu1 %v15539_v12  ;;  %v5923_v12 = vsel %vm2940_vm4, %v5871_v8, %v21242_v1  ;;  %v15585_v8 = vld [vmem:[#allocation5 + $0x828] sm:$0xff]  }
 0xa31   :  { %13789 = vmatpush3.bf16.msra.mxu0 %v15541_v33  ;;  %13776 = vmatprep.subr.bf16.mxu1 %v15542_v26  ;;  %v15565_v26 = vld [vmem:[#allocation5 + $0x800] sm:$0xff]   ;;  %v6292_v27 = vshll.u32 %v5923_v12, 16  ;;  %v5864_v12 = vsel %vm2924_vm12, %v21194_v21, %v21266_v25 }
 0xa32   :  { %13790 = vmatprep.subr.bf16.mxu0 %v15544_v60  ;;  %v15602_v25 = vld [vmem:[#allocation5 + $0x940] sm:$0xff]  }
 0xa33   :  { %v21279_v15 = vpop.permute.xlu0 %3153 }
 0xa34   :  { %13777 = vmatpush3.bf16.msra.mxu1 %v15543_v43  ;;  %v3157_v58 = vsel %vm2932_vm2, %v21279_v15, %v21250_v20  ;;  %v3202_v20 = vsel %vm2898_vm13, %v3121_v46, %v21151_v14  ;;  %v15568_v43 = vld [vmem:[#allocation5 + $0x848] sm:$0xff]   ;;  %v15572_v14 = vld [vmem:[#allocation5 + $0x850] sm:$0xff]  }
 0xa35   :  { %13791 = vmatpush3.bf16.msra.mxu0 %v15545_v52  ;;  %13806 = vmatprep.subr.bf16.mxu1 %v15546_v42  ;;  %v3222_v60 = vsel %vm2940_vm4, %v3157_v58, %v21261_v6  ;;  %v6480_v37 = vsel %vm20605_vm15, %v3202_v20, %v6282_v18  ;;  %v15567_v42 = vld [vmem:[#allocation5 + $0x7a8] sm:$0xff]   ;;  %v15589_v58 = vld [vmem:[#allocation5 + $0x830] sm:$0xff]   ;;  %v15591_v18 = vld [vmem:[#allocation5 + $0x878] sm:$0xff]  }
 0xa36   :  { %13792 = vmatprep.subr.bf16.mxu0 %v15547_v32  ;;  %v6485_v52 = vsel %vm20605_vm15, %v3222_v60, %v6292_v27  ;;  %v15570_v32 = vld [vmem:[#allocation5 + $0x7f0] sm:$0xff]   ;;  %v15593_v27 = vld [vmem:[#allocation5 + $0x838] sm:$0xff]  }
 0xa37   :  { %11692 = vmatmul.mubr.bf16.vlgmr.msra.gmra.mrb[128].mxu1 %v6478_v10  ;;  %v21282_v51 = vpop.permute.xlu0 %3148  ;;  %v15576_v10 = vld [vmem:[#allocation5 + $0x858] sm:$0xff]  }
 0xa38   :  { %13807 = vmatpush3.bf16.msra.mxu1 %v15548_v50  ;;  %11771 = vmatprep.mubr.bf16.mxu1 %v6483_v63  ;;  %v21304_v50 = vpop.permute.xlu1 %3162  ;;  %v3150_v60 = vsel %vm2924_vm12, %v21224_v38, %v21282_v51 }
 0xa39   :  { %13793 = vmatpush3.bf16.msra.mxu0 %v15549_v2  ;;  %13808 = vmatprep.subr.bf16.mxu1 %v15550_v11  ;;  %v15574_v2 = vld [vmem:[#allocation5 + $0x7f8] sm:$0xff]   ;;  %v5850_v11 = vsel %vm1067_vm11, %v21206_v39, %v21215_v13  ;;  %v15579_v13 = vld [vmem:[#allocation5 + $0x860] sm:$0xff]  }
 0xa3a   :  { %13794 = vmatprep.subr.bf16.mxu0 %v15551_v5  ;;  %v15575_v5 = vld [vmem:[#allocation5 + $0x7b8] sm:$0xff]   ;;  %v5914_v63 = vsel %vm2916_vm0, %v5850_v11, %v21168_v30  ;;  %v15580_v30 = vld [vmem:[#allocation5 + $0x880] sm:$0xff]   ;;  %v15598_v11 = vld [vmem:[#allocation5 + $0x8f0] sm:$0xff]  }
 0xa3b   :  { %v21294_v33 = vpop.permute.xlu0 %5876  ;;  %v6286_v23 = vshll.u32 %v5914_v63, 16  ;;  %v15606_v63 = vld [vmem:[#allocation5 + $0x950] sm:$0xff]  }
 0xa3c   :  { %13809 = vmatpush3.bf16.msra.mxu1 %v15552_v35 }
 0xa3d   :  { %13795 = vmatpush3.bf16.msra.mxu0 %v15553_v56  ;;  %13810 = vmatprep.subr.bf16.mxu1 %v15554_v28  ;;  %v15577_v56 = vld [vmem:[#allocation5 + $0x818] sm:$0xff]   ;;  %v15578_v28 = vld [vmem:[#allocation5 + $0x8c0] sm:$0xff]  }
 0xa3e   :  { %13796 = vmatprep.subr.bf16.mxu0 %v15555_v54  ;;  %v3170_v54 = vpop.permute.xlu1 %3169 }
 0xa3f   :  { %v5884_v29 = vpop.permute.xlu0 %5883 }
 0xa40   :  { %13811 = vmatpush3.bf16.msra.mxu1 %v15556_v62  ;;  %v5885_v39 = vsel %vm22863_vm14, %v21277_v36, %v5884_v29  ;;  %v15604_v29 = vld [vmem:[#allocation5 + $0x948] sm:$0xff]   ;;  %vm22873_vm14 = vmmov %vm22855_vm1 }
 0xa41   :  { %13797 = vmatpush3.bf16.msra.mxu0 %v15557_v0  ;;  %13812 = vmatprep.subr.bf16.mxu1 %v15558_v16  ;;  %v6297_v0 = vshll.u32 %v5885_v39, 16  ;;  %v15581_v16 = vld [vmem:[#allocation5 + $0x820] sm:$0xff]   ;;  %v3248_v39 = vrot.slane %v20850_v55, 1 }
 0xa42   :  { %13798 = vmatprep.subr.bf16.mxu0 %v15559_v47  ;;  %v6482_v47 = vsel %vm20605_vm15, %v3210_v57, %v6286_v23  ;;  %v15600_v23 = vld [vmem:[#allocation5 + $0x8f8] sm:$0xff]  }
 0xa43   :  { %v21314_v35 = vpop.permute.xlu0 %3167 }
 0xa44   :  { %13813 = vmatpush3.bf16.msra.mxu1 %v15560_v7  ;;  %v3171_v62 = vsel %vm22855_vm1, %v21314_v35, %v3170_v54  ;;  %v15586_v7 = vld [vmem:[#allocation5 + $0x8d0] sm:$0xff]  }
 0xa45   :  { %13799 = vmatpush3.bf16.msra.mxu0 %v15561_v9  ;;  %13814 = vmatprep.subr.bf16.mxu1 %v15562_v40  ;;  %v6487_v3 = vsel %vm20605_vm15, %v3171_v62, %v6297_v0  ;;  %v15587_v9 = vld [vmem:[#allocation5 + $0x870] sm:$0xff]  }
 0xa46   :  { %13828 = vmatprep.subr.bf16.mxu0 %v15564_v44  ;;  %v15588_v40 = vld [vmem:[#allocation5 + $0x890] sm:$0xff]   ;;  %v15590_v44 = vld [vmem:[#allocation5 + $0x8d8] sm:$0xff]  }
 0xa47   :  { %v15599_v54 = vld [vmem:[#allocation5 + $0x8b0] sm:$0xff]  }
 0xa48   :  { %11732 = vmatmul.mubr.bf16.vlgmr.msra.gmra.mrb[100].mxu0 %v6480_v37  ;;  %13815 = vmatpush3.bf16.msra.mxu1 %v15563_v17  ;;  %v15607_v62 = vld [vmem:[#allocation5 + $0x910] sm:$0xff]  }
 0xa49   :  { %13829 = vmatpush3.bf16.msra.mxu0 %v15565_v26  ;;  %11811 = vmatprep.mubr.bf16.mxu0 %v6485_v52  ;;  %v15592_v26 = vld [vmem:[#allocation5 + $0x898] sm:$0xff]  }
 0xa4a   :  { %13816 = vmatprep.subr.bf16.mxu1 %v15566_v41  ;;  %13830 = vmatprep.subr.bf16.mxu0 %v15568_v43  ;;  %v15594_v41 = vld [vmem:[#allocation5 + $0x8e0] sm:$0xff]   ;;  %v5920_v43 = vsel %vm2932_vm2, %v5864_v12, %v21254_v24  ;;  %v15596_v24 = vld [vmem:[#allocation5 + $0x8e8] sm:$0xff]  }
 0xa4c   :  { %13817 = vmatpush3.bf16.msra.mxu1 %v15567_v42  ;;  %v3218_v42 = vsel %vm2932_vm2, %v3150_v60, %v21279_v15 }
 0xa4d   :  { %13831 = vmatpush3.bf16.msra.mxu0 %v15569_v61  ;;  %13818 = vmatprep.subr.bf16.mxu1 %v15570_v32  ;;  %v15595_v61 = vld [vmem:[#allocation5 + $0x8a0] sm:$0xff]   ;;  %v6290_v32 = vshll.u32 %v5920_v43, 16  ;;  %v15619_v43 = vld [vmem:[#allocation5 + $0x928] sm:$0xff]  }
 0xa4e   :  { %13832 = vmatprep.subr.bf16.mxu0 %v15572_v14  ;;  %v15603_v14 = vld [vmem:[#allocation5 + $0x900] sm:$0xff]  }
 0xa4f   :  { %v6484_v15 = vsel %vm20605_vm15, %v3218_v42, %v6290_v32  ;;  %v15617_v32 = vld [vmem:[#allocation5 + $0x990] sm:$0xff]  }
 0xa50   :  { %13819 = vmatpush3.bf16.msra.mxu1 %v15571_v4 }
 0xa51   :  { %13833 = vmatpush3.bf16.msra.mxu0 %v15573_v45  ;;  %13820 = vmatprep.subr.bf16.mxu1 %v15574_v2  ;;  %v15597_v2 = vld [vmem:[#allocation5 + $0x8a8] sm:$0xff]  }
 0xa52   :  { %13834 = vmatprep.subr.bf16.mxu0 %v15576_v10  ;;  %v15605_v10 = vld [vmem:[#allocation5 + $0x908] sm:$0xff]  }
 0xa54   :  { %13821 = vmatpush3.bf16.msra.mxu1 %v15575_v5 }
 0xa55   :  { %13835 = vmatpush3.bf16.msra.mxu0 %v15577_v56  ;;  %13850 = vmatprep.subr.bf16.mxu1 %v15578_v28 }
 0xa56   :  { %13836 = vmatprep.subr.bf16.mxu0 %v15579_v13 }
 0xa57   :  { %11772 = vmatmul.mubr.bf16.vlgmr.msra.gmra.mrb[132].mxu1 %v6482_v47  ;;  %v21368_v47 = vshrl.u32 %v22850_v49, 16 }
 0xa58   :  { %13851 = vmatpush3.bf16.msra.mxu1 %v15580_v30  ;;  %11851 = vmatprep.mubr.bf16.mxu1 %v6487_v3  ;;  %v5878_v30 = vsel %vm2940_vm4, %v21242_v1, %v21294_v33  ;;  %v15611_v33 = vld [vmem:[#allocation5 + $0x918] sm:$0xff]   ;;  %v3164_v3 = vsel %vm2940_vm4, %v21261_v6, %v21304_v50  ;;  %v15612_v50 = vld [vmem:[#allocation5 + $0x9c8] sm:$0xff]  }
 0xa59   :  { %13837 = vmatpush3.bf16.msra.mxu0 %v15581_v16  ;;  %13852 = vmatprep.subr.bf16.mxu1 %v15582_v31  ;;  %v15610_v16 = vld [vmem:[#allocation5 + $0x958] sm:$0xff]   ;;  %v5926_v1 = vsel %vm22864_vm8, %v5878_v30, %v21277_v36  ;;  %v15629_v30 = vld [vmem:[#allocation5 + $0x9a8] sm:$0xff]   ;;  %vm22874_vm8 = vmmov %vm22855_vm1 }
 0xa5a   :  { %13838 = vmatprep.subr.bf16.mxu0 %v15583_v48  ;;  %v15601_v48 = vld [vmem:[#allocation5 + $0x8b8] sm:$0xff]   ;;  %v6294_v36 = vshll.u32 %v5926_v1, 16 }
 0xa5c   :  { %13853 = vmatpush3.bf16.msra.mxu1 %v15584_v34  ;;  %v3226_v34 = vsel %vm22865_vm9, %v3164_v3, %v21314_v35  ;;  %v15631_v3 = vld [vmem:[#allocation5 + $0x9b0] sm:$0xff]   ;;  %vm22875_vm9 = vmmov %vm22855_vm1 }
 0xa5d   :  { %13839 = vmatpush3.bf16.msra.mxu0 %v15585_v8  ;;  %13854 = vmatprep.subr.bf16.mxu1 %v15586_v7  ;;  %v15614_v7 = vld [vmem:[#allocation5 + $0x960] sm:$0xff]   ;;  %v6486_v35 = vsel %vm20605_vm15, %v3226_v34, %v6294_v36 }
 0xa5e   :  { %13840 = vmatprep.subr.bf16.mxu0 %v15587_v9 }
 0xa5f   :  { %v5606_v46 = vpop.f32.mrb[72].mxu0 }
 0xa60   :  { %13855 = vmatpush3.bf16.msra.mxu1 %v15588_v40  ;;  %v5608_v17 = vpop.f32.mrb[73].mxu0  ;;  %v3256_v40 = vrot.slane %v22850_v49, 2 }
 0xa61   :  { %13841 = vmatpush3.bf16.msra.mxu0 %v15589_v58  ;;  %v5610_v20 = vpop.f32.mrb[74].mxu0  ;;  %13856 = vmatprep.subr.bf16.mxu1 %v15590_v44  ;;  %v15609_v44 = vld [vmem:[#allocation5 + $0x980] sm:$0xff]  }
 0xa62   :  { %v21334_v37 = vpack.c.bf16 %v5610_v20, %v5606_v46  ;;  %v5612_v52 = vpop.f32.mrb[75].mxu0  ;;  %13842 = vmatprep.subr.bf16.mxu0 %v15591_v18  ;;  %v15615_v18 = vld [vmem:[#allocation5 + $0x920] sm:$0xff]   ;;  %v3255_v20 = vrot.slane %v22849_v53, 2 }
 0xa63   :  { %v21336_v21 = vpack.c.bf16 %v5612_v52, %v5608_v17 }
 0xa64   :  { %13857 = vmatpush3.bf16.msra.mxu1 %v15592_v26  ;;  %v5940_v38 = vrot.slane %v21334_v37, 1  ;;  %v21342_v51 = vshrl.u32 %v21334_v37, 16  ;;  %v5954_v58 = vrot.slane %v21334_v37, 2  ;;  %v15618_v26 = vld [vmem:[#allocation5 + $0x968] sm:$0xff]  }
 0xa65   :  { %13843 = vmatpush3.bf16.msra.mxu0 %v15593_v27  ;;  %13858 = vmatprep.subr.bf16.mxu1 %v15594_v41  ;;  %v5941_v45 = vrot.slane %v21336_v21, 1  ;;  %v21355_v13 = vshrl.u32 %v21336_v21, 16  ;;  %v5955_v31 = vrot.slane %v21336_v21, 2  ;;  %v5969_v60 = vrot.slane %v21336_v21, 3  ;;  %v15613_v27 = vld [vmem:[#allocation5 + $0x988] sm:$0xff]   ;;  %v15616_v41 = vld [vmem:[#allocation5 + $0x9d0] sm:$0xff]  }
 0xa66   :  { %5942 = vrot.lane.b32.xlu1 %v5940_v38, %s16166_s17  ;;  %5933 = vrot.lane.b32.xlu0 %v21342_v51, %s16165_s29  ;;  %v5947_v4 = vrot.slane %v21342_v51, 1  ;;  %v3262_v38 = vrot.slane %v20850_v55, 2  ;;  %v5984_v36 = vrot.slane %v21342_v51, 4 }
 0xa67   :  { %13872 = vmatprep.subr.bf16.mxu0 %v15602_v25  ;;  %v15622_v25 = vld [vmem:[#allocation5 + $0x970] sm:$0xff]  }
 0xa68   :  { %11812 = vmatmul.mubr.bf16.vlgmr.msra.gmra.mrb[104].mxu0 %v6484_v15  ;;  %13859 = vmatpush3.bf16.msra.mxu1 %v15595_v61  ;;  %v5968_v61 = vrot.slane %v21334_v37, 3  ;;  %v15620_v15 = vld [vmem:[#allocation5 + $0x9d8] sm:$0xff]  }
 0xa69   :  { %13860 = vmatprep.subr.bf16.mxu1 %v15596_v24  ;;  %13873 = vmatpush3.bf16.msra.mxu0 %v15603_v14 }
 0xa6a   :  { %v13558_v22 = vpop.f32.mrb[108].mxu1  ;;  %5949 = vrot.lane.b32.xlu1 %v5947_v4, %s16167_s5  ;;  %5944 = vrot.lane.b32.xlu0 %v5941_v45, %s16166_s17 }
 0xa6b   :  { %v13559_v5 = vpop.f32.mrb[109].mxu1  ;;  %13874 = vmatprep.subr.bf16.mxu0 %v15604_v29  ;;  %v15623_v29 = vld [vmem:[#allocation5 + $0x930] sm:$0xff]  }
 0xa6c   :  { %v13560_v56 = vadd.f32 %v13559_v5, %v13558_v22  ;;  %13861 = vmatpush3.bf16.msra.mxu1 %v15597_v2  ;;  %v13561_v28 = vpop.f32.mrb[110].mxu1  ;;  %v15626_v2 = vld [vmem:[#allocation5 + $0x978] sm:$0xff]   ;;  %v15624_v5 = vld [vmem:[#allocation5 + $0x9e0] sm:$0xff]  }
 0xa6d   :  { %v13562_v57 = vpop.f32.mrb[111].mxu1  ;;  %13862 = vmatprep.subr.bf16.mxu1 %v15598_v11  ;;  %13875 = vmatpush3.bf16.msra.mxu0 %v15605_v10  ;;  %v3270_v11 = vrot.slane %v22850_v49, 3  ;;  %v3249_v10 = vrot.slane %v21368_v47, 1  ;;  %v15621_v22 = vld [vmem:[#allocation5 + $0x998] sm:$0xff]   ;;  %v5961_v28 = vrot.slane %v21342_v51, 2 }
 0xa6e   :  { %v21361_v0 = vadd.f32 %v13560_v56, %v21231_v19  ;;  %3250 = vrot.lane.b32.xlu1 %v3248_v39, %s16167_s5  ;;  %5935 = vrot.lane.b32.xlu0 %v21355_v13, %s16165_s29  ;;  %v15608_v19 = vld [vmem:[#allocation5 + $0x9c0] sm:$0xff]   ;;  %v3269_v39 = vrot.slane %v22849_v53, 3  ;;  %v15628_v57 = vld [vmem:[#allocation5 + $0x9e8] sm:$0xff]  }
 0xa6f   :  { %13876 = vmatprep.subr.bf16.mxu0 %v15606_v63  ;;  %v15627_v63 = vld [vmem:[#allocation5 + $0x938] sm:$0xff]   ;;  %v15632_v56 = vld [vmem:[#allocation5 + $0xa40] sm:$0xff]  }
 0xa70   :  { %13863 = vmatpush3.bf16.msra.mxu1 %v15599_v54  ;;  %v15625_v54 = vld [vmem:[#allocation5 + $0x9a0] sm:$0xff]  }
 0xa71   :  { %13864 = vmatprep.subr.bf16.mxu1 %v15600_v23  ;;  %13877 = vmatpush3.bf16.msra.mxu0 %v15607_v62  ;;  %v5975_v23 = vrot.slane %v21342_v51, 3  ;;  %v5948_v62 = vrot.slane %v21355_v13, 1 }
 0xa72   :  { %5958 = vrot.lane.b32.xlu1 %v5955_v31, %s16140_s27  ;;  %3236 = vrot.lane.b32.xlu0 %v21368_v47, %s16165_s29 }
 0xa73   :  { %v5616_v8 = vpop.f32.mrb[76].mxu0  ;;  %13878 = vmatprep.subr.bf16.mxu0 %v15610_v16 }
 0xa74   :  { %13865 = vmatpush3.bf16.msra.mxu1 %v15601_v48  ;;  %v5618_v9 = vpop.f32.mrb[77].mxu0 }
 0xa75   :  { %v5620_v6 = vpop.f32.mrb[78].mxu0  ;;  %13894 = vmatprep.subr.bf16.mxu1 %v15608_v19  ;;  %13879 = vmatpush3.bf16.msra.mxu0 %v15611_v33  ;;  %v3276_v19 = vrot.slane %v20850_v55, 3  ;;  %v5962_v33 = vrot.slane %v21355_v13, 2 }
 0xa76   :  { %v21382_v12 = vpack.c.bf16 %v5620_v6, %v5616_v8  ;;  %3259 = vrot.lane.b32.xlu1 %v3256_v40, %s16140_s27  ;;  %5956 = vrot.lane.b32.xlu0 %v5954_v58, %s16140_s27  ;;  %v5622_v46 = vpop.f32.mrb[79].mxu0  ;;  %v15634_v8 = vld [vmem:[#allocation5 + $0x9f8] sm:$0xff]   ;;  %v15638_v58 = vld [vmem:[#allocation5 + $0xac0] sm:$0xff]   ;;  %v3277_v6 = vrot.slane %v21368_v47, 3 }
 0xa77   :  { %11852 = vmatmul.mubr.bf16.vlgmr.msra.gmra.mrb[136].mxu1 %v6486_v35  ;;  %v21388_v17 = vpack.c.bf16 %v5622_v46, %v5618_v9  ;;  %13880 = vmatprep.subr.bf16.mxu0 %v15614_v7  ;;  %v3263_v9 = vrot.slane %v21368_v47, 2  ;;  %v15635_v40 = vld [vmem:[#allocation5 + $0x9b8] sm:$0xff]  }
 0xa78   :  { %13895 = vmatpush3.bf16.msra.mxu1 %v15609_v44  ;;  %v5991_v44 = vrot.slane %v21334_v37, 5 }
 0xa79   :  { %13896 = vmatprep.subr.bf16.mxu1 %v15612_v50  ;;  %13881 = vmatpush3.bf16.msra.mxu0 %v15615_v18  ;;  %v3287_v50 = vrot.slane %v20850_v55, 4  ;;  %v5976_v18 = vrot.slane %v21355_v13, 3 }
 0xa7a   :  { %5972 = vrot.lane.b32.xlu1 %v5969_v60, %s16169_s2  ;;  %3257 = vrot.lane.b32.xlu0 %v3255_v20, %s16140_s27  ;;  %v5985_v60 = vrot.slane %v21355_v13, 4 }
 0xa7b   :  { %v13580_v52 = vpop.f32.mrb[80].mxu0  ;;  %13882 = vmatprep.subr.bf16.mxu0 %v15618_v26  ;;  %v3294_v26 = vrot.slane %v22849_v53, 5 }
 0xa7c   :  { %v13581_v42 = vpop.f32.mrb[81].mxu0  ;;  %13897 = vmatpush3.bf16.msra.mxu1 %v15613_v27 }
 0xa7d   :  { %v13582_v24 = vadd.f32 %v13581_v42, %v13580_v52  ;;  %v13583_v14 = vpop.f32.mrb[82].mxu0  ;;  %13898 = vmatprep.subr.bf16.mxu1 %v15616_v41  ;;  %13883 = vmatpush3.bf16.msra.mxu0 %v15619_v43  ;;  %v6005_v52 = vrot.slane %v21334_v37, 6  ;;  %v3302_v42 = vrot.slane %v21368_v47, 5 }
 0xa7e   :  { %3264 = vrot.lane.b32.xlu1 %v3262_v38, %s16168_s20  ;;  %5970 = vrot.lane.b32.xlu0 %v5968_v61, %s16169_s2  ;;  %v13584_v4 = vpop.f32.mrb[83].mxu0  ;;  %v5998_v38 = vrot.slane %v21342_v51, 5  ;;  %v3308_v61 = vrot.slane %v22849_v53, 6 }
 0xa7f   :  { %v11334_v45 = vadd.f32 %v13582_v24, %v21361_v0  ;;  %13884 = vmatprep.subr.bf16.mxu0 %v15622_v25  ;;  %v15630_v0 = vld [vmem:[#allocation5 + $0x9f0] sm:$0xff]   ;;  %v3288_v25 = vrot.slane %v21368_v47, 4  ;;  %v6019_v4 = vrot.slane %v21334_v37, 7 }
 0xa80   :  { %13899 = vmatpush3.bf16.msra.mxu1 %v15617_v32  ;;  %v5992_v32 = vrot.slane %v21336_v21, 5 }
 0xa81   :  { %13900 = vmatprep.subr.bf16.mxu1 %v15620_v15  ;;  %13885 = vmatpush3.bf16.msra.mxu0 %v15623_v29 }
 0xa82   :  { %3273 = vrot.lane.b32.xlu1 %v3270_v11, %s16169_s2  ;;  %3252 = vrot.lane.b32.xlu0 %v3249_v10, %s16167_s5  ;;  %v3316_v10 = vrot.slane %v21368_v47, 6 }
 0xa83   :  { %13886 = vmatprep.subr.bf16.mxu0 %v15626_v2 }
 0xa84   :  { %13901 = vmatpush3.bf16.msra.mxu1 %v15621_v22  ;;  %v6012_v22 = vrot.slane %v21342_v51, 6 }
 0xa85   :  { %13902 = vmatprep.subr.bf16.mxu1 %v15624_v5  ;;  %13887 = vmatpush3.bf16.msra.mxu0 %v15627_v63  ;;  %v5999_v5 = vrot.slane %v21355_v13, 5  ;;  %v3295_v63 = vrot.slane %v22850_v49, 5 }
 0xa86   :  { %5963 = vrot.lane.b32.xlu1 %v5961_v28, %s16168_s20  ;;  %3271 = vrot.lane.b32.xlu0 %v3269_v39, %s16169_s2  ;;  %v6006_v28 = vrot.slane %v21336_v21, 6 }
 0xa87   :  { %13916 = vmatprep.subr.bf16.mxu0 %v15632_v56  ;;  %v6013_v56 = vrot.slane %v21355_v13, 6 }
 0xa88   :  { %13903 = vmatpush3.bf16.msra.mxu1 %v15625_v54 }
 0xa89   :  { %13904 = vmatprep.subr.bf16.mxu1 %v15628_v57  ;;  %v3322_v57 = vrot.slane %v22849_v53, 7 }
 0xa8a   :  { %v13602_v16 = vpop.f32.mrb[112].mxu1  ;;  %5977 = vrot.lane.b32.xlu1 %v5975_v23, %s16162_s23  ;;  %5951 = vrot.lane.b32.xlu0 %v5948_v62, %s16167_s5  ;;  %v3315_v23 = vrot.slane %v20850_v55, 6 }
 0xa8b   :  { %v13603_v31 = vpop.f32.mrb[113].mxu1 }
 0xa8c   :  { %v13604_v48 = vadd.f32 %v13603_v31, %v13602_v16  ;;  %v13605_v1 = vpop.f32.mrb[114].mxu1  ;;  %13905 = vmatpush3.bf16.msra.mxu1 %v15629_v30  ;;  %v6026_v31 = vrot.slane %v21342_v51, 7 }
 0xa8d   :  { %v13606_v34 = vpop.f32.mrb[115].mxu1  ;;  %13906 = vmatprep.subr.bf16.mxu1 %v15630_v0  ;;  %v3323_v1 = vrot.slane %v22850_v49, 7 }
 0xa8e   :  { %v11374_v7 = vadd.f32 %v13604_v48, %v11334_v45  ;;  %3278 = vrot.lane.b32.xlu1 %v3276_v19, %s16162_s23  ;;  %5965 = vrot.lane.b32.xlu0 %v5962_v33, %s16168_s20  ;;  %v3301_v45 = vrot.slane %v20850_v55, 5  ;;  %v3309_v48 = vrot.slane %v22850_v49, 6  ;;  %v6020_v19 = vrot.slane %v21336_v21, 7 }
 0xa8f   :  { %v3330_v33 = vrot.slane %v21368_v47, 7  ;;  %v22867_v47 = vld [vmem:[#allocation63_spill] sm:$0xff] }
 0xa90   :  { %13907 = vmatpush3.bf16.msra.mxu1 %v15631_v3  ;;  %v3329_v3 = vrot.slane %v20850_v55, 7  ;;  %v21485_v55 = vshrl.u32 %v21382_v12, 16 }
 0xa91   :  { %13908 = vmatprep.subr.bf16.mxu1 %v15634_v8 }
 0xa92   :  { %5986 = vrot.lane.b32.xlu1 %v5984_v36, %s16165_s29  ;;  %3266 = vrot.lane.b32.xlu0 %v3263_v9, %s16168_s20  ;;  %v22866_v36 = vld [vmem:[#allocation65_spill] sm:$0xff] }
 0xa93   :  { %v21476_v9 = vshrl.u32 %v22866_v36, 16 }
 0xa94   :  { %13909 = vmatpush3.bf16.msra.mxu1 %v15635_v40  ;;  %v6027_v40 = vrot.slane %v21355_v13, 7 }
 0xa95   :  { %13938 = vmatprep.subr.bf16.mxu1 %v15638_v58 }
 0xa96   :  { %5993 = vrot.lane.b32.xlu1 %v5991_v44, %s16166_s17  ;;  %3280 = vrot.lane.b32.xlu0 %v3277_v6, %s16162_s23  ;;  %v21479_v44 = vpop.permute.xlu1 %3234 }
 0xa9a   :  { %3289 = vrot.lane.b32.xlu1 %v3287_v50, %s16165_s29  ;;  %5979 = vrot.lane.b32.xlu0 %v5976_v18, %s16162_s23  ;;  %v3406_v50 = vrot.slane %v22867_v47, 1  ;;  %v3246_v13 = vpop.permute.xlu1 %3245  ;;  %v21491_v18 = vpop.permute.xlu0 %3243 }
 0xa9b   :  { %v13624_v35 = vpop.f32.mrb[84].mxu0 }
 0xa9c   :  { %v13625_v46 = vpop.f32.mrb[85].mxu0 }
 0xa9d   :  { %v13626_v20 = vadd.f32 %v13625_v46, %v13624_v35  ;;  %v13627_v27 = vpop.f32.mrb[86].mxu0  ;;  %v3405_v35 = vrot.slane %v22866_v36, 1  ;;  %v3412_v46 = vrot.slane %v21476_v9, 1 }
 0xa9e   :  { %v13628_v41 = vpop.f32.mrb[87].mxu0  ;;  %3296 = vrot.lane.b32.xlu1 %v3294_v26, %s16166_s17  ;;  %5988 = vrot.lane.b32.xlu0 %v5985_v60, %s16165_s29  ;;  %v21499_v27 = vshrl.u32 %v22867_v47, 16 }
 0xa9f   :  { %v11414_v43 = vadd.f32 %v13626_v20, %v11374_v7  ;;  %v3420_v20 = vrot.slane %v22867_v47, 2 }
 0xaa2   :  { %6007 = vrot.lane.b32.xlu1 %v6005_v52, %s16140_s27  ;;  %3291 = vrot.lane.b32.xlu0 %v3288_v25, %s16165_s29  ;;  %v3338_v25 = vsel %vm2898_vm13, %v22850_v49, %v21479_v44 }
 0xaa6   :  { %3305 = vrot.lane.b32.xlu1 %v3302_v42, %s16167_s5  ;;  %6000 = vrot.lane.b32.xlu0 %v5998_v38, %s16167_s5  ;;  %v15633_v38 = vld [vmem:[#allocation5 + $0xa00] sm:$0xff]  }
 0xaaa   :  { %v13646_v24 = vpop.f32.mrb[116].mxu1  ;;  %3310 = vrot.lane.b32.xlu1 %v3308_v61, %s16140_s27  ;;  %5995 = vrot.lane.b32.xlu0 %v5992_v32, %s16166_s17 }
 0xaab   :  { %v13647_v14 = vpop.f32.mrb[117].mxu1 }
 0xaac   :  { %v13648_v15 = vadd.f32 %v13647_v14, %v13646_v24  ;;  %v13649_v29 = vpop.f32.mrb[118].mxu1  ;;  %v6088_v14 = vrot.slane %v21388_v17, 1 }
 0xaad   :  { %v13650_v2 = vpop.f32.mrb[119].mxu1 }
 0xaae   :  { %v11454_v11 = vadd.f32 %v13648_v15, %v11414_v43  ;;  %6021 = vrot.lane.b32.xlu1 %v6019_v4, %s16169_s2  ;;  %3303 = vrot.lane.b32.xlu0 %v3301_v45, %s16167_s5  ;;  %v6299_v43 = vshll.u32 %v21334_v37, 16  ;;  %v15636_v15 = vld [vmem:[#allocation5 + $0xa48] sm:$0xff]  }
 0xab0   :  { %v6488_v2 = vsel %vm20605_vm15, %v22849_v53, %v6299_v43  ;;  %v15646_v43 = vld [vmem:[#allocation5 + $0xad0] sm:$0xff]  }
 0xab2   :  { %3319 = vrot.lane.b32.xlu1 %v3316_v10, %s16168_s20  ;;  %6014 = vrot.lane.b32.xlu0 %v6012_v22, %s16168_s20 }
 0xab6   :  { %6002 = vrot.lane.b32.xlu1 %v5999_v5, %s16167_s5  ;;  %3298 = vrot.lane.b32.xlu0 %v3295_v63, %s16166_s17 }
 0xaba   :  { %6016 = vrot.lane.b32.xlu1 %v6013_v56, %s16168_s20  ;;  %6009 = vrot.lane.b32.xlu0 %v6006_v28, %s16140_s27  ;;  %v3247_v56 = vsel %vm1067_vm11, %v21491_v18, %v3246_v13 }
 0xabb   :  { %v13668_v39 = vpop.f32.mrb[88].mxu0 }
 0xabc   :  { %v13669_v54 = vpop.f32.mrb[89].mxu0 }
 0xabd   :  { %v13670_v62 = vadd.f32 %v13669_v54, %v13668_v39  ;;  %v13671_v30 = vpop.f32.mrb[90].mxu0  ;;  %v6102_v54 = vrot.slane %v21388_v17, 2 }
 0xabe   :  { %v13672_v0 = vpop.f32.mrb[91].mxu0  ;;  %3324 = vrot.lane.b32.xlu1 %v3322_v57, %s16169_s2  ;;  %3317 = vrot.lane.b32.xlu0 %v3315_v23, %s16168_s20  ;;  %v15637_v57 = vld [vmem:[#allocation5 + $0xa08] sm:$0xff]   ;;  %v6087_v30 = vrot.slane %v21382_v12, 1 }
 0xabf   :  { %v11494_v16 = vadd.f32 %v13670_v62, %v11454_v11  ;;  %v3419_v11 = vrot.slane %v22866_v36, 2  ;;  %v15640_v0 = vld [vmem:[#allocation5 + $0xa50] sm:$0xff]  }
 0xac2   :  { %6028 = vrot.lane.b32.xlu1 %v6026_v31, %s16162_s23  ;;  %3312 = vrot.lane.b32.xlu0 %v3309_v48, %s16140_s27 }
 0xac6   :  { %3326 = vrot.lane.b32.xlu1 %v3323_v1, %s16169_s2  ;;  %6023 = vrot.lane.b32.xlu0 %v6020_v19, %s16169_s2  ;;  %v6094_v19 = vrot.slane %v21485_v55, 1 }
 0xaca   :  { %v13690_v34 = vpop.f32.mrb[120].mxu1  ;;  %3333 = vrot.lane.b32.xlu1 %v3330_v33, %s16162_s23  ;;  %3331 = vrot.lane.b32.xlu0 %v3329_v3, %s16162_s23  ;;  %v15641_v33 = vld [vmem:[#allocation5 + $0xa10] sm:$0xff]  }
 0xacb   :  { %v13691_v51 = vpop.f32.mrb[121].mxu1 }
 0xacc   :  { %v13692_v8 = vadd.f32 %v13691_v51, %v13690_v34  ;;  %v13693_v7 = vpop.f32.mrb[122].mxu1  ;;  %v6101_v34 = vrot.slane %v21382_v12, 2  ;;  %v15644_v51 = vld [vmem:[#allocation5 + $0xa58] sm:$0xff]  }
 0xacd   :  { %v13694_v58 = vpop.f32.mrb[123].mxu1 }
 0xace   :  { %v11534_v6 = vadd.f32 %v13692_v8, %v11494_v16  ;;  %3398 = vrot.lane.b32.xlu1 %v21476_v9, %s16165_s29  ;;  %6030 = vrot.lane.b32.xlu0 %v6027_v40, %s16162_s23  ;;  %v15639_v40 = vld [vmem:[#allocation5 + $0xa80] sm:$0xff]  }
 0xad2   :  { %6080 = vrot.lane.b32.xlu0 %v21485_v55, %s16165_s29  ;;  %3409 = vrot.lane.b32.xlu1 %v3406_v50, %s16166_s17 }
 0xad6   :  { %3407 = vrot.lane.b32.xlu0 %v3405_v35, %s16166_s17  ;;  %3414 = vrot.lane.b32.xlu1 %v3412_v46, %s16167_s5  ;;  %v6108_v35 = vrot.slane %v21485_v55, 2  ;;  %v15645_v46 = vld [vmem:[#allocation5 + $0xa18] sm:$0xff]  }
 0xad8   :  { %v5943_v26 = vpop.permute.xlu1 %5942  ;;  %v5934_v60 = vpop.permute.xlu0 %5933 }
 0xad9   :  { %v6034_v41 = vsel %vm2898_vm13, %v21336_v21, %v5934_v60 }
 0xada   :  { %v6301_v52 = vshll.u32 %v6034_v41, 16  ;;  %3423 = vrot.lane.b32.xlu1 %v3420_v20, %s16140_s27  ;;  %3400 = vrot.lane.b32.xlu0 %v21499_v27, %s16165_s29  ;;  %v15643_v20 = vld [vmem:[#allocation5 + $0xa88] sm:$0xff]  }
 0xadb   :  { %v13712_v42 = vpop.f32.mrb[92].mxu0 }
 0xadc   :  { %v13713_v61 = vpop.f32.mrb[93].mxu0  ;;  %v21510_v32 = vpop.permute.xlu1 %5949  ;;  %v6489_v24 = vsel %vm20605_vm15, %v3338_v25, %v6301_v52 }
 0xadd   :  { %v13714_v29 = vadd.f32 %v13713_v61, %v13712_v42  ;;  %v5945_v4 = vpop.permute.xlu0 %5944  ;;  %v13715_v45 = vpop.f32.mrb[94].mxu0  ;;  %11891 = vmatprep.mubr.bf16.mxu0 %v6489_v24  ;;  %v15649_v61 = vld [vmem:[#allocation5 + $0xa20] sm:$0xff]  }
 0xade   :  { %v5946_v10 = vsel %vm1067_vm11, %v5943_v26, %v5945_v4  ;;  %v13716_v22 = vpop.f32.mrb[95].mxu0  ;;  %11892 = vmatmul.mubr.bf16.vlgmr.msra.gmra.mrb[108].mxu0 %v6488_v2  ;;  %6091 = vrot.lane.b32.xlu1 %v6088_v14, %s16166_s17  ;;  %v15647_v45 = vld [vmem:[#allocation5 + $0xa90] sm:$0xff]   ;;  %v15650_v2 = vld [vmem:[#allocation5 + $0xad8] sm:$0xff]  }
 0xadf   :  { %v21521_v5 = vadd.f32 %v13714_v29, %v11534_v6  ;;  %v6040_v63 = vsel %vm2916_vm0, %v5946_v10, %v21510_v32  ;;  %3421 = vrot.lane.b32.xlu0 %v3419_v11, %s16140_s27  ;;  %13917 = vmatpush3.bf16.msra.mxu0 %v15633_v38  ;;  %v15642_v6 = vld [vmem:[#allocation5 + $0xac8] sm:$0xff]   ;;  %v3426_v38 = vrot.slane %v21476_v9, 2  ;;  %v6116_v10 = vrot.slane %v21388_v17, 3 }
 0xae0   :  { %v6305_v28 = vshll.u32 %v6040_v63, 16  ;;  %v21528_v39 = vpop.permute.xlu1 %3250  ;;  %13918 = vmatprep.subr.bf16.mxu0 %v15636_v15  ;;  %v15652_v29 = vld [vmem:[#allocation5 + $0xa68] sm:$0xff]  }
 0xae1   :  { %v3346_v23 = vsel %vm2916_vm0, %v3247_v56, %v21528_v39  ;;  %v5936_v62 = vpop.permute.xlu0 %5935  ;;  %v15653_v22 = vld [vmem:[#allocation5 + $0xa28] sm:$0xff]   ;;  %v3413_v56 = vrot.slane %v21499_v27, 1 }
 0xae2   :  { %v5937_v16 = vsel %vm2898_vm13, %v5934_v60, %v5936_v62  ;;  %6105 = vrot.lane.b32.xlu1 %v6102_v54, %s16140_s27  ;;  %v6491_v31 = vsel %vm20605_vm15, %v3346_v23, %v6305_v28  ;;  %v15651_v28 = vld [vmem:[#allocation5 + $0xa98] sm:$0xff]   ;;  %v15654_v54 = vld [vmem:[#allocation5 + $0xae0] sm:$0xff]   ;;  %v6122_v23 = vrot.slane %v21485_v55, 3  ;;  %v15657_v62 = vld [vmem:[#allocation5 + $0xa30] sm:$0xff]  }
 0xae3   :  { %v6037_v48 = vsel %vm1067_vm11, %v5937_v16, %v5943_v26  ;;  %6089 = vrot.lane.b32.xlu0 %v6087_v30, %s16166_s17  ;;  %11931 = vmatprep.mubr.bf16.mxu1 %v6491_v31  ;;  %v21558_v26 = vshrl.u32 %v21388_v17, 16  ;;  %v15660_v16 = vld [vmem:[#allocation5 + $0xa78] sm:$0xff]   ;;  %v15655_v31 = vld [vmem:[#allocation5 + $0xaa0] sm:$0xff]  }
 0xae4   :  { %v21540_v1 = vpop.permute.xlu1 %5958  ;;  %13919 = vmatpush3.bf16.msra.mxu0 %v15637_v57  ;;  %v6303_v8 = vshll.u32 %v6037_v48, 16  ;;  %v15658_v48 = vld [vmem:[#allocation5 + $0xae8] sm:$0xff]  }
 0xae5   :  { %v3237_v3 = vpop.permute.xlu0 %3236  ;;  %13920 = vmatprep.subr.bf16.mxu0 %v15640_v0  ;;  %v6095_v15 = vrot.slane %v21558_v26, 1  ;;  %v6115_v0 = vrot.slane %v21382_v12, 3 }
 0xae6   :  { %v3238_v7 = vsel %vm2898_vm13, %v21479_v44, %v3237_v3  ;;  %6096 = vrot.lane.b32.xlu1 %v6094_v19, %s16167_s5  ;;  %v3434_v3 = vrot.slane %v22867_v47, 3 }
 0xae7   :  { %v3342_v58 = vsel %vm1067_vm11, %v3238_v7, %v21491_v18  ;;  %6103 = vrot.lane.b32.xlu0 %v6101_v34, %s16140_s27  ;;  %v15648_v18 = vld [vmem:[#allocation5 + $0xa60] sm:$0xff]   ;;  %v15661_v34 = vld [vmem:[#allocation5 + $0xa38] sm:$0xff]   ;;  %v3433_v7 = vrot.slane %v22866_v36, 3 }
 0xae8   :  { %v21550_v50 = vpop.permute.xlu1 %3259  ;;  %v6490_v13 = vsel %vm20605_vm15, %v3342_v58, %v6303_v8  ;;  %13921 = vmatpush3.bf16.msra.mxu0 %v15641_v33 }
 0xae9   :  { %11932 = vmatmul.mubr.bf16.vlgmr.msra.gmra.mrb[140].mxu1 %v6490_v13  ;;  %v21555_v44 = vpop.permute.xlu0 %5956  ;;  %13922 = vmatprep.subr.bf16.mxu0 %v15644_v51 }
 0xaea   :  { %13939 = vmatpush3.bf16.msra.mxu1 %v15639_v40  ;;  %v13734_v60 = vpop.f32.mrb[124].mxu1  ;;  %6110 = vrot.lane.b32.xlu1 %v6108_v35, %s16168_s20  ;;  %v5960_v19 = vsel %vm2924_vm12, %v21555_v44, %v21540_v1  ;;  %v15664_v40 = vld [vmem:[#allocation5 + $0xb40] sm:$0xff]   ;;  %v15659_v1 = vld [vmem:[#allocation5 + $0xaa8] sm:$0xff]  }
 0xaeb   :  { %v13735_v41 = vpop.f32.mrb[125].mxu1  ;;  %6082 = vrot.lane.b32.xlu0 %v21558_v26, %s16165_s29  ;;  %13940 = vmatprep.subr.bf16.mxu1 %v15642_v6 }
 0xaec   :  { %v13736_v52 = vadd.f32 %v13735_v41, %v13734_v60  ;;  %v13737_v25 = vpop.f32.mrb[126].mxu1  ;;  %v21563_v42 = vpop.permute.xlu1 %5972  ;;  %13923 = vmatpush3.bf16.msra.mxu0 %v15645_v46  ;;  %v15662_v46 = vld [vmem:[#allocation5 + $0xaf0] sm:$0xff]   ;;  %v3440_v41 = vrot.slane %v21476_v9, 3 }
 0xaed   :  { %v13738_v24 = vpop.f32.mrb[127].mxu1  ;;  %v21566_v14 = vpop.permute.xlu0 %3257  ;;  %13924 = vmatprep.subr.bf16.mxu0 %v15648_v18 }
 0xaee   :  { %v21570_v4 = vadd.f32 %v13736_v52, %v21521_v5  ;;  %13941 = vmatpush3.bf16.msra.mxu1 %v15643_v20  ;;  %3428 = vrot.lane.b32.xlu1 %v3426_v38, %s16168_s20  ;;  %v15656_v5 = vld [vmem:[#allocation5 + $0xa70] sm:$0xff]   ;;  %v3261_v58 = vsel %vm2924_vm12, %v21566_v14, %v21550_v50 }
 0xaef   :  { %6098 = vrot.lane.b32.xlu0 %v6095_v15, %s16167_s5  ;;  %13942 = vmatprep.subr.bf16.mxu1 %v15646_v43  ;;  %v5982_v43 = vrot.slane %v21334_v37, 4  ;;  %v15663_v37 = vld [vmem:[#allocation5 + $0xab0] sm:$0xff]  }
 0xaf0   :  { %v21574_v11 = vpop.permute.xlu1 %3264  ;;  %13925 = vmatpush3.bf16.msra.mxu0 %v15649_v61 }
 0xaf1   :  { %v21577_v63 = vpop.permute.xlu0 %5970  ;;  %13926 = vmatprep.subr.bf16.mxu0 %v15652_v29  ;;  %v3354_v13 = vsel %vm2932_vm2, %v3261_v58, %v21574_v11 }
 0xaf2   :  { %13943 = vmatpush3.bf16.msra.mxu1 %v15647_v45  ;;  %6119 = vrot.lane.b32.xlu1 %v6116_v10, %s16169_s2  ;;  %v5974_v18 = vsel %vm2940_vm4, %v21577_v63, %v21563_v42  ;;  %v3427_v42 = vrot.slane %v21499_v27, 2  ;;  %v3441_v10 = vrot.slane %v21499_v27, 3 }
 0xaf3   :  { %3416 = vrot.lane.b32.xlu0 %v3413_v56, %s16167_s5  ;;  %13944 = vmatprep.subr.bf16.mxu1 %v15650_v2 }
 0xaf4   :  { %v3274_v57 = vpop.permute.xlu1 %3273  ;;  %13927 = vmatpush3.bf16.msra.mxu0 %v15653_v22 }
 0xaf5   :  { %v3253_v30 = vpop.permute.xlu0 %3252  ;;  %13928 = vmatprep.subr.bf16.mxu0 %v15656_v5  ;;  %v15665_v5 = vld [vmem:[#allocation5 + $0xb00] sm:$0xff]  }
 0xaf6   :  { %13945 = vmatpush3.bf16.msra.mxu1 %v15651_v28  ;;  %6124 = vrot.lane.b32.xlu1 %v6122_v23, %s16162_s23  ;;  %v3254_v24 = vsel %vm2916_vm0, %v21528_v39, %v3253_v30  ;;  %v15666_v28 = vld [vmem:[#allocation5 + $0xaf8] sm:$0xff]  }
 0xaf7   :  { %6117 = vrot.lane.b32.xlu0 %v6115_v0, %s16169_s2  ;;  %13946 = vmatprep.subr.bf16.mxu1 %v15654_v54  ;;  %v6319_v54 = vshll.u32 %v5982_v43, 16  ;;  %v15675_v43 = vld [vmem:[#allocation5 + $0xb88] sm:$0xff]  }
 0xaf8   :  { %v5964_v33 = vpop.permute.xlu1 %5963  ;;  %13929 = vmatpush3.bf16.msra.mxu0 %v15657_v62  ;;  %v6109_v62 = vrot.slane %v21558_v26, 2 }
 0xaf9   :  { %v6046_v51 = vsel %vm2932_vm2, %v5960_v19, %v5964_v33  ;;  %v21591_v8 = vpop.permute.xlu0 %3271  ;;  %13930 = vmatprep.subr.bf16.mxu0 %v15660_v16  ;;  %v3284_v16 = vrot.slane %v22849_v53, 4 }
 0xafa   :  { %v6309_v6 = vshll.u32 %v6046_v51, 16  ;;  %13947 = vmatpush3.bf16.msra.mxu1 %v15655_v31  ;;  %3437 = vrot.lane.b32.xlu1 %v3434_v3, %s16169_s2  ;;  %v3275_v39 = vsel %vm2940_vm4, %v21591_v8, %v3274_v57  ;;  %v15668_v31 = vld [vmem:[#allocation5 + $0xb48] sm:$0xff]   ;;  %v3451_v51 = vrot.slane %v21476_v9, 4 }
 0xafb   :  { %v13756_v35 = vpop.f32.mrb[96].mxu0  ;;  %3435 = vrot.lane.b32.xlu0 %v3433_v7, %s16169_s2  ;;  %13948 = vmatprep.subr.bf16.mxu1 %v15658_v48  ;;  %v6497_v19 = vsel %vm20605_vm15, %v3284_v16, %v6319_v54  ;;  %v15669_v3 = vld [vmem:[#allocation5 + $0xb08] sm:$0xff]   ;;  %v6123_v7 = vrot.slane %v21558_v26, 3  ;;  %v15686_v16 = vld [vmem:[#allocation5 + $0xbe0] sm:$0xff]  }
 0xafc   :  { %v13757_v60 = vpop.f32.mrb[97].mxu0  ;;  %v21604_v20 = vpop.permute.xlu1 %5977  ;;  %v6493_v50 = vsel %vm20605_vm15, %v3354_v13, %v6309_v6  ;;  %13931 = vmatpush3.bf16.msra.mxu0 %v15661_v34  ;;  %v15670_v34 = vld [vmem:[#allocation5 + $0xbc0] sm:$0xff]  }
 0xafd   :  { %v13758_v52 = vadd.f32 %v13757_v60, %v13756_v35  ;;  %v6052_v25 = vsel %vm22868_vm3, %v5974_v18, %v21604_v20  ;;  %v5952_v38 = vpop.permute.xlu0 %5951  ;;  %v13759_v61 = vpop.f32.mrb[98].mxu0  ;;  %11971 = vmatprep.mubr.bf16.mxu0 %v6493_v50  ;;  %13960 = vmatprep.subr.bf16.mxu0 %v15664_v40  ;;  %v15671_v6 = vld [vmem:[#allocation5 + $0xb80] sm:$0xff]   ;;  %v15674_v18 = vld [vmem:[#allocation5 + $0xbc8] sm:$0xff]   ;;  %v6145_v60 = vrot.slane %v21485_v55, 5  ;;  %v15676_v50 = vld [vmem:[#allocation5 + $0xb58] sm:$0xff]  }
 0xafe   :  { %13949 = vmatpush3.bf16.msra.mxu1 %v15659_v1  ;;  %v5953_v15 = vsel %vm2916_vm0, %v21510_v32, %v5952_v38  ;;  %v13760_v29 = vpop.f32.mrb[99].mxu0  ;;  %3442 = vrot.lane.b32.xlu1 %v3440_v41, %s16162_s23  ;;  %v6313_v22 = vshll.u32 %v6052_v25, 16  ;;  %vm22876_vm3 = vmmov %vm22855_vm1 }
 0xaff   :  { %v21619_v45 = vadd.f32 %v13758_v52, %v21570_v4  ;;  %v6043_v2 = vsel %vm2924_vm12, %v5953_v15, %v21555_v44  ;;  %3430 = vrot.lane.b32.xlu0 %v3427_v42, %s16168_s20  ;;  %13950 = vmatprep.subr.bf16.mxu1 %v15662_v46  ;;  %v3350_v4 = vsel %vm2924_vm12, %v3254_v24, %v21566_v14  ;;  %v15667_v14 = vld [vmem:[#allocation5 + $0xab8] sm:$0xff]   ;;  %v15673_v46 = vld [vmem:[#allocation5 + $0xb10] sm:$0xff]  }
 0xb00   :  { %v6307_v32 = vshll.u32 %v6043_v2, 16  ;;  %v21627_v56 = vpop.permute.xlu1 %3278  ;;  %v15677_v42 = vld [vmem:[#allocation5 + $0xb18] sm:$0xff]   ;;  %v15678_v24 = vld [vmem:[#allocation5 + $0xbd0] sm:$0xff]   ;;  %v6138_v2 = vrot.slane %v21382_v12, 5 }
 0xb01   :  { %v3362_v44 = vsel %vm22869_vm10, %v3275_v39, %v21627_v56  ;;  %v5966_v23 = vpop.permute.xlu0 %5965  ;;  %vm22877_vm10 = vmmov %vm22855_vm1 }
 0xb02   :  { %13951 = vmatpush3.bf16.msra.mxu1 %v15663_v37  ;;  %v5967_v30 = vsel %vm2932_vm2, %v5964_v33, %v5966_v23  ;;  %v6492_v57 = vsel %vm20605_vm15, %v3350_v4, %v6307_v32  ;;  %3444 = vrot.lane.b32.xlu1 %v3441_v10, %s16162_s23  ;;  %v6495_v0 = vsel %vm20605_vm15, %v3362_v44, %v6313_v22  ;;  %v3458_v37 = vrot.slane %v22866_v36, 5  ;;  %v15680_v10 = vld [vmem:[#allocation5 + $0xb60] sm:$0xff]   ;;  %v15679_v22 = vld [vmem:[#allocation5 + $0xb90] sm:$0xff]  }
 0xb03   :  { %v6049_v48 = vsel %vm2940_vm4, %v5967_v30, %v21577_v63  ;;  %11972 = vmatmul.mubr.bf16.vlgmr.msra.gmra.mrb[112].mxu0 %v6492_v57  ;;  %6112 = vrot.lane.b32.xlu0 %v6109_v62, %s16168_s20  ;;  %v15672_v63 = vld [vmem:[#allocation5 + $0xb50] sm:$0xff]   ;;  %v6152_v4 = vrot.slane %v21382_v12, 6  ;;  %v3452_v44 = vrot.slane %v21499_v27, 4  ;;  %v15683_v62 = vld [vmem:[#allocation5 + $0xb98] sm:$0xff]  }
 0xb04   :  { %13961 = vmatpush3.bf16.msra.mxu0 %v15665_v5  ;;  %13952 = vmatprep.subr.bf16.mxu1 %v15666_v28  ;;  %v21646_v33 = vpop.permute.xlu1 %5986  ;;  %v6311_v40 = vshll.u32 %v6049_v48, 16  ;;  %v15681_v5 = vld [vmem:[#allocation5 + $0xb20] sm:$0xff]   ;;  %v15682_v28 = vld [vmem:[#allocation5 + $0xbd8] sm:$0xff]   ;;  %v6139_v48 = vrot.slane %v21388_v17, 5 }
 0xb05   :  { %12011 = vmatprep.mubr.bf16.mxu1 %v6495_v0  ;;  %12051 = vmatprep.mubr.bf16.mxu0 %v6497_v19  ;;  %v3267_v53 = vpop.permute.xlu0 %3266  ;;  %v15685_v0 = vld [vmem:[#allocation5 + $0xb28] sm:$0xff]   ;;  %v15688_v19 = vld [vmem:[#allocation5 + $0xb70] sm:$0xff]  }
 0xb06   :  { %13953 = vmatpush3.bf16.msra.mxu1 %v15667_v14  ;;  %v3268_v58 = vsel %vm2932_vm2, %v21574_v11, %v3267_v53  ;;  %13962 = vmatprep.subr.bf16.mxu0 %v15668_v31  ;;  %v6132_v31 = vrot.slane %v21558_v26, 4  ;;  %v15687_v53 = vld [vmem:[#allocation5 + $0xba0] sm:$0xff]  }
 0xb07   :  { %v3358_v1 = vsel %vm2940_vm4, %v3268_v58, %v21591_v8  ;;  %3453 = vrot.lane.b32.xlu1 %v3451_v51, %s16165_s29  ;;  %6126 = vrot.lane.b32.xlu0 %v6123_v7, %s16162_s23  ;;  %v6131_v8 = vrot.slane %v21485_v55, 4  ;;  %v15690_v58 = vld [vmem:[#allocation5 + $0xbe8] sm:$0xff]  }
 0xb08   :  { %13963 = vmatpush3.bf16.msra.mxu0 %v15669_v3  ;;  %13982 = vmatprep.subr.bf16.mxu1 %v15670_v34  ;;  %v21656_v13 = vpop.permute.xlu1 %5993  ;;  %v6494_v35 = vsel %vm20605_vm15, %v3358_v1, %v6311_v40  ;;  %v15689_v40 = vld [vmem:[#allocation5 + $0xb30] sm:$0xff]   ;;  %v3466_v1 = vrot.slane %v21499_v27, 5 }
 0xb09   :  { %12012 = vmatmul.mubr.bf16.vlgmr.msra.gmra.mrb[144].mxu1 %v6494_v35  ;;  %v21660_v11 = vpop.permute.xlu0 %3280  ;;  %13964 = vmatprep.subr.bf16.mxu0 %v15672_v63  ;;  %v3465_v35 = vrot.slane %v21476_v9, 5 }
 0xb0a   :  { %13983 = vmatpush3.bf16.msra.mxu1 %v15671_v6  ;;  %v13778_v41 = vpop.f32.mrb[128].mxu1 }
 0xb0b   :  { %v13779_v52 = vpop.f32.mrb[129].mxu1  ;;  %6147 = vrot.lane.b32.xlu1 %v6145_v60, %s16167_s5  ;;  %6133 = vrot.lane.b32.xlu0 %v6131_v8, %s16165_s29 }
 0xb0c   :  { %v13780_v25 = vadd.f32 %v13779_v52, %v13778_v41  ;;  %13965 = vmatpush3.bf16.msra.mxu0 %v15673_v46  ;;  %v13781_v38 = vpop.f32.mrb[130].mxu1  ;;  %13984 = vmatprep.subr.bf16.mxu1 %v15674_v18  ;;  %v21666_v61 = vpop.permute.xlu1 %3289  ;;  %v15692_v46 = vld [vmem:[#allocation5 + $0xb78] sm:$0xff]   ;;  %v15691_v18 = vld [vmem:[#allocation5 + $0xba8] sm:$0xff]   ;;  %v15694_v52 = vld [vmem:[#allocation5 + $0xbf0] sm:$0xff]  }
 0xb0d   :  { %v13782_v15 = vpop.f32.mrb[131].mxu1  ;;  %v5980_v29 = vpop.permute.xlu0 %5979  ;;  %13966 = vmatprep.subr.bf16.mxu0 %v15676_v50 }
 0xb0e   :  { %v21671_v39 = vadd.f32 %v13780_v25, %v21619_v45  ;;  %13985 = vmatpush3.bf16.msra.mxu1 %v15675_v43  ;;  %v15684_v45 = vld [vmem:[#allocation5 + $0xb68] sm:$0xff]   ;;  %v5981_v60 = vsel %vm22870_vm6, %v21604_v20, %v5980_v29  ;;  %v15693_v43 = vld [vmem:[#allocation5 + $0xb38] sm:$0xff]   ;;  %v6146_v20 = vrot.slane %v21558_v26, 5  ;;  %v15696_v15 = vld [vmem:[#allocation5 + $0xc40] sm:$0xff]  }
 0xb0f   :  { %3460 = vrot.lane.b32.xlu1 %v3458_v37, %s16166_s17  ;;  %6140 = vrot.lane.b32.xlu0 %v6138_v2, %s16166_s17  ;;  %v6316_v29 = vshll.u32 %v5981_v60, 16  ;;  %v15695_v2 = vld [vmem:[#allocation5 + $0xbb0] sm:$0xff]   ;;  %v6153_v60 = vrot.slane %v21388_v17, 6  ;;  %vm22878_vm6 = vmmov %vm22855_vm1 }
 0xb10   :  { %13967 = vmatpush3.bf16.msra.mxu0 %v15677_v42  ;;  %13986 = vmatprep.subr.bf16.mxu1 %v15678_v24  ;;  %v21675_v32 = vpop.permute.xlu1 %3296  ;;  %v3472_v24 = vrot.slane %v22866_v36, 6 }
 0xb11   :  { %v5989_v54 = vpop.permute.xlu0 %5988  ;;  %13968 = vmatprep.subr.bf16.mxu0 %v15680_v10 }
 0xb12   :  { %13987 = vmatpush3.bf16.msra.mxu1 %v15679_v22  ;;  %v5990_v23 = vsel %vm2898_vm13, %v21646_v33, %v5989_v54  ;;  %v3282_v54 = vsel %vm22871_vm7, %v21627_v56, %v21660_v11  ;;  %v15702_v56 = vld [vmem:[#allocation5 + $0xcc0] sm:$0xff]  }
 0xb13   :  { %v6058_v30 = vsel %vm1067_vm11, %v5990_v23, %v21656_v13  ;;  %6154 = vrot.lane.b32.xlu1 %v6152_v4, %s16140_s27  ;;  %3455 = vrot.lane.b32.xlu0 %v3452_v44, %s16165_s29  ;;  %v15698_v44 = vld [vmem:[#allocation5 + $0xbf8] sm:$0xff]   ;;  %v6496_v23 = vsel %vm20605_vm15, %v3282_v54, %v6316_v29 }
 0xb14   :  { %13969 = vmatpush3.bf16.msra.mxu0 %v15681_v5  ;;  %13988 = vmatprep.subr.bf16.mxu1 %v15682_v28  ;;  %v21685_v57 = vpop.permute.xlu1 %6007  ;;  %v6323_v3 = vshll.u32 %v6058_v30, 16  ;;  %v15697_v5 = vld [vmem:[#allocation5 + $0xc00] sm:$0xff]   ;;  %v5983_v28 = vrot.slane %v21336_v21, 4  ;;  %v15699_v30 = vld [vmem:[#allocation5 + $0xbb8] sm:$0xff]  }
 0xb15   :  { %v3292_v14 = vpop.permute.xlu0 %3291  ;;  %13970 = vmatprep.subr.bf16.mxu0 %v15684_v45  ;;  %v15700_v45 = vld [vmem:[#allocation5 + $0xc48] sm:$0xff]  }
 0xb16   :  { %13989 = vmatpush3.bf16.msra.mxu1 %v15683_v62  ;;  %v3293_v34 = vsel %vm2898_vm13, %v21666_v61, %v3292_v14  ;;  %v3459_v62 = vrot.slane %v22867_v47, 5  ;;  %v6055_v21 = vsel %vm2898_vm13, %v5983_v28, %v21646_v33  ;;  %v3480_v33 = vrot.slane %v21499_v27, 6  ;;  %v15712_v28 = vld [vmem:[#allocation5 + $0xc60] sm:$0xff]  }
 0xb17   :  { %6135 = vrot.lane.b32.xlu1 %v6132_v31, %s16165_s29  ;;  %6142 = vrot.lane.b32.xlu0 %v6139_v48, %s16166_s17  ;;  %v3370_v51 = vsel %vm1067_vm11, %v3293_v34, %v21675_v32  ;;  %v6321_v48 = vshll.u32 %v6055_v21, 16  ;;  %v15706_v34 = vld [vmem:[#allocation5 + $0xcc8] sm:$0xff]  }
 0xb18   :  { %13971 = vmatpush3.bf16.msra.mxu0 %v15685_v0  ;;  %13990 = vmatprep.subr.bf16.mxu1 %v15686_v16  ;;  %v21695_v7 = vpop.permute.xlu1 %3305  ;;  %v6499_v63 = vsel %vm20605_vm15, %v3370_v51, %v6323_v3  ;;  %v3285_v0 = vrot.slane %v22850_v49, 4  ;;  %v15701_v16 = vld [vmem:[#allocation5 + $0xc08] sm:$0xff]   ;;  %v15704_v49 = vld [vmem:[#allocation5 + $0xc50] sm:$0xff]   ;;  %v15703_v3 = vld [vmem:[#allocation5 + $0xc80] sm:$0xff]  }
 0xb19   :  { %12091 = vmatprep.mubr.bf16.mxu1 %v6499_v63  ;;  %v21699_v6 = vpop.permute.xlu0 %6000  ;;  %13972 = vmatprep.subr.bf16.mxu0 %v15688_v19  ;;  %v6159_v19 = vrot.slane %v21485_v55, 6  ;;  %v15705_v51 = vld [vmem:[#allocation5 + $0xc10] sm:$0xff]   ;;  %v15716_v21 = vld [vmem:[#allocation5 + $0xc68] sm:$0xff]  }
 0xb1a   :  { %13991 = vmatpush3.bf16.msra.mxu1 %v15687_v53  ;;  %v3366_v14 = vsel %vm2898_vm13, %v3285_v0, %v21666_v61 }
 0xb1b   :  { %v13800_v8 = vpop.f32.mrb[100].mxu0  ;;  %3469 = vrot.lane.b32.xlu1 %v3466_v1, %s16167_s5  ;;  %3467 = vrot.lane.b32.xlu0 %v3465_v35, %s16167_s5  ;;  %v6498_v61 = vsel %vm20605_vm15, %v3366_v14, %v6321_v48  ;;  %v3486_v1 = vrot.slane %v22866_v36, 7  ;;  %v15708_v35 = vld [vmem:[#allocation5 + $0xc58] sm:$0xff]  }
 0xb1c   :  { %13973 = vmatpush3.bf16.msra.mxu0 %v15689_v40  ;;  %v13801_v50 = vpop.f32.mrb[101].mxu0  ;;  %13992 = vmatprep.subr.bf16.mxu1 %v15690_v58  ;;  %v21707_v41 = vpop.permute.xlu1 %3310  ;;  %v15715_v14 = vld [vmem:[#allocation5 + $0xc98] sm:$0xff]  }
 0xb1d   :  { %v13802_v25 = vadd.f32 %v13801_v50, %v13800_v8  ;;  %v21709_v38 = vpop.permute.xlu0 %5995  ;;  %v13803_v42 = vpop.f32.mrb[102].mxu0  ;;  %13974 = vmatprep.subr.bf16.mxu0 %v15692_v46  ;;  %v15707_v8 = vld [vmem:[#allocation5 + $0xc88] sm:$0xff]  }
 0xb1e   :  { %13993 = vmatpush3.bf16.msra.mxu1 %v15691_v18  ;;  %v13804_v37 = vpop.f32.mrb[103].mxu0 }
 0xb1f   :  { %v21714_v10 = vadd.f32 %v13802_v25, %v21671_v39  ;;  %3474 = vrot.lane.b32.xlu1 %v3472_v24, %s16140_s27  ;;  %6149 = vrot.lane.b32.xlu0 %v6146_v20, %s16167_s5  ;;  %v6166_v39 = vrot.slane %v21382_v12, 7  ;;  %v15709_v24 = vld [vmem:[#allocation5 + $0xc18] sm:$0xff]  }
 0xb20   :  { %13975 = vmatpush3.bf16.msra.mxu0 %v15693_v43  ;;  %13994 = vmatprep.subr.bf16.mxu1 %v15694_v52  ;;  %v21718_v22 = vpop.permute.xlu1 %6021  ;;  %v15710_v43 = vld [vmem:[#allocation5 + $0xcd0] sm:$0xff]  }
 0xb21   :  { %v21724_v4 = vpop.permute.xlu0 %3303  ;;  %14004 = vmatprep.subr.bf16.mxu0 %v15696_v15 }
 0xb22   :  { %13995 = vmatpush3.bf16.msra.mxu1 %v15695_v2  ;;  %v3307_v63 = vsel %vm2916_vm0, %v21724_v4, %v21695_v7 }
 0xb23   :  { %12052 = vmatmul.mubr.bf16.vlgmr.msra.gmra.mrb[116].mxu0 %v6496_v23  ;;  %6168 = vrot.lane.b32.xlu1 %v6166_v39, %s16169_s2  ;;  %v3378_v20 = vsel %vm2924_vm12, %v3307_v63, %v21707_v41  ;;  %v3479_v39 = vrot.slane %v21476_v9, 6  ;;  %v15714_v23 = vld [vmem:[#allocation5 + $0xcd8] sm:$0xff]   ;;  %v15722_v63 = vld [vmem:[#allocation5 + $0xce8] sm:$0xff]  }
 0xb24   :  { %14005 = vmatpush3.bf16.msra.mxu0 %v15697_v5  ;;  %3462 = vrot.lane.b32.xlu0 %v3459_v62, %s16166_s17  ;;  %v21735_v11 = vpop.permute.xlu1 %3319  ;;  %v6173_v5 = vrot.slane %v21485_v55, 7  ;;  %v15713_v62 = vld [vmem:[#allocation5 + $0xc20] sm:$0xff]  }
 0xb25   :  { %13996 = vmatprep.subr.bf16.mxu1 %v15698_v44  ;;  %v21739_v31 = vpop.permute.xlu0 %6014  ;;  %14006 = vmatprep.subr.bf16.mxu0 %v15700_v45  ;;  %v15711_v44 = vld [vmem:[#allocation5 + $0xc90] sm:$0xff]  }
 0xb26   :  { %13997 = vmatpush3.bf16.msra.mxu1 %v15699_v30  ;;  %v6160_v30 = vrot.slane %v21558_v26, 6 }
 0xb27   :  { %3483 = vrot.lane.b32.xlu1 %v3480_v33, %s16168_s20  ;;  %14026 = vmatprep.subr.bf16.mxu1 %v15702_v56 }
 0xb28   :  { %14007 = vmatpush3.bf16.msra.mxu0 %v15701_v16  ;;  %6161 = vrot.lane.b32.xlu0 %v6159_v19, %s16168_s20  ;;  %v6003_v53 = vpop.permute.xlu1 %6002  ;;  %v3473_v16 = vrot.slane %v22867_v47, 6 }
 0xb29   :  { %12092 = vmatmul.mubr.bf16.vlgmr.msra.gmra.mrb[148].mxu1 %v6498_v61  ;;  %v6004_v40 = vsel %vm2916_vm0, %v21699_v6, %v6003_v53  ;;  %v21752_v58 = vpop.permute.xlu0 %3298  ;;  %14008 = vmatprep.subr.bf16.mxu0 %v15704_v49  ;;  %v15718_v49 = vld [vmem:[#allocation5 + $0xce0] sm:$0xff]   ;;  %v15720_v61 = vld [vmem:[#allocation5 + $0xc70] sm:$0xff]   ;;  %v6167_v53 = vrot.slane %v21388_v17, 7 }
 0xb2a   :  { %v6064_v46 = vsel %vm2924_vm12, %v6004_v40, %v21685_v57  ;;  %14027 = vmatpush3.bf16.msra.mxu1 %v15703_v3  ;;  %v13822_v18 = vpop.f32.mrb[132].mxu1  ;;  %v15717_v3 = vld [vmem:[#allocation5 + $0xc28] sm:$0xff]  }
 0xb2b   :  { %v6327_v50 = vshll.u32 %v6064_v46, 16  ;;  %v13823_v7 = vpop.f32.mrb[133].mxu1  ;;  %3488 = vrot.lane.b32.xlu1 %v3486_v1, %s16169_s2  ;;  %14028 = vmatprep.subr.bf16.mxu1 %v15706_v34  ;;  %v3487_v34 = vrot.slane %v22867_v47, 7  ;;  %v15721_v1 = vld [vmem:[#allocation5 + $0xc30] sm:$0xff]   ;;  %v3494_v46 = vrot.slane %v21499_v27, 7 }
 0xb2c   :  { %v13824_v52 = vadd.f32 %v13823_v7, %v13822_v18  ;;  %14009 = vmatpush3.bf16.msra.mxu0 %v15705_v51  ;;  %6156 = vrot.lane.b32.xlu0 %v6153_v60, %s16140_s27  ;;  %v13825_v25 = vpop.f32.mrb[134].mxu1  ;;  %v6017_v42 = vpop.permute.xlu1 %6016  ;;  %v15719_v51 = vld [vmem:[#allocation5 + $0xca0] sm:$0xff]   ;;  %v15724_v18 = vld [vmem:[#allocation5 + $0xc78] sm:$0xff]   ;;  %v5997_v60 = vsel %vm1067_vm11, %v21656_v13, %v21709_v38 }
 0xb2d   :  { %v13826_v15 = vpop.f32.mrb[135].mxu1  ;;  %v6018_v29 = vsel %vm2932_vm2, %v21739_v31, %v6017_v42  ;;  %v21764_v37 = vpop.permute.xlu0 %6009  ;;  %14010 = vmatprep.subr.bf16.mxu0 %v15708_v35  ;;  %v6501_v2 = vsel %vm20605_vm15, %v3378_v20, %v6327_v50  ;;  %v15723_v50 = vld [vmem:[#allocation5 + $0xca8] sm:$0xff]   ;;  %v15725_v42 = vld [vmem:[#allocation5 + $0xc38] sm:$0xff]   ;;  %v6061_v13 = vsel %vm2916_vm0, %v5997_v60, %v21699_v6  ;;  %v15728_v20 = vld [vmem:[#allocation5 + $0xd40] sm:$0xff]  }
 0xb2e   :  { %v21770_v54 = vadd.f32 %v13824_v52, %v21714_v10  ;;  %14029 = vmatpush3.bf16.msra.mxu1 %v15707_v8  ;;  %12131 = vmatprep.mubr.bf16.mxu0 %v6501_v2  ;;  %v6070_v45 = vsel %vm2940_vm4, %v6018_v29, %v21718_v22  ;;  %v6174_v8 = vrot.slane %v21558_v26, 7  ;;  %v3300_v52 = vsel %vm1067_vm11, %v21675_v32, %v21752_v58  ;;  %v15727_v32 = vld [vmem:[#allocation5 + $0xcb0] sm:$0xff]  }
 0xb2f   :  { %6175 = vrot.lane.b32.xlu1 %v6173_v5, %s16162_s23  ;;  %14030 = vmatprep.subr.bf16.mxu1 %v15710_v43  ;;  %v6331_v0 = vshll.u32 %v6070_v45, 16  ;;  %v15726_v43 = vld [vmem:[#allocation5 + $0xcf0] sm:$0xff]   ;;  %v3493_v29 = vrot.slane %v21476_v9, 7  ;;  %v3374_v58 = vsel %vm2916_vm0, %v3300_v52, %v21724_v4  ;;  %v15730_v5 = vld [vmem:[#allocation5 + $0xcf8] sm:$0xff]   ;;  %v6325_v6 = vshll.u32 %v6061_v13, 16  ;;  %v15729_v9 = vld [vmem:[#allocation5 + $0xd00] sm:$0xff]  }
 0xb30   :  { %14011 = vmatpush3.bf16.msra.mxu0 %v15709_v24  ;;  %3481 = vrot.lane.b32.xlu0 %v3479_v39, %s16168_s20  ;;  %v21777_v55 = vpop.permute.xlu1 %3324  ;;  %v15732_v45 = vld [vmem:[#allocation5 + $0xd48] sm:$0xff]   ;;  %v15741_v52 = vld [vmem:[#allocation5 + $0xd18] sm:$0xff]  }
 0xb31   :  { %v21779_v10 = vpop.permute.xlu0 %3317  ;;  %14012 = vmatprep.subr.bf16.mxu0 %v15712_v28  ;;  %v6011_v28 = vsel %vm2924_vm12, %v21685_v57, %v21764_v37  ;;  %v15731_v57 = vld [vmem:[#allocation5 + $0xcb8] sm:$0xff]  }
 0xb32   :  { %14031 = vmatpush3.bf16.msra.mxu1 %v15711_v44  ;;  %v3321_v56 = vsel %vm2932_vm2, %v21779_v10, %v21735_v11  ;;  %v6067_v37 = vsel %vm2932_vm2, %v6011_v28, %v21739_v31  ;;  %v15749_v28 = vld [vmem:[#allocation5 + $0xd28] sm:$0xff]  }
 0xb33   :  { %6163 = vrot.lane.b32.xlu1 %v6160_v30, %s16168_s20  ;;  %14032 = vmatprep.subr.bf16.mxu1 %v15714_v23  ;;  %v3386_v33 = vsel %vm2940_vm4, %v3321_v56, %v21777_v55  ;;  %v6500_v23 = vsel %vm20605_vm15, %v3374_v58, %v6325_v6  ;;  %v15734_v30 = vld [vmem:[#allocation5 + $0xdc0] sm:$0xff]   ;;  %v15747_v58 = vld [vmem:[#allocation5 + $0xd98] sm:$0xff]  }
 0xb34   :  { %14013 = vmatpush3.bf16.msra.mxu0 %v15713_v62  ;;  %3476 = vrot.lane.b32.xlu0 %v3473_v16, %s16140_s27  ;;  %v21790_v48 = vpop.permute.xlu1 %6028  ;;  %v6503_v19 = vsel %vm20605_vm15, %v3386_v33, %v6331_v0  ;;  %v15733_v0 = vld [vmem:[#allocation5 + $0xd08] sm:$0xff]   ;;  %v6329_v33 = vshll.u32 %v6067_v37, 16  ;;  %v15756_v37 = vld [vmem:[#allocation5 + $0xd78] sm:$0xff]  }
 0xb35   :  { %12171 = vmatprep.mubr.bf16.mxu1 %v6503_v19  ;;  %v3313_v11 = vpop.permute.xlu0 %3312  ;;  %14014 = vmatprep.subr.bf16.mxu0 %v15716_v21  ;;  %v15735_v19 = vld [vmem:[#allocation5 + $0xd80] sm:$0xff]  }
 0xb36   :  { %14033 = vmatpush3.bf16.msra.mxu1 %v15715_v14  ;;  %v3314_v4 = vsel %vm2924_vm12, %v21707_v41, %v3313_v11  ;;  %v15736_v14 = vld [vmem:[#allocation5 + $0xd50] sm:$0xff]   ;;  %v15738_v11 = vld [vmem:[#allocation5 + $0xdc8] sm:$0xff]  }
 0xb37   :  { %3490 = vrot.lane.b32.xlu1 %v3487_v34, %s16169_s2  ;;  %14034 = vmatprep.subr.bf16.mxu1 %v15718_v49  ;;  %v3382_v56 = vsel %vm2932_vm2, %v3314_v4, %v21779_v10 }
 0xb38   :  { %14015 = vmatpush3.bf16.msra.mxu0 %v15717_v3  ;;  %6170 = vrot.lane.b32.xlu0 %v6167_v53, %s16169_s2  ;;  %v21798_v40 = vpop.permute.xlu1 %3326  ;;  %v6502_v34 = vsel %vm20605_vm15, %v3382_v56, %v6329_v33  ;;  %v15737_v53 = vld [vmem:[#allocation5 + $0xd10] sm:$0xff]   ;;  %v15757_v56 = vld [vmem:[#allocation5 + $0xd38] sm:$0xff]  }
 0xb39   :  { %v21800_v35 = vpop.permute.xlu0 %6023  ;;  %14016 = vmatprep.subr.bf16.mxu0 %v15720_v61 }
 0xb3a   :  { %14035 = vmatpush3.bf16.msra.mxu1 %v15719_v51  ;;  %v6025_v4 = vsel %vm2940_vm4, %v21718_v22, %v21800_v35 }
 0xb3b   :  { %v13844_v7 = vpop.f32.mrb[104].mxu0  ;;  %3497 = vrot.lane.b32.xlu1 %v3494_v46, %s16162_s23  ;;  %14036 = vmatprep.subr.bf16.mxu1 %v15722_v63 }
 0xb3c   :  { %14017 = vmatpush3.bf16.msra.mxu0 %v15721_v1  ;;  %6177 = vrot.lane.b32.xlu0 %v6174_v8, %s16162_s23  ;;  %v13845_v27 = vpop.f32.mrb[105].mxu0  ;;  %v3334_v25 = vpop.permute.xlu1 %3333  ;;  %v15740_v1 = vld [vmem:[#allocation5 + $0xd58] sm:$0xff]   ;;  %v15742_v8 = vld [vmem:[#allocation5 + $0xdd0] sm:$0xff]  }
 0xb3d   :  { %v13846_v26 = vadd.f32 %v13845_v27, %v13844_v7  ;;  %v21814_v38 = vpop.permute.xlu0 %3331  ;;  %v13847_v24 = vpop.f32.mrb[106].mxu0  ;;  %14018 = vmatprep.subr.bf16.mxu0 %v15724_v18  ;;  %v15739_v18 = vld [vmem:[#allocation5 + $0xd88] sm:$0xff]  }
 0xb3e   :  { %14037 = vmatpush3.bf16.msra.mxu1 %v15723_v50  ;;  %v13848_v15 = vpop.f32.mrb[107].mxu0  ;;  %v3335_v21 = vsel %vm22873_vm14, %v21814_v38, %v3334_v25  ;;  %v15746_v24 = vld [vmem:[#allocation5 + $0xdd8] sm:$0xff]  }
 0xb3f   :  { %v21820_v2 = vadd.f32 %v13846_v26, %v21770_v54  ;;  %14038 = vmatprep.subr.bf16.mxu1 %v15726_v43  ;;  %v15743_v26 = vld [vmem:[#allocation5 + $0xd90] sm:$0xff]   ;;  %v15745_v15 = vld [vmem:[#allocation5 + $0xd20] sm:$0xff]  }
 0xb40   :  { %14019 = vmatpush3.bf16.msra.mxu0 %v15725_v42  ;;  %3495 = vrot.lane.b32.xlu0 %v3493_v29, %s16162_s23  ;;  %v21826_v39 = vpop.permute.xlu1 %3398  ;;  %v15744_v42 = vld [vmem:[#allocation5 + $0xd60] sm:$0xff]  }
 0xb41   :  { %v6031_v44 = vpop.permute.xlu0 %6030  ;;  %14048 = vmatprep.subr.bf16.mxu0 %v15728_v20  ;;  %v3502_v10 = vsel %vm2898_vm13, %v22867_v47, %v21826_v39 }
 0xb42   :  { %14039 = vmatpush3.bf16.msra.mxu1 %v15727_v32  ;;  %v6032_v54 = vsel %vm22872_vm5, %v21790_v48, %v6031_v44  ;;  %v15748_v32 = vld [vmem:[#allocation5 + $0xd68] sm:$0xff]   ;;  %v15751_v44 = vld [vmem:[#allocation5 + $0xda0] sm:$0xff]  }
 0xb43   :  { %v6336_v62 = vshll.u32 %v6032_v54, 16  ;;  %12132 = vmatmul.mubr.bf16.vlgmr.msra.gmra.mrb[120].mxu0 %v6500_v23  ;;  %14040 = vmatprep.subr.bf16.mxu1 %v15730_v5  ;;  %v15750_v5 = vld [vmem:[#allocation5 + $0xde0] sm:$0xff]   ;;  %v15753_v23 = vld [vmem:[#allocation5 + $0xd30] sm:$0xff]  }
 0xb44   :  { %14049 = vmatpush3.bf16.msra.mxu0 %v15729_v9  ;;  %v21838_v41 = vpop.permute.xlu1 %3409  ;;  %v15752_v9 = vld [vmem:[#allocation5 + $0xd70] sm:$0xff]  }
 0xb45   :  { %v21842_v16 = vpop.permute.xlu0 %6080  ;;  %14050 = vmatprep.subr.bf16.mxu0 %v15732_v45  ;;  %v6505_v31 = vsel %vm20605_vm15, %v3335_v21, %v6336_v62  ;;  %v15754_v45 = vld [vmem:[#allocation5 + $0xde8] sm:$0xff]  }
 0xb46   :  { %14041 = vmatpush3.bf16.msra.mxu1 %v15731_v57  ;;  %v6181_v49 = vsel %vm2898_vm13, %v21388_v17, %v21842_v16  ;;  %12211 = vmatprep.mubr.bf16.mxu0 %v6505_v31  ;;  %v15755_v62 = vld [vmem:[#allocation5 + $0xda8] sm:$0xff]  }
 0xb47   :  { %v6340_v3 = vshll.u32 %v6181_v49, 16  ;;  %14070 = vmatprep.subr.bf16.mxu1 %v15734_v30  ;;  %v6073_v30 = vsel %vm22855_vm1, %v6025_v4, %v21790_v48  ;;  %v3328_v48 = vsel %vm2940_vm4, %v21777_v55, %v21798_v40  ;;  %v15759_v49 = vld [vmem:[#allocation5 + $0xdb0] sm:$0xff]   ;;  %v15764_v55 = vld [vmem:[#allocation5 + $0xe48] sm:$0xff]   ;;  %v15773_v4 = vld [vmem:[#allocation5 + $0xe18] sm:$0xff]  }
 0xb48   :  { %14051 = vmatpush3.bf16.msra.mxu0 %v15733_v0  ;;  %v21854_v61 = vpop.permute.xlu1 %3414  ;;  %v15758_v0 = vld [vmem:[#allocation5 + $0xdf0] sm:$0xff]   ;;  %v6333_v33 = vshll.u32 %v6073_v30, 16  ;;  %v15778_v30 = vld [vmem:[#allocation5 + $0xed8] sm:$0xff]  }
 0xb49   :  { %12172 = vmatmul.mubr.bf16.vlgmr.msra.gmra.mrb[152].mxu1 %v6502_v34  ;;  %v21856_v51 = vpop.permute.xlu0 %3407  ;;  %14052 = vmatprep.subr.bf16.mxu0 %v15736_v14  ;;  %v6507_v63 = vsel %vm20605_vm15, %v3502_v10, %v6340_v3  ;;  %v15760_v14 = vld [vmem:[#allocation5 + $0xe40] sm:$0xff]   ;;  %v15762_v10 = vld [vmem:[#allocation5 + $0xdf8] sm:$0xff]  }
 0xb4a   :  { %14071 = vmatpush3.bf16.msra.mxu1 %v15735_v19  ;;  %v13866_v46 = vpop.f32.mrb[136].mxu1  ;;  %12251 = vmatprep.mubr.bf16.mxu1 %v6507_v63  ;;  %v3390_v19 = vsel %vm22874_vm8, %v3328_v48, %v21814_v38  ;;  %v3411_v3 = vsel %vm1067_vm11, %v21856_v51, %v21838_v41  ;;  %v15782_v48 = vld [vmem:[#allocation5 + $0xee0] sm:$0xff]  }
 0xb4b   :  { %v13867_v60 = vpop.f32.mrb[137].mxu1  ;;  %14072 = vmatprep.subr.bf16.mxu1 %v15738_v11  ;;  %v3510_v40 = vsel %vm2916_vm0, %v3411_v3, %v21854_v61  ;;  %v6504_v38 = vsel %vm20605_vm15, %v3390_v19, %v6333_v33  ;;  %v15784_v3 = vld [vmem:[#allocation5 + $0xe70] sm:$0xff]  }
 0xb4c   :  { %v13868_v50 = vadd.f32 %v13867_v60, %v13866_v46  ;;  %14053 = vmatpush3.bf16.msra.mxu0 %v15737_v53  ;;  %v13869_v7 = vpop.f32.mrb[138].mxu1  ;;  %v21860_v43 = vpop.permute.xlu1 %3423  ;;  %v15761_v53 = vld [vmem:[#allocation5 + $0xe00] sm:$0xff]  }
 0xb4d   :  { %v13870_v27 = vpop.f32.mrb[139].mxu1  ;;  %v21862_v25 = vpop.permute.xlu0 %3400  ;;  %14054 = vmatprep.subr.bf16.mxu0 %v15740_v1  ;;  %v15763_v1 = vld [vmem:[#allocation5 + $0xdb8] sm:$0xff]   ;;  %v6338_v7 = vshll.u32 %v21382_v12, 16 }
 0xb4e   :  { %v21865_v13 = vadd.f32 %v13868_v50, %v21820_v2  ;;  %14073 = vmatpush3.bf16.msra.mxu1 %v15739_v18  ;;  %v15766_v18 = vld [vmem:[#allocation5 + $0xec0] sm:$0xff]   ;;  %v15765_v50 = vld [vmem:[#allocation5 + $0xe08] sm:$0xff]  }
 0xb4f   :  { %14074 = vmatprep.subr.bf16.mxu1 %v15742_v8 }
 0xb50   :  { %14055 = vmatpush3.bf16.msra.mxu0 %v15741_v52  ;;  %v6092_v20 = vpop.permute.xlu1 %6091 }
 0xb51   :  { %v21867_v29 = vpop.permute.xlu0 %3421  ;;  %14056 = vmatprep.subr.bf16.mxu0 %v15744_v42  ;;  %v15768_v42 = vld [vmem:[#allocation5 + $0xe50] sm:$0xff]  }
 0xb52   :  { %14075 = vmatpush3.bf16.msra.mxu1 %v15743_v26  ;;  %v3425_v52 = vsel %vm2924_vm12, %v21867_v29, %v21860_v43  ;;  %v15769_v43 = vld [vmem:[#allocation5 + $0xe10] sm:$0xff]  }
 0xb53   :  { %14076 = vmatprep.subr.bf16.mxu1 %v15746_v24  ;;  %v15767_v24 = vld [vmem:[#allocation5 + $0xe80] sm:$0xff]  }
 0xb54   :  { %14057 = vmatpush3.bf16.msra.mxu0 %v15745_v15  ;;  %v6106_v6 = vpop.permute.xlu1 %6105  ;;  %v15770_v15 = vld [vmem:[#allocation5 + $0xec8] sm:$0xff]  }
 0xb55   :  { %v21869_v2 = vpop.permute.xlu0 %6089  ;;  %14058 = vmatprep.subr.bf16.mxu0 %v15748_v32  ;;  %v6506_v32 = vsel %vm20605_vm15, %v22866_v36, %v6338_v7  ;;  %v15792_v7 = vld [vmem:[#allocation5 + $0xf40] sm:$0xff]  }
 0xb56   :  { %14077 = vmatpush3.bf16.msra.mxu1 %v15747_v58  ;;  %v6093_v21 = vsel %vm1067_vm11, %v21869_v2, %v6092_v20 }
 0xb57   :  { %14078 = vmatprep.subr.bf16.mxu1 %v15750_v5 }
 0xb58   :  { %14059 = vmatpush3.bf16.msra.mxu0 %v15749_v28  ;;  %v21874_v54 = vpop.permute.xlu1 %6096  ;;  %v15772_v28 = vld [vmem:[#allocation5 + $0xe58] sm:$0xff]  }
 0xb59   :  { %v21876_v57 = vpop.permute.xlu0 %6103  ;;  %14060 = vmatprep.subr.bf16.mxu0 %v15752_v9  ;;  %v6187_v22 = vsel %vm2916_vm0, %v6093_v21, %v21874_v54  ;;  %v15771_v9 = vld [vmem:[#allocation5 + $0xe88] sm:$0xff]  }
 0xb5a   :  { %14079 = vmatpush3.bf16.msra.mxu1 %v15751_v44  ;;  %v6344_v11 = vshll.u32 %v6187_v22, 16  ;;  %v6107_v41 = vsel %vm2924_vm12, %v21876_v57, %v6106_v6  ;;  %v15774_v44 = vld [vmem:[#allocation5 + $0xed0] sm:$0xff]  }
 0xb5b   :  { %14080 = vmatprep.subr.bf16.mxu1 %v15754_v45 }
 0xb5c   :  { %14061 = vmatpush3.bf16.msra.mxu0 %v15753_v23  ;;  %v21884_v35 = vpop.permute.xlu1 %6110  ;;  %v6509_v46 = vsel %vm20605_vm15, %v3510_v40, %v6344_v11  ;;  %v15783_v11 = vld [vmem:[#allocation5 + $0xea0] sm:$0xff]  }
 0xb5d   :  { %v21886_v31 = vpop.permute.xlu0 %6082  ;;  %14062 = vmatprep.subr.bf16.mxu0 %v15756_v37  ;;  %v6193_v60 = vsel %vm2932_vm2, %v6107_v41, %v21884_v35  ;;  %v15776_v37 = vld [vmem:[#allocation5 + $0xe60] sm:$0xff]   ;;  %v15787_v41 = vld [vmem:[#allocation5 + $0xea8] sm:$0xff]  }
 0xb5e   :  { %14081 = vmatpush3.bf16.msra.mxu1 %v15755_v62  ;;  %v6348_v20 = vshll.u32 %v6193_v60, 16  ;;  %v15775_v62 = vld [vmem:[#allocation5 + $0xe90] sm:$0xff]  }
 0xb5f   :  { %14082 = vmatprep.subr.bf16.mxu1 %v15758_v0  ;;  %v15777_v0 = vld [vmem:[#allocation5 + $0xe20] sm:$0xff]   ;;  %v15790_v60 = vld [vmem:[#allocation5 + $0xef0] sm:$0xff]  }
 0xb60   :  { %14063 = vmatpush3.bf16.msra.mxu0 %v15757_v56  ;;  %v21896_v34 = vpop.permute.xlu1 %3428  ;;  %v15780_v56 = vld [vmem:[#allocation5 + $0xe68] sm:$0xff]  }
 0xb61   :  { %v21898_v63 = vpop.permute.xlu0 %6098  ;;  %14092 = vmatprep.subr.bf16.mxu0 %v15760_v14  ;;  %v3518_v26 = vsel %vm2932_vm2, %v3425_v52, %v21896_v34  ;;  %v15779_v14 = vld [vmem:[#allocation5 + $0xe98] sm:$0xff]   ;;  %v3402_v52 = vsel %vm2898_vm13, %v21826_v39, %v21862_v25  ;;  %v15793_v39 = vld [vmem:[#allocation5 + $0xf00] sm:$0xff]  }
 0xb62   :  { %14083 = vmatpush3.bf16.msra.mxu1 %v15759_v49  ;;  %v6511_v5 = vsel %vm20605_vm15, %v3518_v26, %v6348_v20  ;;  %v15781_v49 = vld [vmem:[#allocation5 + $0xe28] sm:$0xff]   ;;  %v6100_v20 = vsel %vm2916_vm0, %v21874_v54, %v21898_v63  ;;  %v3506_v25 = vsel %vm1067_vm11, %v3402_v52, %v21856_v51  ;;  %v15811_v52 = vld [vmem:[#allocation5 + $0xf98] sm:$0xff]  }
 0xb63   :  { %12212 = vmatmul.mubr.bf16.vlgmr.msra.gmra.mrb[124].mxu0 %v6504_v38  ;;  %14084 = vmatprep.subr.bf16.mxu1 %v15762_v10  ;;  %v15786_v10 = vld [vmem:[#allocation5 + $0xee8] sm:$0xff]   ;;  %v6190_v51 = vsel %vm2924_vm12, %v6100_v20, %v21876_v57 }
 0xb64   :  { %14093 = vmatpush3.bf16.msra.mxu0 %v15761_v53  ;;  %12291 = vmatprep.mubr.bf16.mxu0 %v6509_v46  ;;  %v21910_v8 = vpop.permute.xlu1 %6119  ;;  %v6084_v53 = vsel %vm2898_vm13, %v21842_v16, %v21886_v31  ;;  %v15789_v16 = vld [vmem:[#allocation5 + $0xe38] sm:$0xff]   ;;  %v15818_v20 = vld [vmem:[#allocation5 + $0xfe8] sm:$0xff]  }
 0xb65   :  { %v21916_v27 = vpop.permute.xlu0 %3416  ;;  %14094 = vmatprep.subr.bf16.mxu0 %v15764_v55  ;;  %v15785_v55 = vld [vmem:[#allocation5 + $0xe30] sm:$0xff]   ;;  %v6184_v46 = vsel %vm1067_vm11, %v6084_v53, %v21869_v2 }
 0xb66   :  { %14085 = vmatpush3.bf16.msra.mxu1 %v15763_v1  ;;  %v15788_v1 = vld [vmem:[#allocation5 + $0xe78] sm:$0xff]   ;;  %v3418_v54 = vsel %vm2916_vm0, %v21854_v61, %v21916_v27  ;;  %v15806_v53 = vld [vmem:[#allocation5 + $0xfd0] sm:$0xff]  }
 0xb67   :  { %14114 = vmatprep.subr.bf16.mxu1 %v15766_v18  ;;  %v3514_v61 = vsel %vm2924_vm12, %v3418_v54, %v21867_v29  ;;  %v15819_v54 = vld [vmem:[#allocation5 + $0xfa8] sm:$0xff]  }
 0xb68   :  { %14095 = vmatpush3.bf16.msra.mxu0 %v15765_v50  ;;  %v21923_v58 = vpop.permute.xlu1 %6124 }
 0xb69   :  { %12252 = vmatmul.mubr.bf16.vlgmr.msra.gmra.mrb[156].mxu1 %v6506_v32  ;;  %v21927_v6 = vpop.permute.xlu0 %6117  ;;  %14096 = vmatprep.subr.bf16.mxu0 %v15768_v42  ;;  %v6342_v42 = vshll.u32 %v6184_v46, 16  ;;  %v15807_v46 = vld [vmem:[#allocation5 + $0xf90] sm:$0xff]  }
 0xb6a   :  { %14115 = vmatpush3.bf16.msra.mxu1 %v15767_v24  ;;  %12331 = vmatprep.mubr.bf16.mxu1 %v6511_v5  ;;  %v6121_v18 = vsel %vm2940_vm4, %v21927_v6, %v21910_v8  ;;  %v15791_v8 = vld [vmem:[#allocation5 + $0xeb0] sm:$0xff]   ;;  %v15794_v24 = vld [vmem:[#allocation5 + $0xef8] sm:$0xff]  }
 0xb6b   :  { %14116 = vmatprep.subr.bf16.mxu1 %v15770_v15  ;;  %v6199_v2 = vsel %vm22875_vm9, %v6121_v18, %v21923_v58  ;;  %v6508_v63 = vsel %vm20605_vm15, %v3506_v25, %v6342_v42  ;;  %v15810_v18 = vld [vmem:[#allocation5 + $0xfd8] sm:$0xff]   ;;  %v15817_v25 = vld [vmem:[#allocation5 + $0xf30] sm:$0xff]  }
 0xb6c   :  { %14097 = vmatpush3.bf16.msra.mxu0 %v15769_v43  ;;  %v3438_v45 = vpop.permute.xlu1 %3437  ;;  %v6352_v32 = vshll.u32 %v6199_v2, 16  ;;  %v15814_v2 = vld [vmem:[#allocation5 + $0xfe0] sm:$0xff]  }
 0xb6d   :  { %v21929_v23 = vpop.permute.xlu0 %3435  ;;  %14098 = vmatprep.subr.bf16.mxu0 %v15772_v28  ;;  %v15796_v28 = vld [vmem:[#allocation5 + $0xf48] sm:$0xff]  }
 0xb6e   :  { %14117 = vmatpush3.bf16.msra.mxu1 %v15771_v9  ;;  %v3439_v26 = vsel %vm2940_vm4, %v21929_v23, %v3438_v45  ;;  %v6129_v9 = vrot.slane %v21382_v12, 4  ;;  %v15797_v12 = vld [vmem:[#allocation5 + $0xf08] sm:$0xff]  }
 0xb6f   :  { %14118 = vmatprep.subr.bf16.mxu1 %v15774_v44  ;;  %v15795_v44 = vld [vmem:[#allocation5 + $0xeb8] sm:$0xff]  }
 0xb70   :  { %14099 = vmatpush3.bf16.msra.mxu0 %v15773_v4  ;;  %v21931_v21 = vpop.permute.xlu1 %3442  ;;  %v15798_v4 = vld [vmem:[#allocation5 + $0xfc0] sm:$0xff]  }
 0xb71   :  { %v21933_v22 = vpop.permute.xlu0 %3430  ;;  %14100 = vmatprep.subr.bf16.mxu0 %v15776_v37  ;;  %v3526_v15 = vsel %vm22876_vm3, %v3439_v26, %v21931_v21  ;;  %v6358_v37 = vshll.u32 %v6129_v9, 16  ;;  %v15816_v26 = vld [vmem:[#allocation5 + $0xf70] sm:$0xff]   ;;  %v15820_v9 = vld [vmem:[#allocation5 + $0xf78] sm:$0xff]  }
 0xb72   :  { %14119 = vmatpush3.bf16.msra.mxu1 %v15775_v62  ;;  %v6513_v45 = vsel %vm20605_vm15, %v3526_v15, %v6352_v32  ;;  %v15800_v62 = vld [vmem:[#allocation5 + $0xf50] sm:$0xff]  }
 0xb73   :  { %14120 = vmatprep.subr.bf16.mxu1 %v15778_v30  ;;  %v6346_v30 = vshll.u32 %v6190_v51, 16  ;;  %v15824_v51 = vld [vmem:[#allocation5 + $0x1040] sm:$0xff]  }
 0xb74   :  { %14101 = vmatpush3.bf16.msra.mxu0 %v15777_v0  ;;  %v21935_v33 = vpop.permute.xlu1 %3444  ;;  %v15799_v0 = vld [vmem:[#allocation5 + $0xf80] sm:$0xff]  }
 0xb75   :  { %v21937_v19 = vpop.permute.xlu0 %6112  ;;  %14102 = vmatprep.subr.bf16.mxu0 %v15780_v56  ;;  %v3448_v56 = vrot.slane %v22866_v36, 4 }
 0xb76   :  { %14121 = vmatpush3.bf16.msra.mxu1 %v15779_v14  ;;  %v15802_v14 = vld [vmem:[#allocation5 + $0xfc8] sm:$0xff]   ;;  %v6114_v15 = vsel %vm2932_vm2, %v21884_v35, %v21937_v19  ;;  %v15821_v19 = vld [vmem:[#allocation5 + $0xf38] sm:$0xff]  }
 0xb77   :  { %14122 = vmatprep.subr.bf16.mxu1 %v15782_v48  ;;  %v6510_v48 = vsel %vm20605_vm15, %v3514_v61, %v6346_v30  ;;  %v6515_v29 = vsel %vm20605_vm15, %v3448_v56, %v6358_v37  ;;  %v15823_v61 = vld [vmem:[#allocation5 + $0xfb0] sm:$0xff]   ;;  %v15825_v56 = vld [vmem:[#allocation5 + $0x1000] sm:$0xff]  }
 0xb78   :  { %14103 = vmatpush3.bf16.msra.mxu0 %v15781_v49  ;;  %v15801_v49 = vld [vmem:[#allocation5 + $0xf10] sm:$0xff]  }
 0xb79   :  { %v21942_v40 = vpop.permute.xlu1 %3453  ;;  %v21944_v38 = vpop.permute.xlu0 %6126  ;;  %14104 = vmatprep.subr.bf16.mxu0 %v15784_v3 }
 0xb7a   :  { %14123 = vmatpush3.bf16.msra.mxu1 %v15783_v11  ;;  %v15804_v11 = vld [vmem:[#allocation5 + $0xf58] sm:$0xff]  }
 0xb7b   :  { %14124 = vmatprep.subr.bf16.mxu1 %v15786_v10  ;;  %v15803_v10 = vld [vmem:[#allocation5 + $0xf88] sm:$0xff]  }
 0xb7c   :  { %14105 = vmatpush3.bf16.msra.mxu0 %v15785_v55  ;;  %v15805_v55 = vld [vmem:[#allocation5 + $0xf18] sm:$0xff]  }
 0xb7d   :  { %v21951_v31 = vpop.permute.xlu1 %6147  ;;  %v21953_v50 = vpop.permute.xlu0 %6133  ;;  %14106 = vmatprep.subr.bf16.mxu0 %v15788_v1 }
 0xb7e   :  { %14125 = vmatpush3.bf16.msra.mxu1 %v15787_v41  ;;  %v15808_v41 = vld [vmem:[#allocation5 + $0xf60] sm:$0xff]  }
 0xb7f   :  { %14126 = vmatprep.subr.bf16.mxu1 %v15790_v60  ;;  %v15809_v60 = vld [vmem:[#allocation5 + $0xf20] sm:$0xff]  }
 0xb80   :  { %14107 = vmatpush3.bf16.msra.mxu0 %v15789_v16  ;;  %v15812_v16 = vld [vmem:[#allocation5 + $0xf68] sm:$0xff]  }
 0xb81   :  { %v21969_v43 = vpop.permute.xlu1 %3460  ;;  %v21971_v5 = vpop.permute.xlu0 %6140  ;;  %14136 = vmatprep.subr.bf16.mxu0 %v15792_v7 }
 0xb82   :  { %14127 = vmatpush3.bf16.msra.mxu1 %v15791_v8  ;;  %v15813_v8 = vld [vmem:[#allocation5 + $0xf28] sm:$0xff]  }
 0xb83   :  { %12292 = vmatmul.mubr.bf16.vlgmr.msra.gmra.mrb[128].mxu0 %v6508_v63  ;;  %14128 = vmatprep.subr.bf16.mxu1 %v15794_v24  ;;  %v15815_v24 = vld [vmem:[#allocation5 + $0xfa0] sm:$0xff]   ;;  %v6196_v63 = vsel %vm2940_vm4, %v6114_v15, %v21927_v6  ;;  %v15839_v15 = vld [vmem:[#allocation5 + $0x1090] sm:$0xff]  }
 0xb84   :  { %14137 = vmatpush3.bf16.msra.mxu0 %v15793_v39  ;;  %12371 = vmatprep.mubr.bf16.mxu0 %v6513_v45  ;;  %v3432_v45 = vsel %vm2932_vm2, %v21896_v34, %v21933_v22  ;;  %v6128_v22 = vsel %vm22877_vm10, %v21923_v58, %v21944_v38 }
 0xb85   :  { %v21985_v27 = vpop.permute.xlu0 %3455  ;;  %14138 = vmatprep.subr.bf16.mxu0 %v15796_v28  ;;  %v21987_v57 = vpop.permute.xlu1 %6154  ;;  %v3522_v34 = vsel %vm2940_vm4, %v3432_v45, %v21929_v23  ;;  %v6355_v58 = vshll.u32 %v6128_v22, 16  ;;  %v15850_v22 = vld [vmem:[#allocation5 + $0x10e8] sm:$0xff]  }
 0xb86   :  { %14129 = vmatpush3.bf16.msra.mxu1 %v15795_v44  ;;  %v15822_v44 = vld [vmem:[#allocation5 + $0xff0] sm:$0xff]   ;;  %v3457_v6 = vsel %vm2898_vm13, %v21942_v40, %v21985_v27 }
 0xb87   :  { %14158 = vmatprep.subr.bf16.mxu1 %v15798_v4  ;;  %v6350_v4 = vshll.u32 %v6196_v63, 16 }
 0xb88   :  { %14139 = vmatpush3.bf16.msra.mxu0 %v15797_v12 }
 0xb89   :  { %12332 = vmatmul.mubr.bf16.vlgmr.msra.gmra.mrb[160].mxu1 %v6510_v48  ;;  %v21994_v3 = vpop.permute.xlu0 %6142  ;;  %14140 = vmatprep.subr.bf16.mxu0 %v15800_v62  ;;  %v6136_v36 = vpop.permute.xlu1 %6135  ;;  %v6512_v48 = vsel %vm20605_vm15, %v3522_v34, %v6350_v4  ;;  %v15846_v4 = vld [vmem:[#allocation5 + $0x10e0] sm:$0xff]  }
 0xb8a   :  { %14159 = vmatpush3.bf16.msra.mxu1 %v15799_v0  ;;  %12411 = vmatprep.mubr.bf16.mxu1 %v6515_v29  ;;  %v6137_v32 = vsel %vm2898_vm13, %v21953_v50, %v6136_v36  ;;  %v15826_v0 = vld [vmem:[#allocation5 + $0xff8] sm:$0xff]  }
 0xb8b   :  { %14160 = vmatprep.subr.bf16.mxu1 %v15802_v14  ;;  %v6205_v35 = vsel %vm1067_vm11, %v6137_v32, %v21971_v5  ;;  %v15828_v14 = vld [vmem:[#allocation5 + $0x1048] sm:$0xff]   ;;  %v15827_v29 = vld [vmem:[#allocation5 + $0xfb8] sm:$0xff]  }
 0xb8c   :  { %14141 = vmatpush3.bf16.msra.mxu0 %v15801_v49  ;;  %v6362_v37 = vshll.u32 %v6205_v35, 16  ;;  %v3534_v49 = vsel %vm1067_vm11, %v3457_v6, %v21969_v43  ;;  %v15845_v6 = vld [vmem:[#allocation5 + $0x1028] sm:$0xff]  }
 0xb8d   :  { %v21996_v1 = vpop.permute.xlu0 %3467  ;;  %14142 = vmatprep.subr.bf16.mxu0 %v15804_v11  ;;  %v21998_v7 = vpop.permute.xlu1 %3469  ;;  %v15830_v11 = vld [vmem:[#allocation5 + $0x10c0] sm:$0xff]  }
 0xb8e   :  { %14161 = vmatpush3.bf16.msra.mxu1 %v15803_v10  ;;  %v6517_v23 = vsel %vm20605_vm15, %v3534_v49, %v6362_v37  ;;  %v15829_v10 = vld [vmem:[#allocation5 + $0x1008] sm:$0xff]   ;;  %v15852_v49 = vld [vmem:[#allocation5 + $0x1078] sm:$0xff]  }
 0xb8f   :  { %14162 = vmatprep.subr.bf16.mxu1 %v15806_v53 }
 0xb90   :  { %14143 = vmatpush3.bf16.msra.mxu0 %v15805_v55  ;;  %v15832_v55 = vld [vmem:[#allocation5 + $0x1050] sm:$0xff]  }
 0xb91   :  { %14144 = vmatprep.subr.bf16.mxu0 %v15808_v41  ;;  %v6150_v42 = vpop.permute.xlu0 %6149  ;;  %v22003_v39 = vpop.permute.xlu1 %3474  ;;  %v15831_v41 = vld [vmem:[#allocation5 + $0x1080] sm:$0xff]  }
 0xb92   :  { %14163 = vmatpush3.bf16.msra.mxu1 %v15807_v46  ;;  %v6151_v62 = vsel %vm2916_vm0, %v21951_v31, %v6150_v42  ;;  %v3446_v46 = vsel %vm22878_vm6, %v21931_v21, %v21935_v33  ;;  %v15833_v42 = vld [vmem:[#allocation5 + $0x1010] sm:$0xff]   ;;  %v15836_v21 = vld [vmem:[#allocation5 + $0x1058] sm:$0xff]  }
 0xb93   :  { %14164 = vmatprep.subr.bf16.mxu1 %v15810_v18  ;;  %v6211_v27 = vsel %vm2924_vm12, %v6151_v62, %v21987_v57  ;;  %v3471_v18 = vsel %vm2916_vm0, %v21996_v1, %v21998_v7  ;;  %v15835_v7 = vld [vmem:[#allocation5 + $0x1088] sm:$0xff]   ;;  %v15848_v62 = vld [vmem:[#allocation5 + $0x1070] sm:$0xff]  }
 0xb94   :  { %14145 = vmatpush3.bf16.msra.mxu0 %v15809_v60  ;;  %v6366_v53 = vshll.u32 %v6211_v27, 16  ;;  %v15834_v60 = vld [vmem:[#allocation5 + $0x10c8] sm:$0xff]   ;;  %v6130_v27 = vrot.slane %v21388_v17, 4 }
 0xb95   :  { %14146 = vmatprep.subr.bf16.mxu0 %v15812_v16  ;;  %v22016_v12 = vpop.permute.xlu1 %6168  ;;  %v3542_v16 = vsel %vm2924_vm12, %v3471_v18, %v22003_v39 }
 0xb96   :  { %14165 = vmatpush3.bf16.msra.mxu1 %v15811_v52  ;;  %v22007_v28 = vpop.permute.xlu0 %3462  ;;  %v6514_v52 = vsel %vm20605_vm15, %v3446_v46, %v6355_v58 }
 0xb97   :  { %14166 = vmatprep.subr.bf16.mxu1 %v15814_v2  ;;  %v6519_v2 = vsel %vm20605_vm15, %v3542_v16, %v6366_v53  ;;  %v3449_v16 = vrot.slane %v22867_v47, 4 }
 0xb98   :  { %14147 = vmatpush3.bf16.msra.mxu0 %v15813_v8 }
 0xb99   :  { %14148 = vmatprep.subr.bf16.mxu0 %v15816_v26  ;;  %v22038_v38 = vpop.permute.xlu1 %3483  ;;  %v15838_v26 = vld [vmem:[#allocation5 + $0x10d0] sm:$0xff]   ;;  %v3530_v47 = vsel %vm2898_vm13, %v3449_v16, %v21942_v40  ;;  %v15884_v16 = vld [vmem:[#allocation5 + $0x1178] sm:$0xff]  }
 0xb9a   :  { %14167 = vmatpush3.bf16.msra.mxu1 %v15815_v24  ;;  %v22023_v30 = vpop.permute.xlu0 %6161  ;;  %v15837_v24 = vld [vmem:[#allocation5 + $0x1018] sm:$0xff]  }
 0xb9b   :  { %14168 = vmatprep.subr.bf16.mxu1 %v15818_v20  ;;  %v15840_v20 = vld [vmem:[#allocation5 + $0x1060] sm:$0xff]  }
 0xb9c   :  { %14149 = vmatpush3.bf16.msra.mxu0 %v15817_v25  ;;  %v15842_v25 = vld [vmem:[#allocation5 + $0x10d8] sm:$0xff]  }
 0xb9d   :  { %14150 = vmatprep.subr.bf16.mxu0 %v15820_v9  ;;  %v22054_v33 = vpop.permute.xlu1 %3488  ;;  %v15841_v9 = vld [vmem:[#allocation5 + $0x1020] sm:$0xff]  }
 0xb9e   :  { %14169 = vmatpush3.bf16.msra.mxu1 %v15819_v54  ;;  %v22040_v36 = vpop.permute.xlu0 %6156 }
 0xb9f   :  { %14170 = vmatprep.subr.bf16.mxu1 %v15822_v44  ;;  %v15844_v44 = vld [vmem:[#allocation5 + $0x1068] sm:$0xff]  }
 0xba0   :  { %14151 = vmatpush3.bf16.msra.mxu0 %v15821_v19  ;;  %v15843_v19 = vld [vmem:[#allocation5 + $0x1098] sm:$0xff]  }
 0xba1   :  { %14180 = vmatprep.subr.bf16.mxu0 %v15824_v51  ;;  %v22058_v32 = vpop.permute.xlu1 %6175 }
 0xba2   :  { %14171 = vmatpush3.bf16.msra.mxu1 %v15823_v61  ;;  %v22056_v8 = vpop.permute.xlu0 %3481 }
 0xba3   :  { %12372 = vmatmul.mubr.bf16.vlgmr.msra.gmra.mrb[132].mxu0 %v6512_v48  ;;  %14172 = vmatprep.subr.bf16.mxu1 %v15826_v0 }
 0xba4   :  { %14181 = vmatpush3.bf16.msra.mxu0 %v15825_v56  ;;  %12451 = vmatprep.mubr.bf16.mxu0 %v6517_v23  ;;  %v15847_v56 = vld [vmem:[#allocation5 + $0x10a0] sm:$0xff]   ;;  %v15854_v23 = vld [vmem:[#allocation5 + $0x10f0] sm:$0xff]  }
 0xba5   :  { %14182 = vmatprep.subr.bf16.mxu0 %v15828_v14  ;;  %v6164_v0 = vpop.permute.xlu1 %6163  ;;  %v15849_v14 = vld [vmem:[#allocation5 + $0x1030] sm:$0xff]  }
 0xba6   :  { %14173 = vmatpush3.bf16.msra.mxu1 %v15827_v29  ;;  %v22060_v54 = vpop.permute.xlu0 %3476  ;;  %v6165_v48 = vsel %vm2932_vm2, %v22023_v30, %v6164_v0  ;;  %v6202_v29 = vsel %vm2898_vm13, %v6130_v27, %v21953_v50  ;;  %v3485_v50 = vsel %vm2932_vm2, %v22056_v8, %v22038_v38  ;;  %v3464_v38 = vsel %vm1067_vm11, %v21969_v43, %v22007_v28  ;;  %v15861_v28 = vld [vmem:[#allocation5 + $0x1108] sm:$0xff]   ;;  %vm22880_vm13 = vmmov %vm22855_vm1  ;;  %v15871_v27 = vld [vmem:[#allocation5 + $0x1190] sm:$0xff]  }
 0xba7   :  { %14202 = vmatprep.subr.bf16.mxu1 %v15830_v11  ;;  %v6217_v11 = vsel %vm2940_vm4, %v6165_v48, %v22016_v12  ;;  %v15867_v0 = vld [vmem:[#allocation5 + $0x1188] sm:$0xff]   ;;  %v15874_v48 = vld [vmem:[#allocation5 + $0x11d8] sm:$0xff]  }
 0xba8   :  { %14183 = vmatpush3.bf16.msra.mxu0 %v15829_v10  ;;  %v15853_v10 = vld [vmem:[#allocation5 + $0x1038] sm:$0xff]  }
 0xba9   :  { %12412 = vmatmul.mubr.bf16.vlgmr.msra.gmra.mrb[164].mxu1 %v6514_v52  ;;  %14184 = vmatprep.subr.bf16.mxu0 %v15832_v55  ;;  %v15856_v55 = vld [vmem:[#allocation5 + $0x1140] sm:$0xff]   ;;  %v6370_v52 = vshll.u32 %v6217_v11, 16  ;;  %v15877_v11 = vld [vmem:[#allocation5 + $0x1128] sm:$0xff]  }
 0xbaa   :  { %14203 = vmatpush3.bf16.msra.mxu1 %v15831_v41  ;;  %12491 = vmatprep.mubr.bf16.mxu1 %v6519_v2  ;;  %v22063_v34 = vpop.permute.xlu0 %6170  ;;  %v6360_v41 = vshll.u32 %v6202_v29, 16  ;;  %v15875_v29 = vld [vmem:[#allocation5 + $0x1198] sm:$0xff]  }
 0xbab   :  { %14204 = vmatprep.subr.bf16.mxu1 %v15834_v60  ;;  %v15855_v60 = vld [vmem:[#allocation5 + $0x10b0] sm:$0xff]  }
 0xbac   :  { %14185 = vmatpush3.bf16.msra.mxu0 %v15833_v42  ;;  %v22076_v42 = vpop.permute.xlu1 %3490 }
 0xbad   :  { %14186 = vmatprep.subr.bf16.mxu0 %v15836_v21  ;;  %v15858_v21 = vld [vmem:[#allocation5 + $0x10f8] sm:$0xff]  }
 0xbae   :  { %14205 = vmatpush3.bf16.msra.mxu1 %v15835_v7  ;;  %v6178_v53 = vpop.permute.xlu0 %6177  ;;  %v6144_v7 = vsel %vm1067_vm11, %v21971_v5, %v21994_v3  ;;  %v3550_v5 = vsel %vm2940_vm4, %v3485_v50, %v22054_v33  ;;  %v15859_v3 = vld [vmem:[#allocation5 + $0x10b8] sm:$0xff]   ;;  %vm22879_vm11 = vmmov %vm22855_vm1  ;;  %v6158_v50 = vsel %vm2924_vm12, %v21987_v57, %v22040_v36  ;;  %v15887_v36 = vld [vmem:[#allocation5 + $0x11b0] sm:$0xff]  }
 0xbaf   :  { %14206 = vmatprep.subr.bf16.mxu1 %v15838_v26  ;;  %v6521_v40 = vsel %vm20605_vm15, %v3550_v5, %v6370_v52  ;;  %v6179_v43 = vsel %vm22879_vm11, %v22058_v32, %v6178_v53  ;;  %v15879_v53 = vld [vmem:[#allocation5 + $0x11a0] sm:$0xff]  }
 0xbb0   :  { %14187 = vmatpush3.bf16.msra.mxu0 %v15837_v24  ;;  %v15857_v24 = vld [vmem:[#allocation5 + $0x1100] sm:$0xff]  }
 0xbb1   :  { %v13888_v63 = vpop.f32.mrb[108].mxu0  ;;  %14188 = vmatprep.subr.bf16.mxu0 %v15840_v20  ;;  %v15860_v20 = vld [vmem:[#allocation5 + $0x1148] sm:$0xff]  }
 0xbb2   :  { %14207 = vmatpush3.bf16.msra.mxu1 %v15839_v15  ;;  %v13889_v35 = vpop.f32.mrb[109].mxu0  ;;  %v6516_v15 = vsel %vm20605_vm15, %v3530_v47, %v6360_v41  ;;  %v15885_v47 = vld [vmem:[#allocation5 + $0x1138] sm:$0xff]  }
 0xbb3   :  { %v13890_v51 = vadd.f32 %v13889_v35, %v13888_v63  ;;  %v13891_v45 = vpop.f32.mrb[110].mxu0  ;;  %14208 = vmatprep.subr.bf16.mxu1 %v15842_v25  ;;  %v6208_v25 = vsel %vm2916_vm0, %v6144_v7, %v21951_v31  ;;  %v15862_v63 = vld [vmem:[#allocation5 + $0x11c0] sm:$0xff]   ;;  %v3498_v35 = vpop.permute.xlu1 %3497  ;;  %v15864_v31 = vld [vmem:[#allocation5 + $0x1150] sm:$0xff]   ;;  %v3478_v7 = vsel %vm2924_vm12, %v22003_v39, %v22060_v54  ;;  %v6172_v39 = vsel %vm2940_vm4, %v22016_v12, %v22063_v34 }
 0xbb4   :  { %14189 = vmatpush3.bf16.msra.mxu0 %v15841_v9  ;;  %v13892_v61 = vpop.f32.mrb[111].mxu0  ;;  %v22094_v9 = vpop.permute.xlu0 %3495  ;;  %v15863_v45 = vld [vmem:[#allocation5 + $0x1180] sm:$0xff]  }
 0xbb5   :  { %v11894_v37 = vadd.f32 %v13890_v51, %v21865_v13  ;;  %14190 = vmatprep.subr.bf16.mxu0 %v15844_v44  ;;  %v15851_v13 = vld [vmem:[#allocation5 + $0x10a8] sm:$0xff]   ;;  %v3538_v44 = vsel %vm2916_vm0, %v3464_v38, %v21996_v1  ;;  %v3499_v51 = vsel %vm22880_vm13, %v22094_v9, %v3498_v35  ;;  %vm22881_vm0 = vmmov %vm22855_vm1 }
 0xbb6   :  { %14209 = vmatpush3.bf16.msra.mxu1 %v15843_v19  ;;  %v6364_v19 = vshll.u32 %v6208_v25, 16  ;;  %v15866_v61 = vld [vmem:[#allocation5 + $0x11c8] sm:$0xff]   ;;  %vm22882_vm12 = vmmov %vm22881_vm0 }
 0xbb7   :  { %14210 = vmatprep.subr.bf16.mxu1 %v15846_v4  ;;  %v6375_v4 = vshll.u32 %v6179_v43, 16 }
 0xbb8   :  { %14191 = vmatpush3.bf16.msra.mxu0 %v15845_v6  ;;  %v6518_v6 = vsel %vm20605_vm15, %v3538_v44, %v6364_v19 }
 0xbb9   :  { %14192 = vmatprep.subr.bf16.mxu0 %v15848_v62  ;;  %v6523_v1 = vsel %vm20605_vm15, %v3499_v51, %v6375_v4  ;;  %v15868_v62 = vld [vmem:[#allocation5 + $0x1158] sm:$0xff]  }
 0xbba   :  { %14211 = vmatpush3.bf16.msra.mxu1 %v15847_v56  ;;  %v15870_v56 = vld [vmem:[#allocation5 + $0x11d0] sm:$0xff]  }
 0xbbb   :  { %14212 = vmatprep.subr.bf16.mxu1 %v15850_v22  ;;  %v15869_v22 = vld [vmem:[#allocation5 + $0x1118] sm:$0xff]  }
 0xbbc   :  { %14193 = vmatpush3.bf16.msra.mxu0 %v15849_v14  ;;  %v13910_v58 = vpop.f32.mrb[140].mxu1  ;;  %v15872_v14 = vld [vmem:[#allocation5 + $0x1160] sm:$0xff]  }
 0xbbd   :  { %v13911_v17 = vpop.f32.mrb[141].mxu1  ;;  %14194 = vmatprep.subr.bf16.mxu0 %v15852_v49  ;;  %v15873_v49 = vld [vmem:[#allocation5 + $0x1120] sm:$0xff]  }
 0xbbe   :  { %v13912_v46 = vadd.f32 %v13911_v17, %v13910_v58  ;;  %14213 = vmatpush3.bf16.msra.mxu1 %v15851_v13  ;;  %v13913_v18 = vpop.f32.mrb[142].mxu1  ;;  %v15876_v13 = vld [vmem:[#allocation5 + $0x1168] sm:$0xff]   ;;  %v15880_v58 = vld [vmem:[#allocation5 + $0x1170] sm:$0xff]  }
 0xbbf   :  { %v13914_v2 = vpop.f32.mrb[143].mxu1  ;;  %14214 = vmatprep.subr.bf16.mxu1 %v15854_v23  ;;  %v15878_v23 = vld [vmem:[#allocation5 + $0x11e0] sm:$0xff]   ;;  %v15881_v18 = vld [vmem:[#allocation5 + $0x1130] sm:$0xff]  }
 0xbc0   :  { %v22081_v26 = vadd.f32 %v13912_v46, %v11894_v37  ;;  %14195 = vmatpush3.bf16.msra.mxu0 %v15853_v10  ;;  %v15865_v37 = vld [vmem:[#allocation5 + $0x1110] sm:$0xff]   ;;  %v15883_v2 = vld [vmem:[#allocation5 + $0x11a8] sm:$0xff]  }
 0xbc1   :  { %14224 = vmatprep.subr.bf16.mxu0 %v15856_v55  ;;  %v15882_v55 = vld [vmem:[#allocation5 + $0x11e8] sm:$0xff]  }
 0xbc2   :  { %14215 = vmatpush3.bf16.msra.mxu1 %v15855_v60 }
 0xbc3   :  { %12452 = vmatmul.mubr.bf16.vlgmr.msra.gmra.mrb[136].mxu0 %v6516_v15  ;;  %14216 = vmatprep.subr.bf16.mxu1 %v15858_v21  ;;  %v15886_v21 = vld [vmem:[#allocation5 + $0x11f0] sm:$0xff]  }
 0xbc4   :  { %14225 = vmatpush3.bf16.msra.mxu0 %v15857_v24  ;;  %12531 = vmatprep.mubr.bf16.mxu0 %v6521_v40  ;;  %v15889_v40 = vld [vmem:[#allocation5 + $0x11b8] sm:$0xff]  }
 0xbc5   :  { %14226 = vmatprep.subr.bf16.mxu0 %v15860_v20  ;;  %v6214_v20 = vsel %vm2932_vm2, %v6158_v50, %v22023_v30 }
 0xbc6   :  { %14217 = vmatpush3.bf16.msra.mxu1 %v15859_v3  ;;  %v15888_v3 = vld [vmem:[#allocation5 + $0x11f8] sm:$0xff]   ;;  %v6368_v25 = vshll.u32 %v6214_v20, 16 }
 0xbc7   :  { %14246 = vmatprep.subr.bf16.mxu1 %v15862_v63  ;;  %v6220_v63 = vsel %vm22881_vm0, %v6172_v39, %v22058_v32 }
 0xbc8   :  { %14227 = vmatpush3.bf16.msra.mxu0 %v15861_v28  ;;  %v6372_v12 = vshll.u32 %v6220_v63, 16 }
 0xbc9   :  { %12492 = vmatmul.mubr.bf16.vlgmr.msra.gmra.mrb[168].mxu1 %v6518_v6  ;;  %14228 = vmatprep.subr.bf16.mxu0 %v15864_v31 }
 0xbca   :  { %14247 = vmatpush3.bf16.msra.mxu1 %v15863_v45  ;;  %12571 = vmatprep.mubr.bf16.mxu1 %v6523_v1 }
 0xbcb   :  { %14248 = vmatprep.subr.bf16.mxu1 %v15866_v61 }
 0xbcc   :  { %14229 = vmatpush3.bf16.msra.mxu0 %v15865_v37 }
 0xbcd   :  { %14230 = vmatprep.subr.bf16.mxu0 %v15868_v62 }
 0xbce   :  { %14249 = vmatpush3.bf16.msra.mxu1 %v15867_v0 }
 0xbcf   :  { %14250 = vmatprep.subr.bf16.mxu1 %v15870_v56 }
 0xbd0   :  { %14231 = vmatpush3.bf16.msra.mxu0 %v15869_v22 }
 0xbd1   :  { %14232 = vmatprep.subr.bf16.mxu0 %v15872_v14 }
 0xbd2   :  { %14251 = vmatpush3.bf16.msra.mxu1 %v15871_v27 }
 0xbd3   :  { %14252 = vmatprep.subr.bf16.mxu1 %v15874_v48 }
 0xbd4   :  { %14233 = vmatpush3.bf16.msra.mxu0 %v15873_v49  ;;  %v15890_v49 = vld [vmem:[%s22189_s8] sm:$0xff]  }
 0xbd5   :  { %14234 = vmatprep.subr.bf16.mxu0 %v15876_v13  ;;  %v16170_v13 = vmov 0.0  }
 0xbd6   :  { %14253 = vmatpush3.bf16.msra.mxu1 %v15875_v29  ;;  %v13932_v10 = vpop.f32.mrb[112].mxu0  ;;  %v15891_v29 = vld [vmem:[%s22189_s8 + $0x8] sm:$0xff]  }
 0xbd7   :  { %v13933_v17 = vpop.f32.mrb[113].mxu0  ;;  %14254 = vmatprep.subr.bf16.mxu1 %v15878_v23  ;;  %v15892_v23 = vld [vmem:[%s22189_s8 + $0x10] sm:$0xff]  }
 0xbd8   :  { %v13934_v41 = vadd.f32 %v13933_v17, %v13932_v10  ;;  %14235 = vmatpush3.bf16.msra.mxu0 %v15877_v11  ;;  %v13935_v46 = vpop.f32.mrb[114].mxu0  ;;  %v15893_v11 = vld [vmem:[%s22189_s8 + $0x18] sm:$0xff]  }
 0xbd9   :  { %v13936_v60 = vpop.f32.mrb[115].mxu0  ;;  %14236 = vmatprep.subr.bf16.mxu0 %v15880_v58  ;;  %v15894_v46 = vld [vmem:[%s22189_s8 + $0x20] sm:$0xff]  }
 0xbda   :  { %v11974_v52 = vadd.f32 %v13934_v41, %v22081_v26  ;;  %14255 = vmatpush3.bf16.msra.mxu1 %v15879_v53  ;;  %v3546_v26 = vsel %vm2932_vm2, %v3478_v7, %v22056_v8  ;;  %v3492_v8 = vsel %vm2940_vm4, %v22054_v33, %v22076_v42  ;;  %v15895_v60 = vld [vmem:[%s22189_s8 + $0x28] sm:$0xff]   ;;  %v15896_v7 = vld [vmem:[%s22189_s8 + $0x30] sm:$0xff]  }
 0xbdb   :  { %14256 = vmatprep.subr.bf16.mxu1 %v15882_v55  ;;  %v6520_v30 = vsel %vm20605_vm15, %v3546_v26, %v6368_v25  ;;  %v3554_v43 = vsel %vm22882_vm12, %v3492_v8, %v22094_v9 }
 0xbdc   :  { %14237 = vmatpush3.bf16.msra.mxu0 %v15881_v18  ;;  %v13954_v24 = vpop.f32.mrb[144].mxu1  ;;  %v6522_v34 = vsel %vm20605_vm15, %v3554_v43, %v6372_v12  ;;  %vm16171_vm15 = vmmov 0  }
 0xbdd   :  { %v13955_v38 = vpop.f32.mrb[145].mxu1  ;;  %14238 = vmatprep.subr.bf16.mxu0 %v15884_v16 }
 0xbde   :  { %v13956_v15 = vadd.f32 %v13955_v38, %v13954_v24  ;;  %14257 = vmatpush3.bf16.msra.mxu1 %v15883_v2  ;;  %v13957_v57 = vpop.f32.mrb[146].mxu1  ;;  %v15897_v24 = vld [vmem:[%s22189_s8 + $0x38] sm:$0xff]   ;;  %s16172_s8 = smov [#allocation11]  }
 0xbdf   :  { %v13958_v5 = vpop.f32.mrb[147].mxu1  ;;  %14258 = vmatprep.subr.bf16.mxu1 %v15886_v21  ;;  %s12711_s9 = sshll.u32 %s16172_s8, 4  ;;  %s12712_s9 = int_to_ptr.vmem [resolvable:$true] %s12711_s9 }
 0xbe0   :  { %v12014_v54 = vadd.f32 %v13956_v15, %v11974_v52  ;;  %14239 = vmatpush3.bf16.msra.mxu0 %v15885_v47  ;;  %s16085_s28 = scalar_lea.vmem %s12712_s9, 32  ;;  %p16090_p5 = scmp.lt.s32.totalorder %s12712_s9, %s12712_s9 }
 0xbe1   :  { %14277 = vmatprep.subr.bf16.mxu0 %v16170_v13  ;;  %p16086_p4 = scmp.ne.s32.totalorder %s12712_s9, %s16085_s28  ;;  %p16091_p6 = scmp.lt.s32.totalorder %s16085_s28, %s16085_s28 }
 0xbe2   :  { %14259 = vmatpush3.bf16.msra.mxu1 %v15887_v36 }
 0xbe3   :  { %12532 = vmatmul.mubr.bf16.vlgmr.msra.gmra.mrb[140].mxu0 %v6520_v30  ;;  %14260 = vmatprep.subr.bf16.mxu1 %v15888_v3  ;;  %p16092_p7 = por %p16091_p6, %p16090_p5 }
 0xbe4   :  { %14278 = vmatpush3.bf16.msra.mxu0 %v15890_v49  ;;  %14293 = vmatprep.mubr.msk.bf16.mxu0 %vm16171_vm15, %v16170_v13 }
 0xbe5   :  { %14279 = vmatprep.subr.bf16.mxu0 %v16170_v13  ;;  %p16093_p8 = pnand %p16092_p7, %p16086_p4 }
 0xbe6   :  { %14261 = vmatpush3.bf16.msra.mxu1 %v15889_v40 }
 0xbe8   :  { %14280 = vmatpush3.bf16.msra.mxu0 %v15891_v29 }
 0xbe9   :  { %12572 = vmatmul.mubr.bf16.vlgmr.msra.gmra.mrb[172].mxu1 %v6522_v34  ;;  %14281 = vmatprep.subr.bf16.mxu0 %v16170_v13 }
 0xbec   :  { %14282 = vmatpush3.bf16.msra.mxu0 %v15892_v23 }
 0xbed   :  { %14283 = vmatprep.subr.bf16.mxu0 %v16170_v13 }
 0xbf0   :  { %14284 = vmatpush3.bf16.msra.mxu0 %v15893_v11 }
 0xbf1   :  { %14285 = vmatprep.subr.bf16.mxu0 %v16170_v13 }
 0xbf4   :  { %14286 = vmatpush3.bf16.msra.mxu0 %v15894_v46 }
 0xbf5   :  { %14287 = vmatprep.subr.bf16.mxu0 %v16170_v13 }
 0xbf6   :  { %v13976_v28 = vpop.f32.mrb[116].mxu0 }
 0xbf7   :  { %v13977_v44 = vpop.f32.mrb[117].mxu0 }
 0xbf8   :  { %v13978_v35 = vadd.f32 %v13977_v44, %v13976_v28  ;;  %v13979_v31 = vpop.f32.mrb[118].mxu0  ;;  %14288 = vmatpush3.bf16.msra.mxu0 %v15895_v60 }
 0xbf9   :  { %v13980_v32 = vpop.f32.mrb[119].mxu0  ;;  %14289 = vmatprep.subr.bf16.mxu0 %v16170_v13 }
 0xbfa   :  { %v12054_v19 = vadd.f32 %v13978_v35, %v12014_v54 }
 0xbfc   :  { %v13998_v51 = vpop.f32.mrb[148].mxu1  ;;  %14290 = vmatpush3.bf16.msra.mxu0 %v15896_v7 }
 0xbfd   :  { %v13999_v45 = vpop.f32.mrb[149].mxu1  ;;  %14291 = vmatprep.subr.bf16.mxu0 %v16170_v13 }
 0xbfe   :  { %v14000_v4 = vadd.f32 %v13999_v45, %v13998_v51  ;;  %v14001_v61 = vpop.f32.mrb[150].mxu1 }
 0xbff   :  { %v14002_v33 = vpop.f32.mrb[151].mxu1 }
 0xc00   :  { %v12094_v42 = vadd.f32 %v14000_v4, %v12054_v19  ;;  %14292 = vmatpush3.bf16.msra.mxu0 %v15897_v24 }
 0xc16   :  { %v14020_v6 = vpop.f32.mrb[120].mxu0 }
 0xc17   :  { %v14021_v9 = vpop.f32.mrb[121].mxu0 }
 0xc18   :  { %v14022_v37 = vadd.f32 %v14021_v9, %v14020_v6  ;;  %v14023_v1 = vpop.f32.mrb[122].mxu0 }
 0xc19   :  { %v14024_v62 = vpop.f32.mrb[123].mxu0 }
 0xc1a   :  { %v12134_v59 = vadd.f32 %v14022_v37, %v12094_v42 }
 0xc1c   :  { %v14042_v0 = vpop.f32.mrb[152].mxu1 }
 0xc1d   :  { %v14043_v56 = vpop.f32.mrb[153].mxu1 }
 0xc1e   :  { %v14044_v22 = vadd.f32 %v14043_v56, %v14042_v0  ;;  %v14045_v14 = vpop.f32.mrb[154].mxu1 }
 0xc1f   :  { %v14046_v27 = vpop.f32.mrb[155].mxu1 }
 0xc20   :  { %v12174_v48 = vadd.f32 %v14044_v22, %v12134_v59 }
 0xc36   :  { %v14064_v58 = vpop.f32.mrb[124].mxu0 }
 0xc37   :  { %v14065_v10 = vpop.f32.mrb[125].mxu0 }
 0xc38   :  { %v14066_v53 = vadd.f32 %v14065_v10, %v14064_v58  ;;  %v14067_v17 = vpop.f32.mrb[126].mxu0 }
 0xc39   :  { %v14068_v55 = vpop.f32.mrb[127].mxu0 }
 0xc3a   :  { %v12214_v41 = vadd.f32 %v14066_v53, %v12174_v48 }
 0xc3c   :  { %v14086_v18 = vpop.f32.mrb[156].mxu1 }
 0xc3d   :  { %v14087_v16 = vpop.f32.mrb[157].mxu1 }
 0xc3e   :  { %v14088_v50 = vadd.f32 %v14087_v16, %v14086_v18  ;;  %v14089_v52 = vpop.f32.mrb[158].mxu1 }
 0xc3f   :  { %v14090_v2 = vpop.f32.mrb[159].mxu1 }
 0xc40   :  { %v12254_v21 = vadd.f32 %v14088_v50, %v12214_v41 }
 0xc56   :  { %v14108_v47 = vpop.f32.mrb[128].mxu0 }
 0xc57   :  { %v14109_v20 = vpop.f32.mrb[129].mxu0 }
 0xc58   :  { %v14110_v38 = vadd.f32 %v14109_v20, %v14108_v47  ;;  %v14111_v15 = vpop.f32.mrb[130].mxu0 }
 0xc59   :  { %v14112_v57 = vpop.f32.mrb[131].mxu0 }
 0xc5a   :  { %v12294_v36 = vadd.f32 %v14110_v38, %v12254_v21 }
 0xc5c   :  { %v14130_v26 = vpop.f32.mrb[160].mxu1 }
 0xc5d   :  { %v14131_v5 = vpop.f32.mrb[161].mxu1 }
 0xc5e   :  { %v14132_v3 = vadd.f32 %v14131_v5, %v14130_v26  ;;  %v14133_v25 = vpop.f32.mrb[162].mxu1 }
 0xc5f   :  { %v14134_v39 = vpop.f32.mrb[163].mxu1 }
 0xc60   :  { %v12334_v54 = vadd.f32 %v14132_v3, %v12294_v36 }
 0xc76   :  { %v14152_v30 = vpop.f32.mrb[132].mxu0 }
 0xc77   :  { %v14153_v40 = vpop.f32.mrb[133].mxu0 }
 0xc78   :  { %v14154_v63 = vadd.f32 %v14153_v40, %v14152_v30  ;;  %v14155_v8 = vpop.f32.mrb[134].mxu0 }
 0xc79   :  { %v14156_v43 = vpop.f32.mrb[135].mxu0 }
 0xc7a   :  { %v12374_v12 = vadd.f32 %v14154_v63, %v12334_v54 }
 0xc7c   :  { %v14174_v34 = vpop.f32.mrb[164].mxu1 }
 0xc7d   :  { %v14175_v28 = vpop.f32.mrb[165].mxu1 }
 0xc7e   :  { %v14176_v44 = vadd.f32 %v14175_v28, %v14174_v34  ;;  %v14177_v35 = vpop.f32.mrb[166].mxu1 }
 0xc7f   :  { %v14178_v31 = vpop.f32.mrb[167].mxu1 }
 0xc80   :  { %v12414_v32 = vadd.f32 %v14176_v44, %v12374_v12 }
 0xc96   :  { %v14196_v19 = vpop.f32.mrb[136].mxu0 }
 0xc97   :  { %v14197_v51 = vpop.f32.mrb[137].mxu0 }
 0xc98   :  { %v14198_v45 = vadd.f32 %v14197_v51, %v14196_v19  ;;  %v14199_v4 = vpop.f32.mrb[138].mxu0 }
 0xc99   :  { %v14200_v61 = vpop.f32.mrb[139].mxu0 }
 0xc9a   :  { %v12454_v33 = vadd.f32 %v14198_v45, %v12414_v32 }
 0xc9c   :  { %v14218_v42 = vpop.f32.mrb[168].mxu1 }
 0xc9d   :  { %v14219_v6 = vpop.f32.mrb[169].mxu1 }
 0xc9e   :  { %v14220_v9 = vadd.f32 %v14219_v6, %v14218_v42  ;;  %v14221_v37 = vpop.f32.mrb[170].mxu1 }
 0xc9f   :  { %v14222_v1 = vpop.f32.mrb[171].mxu1 }
 0xca0   :  { %v12494_v62 = vadd.f32 %v14220_v9, %v12454_v33 }
 0xcb6   :  { %v14240_v59 = vpop.f32.mrb[140].mxu0 }
 0xcb7   :  { %v14241_v0 = vpop.f32.mrb[141].mxu0 }
 0xcb8   :  { %v14242_v56 = vadd.f32 %v14241_v0, %v14240_v59  ;;  %v14243_v22 = vpop.f32.mrb[142].mxu0 }
 0xcb9   :  { %v14244_v14 = vpop.f32.mrb[143].mxu0 }
 0xcba   :  { %v12534_v27 = vadd.f32 %v14242_v56, %v12494_v62 }
 0xcbc   :  { %v14262_v48 = vpop.f32.mrb[172].mxu1 }
 0xcbd   :  { %v14263_v49 = vpop.f32.mrb[173].mxu1 }
 0xcbe   :  { %v14264_v13 = vadd.f32 %v14263_v49, %v14262_v48  ;;  %v14265_v29 = vpop.f32.mrb[174].mxu1 }
 0xcbf   :  { %v14266_v23 = vpop.f32.mrb[175].mxu1 }
 0xcc0   :  { %v12574_v11 = vadd.f32 %v14264_v13, %v12534_v27 }
 0xcc2   :  { %v12579_v58 = vmax.f32 %v12574_v11, 0.0 }
 0xcc4   :  { %v12581_v10 = vpack.c.bf16 %v12579_v58, %v12579_v58  ;;  %12580 = vst [vmem:[#allocation11] sm:$0x3] %v12579_v58 }
 0xcc6   :  { %14294 = vmatmul.mubr.bf16.vlgmr.msra.gmra.mrb[144].mxu0 %v12581_v10 }
 0xcc7   :  { %16096 = shalt.err (!%p16093_p8)
}
 0xcc8   :  { %s16097_s1 = scalar_lea.hbm %s22192_s11, 32 }
 0xcc9   :  { %p16098_p9 = scmp.ne.s32.totalorder %s22192_s11, %s16097_s1  ;;  %p16101_p10 = scmp.lt.u32.totalorder %s16097_s1, %s22192_s11 }
 0xccb   :  { %p16103_p11 = pnand %p16101_p10, %p16098_p9 }
 0xccd   :  { %16106 = shalt.err (!%p16103_p11)
}
 0xcce   :  { %12714 = dma.vmem_to_hbm [thread:$0]  %s12712_s9, 32, %s22192_s11, [#allocation12]   ;;  %v13467_v53 = vld [vmem:[#allocation8] ss:$0 sm:$0xff]  ;;  %vm12693_vm2 = vcmask 74752  }
 0xccf   :  { %s16173_s2 = smov [#allocation10]  }
 0xcd0   :  { %s12701_s27 = sshll.u32 %s16173_s2, 4  ;;  %s12702_s27 = int_to_ptr.vmem [resolvable:$true] %s12701_s27 }
 0xcd1   :  { %s16107_s15 = scalar_lea.vmem %s12702_s27, 32  ;;  %p16112_p13 = scmp.lt.s32.totalorder %s12702_s27, %s12702_s27 }
 0xcd2   :  { %p16108_p12 = scmp.ne.s32.totalorder %s12702_s27, %s16107_s15  ;;  %p16113_p0 = scmp.lt.s32.totalorder %s16107_s15, %s16107_s15 }
 0xcd4   :  { %p16114_p1 = por %p16113_p0, %p16112_p13 }
 0xcd6   :  { %p16115_p2 = pnand %p16114_p1, %p16108_p12 }
 0xd99   :  { %v12687_v17 = vpop.f32.mrb[144].mxu0 }
 0xd9a   :  { %v12688_v55 = vadd.f32 %v13467_v53, %v12687_v17  ;;  %v14295_v41 = vpop.f32.mrb[145].mxu0 }
 0xd9b   :  { %v12690_v46 = vpop.f32.mrb[146].mxu0 }
 0xd9c   :  { %v14296_v18 = vpop.f32.mrb[147].mxu0  ;;  %12694 = vst.msk [vmem:[#allocation10] sm:$0x3] %vm12693_vm2, %v12688_v55 }
 0xd9d   :  { %16118 = shalt.err (!%p16115_p2)
}
 0xd9e   :  { %s16119_s23 = scalar_lea.hbm %s22191_s10, 32 }
 0xd9f   :  { %p16120_p3 = scmp.ne.s32.totalorder %s22191_s10, %s16119_s23  ;;  %p16123_p4 = scmp.lt.u32.totalorder %s16119_s23, %s22191_s10 }
 0xda1   :  { %p16125_p5 = pnand %p16123_p4, %p16120_p3 }
 0xda3   :  { %16128 = shalt.err (!%p16125_p5)
}
 0xda4   :  { %12704 = dma.vmem_to_hbm [thread:$0]  %s12702_s27, 32, %s22191_s10, [#allocation4]  }
 0xda5   :  { %16135 = dma.done.wait [#allocation4], 32  }
 0xda6   :  { %16136 = vsyncadd [#allocation4], 4294967264 }
 0xda7   :  { %16137 = dma.done.wait [#allocation12], 32  }
 0xda8   :  { %16138 = vsyncadd [#allocation12], 4294967264 }
 0xda9   :  { %12721 = vsyncpa [#allocation3], 1 }
 0xdaa   :  { %12722 = vsyncpa [#allocation6], 1 }
 0xdab   :  { %12723 = vsyncpa [#allocation9], 1 }
 0xdac   :  { %12724 = vsyncpa [#allocation4], 1 }
 0xdad   :  { %12725 = vsyncpa [#allocation12], 1 }

</bundles_post_ra>
